<compile_context>
chip_gen: v7x
topology: tpu7x:2x2x1
jax: 0.10.0
libtpu: 0.0.40
codegen_flags: <defaults>
</compile_context>

<pallas_src>
import math
import functools

import jax
import jax.numpy as jnp
from jax.experimental import pallas as pl
from jax.experimental.pallas import tpu as pltpu

EPS = 1e-5                       # LayerNorm eps (PyTorch default)
MXU_BF16 = True                  # bf16 MXU operands (v6e/v7x native); elementwise math stays f32
_MXU_DTYPE = jnp.bfloat16 if MXU_BF16 else jnp.float32

_CP1 = pltpu.CompilerParams(dimension_semantics=("parallel",))
_CP2 = pltpu.CompilerParams(dimension_semantics=("parallel", "parallel"))


# ----------------------------- small helpers --------------------------------

def _round_up(x, m):
    return ((x + m - 1) // m) * m


def _row_tile(m, max_tile=512):
    tm = min(max_tile, _round_up(m, 8))
    return tm, _round_up(m, tm)


def _pad_rows(x, rows):
    if x.shape[0] == rows:
        return x
    pad = [(0, rows - x.shape[0])] + [(0, 0)] * (x.ndim - 1)
    return jnp.pad(x, pad)


def _maybe_bf16(w):
    return w.astype(jnp.bfloat16) if MXU_BF16 else w


def _dot(a, b):
    return jnp.dot(a.astype(_MXU_DTYPE), b.astype(_MXU_DTYPE),
                   preferred_element_type=jnp.float32)


def _layernorm(y, g, b):
    mu = jnp.mean(y, axis=-1, keepdims=True)
    d = y - mu
    var = jnp.mean(d * d, axis=-1, keepdims=True)
    return d * jax.lax.rsqrt(var + EPS) * g + b


# ----------------------------- Pallas kernels --------------------------------

def _linear_kernel(x_ref, w_ref, b_ref, o_ref):
    o_ref[...] = _dot(x_ref[...], w_ref[...]) + b_ref[...]


def _self_attn_kernel(t_ref, p_ref, wqk_ref, bqk_ref, wv_ref, bv_ref,
                      wo_ref, bo_ref, g_ref, be_ref, o_ref, *, n_heads):
    # One fused pass: q/k/v projection, per-head attention over the C control points,
    # out_proj (accumulated per head), residual add, LayerNorm2.
    TB, C, D = t_ref.shape
    H = n_heads
    Dh = D // H
    scale = 1.0 / math.sqrt(Dh)
    R = TB * C

    tgt3 = t_ref[...]
    xqk = (tgt3 + p_ref[...]).reshape(R, D)       # q = k = tgt + query_pos
    xv = tgt3.reshape(R, D)                       # v = tgt (also the residual)

    qk = _dot(xqk, wqk_ref[...]) + bqk_ref[...]   # (R, 2D)
    v = _dot(xv, wv_ref[...]) + bv_ref[...]       # (R, D)

    q3 = (qk[:, :D] * scale).reshape(TB, C, D)
    k3 = qk[:, D:].reshape(TB, C, D)
    v3 = v.reshape(TB, C, D)

    wo = wo_ref[...]
    acc = xv + bo_ref[...]                        # residual + out_proj bias
    for h in range(H):
        sl = slice(h * Dh, (h + 1) * Dh)
        s = jnp.einsum('gqd,gkd->gqk',
                       q3[..., sl].astype(_MXU_DTYPE),
                       k3[..., sl].astype(_MXU_DTYPE),
                       preferred_element_type=jnp.float32)
        m = jnp.max(s, axis=-1, keepdims=True)
        p = jnp.exp(s - m)
        p = p * pl.reciprocal(jnp.sum(p, axis=-1, keepdims=True), approx=True)
        oh = jnp.einsum('gqk,gkd->gqd',
                        p.astype(_MXU_DTYPE),
                        v3[..., sl].astype(_MXU_DTYPE),
                        preferred_element_type=jnp.float32)        # (TB, C, Dh)
        acc = acc + _dot(oh.reshape(R, Dh), wo[sl, :])             # out_proj, per head

    y = _layernorm(acc, g_ref[...], be_ref[...])
    o_ref[...] = y.reshape(TB, C, D)


def _query_proj_kernel(t_ref, p_ref, w_ref, b_ref, gm_ref, off_ref, attn_ref, *, n_off):
    # One stacked matmul -> [sampling offsets | attention logits]; per-head group softmax
    # done with a row-max shift (valid per group) + block-diagonal ones matmul for the
    # group sums + EUP approximate reciprocal.
    x = t_ref[...] + p_ref[...]
    y = _dot(x, w_ref[...]) + b_ref[...]
    off_ref[...] = y[:, :n_off]
    logits = y[:, n_off:]
    m = jnp.max(logits, axis=-1, keepdims=True)
    e = jnp.exp(logits - m)
    gsum = jnp.dot(e, gm_ref[...], preferred_element_type=jnp.float32)
    attn_ref[...] = e * pl.reciprocal(gsum, approx=True)


def _msda_sample_kernel(val_ref, idx_ref, w_ref, o_ref, *, n_heads):
    # Fused bilinear gather + attention-weighted reduction.
    # For each head h:  out[m, hDh:(h+1)Dh] = sum_k w[m,h,k] * value[idx[m,h,k], hDh:(h+1)Dh]
    # realized as a scatter-weight matrix A (TQ, Lin) built from one-hot compares, then A @ V_h
    # on the MXU.  value stays VMEM-resident per batch; no corner tensor hits HBM.
    Lin, D = val_ref.shape
    TQ, HK = idx_ref.shape
    H = n_heads
    Dh = D // H
    K = HK // H

    val = val_ref[...]
    ids = idx_ref[...]
    wts = w_ref[...]
    pos = jax.lax.broadcasted_iota(jnp.int32, (TQ, Lin), 1)

    for h in range(H):
        A = jnp.zeros((TQ, Lin), jnp.float32)
        for k in range(K):
            c = h * K + k
            A = A + jnp.where(ids[:, c:c + 1] == pos, wts[:, c:c + 1], 0.0)
        o_ref[:, h * Dh:(h + 1) * Dh] = _dot(A, val[:, h * Dh:(h + 1) * Dh])


def _cross_tail_kernel(x_ref, res_ref, wo_ref, bo_ref, g1_ref, be1_ref,
                       w1_ref, b1_ref, w2_ref, b2_ref, g3_ref, be3_ref, o_ref):
    # y  = LayerNorm1(tgt + output_proj(msda))
    # out= LayerNorm3(y + linear2(relu(linear1(y))))
    y = res_ref[...] + _dot(x_ref[...], wo_ref[...]) + bo_ref[...]
    y = _layernorm(y, g1_ref[...], be1_ref[...])
    h = jnp.maximum(_dot(y, w1_ref[...]) + b1_ref[...], 0.0)
    z = y + _dot(h, w2_ref[...]) + b2_ref[...]
    o_ref[...] = _layernorm(z, g3_ref[...], be3_ref[...])


# ----------------------------- kernel wrappers --------------------------------

def linear(x, w_t, b, tile_m=512):
    M, K = x.shape
    N = w_t.shape[1]
    tm, Mp = _row_tile(M, tile_m)
    out = pl.pallas_call(
        _linear_kernel,
        out_shape=jax.ShapeDtypeStruct((Mp, N), jnp.float32),
        grid=(Mp // tm,),
        in_specs=[pl.BlockSpec((tm, K), lambda i: (i, 0)),
                  pl.BlockSpec((K, N), lambda i: (0, 0)),
                  pl.BlockSpec((1, N), lambda i: (0, 0))],
        out_specs=pl.BlockSpec((tm, N), lambda i: (i, 0)),
        compiler_params=_CP1,
    )(_pad_rows(x, Mp), _maybe_bf16(w_t), b.reshape(1, N))
    return out[:M]


def fused_self_attn(tgt3, pos3, w_qk, b_qk, w_v, b_v, w_o, b_o, gamma, beta,
                    n_heads, tile_g=64):
    G, C, D = tgt3.shape
    tg = min(tile_g, G)
    Gp = _round_up(G, tg)
    out = pl.pallas_call(
        functools.partial(_self_attn_kernel, n_heads=n_heads),
        out_shape=jax.ShapeDtypeStruct((Gp, C, D), jnp.float32),
        grid=(Gp // tg,),
        in_specs=[pl.BlockSpec((tg, C, D), lambda i: (i, 0, 0)),
                  pl.BlockSpec((tg, C, D), lambda i: (i, 0, 0)),
                  pl.BlockSpec((D, 2 * D), lambda i: (0, 0)),
                  pl.BlockSpec((1, 2 * D), lambda i: (0, 0)),
                  pl.BlockSpec((D, D), lambda i: (0, 0)),
                  pl.BlockSpec((1, D), lambda i: (0, 0)),
                  pl.BlockSpec((D, D), lambda i: (0, 0)),
                  pl.BlockSpec((1, D), lambda i: (0, 0)),
                  pl.BlockSpec((1, D), lambda i: (0, 0)),
                  pl.BlockSpec((1, D), lambda i: (0, 0))],
        out_specs=pl.BlockSpec((tg, C, D), lambda i: (i, 0, 0)),
        compiler_params=_CP1,
    )(_pad_rows(tgt3, Gp), _pad_rows(pos3, Gp),
      _maybe_bf16(w_qk), b_qk.reshape(1, 2 * D),
      _maybe_bf16(w_v), b_v.reshape(1, D),
      _maybe_bf16(w_o), b_o.reshape(1, D),
      gamma.reshape(1, D), beta.reshape(1, D))
    return out[:G]


def fused_query_proj(tgt2d, pos2d, w_cat, b_cat, group_mask, n_off, tile_m=512):
    M, D = tgt2d.shape
    N = w_cat.shape[1]
    n_attn = N - n_off
    tm, Mp = _row_tile(M, tile_m)
    off, attn = pl.pallas_call(
        functools.partial(_query_proj_kernel, n_off=n_off),
        out_shape=(jax.ShapeDtypeStruct((Mp, n_off), jnp.float32),
                   jax.ShapeDtypeStruct((Mp, n_attn), jnp.float32)),
        grid=(Mp // tm,),
        in_specs=[pl.BlockSpec((tm, D), lambda i: (i, 0)),
                  pl.BlockSpec((tm, D), lambda i: (i, 0)),
                  pl.BlockSpec((D, N), lambda i: (0, 0)),
                  pl.BlockSpec((1, N), lambda i: (0, 0)),
                  pl.BlockSpec((n_attn, n_attn), lambda i: (0, 0))],
        out_specs=(pl.BlockSpec((tm, n_off), lambda i: (i, 0)),
                   pl.BlockSpec((tm, n_attn), lambda i: (i, 0))),
        compiler_params=_CP1,
    )(_pad_rows(tgt2d, Mp), _pad_rows(pos2d, Mp),
      _maybe_bf16(w_cat), b_cat.reshape(1, N), group_mask)
    return off[:M], attn[:M]


def msda_sample(value, idx, wts, n_heads, tile_q=256):
    # TODO(synk): for production-sized Lin the VMEM-resident one-hot gather should become a
    #             manual DMA gather (memory_space=pl.ANY + make_async_copy) over value pages.
    B, Lin, D = value.shape
    _, Lq, HK = idx.shape
    tq = min(tile_q, _round_up(Lq, 8))
    Lqp = _round_up(Lq, tq)
    if Lqp != Lq:
        idx = jnp.pad(idx, ((0, 0), (0, Lqp - Lq), (0, 0)))
        wts = jnp.pad(wts, ((0, 0), (0, Lqp - Lq), (0, 0)))
    out = pl.pallas_call(
        functools.partial(_msda_sample_kernel, n_heads=n_heads),
        out_shape=jax.ShapeDtypeStruct((B, Lqp, D), jnp.float32),
        grid=(B, Lqp // tq),
        in_specs=[pl.BlockSpec((None, Lin, D), lambda b, i: (b, 0, 0)),
                  pl.BlockSpec((None, tq, HK), lambda b, i: (b, i, 0)),
                  pl.BlockSpec((None, tq, HK), lambda b, i: (b, i, 0))],
        out_specs=pl.BlockSpec((None, tq, D), lambda b, i: (b, i, 0)),
        compiler_params=_CP2,
    )(value, idx, wts)
    return out[:, :Lq]


def cross_tail(x, res, w_o, b_o, g1, be1, w1, b1, w2, b2, g3, be3, tile_m=512):
    M, D = x.shape
    F = w1.shape[1]
    tm, Mp = _row_tile(M, tile_m)
    out = pl.pallas_call(
        _cross_tail_kernel,
        out_shape=jax.ShapeDtypeStruct((Mp, D), jnp.float32),
        grid=(Mp // tm,),
        in_specs=[pl.BlockSpec((tm, D), lambda i: (i, 0)),
                  pl.BlockSpec((tm, D), lambda i: (i, 0)),
                  pl.BlockSpec((D, D), lambda i: (0, 0)),
                  pl.BlockSpec((1, D), lambda i: (0, 0)),
                  pl.BlockSpec((1, D), lambda i: (0, 0)),
                  pl.BlockSpec((1, D), lambda i: (0, 0)),
                  pl.BlockSpec((D, F), lambda i: (0, 0)),
                  pl.BlockSpec((1, F), lambda i: (0, 0)),
                  pl.BlockSpec((F, D), lambda i: (0, 0)),
                  pl.BlockSpec((1, D), lambda i: (0, 0)),
                  pl.BlockSpec((1, D), lambda i: (0, 0)),
                  pl.BlockSpec((1, D), lambda i: (0, 0))],
        out_specs=pl.BlockSpec((tm, D), lambda i: (i, 0)),
        compiler_params=_CP1,
    )(_pad_rows(x, Mp), _pad_rows(res, Mp),
      _maybe_bf16(w_o), b_o.reshape(1, D),
      g1.reshape(1, D), be1.reshape(1, D),
      _maybe_bf16(w1), b1.reshape(1, F),
      _maybe_bf16(w2), b2.reshape(1, D),
      g3.reshape(1, D), be3.reshape(1, D))
    return out[:M]


# ----------------------------- parameters --------------------------------

def init_params(key, d_model, d_ffn, n_heads, n_levels, n_points):
    ks = iter(jax.random.split(key, 24))

    def w(shape, scale=0.05):
        return jax.random.normal(next(ks), shape, jnp.float32) * scale

    hlp = n_heads * n_levels * n_points
    p = {}
    # nn.MultiheadAttention (self_attn)
    p['in_proj_w'] = w((3 * d_model, d_model))
    p['in_proj_b'] = w((3 * d_model,))
    p['out_proj_w'] = w((d_model, d_model))
    p['out_proj_b'] = w((d_model,))
    p['norm2_g'] = 1.0 + w((d_model,), 0.02)
    p['norm2_b'] = w((d_model,), 0.02)
    # MSDeformAttn (cross_attn)
    p['samp_off_w'] = w((hlp * 2, d_model))
    p['samp_off_b'] = w((hlp * 2,), 0.5)
    p['attn_w_w'] = w((hlp, d_model))
    p['attn_w_b'] = w((hlp,))
    p['value_proj_w'] = w((d_model, d_model))
    p['value_proj_b'] = w((d_model,))
    p['output_proj_w'] = w((d_model, d_model))
    p['output_proj_b'] = w((d_model,))
    p['norm1_g'] = 1.0 + w((d_model,), 0.02)
    p['norm1_b'] = w((d_model,), 0.02)
    # FFN
    p['lin1_w'] = w((d_ffn, d_model))
    p['lin1_b'] = w((d_ffn,))
    p['lin2_w'] = w((d_model, d_ffn))
    p['lin2_b'] = w((d_model,))
    p['norm3_g'] = 1.0 + w((d_model,), 0.02)
    p['norm3_b'] = w((d_model,), 0.02)
    return p


# ----------------------------- forward pass --------------------------------

def deformable_control_layer_forward(params, tgt, query_pos, reference_points, src,
                                     spatial_shapes, cfg):
    B, Q, C, D = tgt.shape
    H = cfg['n_heads']
    Lv = cfg['n_levels']
    P = cfg['n_points']
    Lq = Q * C
    Lin = src.shape[1]
    hlp = H * Lv * P

    # -------- self (p2p) attention + norm2 : one fused kernel --------
    Wq, Wk, Wv = jnp.split(params['in_proj_w'], 3, axis=0)
    bq, bk, bv = jnp.split(params['in_proj_b'], 3, axis=0)
    w_qk = jnp.concatenate([Wq.T, Wk.T], axis=1)          # (D, 2D)
    b_qk = jnp.concatenate([bq, bk])                      # (2D,)

    tgt3 = tgt.reshape(B * Q, C, D)
    pos3 = query_pos.reshape(B * Q, C, D)
    tgt_n2 = fused_self_attn(tgt3, pos3, w_qk, b_qk, Wv.T, bv,
                             params['out_proj_w'].T, params['out_proj_b'],
                             params['norm2_g'], params['norm2_b'], H)
    tgt_n2 = tgt_n2.reshape(B, Lq, D)
    pos_seq = query_pos.reshape(B, Lq, D)

    # -------- MSDeformAttn (cross attention) --------
    value = linear(src.reshape(B * Lin, D),
                   params['value_proj_w'].T, params['value_proj_b']).reshape(B, Lin, D)

    w_cat = jnp.concatenate([params['samp_off_w'].T, params['attn_w_w'].T], axis=1)
    b_cat = jnp.concatenate([params['samp_off_b'], params['attn_w_b']])
    g_idx = jnp.arange(hlp) // (Lv * P)
    group_mask = (g_idx[:, None] == g_idx[None, :]).astype(jnp.float32)  # block-diag per head

    off2d, attn2d = fused_query_proj(tgt_n2.reshape(B * Lq, D),
                                     pos_seq.reshape(B * Lq, D),
                                     w_cat, b_cat, group_mask, n_off=2 * hlp)
    off = off2d.reshape(B, Lq, H, Lv, P, 2)
    attn_w = attn2d.reshape(B, Lq, H, Lv, P)

    # sampling locations -> flat bilinear-corner indices & combined weights.
    # TODO(synk): this tiny elementwise index arithmetic (B*Lq*H*P per level) stays in plain JAX;
    #             the heavy gather + reduction runs in the fused Pallas kernel below.
    offset_norm = jnp.array([[w_l, h_l] for (h_l, w_l) in spatial_shapes],
                            dtype=jnp.float32)             # (Lv, 2) as (W, H)
    loc = (reference_points[:, :, None, :, None, :]
           + off / offset_norm[None, None, None, :, None, :])   # (B, Lq, H, Lv, P, 2)

    level_start = [0]
    for (h_l, w_l) in spatial_shapes[:-1]:
        level_start.append(level_start[-1] + h_l * w_l)

    idx_list, w_list = [], []
    for l, (Hl, Wl) in enumerate(spatial_shapes):
        x = loc[:, :, :, l, :, 0] * Wl - 0.5                # (B, Lq, H, P)
        y = loc[:, :, :, l, :, 1] * Hl - 0.5
        x0 = jnp.floor(x)
        y0 = jnp.floor(y)
        lx = x - x0
        ly = y - y0
        a_l = attn_w[:, :, :, l, :]                         # (B, Lq, H, P)
        for dy, dx in ((0, 0), (0, 1), (1, 0), (1, 1)):
            cx = x0 + dx
            cy = y0 + dy
            wgt = (lx if dx else (1.0 - lx)) * (ly if dy else (1.0 - ly))
            valid = ((cx >= 0) & (cx <= Wl - 1) & (cy >= 0) & (cy <= Hl - 1))
            w_list.append(wgt * valid.astype(jnp.float32) * a_l)
            idx_list.append((level_start[l]
                             + jnp.clip(cy, 0, Hl - 1) * Wl
                             + jnp.clip(cx, 0, Wl - 1)).astype(jnp.int32))

    K = Lv * P * 4
    idx_all = jnp.stack(idx_list, axis=-1).reshape(B, Lq, H * K)   # head-major lanes
    wts_all = jnp.stack(w_list, axis=-1).reshape(B, Lq, H * K)

    # fused bilinear gather (one-hot matmul) + attention-weighted reduction -> (B, Lq, D)
    msda = msda_sample(value, idx_all, wts_all, H)

    # -------- output_proj + norm1 + FFN + norm3 : one fused kernel --------
    out2d = cross_tail(msda.reshape(B * Lq, D), tgt_n2.reshape(B * Lq, D),
                       params['output_proj_w'].T, params['output_proj_b'],
                       params['norm1_g'], params['norm1_b'],
                       params['lin1_w'].T, params['lin1_b'],
                       params['lin2_w'].T, params['lin2_b'],
                       params['norm3_g'], params['norm3_b'])
    return out2d.reshape(B, Q, C, D), None


# ----------------------------- main --------------------------------

if __name__ == "__main__":
    # small config consistent with the module: d_model=32, d_ffn=64, 4 heads,
    # 2 levels, 2 points, use_p2p_attn=True, emulate_pooling=True
    B, Q, C = 2, 3, 8
    D, FF, H, Lv, P = 32, 64, 4, 2, 2
    spatial_shapes = ((8, 8), (4, 4))
    Lin = sum(h * w for h, w in spatial_shapes)
    cfg = dict(n_heads=H, n_levels=Lv, n_points=P)

    key = jax.random.PRNGKey(0)
    kp, kt, kq, kr, ks = jax.random.split(key, 5)
    params = init_params(kp, D, FF, H, Lv, P)

    tgt = jax.random.normal(kt, (B, Q, C, D), jnp.float32)
    query_pos = jax.random.normal(kq, (B, Q, C, D), jnp.float32) * 0.5
    reference_points = jax.random.uniform(kr, (B, Q * C, Lv, 2), jnp.float32)
    src = jax.random.normal(ks, (B, Lin, D), jnp.float32)
    # src_padding_mask=None, reference_boxes=None, cls_token=None (unused paths)

    fwd = jax.jit(functools.partial(deformable_control_layer_forward,
                                    spatial_shapes=spatial_shapes, cfg=cfg))
    out, _ = fwd(params, tgt, query_pos, reference_points, src)
    out = jax.block_until_ready(out)

    assert out.shape == (B, Q, C, D)
    assert bool(jnp.all(jnp.isfinite(out)))
    print("KERNEL_OK")
</pallas_src>

<mosaic_0001>
module attributes {stable_mosaic.version = 11 : i64} {
  func.func @_self_attn_kernel(%arg0: i32, %arg1: memref<6x8x32xf32, #tpu.memory_space<vmem>>, %arg2: memref<6x8x32xf32, #tpu.memory_space<vmem>>, %arg3: memref<32x64xbf16, #tpu.memory_space<vmem>>, %arg4: memref<1x64xf32, #tpu.memory_space<vmem>>, %arg5: memref<32x32xbf16, #tpu.memory_space<vmem>>, %arg6: memref<1x32xf32, #tpu.memory_space<vmem>>, %arg7: memref<32x32xbf16, #tpu.memory_space<vmem>>, %arg8: memref<1x32xf32, #tpu.memory_space<vmem>>, %arg9: memref<1x32xf32, #tpu.memory_space<vmem>>, %arg10: memref<1x32xf32, #tpu.memory_space<vmem>>, %arg11: memref<6x8x32xf32, #tpu.memory_space<vmem>>) attributes {dimension_semantics = [#tpu.dimension_semantics<parallel>], iteration_bounds = array<i64: 1>, scalar_prefetch = 0 : i64, scratch_operands = 0 : i64, tpu.core_type = #tpu.core_type<tc>, window_params = [{transform_indices = @transform_0, window_bounds = array<i64: 6, 8, 32>}, {transform_indices = @transform_1, window_bounds = array<i64: 6, 8, 32>}, {pipeline_mode = #tpu.pipeline_mode<synchronous>, transform_indices = @transform_2, window_bounds = array<i64: 32, 64>}, {pipeline_mode = #tpu.pipeline_mode<synchronous>, transform_indices = @transform_3, window_bounds = array<i64: 1, 64>}, {pipeline_mode = #tpu.pipeline_mode<synchronous>, transform_indices = @transform_4, window_bounds = array<i64: 32, 32>}, {pipeline_mode = #tpu.pipeline_mode<synchronous>, transform_indices = @transform_5, window_bounds = array<i64: 1, 32>}, {pipeline_mode = #tpu.pipeline_mode<synchronous>, transform_indices = @transform_6, window_bounds = array<i64: 32, 32>}, {pipeline_mode = #tpu.pipeline_mode<synchronous>, transform_indices = @transform_7, window_bounds = array<i64: 1, 32>}, {pipeline_mode = #tpu.pipeline_mode<synchronous>, transform_indices = @transform_8, window_bounds = array<i64: 1, 32>}, {pipeline_mode = #tpu.pipeline_mode<synchronous>, transform_indices = @transform_9, window_bounds = array<i64: 1, 32>}, {transform_indices = @transform_10, window_bounds = array<i64: 6, 8, 32>}]} {
    %c0 = arith.constant 0 : index
    %c0_0 = arith.constant 0 : index
    %c0_1 = arith.constant 0 : index
    %0 = vector.load %arg1[%c0, %c0_0, %c0_1] : memref<6x8x32xf32, #tpu.memory_space<vmem>>, vector<6x8x32xf32>
    %c0_2 = arith.constant 0 : index
    %c0_3 = arith.constant 0 : index
    %c0_4 = arith.constant 0 : index
    %1 = vector.load %arg2[%c0_2, %c0_3, %c0_4] : memref<6x8x32xf32, #tpu.memory_space<vmem>>, vector<6x8x32xf32>
    %2 = arith.addf %0, %1 : vector<6x8x32xf32>
    %3 = vector.shape_cast %2 : vector<6x8x32xf32> to vector<48x32xf32>
    %4 = vector.shape_cast %0 : vector<6x8x32xf32> to vector<48x32xf32>
    %c0_5 = arith.constant 0 : index
    %c0_6 = arith.constant 0 : index
    %5 = vector.load %arg3[%c0_5, %c0_6] : memref<32x64xbf16, #tpu.memory_space<vmem>>, vector<32x64xbf16>
    %6 = arith.truncf %3 : vector<48x32xf32> to vector<48x32xbf16>
    %cst = arith.constant dense<0.000000e+00> : vector<48x64xf32>
    %7 = tpu.matmul %6, %5, %cst {dimension_numbers = #tpu.dot_dimension_numbers<[1], [0], [0], [1], [0, 0, 1, 1], [], []>} : vector<48x32xbf16>, vector<32x64xbf16>, vector<48x64xf32> -> vector<48x64xf32>
    %c0_7 = arith.constant 0 : index
    %c0_8 = arith.constant 0 : index
    %8 = vector.load %arg4[%c0_7, %c0_8] : memref<1x64xf32, #tpu.memory_space<vmem>>, vector<1x64xf32>
    %9 = vector.broadcast %8 : vector<1x64xf32> to vector<48x64xf32>
    %10 = arith.addf %7, %9 : vector<48x64xf32>
    %c0_9 = arith.constant 0 : index
    %c0_10 = arith.constant 0 : index
    %11 = vector.load %arg5[%c0_9, %c0_10] : memref<32x32xbf16, #tpu.memory_space<vmem>>, vector<32x32xbf16>
    %12 = arith.truncf %4 : vector<48x32xf32> to vector<48x32xbf16>
    %cst_11 = arith.constant dense<0.000000e+00> : vector<48x32xf32>
    %13 = tpu.matmul %12, %11, %cst_11 {dimension_numbers = #tpu.dot_dimension_numbers<[1], [0], [0], [1], [0, 0, 1, 1], [], []>} : vector<48x32xbf16>, vector<32x32xbf16>, vector<48x32xf32> -> vector<48x32xf32>
    %c0_12 = arith.constant 0 : index
    %c0_13 = arith.constant 0 : index
    %14 = vector.load %arg6[%c0_12, %c0_13] : memref<1x32xf32, #tpu.memory_space<vmem>>, vector<1x32xf32>
    %15 = vector.broadcast %14 : vector<1x32xf32> to vector<48x32xf32>
    %16 = arith.addf %13, %15 : vector<48x32xf32>
    %17 = vector.extract_strided_slice %10 {offsets = [0, 0], sizes = [48, 32], strides = [1, 1]} : vector<48x64xf32> to vector<48x32xf32>
    %cst_14 = arith.constant 0.353553385 : f32
    %18 = vector.broadcast %cst_14 : f32 to vector<48x32xf32>
    %19 = arith.mulf %17, %18 : vector<48x32xf32>
    %20 = vector.shape_cast %19 : vector<48x32xf32> to vector<6x8x32xf32>
    %21 = vector.extract_strided_slice %10 {offsets = [0, 32], sizes = [48, 32], strides = [1, 1]} : vector<48x64xf32> to vector<48x32xf32>
    %22 = vector.shape_cast %21 : vector<48x32xf32> to vector<6x8x32xf32>
    %23 = vector.shape_cast %16 : vector<48x32xf32> to vector<6x8x32xf32>
    %c0_15 = arith.constant 0 : index
    %c0_16 = arith.constant 0 : index
    %24 = vector.load %arg7[%c0_15, %c0_16] : memref<32x32xbf16, #tpu.memory_space<vmem>>, vector<32x32xbf16>
    %c0_17 = arith.constant 0 : index
    %c0_18 = arith.constant 0 : index
    %25 = vector.load %arg8[%c0_17, %c0_18] : memref<1x32xf32, #tpu.memory_space<vmem>>, vector<1x32xf32>
    %26 = vector.broadcast %25 : vector<1x32xf32> to vector<48x32xf32>
    %27 = arith.addf %4, %26 : vector<48x32xf32>
    %28 = vector.extract_strided_slice %20 {offsets = [0, 0, 0], sizes = [6, 8, 8], strides = [1, 1, 1]} : vector<6x8x32xf32> to vector<6x8x8xf32>
    %29 = arith.truncf %28 : vector<6x8x8xf32> to vector<6x8x8xbf16>
    %30 = vector.extract_strided_slice %22 {offsets = [0, 0, 0], sizes = [6, 8, 8], strides = [1, 1, 1]} : vector<6x8x32xf32> to vector<6x8x8xf32>
    %31 = arith.truncf %30 : vector<6x8x8xf32> to vector<6x8x8xbf16>
    "tpu.trace_start"() <{level = 10 : i32, message = "gqd,gkd->gqk"}> : () -> ()
    %cst_19 = arith.constant dense<0.000000e+00> : vector<6x8x8xf32>
    %32 = tpu.matmul %29, %31, %cst_19 {dimension_numbers = #tpu.dot_dimension_numbers<[2], [2], [1], [1], [0, 0, 0, 1, 1, 1], [0], [0]>} : vector<6x8x8xbf16>, vector<6x8x8xbf16>, vector<6x8x8xf32> -> vector<6x8x8xf32>
    "tpu.trace_stop"() : () -> ()
    %cst_20 = arith.constant dense<0xFF800000> : vector<6x8xf32>
    %33 = vector.multi_reduction <maximumf>, %32, %cst_20 [2] : vector<6x8x8xf32> to vector<6x8xf32>
    %34 = vector.shape_cast %33 : vector<6x8xf32> to vector<6x8x1xf32>
    %35 = vector.broadcast %34 : vector<6x8x1xf32> to vector<6x8x8xf32>
    %36 = arith.subf %32, %35 : vector<6x8x8xf32>
    %37 = math.exp %36 : vector<6x8x8xf32>
    %cst_21 = arith.constant dense<0.000000e+00> : vector<6x8xf32>
    %38 = vector.multi_reduction <add>, %37, %cst_21 [2] : vector<6x8x8xf32> to vector<6x8xf32>
    %39 = vector.shape_cast %38 : vector<6x8xf32> to vector<6x8x1xf32>
    %40 = tpu.reciprocal %39 {approx = true} : vector<6x8x1xf32> -> vector<6x8x1xf32>
    %41 = vector.broadcast %40 : vector<6x8x1xf32> to vector<6x8x8xf32>
    %42 = arith.mulf %37, %41 : vector<6x8x8xf32>
    %43 = arith.truncf %42 : vector<6x8x8xf32> to vector<6x8x8xbf16>
    %44 = vector.extract_strided_slice %23 {offsets = [0, 0, 0], sizes = [6, 8, 8], strides = [1, 1, 1]} : vector<6x8x32xf32> to vector<6x8x8xf32>
    %45 = arith.truncf %44 : vector<6x8x8xf32> to vector<6x8x8xbf16>
    "tpu.trace_start"() <{level = 10 : i32, message = "gqk,gkd->gqd"}> : () -> ()
    %cst_22 = arith.constant dense<0.000000e+00> : vector<6x8x8xf32>
    %46 = tpu.matmul %43, %45, %cst_22 {dimension_numbers = #tpu.dot_dimension_numbers<[2], [1], [1], [2], [0, 0, 0, 1, 1, 2], [0], [0]>} : vector<6x8x8xbf16>, vector<6x8x8xbf16>, vector<6x8x8xf32> -> vector<6x8x8xf32>
    "tpu.trace_stop"() : () -> ()
    %47 = vector.shape_cast %46 : vector<6x8x8xf32> to vector<48x8xf32>
    %48 = vector.extract_strided_slice %24 {offsets = [0, 0], sizes = [8, 32], strides = [1, 1]} : vector<32x32xbf16> to vector<8x32xbf16>
    %49 = arith.truncf %47 : vector<48x8xf32> to vector<48x8xbf16>
    %cst_23 = arith.constant dense<0.000000e+00> : vector<48x32xf32>
    %50 = tpu.matmul %49, %48, %cst_23 {dimension_numbers = #tpu.dot_dimension_numbers<[1], [0], [0], [1], [0, 0, 1, 1], [], []>} : vector<48x8xbf16>, vector<8x32xbf16>, vector<48x32xf32> -> vector<48x32xf32>
    %51 = arith.addf %27, %50 : vector<48x32xf32>
    %52 = vector.extract_strided_slice %20 {offsets = [0, 0, 8], sizes = [6, 8, 8], strides = [1, 1, 1]} : vector<6x8x32xf32> to vector<6x8x8xf32>
    %53 = arith.truncf %52 : vector<6x8x8xf32> to vector<6x8x8xbf16>
    %54 = vector.extract_strided_slice %22 {offsets = [0, 0, 8], sizes = [6, 8, 8], strides = [1, 1, 1]} : vector<6x8x32xf32> to vector<6x8x8xf32>
    %55 = arith.truncf %54 : vector<6x8x8xf32> to vector<6x8x8xbf16>
    "tpu.trace_start"() <{level = 10 : i32, message = "gqd,gkd->gqk"}> : () -> ()
    %cst_24 = arith.constant dense<0.000000e+00> : vector<6x8x8xf32>
    %56 = tpu.matmul %53, %55, %cst_24 {dimension_numbers = #tpu.dot_dimension_numbers<[2], [2], [1], [1], [0, 0, 0, 1, 1, 1], [0], [0]>} : vector<6x8x8xbf16>, vector<6x8x8xbf16>, vector<6x8x8xf32> -> vector<6x8x8xf32>
    "tpu.trace_stop"() : () -> ()
    %cst_25 = arith.constant dense<0xFF800000> : vector<6x8xf32>
    %57 = vector.multi_reduction <maximumf>, %56, %cst_25 [2] : vector<6x8x8xf32> to vector<6x8xf32>
    %58 = vector.shape_cast %57 : vector<6x8xf32> to vector<6x8x1xf32>
    %59 = vector.broadcast %58 : vector<6x8x1xf32> to vector<6x8x8xf32>
    %60 = arith.subf %56, %59 : vector<6x8x8xf32>
    %61 = math.exp %60 : vector<6x8x8xf32>
    %cst_26 = arith.constant dense<0.000000e+00> : vector<6x8xf32>
    %62 = vector.multi_reduction <add>, %61, %cst_26 [2] : vector<6x8x8xf32> to vector<6x8xf32>
    %63 = vector.shape_cast %62 : vector<6x8xf32> to vector<6x8x1xf32>
    %64 = tpu.reciprocal %63 {approx = true} : vector<6x8x1xf32> -> vector<6x8x1xf32>
    %65 = vector.broadcast %64 : vector<6x8x1xf32> to vector<6x8x8xf32>
    %66 = arith.mulf %61, %65 : vector<6x8x8xf32>
    %67 = arith.truncf %66 : vector<6x8x8xf32> to vector<6x8x8xbf16>
    %68 = vector.extract_strided_slice %23 {offsets = [0, 0, 8], sizes = [6, 8, 8], strides = [1, 1, 1]} : vector<6x8x32xf32> to vector<6x8x8xf32>
    %69 = arith.truncf %68 : vector<6x8x8xf32> to vector<6x8x8xbf16>
    "tpu.trace_start"() <{level = 10 : i32, message = "gqk,gkd->gqd"}> : () -> ()
    %cst_27 = arith.constant dense<0.000000e+00> : vector<6x8x8xf32>
    %70 = tpu.matmul %67, %69, %cst_27 {dimension_numbers = #tpu.dot_dimension_numbers<[2], [1], [1], [2], [0, 0, 0, 1, 1, 2], [0], [0]>} : vector<6x8x8xbf16>, vector<6x8x8xbf16>, vector<6x8x8xf32> -> vector<6x8x8xf32>
    "tpu.trace_stop"() : () -> ()
    %71 = vector.shape_cast %70 : vector<6x8x8xf32> to vector<48x8xf32>
    %72 = vector.extract_strided_slice %24 {offsets = [8, 0], sizes = [8, 32], strides = [1, 1]} : vector<32x32xbf16> to vector<8x32xbf16>
    %73 = arith.truncf %71 : vector<48x8xf32> to vector<48x8xbf16>
    %cst_28 = arith.constant dense<0.000000e+00> : vector<48x32xf32>
    %74 = tpu.matmul %73, %72, %cst_28 {dimension_numbers = #tpu.dot_dimension_numbers<[1], [0], [0], [1], [0, 0, 1, 1], [], []>} : vector<48x8xbf16>, vector<8x32xbf16>, vector<48x32xf32> -> vector<48x32xf32>
    %75 = arith.addf %51, %74 : vector<48x32xf32>
    %76 = vector.extract_strided_slice %20 {offsets = [0, 0, 16], sizes = [6, 8, 8], strides = [1, 1, 1]} : vector<6x8x32xf32> to vector<6x8x8xf32>
    %77 = arith.truncf %76 : vector<6x8x8xf32> to vector<6x8x8xbf16>
    %78 = vector.extract_strided_slice %22 {offsets = [0, 0, 16], sizes = [6, 8, 8], strides = [1, 1, 1]} : vector<6x8x32xf32> to vector<6x8x8xf32>
    %79 = arith.truncf %78 : vector<6x8x8xf32> to vector<6x8x8xbf16>
    "tpu.trace_start"() <{level = 10 : i32, message = "gqd,gkd->gqk"}> : () -> ()
    %cst_29 = arith.constant dense<0.000000e+00> : vector<6x8x8xf32>
    %80 = tpu.matmul %77, %79, %cst_29 {dimension_numbers = #tpu.dot_dimension_numbers<[2], [2], [1], [1], [0, 0, 0, 1, 1, 1], [0], [0]>} : vector<6x8x8xbf16>, vector<6x8x8xbf16>, vector<6x8x8xf32> -> vector<6x8x8xf32>
    "tpu.trace_stop"() : () -> ()
    %cst_30 = arith.constant dense<0xFF800000> : vector<6x8xf32>
    %81 = vector.multi_reduction <maximumf>, %80, %cst_30 [2] : vector<6x8x8xf32> to vector<6x8xf32>
    %82 = vector.shape_cast %81 : vector<6x8xf32> to vector<6x8x1xf32>
    %83 = vector.broadcast %82 : vector<6x8x1xf32> to vector<6x8x8xf32>
    %84 = arith.subf %80, %83 : vector<6x8x8xf32>
    %85 = math.exp %84 : vector<6x8x8xf32>
    %cst_31 = arith.constant dense<0.000000e+00> : vector<6x8xf32>
    %86 = vector.multi_reduction <add>, %85, %cst_31 [2] : vector<6x8x8xf32> to vector<6x8xf32>
    %87 = vector.shape_cast %86 : vector<6x8xf32> to vector<6x8x1xf32>
    %88 = tpu.reciprocal %87 {approx = true} : vector<6x8x1xf32> -> vector<6x8x1xf32>
    %89 = vector.broadcast %88 : vector<6x8x1xf32> to vector<6x8x8xf32>
    %90 = arith.mulf %85, %89 : vector<6x8x8xf32>
    %91 = arith.truncf %90 : vector<6x8x8xf32> to vector<6x8x8xbf16>
    %92 = vector.extract_strided_slice %23 {offsets = [0, 0, 16], sizes = [6, 8, 8], strides = [1, 1, 1]} : vector<6x8x32xf32> to vector<6x8x8xf32>
    %93 = arith.truncf %92 : vector<6x8x8xf32> to vector<6x8x8xbf16>
    "tpu.trace_start"() <{level = 10 : i32, message = "gqk,gkd->gqd"}> : () -> ()
    %cst_32 = arith.constant dense<0.000000e+00> : vector<6x8x8xf32>
    %94 = tpu.matmul %91, %93, %cst_32 {dimension_numbers = #tpu.dot_dimension_numbers<[2], [1], [1], [2], [0, 0, 0, 1, 1, 2], [0], [0]>} : vector<6x8x8xbf16>, vector<6x8x8xbf16>, vector<6x8x8xf32> -> vector<6x8x8xf32>
    "tpu.trace_stop"() : () -> ()
    %95 = vector.shape_cast %94 : vector<6x8x8xf32> to vector<48x8xf32>
    %96 = vector.extract_strided_slice %24 {offsets = [16, 0], sizes = [8, 32], strides = [1, 1]} : vector<32x32xbf16> to vector<8x32xbf16>
    %97 = arith.truncf %95 : vector<48x8xf32> to vector<48x8xbf16>
    %cst_33 = arith.constant dense<0.000000e+00> : vector<48x32xf32>
    %98 = tpu.matmul %97, %96, %cst_33 {dimension_numbers = #tpu.dot_dimension_numbers<[1], [0], [0], [1], [0, 0, 1, 1], [], []>} : vector<48x8xbf16>, vector<8x32xbf16>, vector<48x32xf32> -> vector<48x32xf32>
    %99 = arith.addf %75, %98 : vector<48x32xf32>
    %100 = vector.extract_strided_slice %20 {offsets = [0, 0, 24], sizes = [6, 8, 8], strides = [1, 1, 1]} : vector<6x8x32xf32> to vector<6x8x8xf32>
    %101 = arith.truncf %100 : vector<6x8x8xf32> to vector<6x8x8xbf16>
    %102 = vector.extract_strided_slice %22 {offsets = [0, 0, 24], sizes = [6, 8, 8], strides = [1, 1, 1]} : vector<6x8x32xf32> to vector<6x8x8xf32>
    %103 = arith.truncf %102 : vector<6x8x8xf32> to vector<6x8x8xbf16>
    "tpu.trace_start"() <{level = 10 : i32, message = "gqd,gkd->gqk"}> : () -> ()
    %cst_34 = arith.constant dense<0.000000e+00> : vector<6x8x8xf32>
    %104 = tpu.matmul %101, %103, %cst_34 {dimension_numbers = #tpu.dot_dimension_numbers<[2], [2], [1], [1], [0, 0, 0, 1, 1, 1], [0], [0]>} : vector<6x8x8xbf16>, vector<6x8x8xbf16>, vector<6x8x8xf32> -> vector<6x8x8xf32>
    "tpu.trace_stop"() : () -> ()
    %cst_35 = arith.constant dense<0xFF800000> : vector<6x8xf32>
    %105 = vector.multi_reduction <maximumf>, %104, %cst_35 [2] : vector<6x8x8xf32> to vector<6x8xf32>
    %106 = vector.shape_cast %105 : vector<6x8xf32> to vector<6x8x1xf32>
    %107 = vector.broadcast %106 : vector<6x8x1xf32> to vector<6x8x8xf32>
    %108 = arith.subf %104, %107 : vector<6x8x8xf32>
    %109 = math.exp %108 : vector<6x8x8xf32>
    %cst_36 = arith.constant dense<0.000000e+00> : vector<6x8xf32>
    %110 = vector.multi_reduction <add>, %109, %cst_36 [2] : vector<6x8x8xf32> to vector<6x8xf32>
    %111 = vector.shape_cast %110 : vector<6x8xf32> to vector<6x8x1xf32>
    %112 = tpu.reciprocal %111 {approx = true} : vector<6x8x1xf32> -> vector<6x8x1xf32>
    %113 = vector.broadcast %112 : vector<6x8x1xf32> to vector<6x8x8xf32>
    %114 = arith.mulf %109, %113 : vector<6x8x8xf32>
    %115 = arith.truncf %114 : vector<6x8x8xf32> to vector<6x8x8xbf16>
    %116 = vector.extract_strided_slice %23 {offsets = [0, 0, 24], sizes = [6, 8, 8], strides = [1, 1, 1]} : vector<6x8x32xf32> to vector<6x8x8xf32>
    %117 = arith.truncf %116 : vector<6x8x8xf32> to vector<6x8x8xbf16>
    "tpu.trace_start"() <{level = 10 : i32, message = "gqk,gkd->gqd"}> : () -> ()
    %cst_37 = arith.constant dense<0.000000e+00> : vector<6x8x8xf32>
    %118 = tpu.matmul %115, %117, %cst_37 {dimension_numbers = #tpu.dot_dimension_numbers<[2], [1], [1], [2], [0, 0, 0, 1, 1, 2], [0], [0]>} : vector<6x8x8xbf16>, vector<6x8x8xbf16>, vector<6x8x8xf32> -> vector<6x8x8xf32>
    "tpu.trace_stop"() : () -> ()
    %119 = vector.shape_cast %118 : vector<6x8x8xf32> to vector<48x8xf32>
    %120 = vector.extract_strided_slice %24 {offsets = [24, 0], sizes = [8, 32], strides = [1, 1]} : vector<32x32xbf16> to vector<8x32xbf16>
    %121 = arith.truncf %119 : vector<48x8xf32> to vector<48x8xbf16>
    %cst_38 = arith.constant dense<0.000000e+00> : vector<48x32xf32>
    %122 = tpu.matmul %121, %120, %cst_38 {dimension_numbers = #tpu.dot_dimension_numbers<[1], [0], [0], [1], [0, 0, 1, 1], [], []>} : vector<48x8xbf16>, vector<8x32xbf16>, vector<48x32xf32> -> vector<48x32xf32>
    %123 = arith.addf %99, %122 : vector<48x32xf32>
    %c0_39 = arith.constant 0 : index
    %c0_40 = arith.constant 0 : index
    %124 = vector.load %arg9[%c0_39, %c0_40] : memref<1x32xf32, #tpu.memory_space<vmem>>, vector<1x32xf32>
    %c0_41 = arith.constant 0 : index
    %c0_42 = arith.constant 0 : index
    %125 = vector.load %arg10[%c0_41, %c0_42] : memref<1x32xf32, #tpu.memory_space<vmem>>, vector<1x32xf32>
    %cst_43 = arith.constant dense<0.000000e+00> : vector<48xf32>
    %126 = vector.multi_reduction <add>, %123, %cst_43 [1] : vector<48x32xf32> to vector<48xf32>
    %127 = vector.shape_cast %126 : vector<48xf32> to vector<48x1xf32>
    %cst_44 = arith.constant 3.200000e+01 : f32
    %128 = vector.broadcast %cst_44 : f32 to vector<48x1xf32>
    %129 = arith.divf %127, %128 : vector<48x1xf32>
    %130 = vector.broadcast %129 : vector<48x1xf32> to vector<48x32xf32>
    %131 = arith.subf %123, %130 : vector<48x32xf32>
    %132 = arith.mulf %131, %131 : vector<48x32xf32>
    %cst_45 = arith.constant dense<0.000000e+00> : vector<48xf32>
    %133 = vector.multi_reduction <add>, %132, %cst_45 [1] : vector<48x32xf32> to vector<48xf32>
    %134 = vector.shape_cast %133 : vector<48xf32> to vector<48x1xf32>
    %cst_46 = arith.constant 3.200000e+01 : f32
    %135 = vector.broadcast %cst_46 : f32 to vector<48x1xf32>
    %136 = arith.divf %134, %135 : vector<48x1xf32>
    %cst_47 = arith.constant 9.99999974E-6 : f32
    %137 = vector.broadcast %cst_47 : f32 to vector<48x1xf32>
    %138 = arith.addf %136, %137 : vector<48x1xf32>
    %139 = math.rsqrt %138 : vector<48x1xf32>
    %140 = vector.broadcast %139 : vector<48x1xf32> to vector<48x32xf32>
    %141 = arith.mulf %131, %140 : vector<48x32xf32>
    %142 = vector.broadcast %124 : vector<1x32xf32> to vector<48x32xf32>
    %143 = arith.mulf %141, %142 : vector<48x32xf32>
    %144 = vector.broadcast %125 : vector<1x32xf32> to vector<48x32xf32>
    %145 = arith.addf %143, %144 : vector<48x32xf32>
    %146 = vector.shape_cast %145 : vector<48x32xf32> to vector<6x8x32xf32>
    %c0_48 = arith.constant 0 : index
    %c0_49 = arith.constant 0 : index
    %c0_50 = arith.constant 0 : index
    %147 = vector.load %arg11[%c0_48, %c0_49, %c0_50] : memref<6x8x32xf32, #tpu.memory_space<vmem>>, vector<6x8x32xf32>
    tpu.vector_store %arg11[%c0_48, %c0_49, %c0_50], %146 {strides = array<i32>} : memref<6x8x32xf32, #tpu.memory_space<vmem>>, vector<6x8x32xf32>,
    return
  }
  func.func @transform_0(%arg0: i32) -> (i32, i32, i32) {
    %c0_i32 = arith.constant 0 : i32
    %c0_i32_0 = arith.constant 0 : i32
    %c0_i32_1 = arith.constant 0 : i32
    return %arg0, %c0_i32, %c0_i32_0 : i32, i32, i32
  }
  func.func @transform_1(%arg0: i32) -> (i32, i32, i32) {
    %c0_i32 = arith.constant 0 : i32
    %c0_i32_0 = arith.constant 0 : i32
    %c0_i32_1 = arith.constant 0 : i32
    return %arg0, %c0_i32, %c0_i32_0 : i32, i32, i32
  }
  func.func @transform_2(%arg0: i32) -> (i32, i32) {
    %c0_i32 = arith.constant 0 : i32
    %c0_i32_0 = arith.constant 0 : i32
    %c0_i32_1 = arith.constant 0 : i32
    return %c0_i32, %c0_i32_0 : i32, i32
  }
  func.func @transform_3(%arg0: i32) -> (i32, i32) {
    %c0_i32 = arith.constant 0 : i32
    %c0_i32_0 = arith.constant 0 : i32
    %c0_i32_1 = arith.constant 0 : i32
    return %c0_i32, %c0_i32_0 : i32, i32
  }
  func.func @transform_4(%arg0: i32) -> (i32, i32) {
    %c0_i32 = arith.constant 0 : i32
    %c0_i32_0 = arith.constant 0 : i32
    %c0_i32_1 = arith.constant 0 : i32
    return %c0_i32, %c0_i32_0 : i32, i32
  }
  func.func @transform_5(%arg0: i32) -> (i32, i32) {
    %c0_i32 = arith.constant 0 : i32
    %c0_i32_0 = arith.constant 0 : i32
    %c0_i32_1 = arith.constant 0 : i32
    return %c0_i32, %c0_i32_0 : i32, i32
  }
  func.func @transform_6(%arg0: i32) -> (i32, i32) {
    %c0_i32 = arith.constant 0 : i32
    %c0_i32_0 = arith.constant 0 : i32
    %c0_i32_1 = arith.constant 0 : i32
    return %c0_i32, %c0_i32_0 : i32, i32
  }
  func.func @transform_7(%arg0: i32) -> (i32, i32) {
    %c0_i32 = arith.constant 0 : i32
    %c0_i32_0 = arith.constant 0 : i32
    %c0_i32_1 = arith.constant 0 : i32
    return %c0_i32, %c0_i32_0 : i32, i32
  }
  func.func @transform_8(%arg0: i32) -> (i32, i32) {
    %c0_i32 = arith.constant 0 : i32
    %c0_i32_0 = arith.constant 0 : i32
    %c0_i32_1 = arith.constant 0 : i32
    return %c0_i32, %c0_i32_0 : i32, i32
  }
  func.func @transform_9(%arg0: i32) -> (i32, i32) {
    %c0_i32 = arith.constant 0 : i32
    %c0_i32_0 = arith.constant 0 : i32
    %c0_i32_1 = arith.constant 0 : i32
    return %c0_i32, %c0_i32_0 : i32, i32
  }
  func.func @transform_10(%arg0: i32) -> (i32, i32, i32) {
    %c0_i32 = arith.constant 0 : i32
    %c0_i32_0 = arith.constant 0 : i32
    %c0_i32_1 = arith.constant 0 : i32
    return %arg0, %c0_i32, %c0_i32_0 : i32, i32, i32
  }
}

module attributes {stable_mosaic.version = 11 : i64} {
  func.func @_query_proj_kernel(%arg0: i32, %arg1: memref<48x32xf32, #tpu.memory_space<vmem>>, %arg2: memref<48x32xf32, #tpu.memory_space<vmem>>, %arg3: memref<32x48xbf16, #tpu.memory_space<vmem>>, %arg4: memref<1x48xf32, #tpu.memory_space<vmem>>, %arg5: memref<16x16xf32, #tpu.memory_space<vmem>>, %arg6: memref<48x32xf32, #tpu.memory_space<vmem>>, %arg7: memref<48x16xf32, #tpu.memory_space<vmem>>) attributes {dimension_semantics = [#tpu.dimension_semantics<parallel>], iteration_bounds = array<i64: 1>, scalar_prefetch = 0 : i64, scratch_operands = 0 : i64, tpu.core_type = #tpu.core_type<tc>, window_params = [{transform_indices = @transform_0, window_bounds = array<i64: 48, 32>}, {transform_indices = @transform_1, window_bounds = array<i64: 48, 32>}, {pipeline_mode = #tpu.pipeline_mode<synchronous>, transform_indices = @transform_2, window_bounds = array<i64: 32, 48>}, {pipeline_mode = #tpu.pipeline_mode<synchronous>, transform_indices = @transform_3, window_bounds = array<i64: 1, 48>}, {pipeline_mode = #tpu.pipeline_mode<synchronous>, transform_indices = @transform_4, window_bounds = array<i64: 16, 16>}, {transform_indices = @transform_5, window_bounds = array<i64: 48, 32>}, {transform_indices = @transform_6, window_bounds = array<i64: 48, 16>}]} {
    %c0 = arith.constant 0 : index
    %c0_0 = arith.constant 0 : index
    %0 = vector.load %arg1[%c0, %c0_0] : memref<48x32xf32, #tpu.memory_space<vmem>>, vector<48x32xf32>
    %c0_1 = arith.constant 0 : index
    %c0_2 = arith.constant 0 : index
    %1 = vector.load %arg2[%c0_1, %c0_2] : memref<48x32xf32, #tpu.memory_space<vmem>>, vector<48x32xf32>
    %2 = arith.addf %0, %1 : vector<48x32xf32>
    %c0_3 = arith.constant 0 : index
    %c0_4 = arith.constant 0 : index
    %3 = vector.load %arg3[%c0_3, %c0_4] : memref<32x48xbf16, #tpu.memory_space<vmem>>, vector<32x48xbf16>
    %4 = arith.truncf %2 : vector<48x32xf32> to vector<48x32xbf16>
    %cst = arith.constant dense<0.000000e+00> : vector<48x48xf32>
    %5 = tpu.matmul %4, %3, %cst {dimension_numbers = #tpu.dot_dimension_numbers<[1], [0], [0], [1], [0, 0, 1, 1], [], []>} : vector<48x32xbf16>, vector<32x48xbf16>, vector<48x48xf32> -> vector<48x48xf32>
    %c0_5 = arith.constant 0 : index
    %c0_6 = arith.constant 0 : index
    %6 = vector.load %arg4[%c0_5, %c0_6] : memref<1x48xf32, #tpu.memory_space<vmem>>, vector<1x48xf32>
    %7 = vector.broadcast %6 : vector<1x48xf32> to vector<48x48xf32>
    %8 = arith.addf %5, %7 : vector<48x48xf32>
    %9 = vector.extract_strided_slice %8 {offsets = [0, 0], sizes = [48, 32], strides = [1, 1]} : vector<48x48xf32> to vector<48x32xf32>
    %c0_7 = arith.constant 0 : index
    %c0_8 = arith.constant 0 : index
    %10 = vector.load %arg6[%c0_7, %c0_8] : memref<48x32xf32, #tpu.memory_space<vmem>>, vector<48x32xf32>
    tpu.vector_store %arg6[%c0_7, %c0_8], %9 {strides = array<i32>} : memref<48x32xf32, #tpu.memory_space<vmem>>, vector<48x32xf32>,
    %11 = vector.extract_strided_slice %8 {offsets = [0, 32], sizes = [48, 16], strides = [1, 1]} : vector<48x48xf32> to vector<48x16xf32>
    %cst_9 = arith.constant dense<0xFF800000> : vector<48xf32>
    %12 = vector.multi_reduction <maximumf>, %11, %cst_9 [1] : vector<48x16xf32> to vector<48xf32>
    %13 = vector.shape_cast %12 : vector<48xf32> to vector<48x1xf32>
    %14 = vector.broadcast %13 : vector<48x1xf32> to vector<48x16xf32>
    %15 = arith.subf %11, %14 : vector<48x16xf32>
    %16 = math.exp %15 : vector<48x16xf32>
    %c0_10 = arith.constant 0 : index
    %c0_11 = arith.constant 0 : index
    %17 = vector.load %arg5[%c0_10, %c0_11] : memref<16x16xf32, #tpu.memory_space<vmem>>, vector<16x16xf32>
    %cst_12 = arith.constant dense<0.000000e+00> : vector<48x16xf32>
    %18 = tpu.matmul %16, %17, %cst_12 {dimension_numbers = #tpu.dot_dimension_numbers<[1], [0], [0], [1], [0, 0, 1, 1], [], []>} : vector<48x16xf32>, vector<16x16xf32>, vector<48x16xf32> -> vector<48x16xf32>
    %19 = tpu.reciprocal %18 {approx = true} : vector<48x16xf32> -> vector<48x16xf32>
    %20 = arith.mulf %16, %19 : vector<48x16xf32>
    %c0_13 = arith.constant 0 : index
    %c0_14 = arith.constant 0 : index
    %21 = vector.load %arg7[%c0_13, %c0_14] : memref<48x16xf32, #tpu.memory_space<vmem>>, vector<48x16xf32>
    tpu.vector_store %arg7[%c0_13, %c0_14], %20 {strides = array<i32>} : memref<48x16xf32, #tpu.memory_space<vmem>>, vector<48x16xf32>,
    return
  }
  func.func @transform_0(%arg0: i32) -> (i32, i32) {
    %c0_i32 = arith.constant 0 : i32
    %c0_i32_0 = arith.constant 0 : i32
    return %arg0, %c0_i32 : i32, i32
  }
  func.func @transform_1(%arg0: i32) -> (i32, i32) {
    %c0_i32 = arith.constant 0 : i32
    %c0_i32_0 = arith.constant 0 : i32
    return %arg0, %c0_i32 : i32, i32
  }
  func.func @transform_2(%arg0: i32) -> (i32, i32) {
    %c0_i32 = arith.constant 0 : i32
    %c0_i32_0 = arith.constant 0 : i32
    %c0_i32_1 = arith.constant 0 : i32
    return %c0_i32, %c0_i32_0 : i32, i32
  }
  func.func @transform_3(%arg0: i32) -> (i32, i32) {
    %c0_i32 = arith.constant 0 : i32
    %c0_i32_0 = arith.constant 0 : i32
    %c0_i32_1 = arith.constant 0 : i32
    return %c0_i32, %c0_i32_0 : i32, i32
  }
  func.func @transform_4(%arg0: i32) -> (i32, i32) {
    %c0_i32 = arith.constant 0 : i32
    %c0_i32_0 = arith.constant 0 : i32
    %c0_i32_1 = arith.constant 0 : i32
    return %c0_i32, %c0_i32_0 : i32, i32
  }
  func.func @transform_5(%arg0: i32) -> (i32, i32) {
    %c0_i32 = arith.constant 0 : i32
    %c0_i32_0 = arith.constant 0 : i32
    return %arg0, %c0_i32 : i32, i32
  }
  func.func @transform_6(%arg0: i32) -> (i32, i32) {
    %c0_i32 = arith.constant 0 : i32
    %c0_i32_0 = arith.constant 0 : i32
    return %arg0, %c0_i32 : i32, i32
  }
}

module attributes {stable_mosaic.version = 11 : i64} {
  func.func @_linear_kernel(%arg0: i32, %arg1: memref<160x32xf32, #tpu.memory_space<vmem>>, %arg2: memref<32x32xbf16, #tpu.memory_space<vmem>>, %arg3: memref<1x32xf32, #tpu.memory_space<vmem>>, %arg4: memref<160x32xf32, #tpu.memory_space<vmem>>) attributes {dimension_semantics = [#tpu.dimension_semantics<parallel>], iteration_bounds = array<i64: 1>, scalar_prefetch = 0 : i64, scratch_operands = 0 : i64, tpu.core_type = #tpu.core_type<tc>, window_params = [{transform_indices = @transform_0, window_bounds = array<i64: 160, 32>}, {pipeline_mode = #tpu.pipeline_mode<synchronous>, transform_indices = @transform_1, window_bounds = array<i64: 32, 32>}, {pipeline_mode = #tpu.pipeline_mode<synchronous>, transform_indices = @transform_2, window_bounds = array<i64: 1, 32>}, {transform_indices = @transform_3, window_bounds = array<i64: 160, 32>}]} {
    %c0 = arith.constant 0 : index
    %c0_0 = arith.constant 0 : index
    %0 = vector.load %arg1[%c0, %c0_0] : memref<160x32xf32, #tpu.memory_space<vmem>>, vector<160x32xf32>
    %c0_1 = arith.constant 0 : index
    %c0_2 = arith.constant 0 : index
    %1 = vector.load %arg2[%c0_1, %c0_2] : memref<32x32xbf16, #tpu.memory_space<vmem>>, vector<32x32xbf16>
    %2 = arith.truncf %0 : vector<160x32xf32> to vector<160x32xbf16>
    %cst = arith.constant dense<0.000000e+00> : vector<160x32xf32>
    %3 = tpu.matmul %2, %1, %cst {dimension_numbers = #tpu.dot_dimension_numbers<[1], [0], [0], [1], [0, 0, 1, 1], [], []>} : vector<160x32xbf16>, vector<32x32xbf16>, vector<160x32xf32> -> vector<160x32xf32>
    %c0_3 = arith.constant 0 : index
    %c0_4 = arith.constant 0 : index
    %4 = vector.load %arg3[%c0_3, %c0_4] : memref<1x32xf32, #tpu.memory_space<vmem>>, vector<1x32xf32>
    %5 = vector.broadcast %4 : vector<1x32xf32> to vector<160x32xf32>
    %6 = arith.addf %3, %5 : vector<160x32xf32>
    %c0_5 = arith.constant 0 : index
    %c0_6 = arith.constant 0 : index
    %7 = vector.load %arg4[%c0_5, %c0_6] : memref<160x32xf32, #tpu.memory_space<vmem>>, vector<160x32xf32>
    tpu.vector_store %arg4[%c0_5, %c0_6], %6 {strides = array<i32>} : memref<160x32xf32, #tpu.memory_space<vmem>>, vector<160x32xf32>,
    return
  }
  func.func @transform_0(%arg0: i32) -> (i32, i32) {
    %c0_i32 = arith.constant 0 : i32
    %c0_i32_0 = arith.constant 0 : i32
    return %arg0, %c0_i32 : i32, i32
  }
  func.func @transform_1(%arg0: i32) -> (i32, i32) {
    %c0_i32 = arith.constant 0 : i32
    %c0_i32_0 = arith.constant 0 : i32
    %c0_i32_1 = arith.constant 0 : i32
    return %c0_i32, %c0_i32_0 : i32, i32
  }
  func.func @transform_2(%arg0: i32) -> (i32, i32) {
    %c0_i32 = arith.constant 0 : i32
    %c0_i32_0 = arith.constant 0 : i32
    %c0_i32_1 = arith.constant 0 : i32
    return %c0_i32, %c0_i32_0 : i32, i32
  }
  func.func @transform_3(%arg0: i32) -> (i32, i32) {
    %c0_i32 = arith.constant 0 : i32
    %c0_i32_0 = arith.constant 0 : i32
    return %arg0, %c0_i32 : i32, i32
  }
}

module attributes {stable_mosaic.version = 11 : i64} {
  func.func @_msda_sample_kernel(%arg0: i32, %arg1: i32, %arg2: memref<1x80x32xf32, #tpu.memory_space<vmem>>, %arg3: memref<1x24x64xi32, #tpu.memory_space<vmem>>, %arg4: memref<1x24x64xf32, #tpu.memory_space<vmem>>, %arg5: memref<1x24x32xf32, #tpu.memory_space<vmem>>) attributes {dimension_semantics = [#tpu.dimension_semantics<parallel>, #tpu.dimension_semantics<parallel>], iteration_bounds = array<i64: 2, 1>, scalar_prefetch = 0 : i64, scratch_operands = 0 : i64, tpu.core_type = #tpu.core_type<tc>, window_params = [{transform_indices = @transform_0, window_bounds = array<i64: 1, 80, 32>}, {transform_indices = @transform_1, window_bounds = array<i64: 1, 24, 64>}, {transform_indices = @transform_2, window_bounds = array<i64: 1, 24, 64>}, {transform_indices = @transform_3, window_bounds = array<i64: 1, 24, 32>}]} {
    %c0 = arith.constant 0 : index
    %c0_0 = arith.constant 0 : index
    %c0_1 = arith.constant 0 : index
    %0 = vector.load %arg2[%c0, %c0_0, %c0_1] : memref<1x80x32xf32, #tpu.memory_space<vmem>>, vector<1x80x32xf32>
    %1 = vector.shape_cast %0 : vector<1x80x32xf32> to vector<80x32xf32>
    %c0_2 = arith.constant 0 : index
    %c0_3 = arith.constant 0 : index
    %c0_4 = arith.constant 0 : index
    %2 = vector.load %arg3[%c0_2, %c0_3, %c0_4] : memref<1x24x64xi32, #tpu.memory_space<vmem>>, vector<1x24x64xi32>
    %3 = vector.shape_cast %2 : vector<1x24x64xi32> to vector<24x64xi32>
    %c0_5 = arith.constant 0 : index
    %c0_6 = arith.constant 0 : index
    %c0_7 = arith.constant 0 : index
    %4 = vector.load %arg4[%c0_5, %c0_6, %c0_7] : memref<1x24x64xf32, #tpu.memory_space<vmem>>, vector<1x24x64xf32>
    %5 = vector.shape_cast %4 : vector<1x24x64xf32> to vector<24x64xf32>
    %6 = tpu.iota {dimensions = array<i32: 1>} : vector<24x80xi32>
    %cst = arith.constant 0.000000e+00 : f32
    %7 = vector.broadcast %cst : f32 to vector<24x80xf32>
    %8 = vector.extract_strided_slice %3 {offsets = [0, 0], sizes = [24, 1], strides = [1, 1]} : vector<24x64xi32> to vector<24x1xi32>
    %9 = vector.broadcast %8 : vector<24x1xi32> to vector<24x80xi32>
    %10 = arith.cmpi eq, %9, %6 : vector<24x80xi32>
    %11 = vector.extract_strided_slice %5 {offsets = [0, 0], sizes = [24, 1], strides = [1, 1]} : vector<24x64xf32> to vector<24x1xf32>
    %cst_8 = arith.constant 0.000000e+00 : f32
    %12 = vector.shape_cast %11 : vector<24x1xf32> to vector<24x1xf32>
    %13 = vector.broadcast %12 : vector<24x1xf32> to vector<24x80xf32>
    %14 = vector.broadcast %cst_8 : f32 to vector<24x80xf32>
    %15 = arith.select %10, %13, %14 : vector<24x80xi1>, vector<24x80xf32>
    %16 = arith.addf %7, %15 : vector<24x80xf32>
    %17 = vector.extract_strided_slice %3 {offsets = [0, 1], sizes = [24, 1], strides = [1, 1]} : vector<24x64xi32> to vector<24x1xi32>
    %18 = vector.broadcast %17 : vector<24x1xi32> to vector<24x80xi32>
    %19 = arith.cmpi eq, %18, %6 : vector<24x80xi32>
    %20 = vector.extract_strided_slice %5 {offsets = [0, 1], sizes = [24, 1], strides = [1, 1]} : vector<24x64xf32> to vector<24x1xf32>
    %cst_9 = arith.constant 0.000000e+00 : f32
    %21 = vector.shape_cast %20 : vector<24x1xf32> to vector<24x1xf32>
    %22 = vector.broadcast %21 : vector<24x1xf32> to vector<24x80xf32>
    %23 = vector.broadcast %cst_9 : f32 to vector<24x80xf32>
    %24 = arith.select %19, %22, %23 : vector<24x80xi1>, vector<24x80xf32>
    %25 = arith.addf %16, %24 : vector<24x80xf32>
    %26 = vector.extract_strided_slice %3 {offsets = [0, 2], sizes = [24, 1], strides = [1, 1]} : vector<24x64xi32> to vector<24x1xi32>
    %27 = vector.broadcast %26 : vector<24x1xi32> to vector<24x80xi32>
    %28 = arith.cmpi eq, %27, %6 : vector<24x80xi32>
    %29 = vector.extract_strided_slice %5 {offsets = [0, 2], sizes = [24, 1], strides = [1, 1]} : vector<24x64xf32> to vector<24x1xf32>
    %cst_10 = arith.constant 0.000000e+00 : f32
    %30 = vector.shape_cast %29 : vector<24x1xf32> to vector<24x1xf32>
    %31 = vector.broadcast %30 : vector<24x1xf32> to vector<24x80xf32>
    %32 = vector.broadcast %cst_10 : f32 to vector<24x80xf32>
    %33 = arith.select %28, %31, %32 : vector<24x80xi1>, vector<24x80xf32>
    %34 = arith.addf %25, %33 : vector<24x80xf32>
    %35 = vector.extract_strided_slice %3 {offsets = [0, 3], sizes = [24, 1], strides = [1, 1]} : vector<24x64xi32> to vector<24x1xi32>
    %36 = vector.broadcast %35 : vector<24x1xi32> to vector<24x80xi32>
    %37 = arith.cmpi eq, %36, %6 : vector<24x80xi32>
    %38 = vector.extract_strided_slice %5 {offsets = [0, 3], sizes = [24, 1], strides = [1, 1]} : vector<24x64xf32> to vector<24x1xf32>
    %cst_11 = arith.constant 0.000000e+00 : f32
    %39 = vector.shape_cast %38 : vector<24x1xf32> to vector<24x1xf32>
    %40 = vector.broadcast %39 : vector<24x1xf32> to vector<24x80xf32>
    %41 = vector.broadcast %cst_11 : f32 to vector<24x80xf32>
    %42 = arith.select %37, %40, %41 : vector<24x80xi1>, vector<24x80xf32>
    %43 = arith.addf %34, %42 : vector<24x80xf32>
    %44 = vector.extract_strided_slice %3 {offsets = [0, 4], sizes = [24, 1], strides = [1, 1]} : vector<24x64xi32> to vector<24x1xi32>
    %45 = vector.broadcast %44 : vector<24x1xi32> to vector<24x80xi32>
    %46 = arith.cmpi eq, %45, %6 : vector<24x80xi32>
    %47 = vector.extract_strided_slice %5 {offsets = [0, 4], sizes = [24, 1], strides = [1, 1]} : vector<24x64xf32> to vector<24x1xf32>
    %cst_12 = arith.constant 0.000000e+00 : f32
    %48 = vector.shape_cast %47 : vector<24x1xf32> to vector<24x1xf32>
    %49 = vector.broadcast %48 : vector<24x1xf32> to vector<24x80xf32>
    %50 = vector.broadcast %cst_12 : f32 to vector<24x80xf32>
    %51 = arith.select %46, %49, %50 : vector<24x80xi1>, vector<24x80xf32>
    %52 = arith.addf %43, %51 : vector<24x80xf32>
    %53 = vector.extract_strided_slice %3 {offsets = [0, 5], sizes = [24, 1], strides = [1, 1]} : vector<24x64xi32> to vector<24x1xi32>
    %54 = vector.broadcast %53 : vector<24x1xi32> to vector<24x80xi32>
    %55 = arith.cmpi eq, %54, %6 : vector<24x80xi32>
    %56 = vector.extract_strided_slice %5 {offsets = [0, 5], sizes = [24, 1], strides = [1, 1]} : vector<24x64xf32> to vector<24x1xf32>
    %cst_13 = arith.constant 0.000000e+00 : f32
    %57 = vector.shape_cast %56 : vector<24x1xf32> to vector<24x1xf32>
    %58 = vector.broadcast %57 : vector<24x1xf32> to vector<24x80xf32>
    %59 = vector.broadcast %cst_13 : f32 to vector<24x80xf32>
    %60 = arith.select %55, %58, %59 : vector<24x80xi1>, vector<24x80xf32>
    %61 = arith.addf %52, %60 : vector<24x80xf32>
    %62 = vector.extract_strided_slice %3 {offsets = [0, 6], sizes = [24, 1], strides = [1, 1]} : vector<24x64xi32> to vector<24x1xi32>
    %63 = vector.broadcast %62 : vector<24x1xi32> to vector<24x80xi32>
    %64 = arith.cmpi eq, %63, %6 : vector<24x80xi32>
    %65 = vector.extract_strided_slice %5 {offsets = [0, 6], sizes = [24, 1], strides = [1, 1]} : vector<24x64xf32> to vector<24x1xf32>
    %cst_14 = arith.constant 0.000000e+00 : f32
    %66 = vector.shape_cast %65 : vector<24x1xf32> to vector<24x1xf32>
    %67 = vector.broadcast %66 : vector<24x1xf32> to vector<24x80xf32>
    %68 = vector.broadcast %cst_14 : f32 to vector<24x80xf32>
    %69 = arith.select %64, %67, %68 : vector<24x80xi1>, vector<24x80xf32>
    %70 = arith.addf %61, %69 : vector<24x80xf32>
    %71 = vector.extract_strided_slice %3 {offsets = [0, 7], sizes = [24, 1], strides = [1, 1]} : vector<24x64xi32> to vector<24x1xi32>
    %72 = vector.broadcast %71 : vector<24x1xi32> to vector<24x80xi32>
    %73 = arith.cmpi eq, %72, %6 : vector<24x80xi32>
    %74 = vector.extract_strided_slice %5 {offsets = [0, 7], sizes = [24, 1], strides = [1, 1]} : vector<24x64xf32> to vector<24x1xf32>
    %cst_15 = arith.constant 0.000000e+00 : f32
    %75 = vector.shape_cast %74 : vector<24x1xf32> to vector<24x1xf32>
    %76 = vector.broadcast %75 : vector<24x1xf32> to vector<24x80xf32>
    %77 = vector.broadcast %cst_15 : f32 to vector<24x80xf32>
    %78 = arith.select %73, %76, %77 : vector<24x80xi1>, vector<24x80xf32>
    %79 = arith.addf %70, %78 : vector<24x80xf32>
    %80 = vector.extract_strided_slice %3 {offsets = [0, 8], sizes = [24, 1], strides = [1, 1]} : vector<24x64xi32> to vector<24x1xi32>
    %81 = vector.broadcast %80 : vector<24x1xi32> to vector<24x80xi32>
    %82 = arith.cmpi eq, %81, %6 : vector<24x80xi32>
    %83 = vector.extract_strided_slice %5 {offsets = [0, 8], sizes = [24, 1], strides = [1, 1]} : vector<24x64xf32> to vector<24x1xf32>
    %cst_16 = arith.constant 0.000000e+00 : f32
    %84 = vector.shape_cast %83 : vector<24x1xf32> to vector<24x1xf32>
    %85 = vector.broadcast %84 : vector<24x1xf32> to vector<24x80xf32>
    %86 = vector.broadcast %cst_16 : f32 to vector<24x80xf32>
    %87 = arith.select %82, %85, %86 : vector<24x80xi1>, vector<24x80xf32>
    %88 = arith.addf %79, %87 : vector<24x80xf32>
    %89 = vector.extract_strided_slice %3 {offsets = [0, 9], sizes = [24, 1], strides = [1, 1]} : vector<24x64xi32> to vector<24x1xi32>
    %90 = vector.broadcast %89 : vector<24x1xi32> to vector<24x80xi32>
    %91 = arith.cmpi eq, %90, %6 : vector<24x80xi32>
    %92 = vector.extract_strided_slice %5 {offsets = [0, 9], sizes = [24, 1], strides = [1, 1]} : vector<24x64xf32> to vector<24x1xf32>
    %cst_17 = arith.constant 0.000000e+00 : f32
    %93 = vector.shape_cast %92 : vector<24x1xf32> to vector<24x1xf32>
    %94 = vector.broadcast %93 : vector<24x1xf32> to vector<24x80xf32>
    %95 = vector.broadcast %cst_17 : f32 to vector<24x80xf32>
    %96 = arith.select %91, %94, %95 : vector<24x80xi1>, vector<24x80xf32>
    %97 = arith.addf %88, %96 : vector<24x80xf32>
    %98 = vector.extract_strided_slice %3 {offsets = [0, 10], sizes = [24, 1], strides = [1, 1]} : vector<24x64xi32> to vector<24x1xi32>
    %99 = vector.broadcast %98 : vector<24x1xi32> to vector<24x80xi32>
    %100 = arith.cmpi eq, %99, %6 : vector<24x80xi32>
    %101 = vector.extract_strided_slice %5 {offsets = [0, 10], sizes = [24, 1], strides = [1, 1]} : vector<24x64xf32> to vector<24x1xf32>
    %cst_18 = arith.constant 0.000000e+00 : f32
    %102 = vector.shape_cast %101 : vector<24x1xf32> to vector<24x1xf32>
    %103 = vector.broadcast %102 : vector<24x1xf32> to vector<24x80xf32>
    %104 = vector.broadcast %cst_18 : f32 to vector<24x80xf32>
    %105 = arith.select %100, %103, %104 : vector<24x80xi1>, vector<24x80xf32>
    %106 = arith.addf %97, %105 : vector<24x80xf32>
    %107 = vector.extract_strided_slice %3 {offsets = [0, 11], sizes = [24, 1], strides = [1, 1]} : vector<24x64xi32> to vector<24x1xi32>
    %108 = vector.broadcast %107 : vector<24x1xi32> to vector<24x80xi32>
    %109 = arith.cmpi eq, %108, %6 : vector<24x80xi32>
    %110 = vector.extract_strided_slice %5 {offsets = [0, 11], sizes = [24, 1], strides = [1, 1]} : vector<24x64xf32> to vector<24x1xf32>
    %cst_19 = arith.constant 0.000000e+00 : f32
    %111 = vector.shape_cast %110 : vector<24x1xf32> to vector<24x1xf32>
    %112 = vector.broadcast %111 : vector<24x1xf32> to vector<24x80xf32>
    %113 = vector.broadcast %cst_19 : f32 to vector<24x80xf32>
    %114 = arith.select %109, %112, %113 : vector<24x80xi1>, vector<24x80xf32>
    %115 = arith.addf %106, %114 : vector<24x80xf32>
    %116 = vector.extract_strided_slice %3 {offsets = [0, 12], sizes = [24, 1], strides = [1, 1]} : vector<24x64xi32> to vector<24x1xi32>
    %117 = vector.broadcast %116 : vector<24x1xi32> to vector<24x80xi32>
    %118 = arith.cmpi eq, %117, %6 : vector<24x80xi32>
    %119 = vector.extract_strided_slice %5 {offsets = [0, 12], sizes = [24, 1], strides = [1, 1]} : vector<24x64xf32> to vector<24x1xf32>
    %cst_20 = arith.constant 0.000000e+00 : f32
    %120 = vector.shape_cast %119 : vector<24x1xf32> to vector<24x1xf32>
    %121 = vector.broadcast %120 : vector<24x1xf32> to vector<24x80xf32>
    %122 = vector.broadcast %cst_20 : f32 to vector<24x80xf32>
    %123 = arith.select %118, %121, %122 : vector<24x80xi1>, vector<24x80xf32>
    %124 = arith.addf %115, %123 : vector<24x80xf32>
    %125 = vector.extract_strided_slice %3 {offsets = [0, 13], sizes = [24, 1], strides = [1, 1]} : vector<24x64xi32> to vector<24x1xi32>
    %126 = vector.broadcast %125 : vector<24x1xi32> to vector<24x80xi32>
    %127 = arith.cmpi eq, %126, %6 : vector<24x80xi32>
    %128 = vector.extract_strided_slice %5 {offsets = [0, 13], sizes = [24, 1], strides = [1, 1]} : vector<24x64xf32> to vector<24x1xf32>
    %cst_21 = arith.constant 0.000000e+00 : f32
    %129 = vector.shape_cast %128 : vector<24x1xf32> to vector<24x1xf32>
    %130 = vector.broadcast %129 : vector<24x1xf32> to vector<24x80xf32>
    %131 = vector.broadcast %cst_21 : f32 to vector<24x80xf32>
    %132 = arith.select %127, %130, %131 : vector<24x80xi1>, vector<24x80xf32>
    %133 = arith.addf %124, %132 : vector<24x80xf32>
    %134 = vector.extract_strided_slice %3 {offsets = [0, 14], sizes = [24, 1], strides = [1, 1]} : vector<24x64xi32> to vector<24x1xi32>
    %135 = vector.broadcast %134 : vector<24x1xi32> to vector<24x80xi32>
    %136 = arith.cmpi eq, %135, %6 : vector<24x80xi32>
    %137 = vector.extract_strided_slice %5 {offsets = [0, 14], sizes = [24, 1], strides = [1, 1]} : vector<24x64xf32> to vector<24x1xf32>
    %cst_22 = arith.constant 0.000000e+00 : f32
    %138 = vector.shape_cast %137 : vector<24x1xf32> to vector<24x1xf32>
    %139 = vector.broadcast %138 : vector<24x1xf32> to vector<24x80xf32>
    %140 = vector.broadcast %cst_22 : f32 to vector<24x80xf32>
    %141 = arith.select %136, %139, %140 : vector<24x80xi1>, vector<24x80xf32>
    %142 = arith.addf %133, %141 : vector<24x80xf32>
    %143 = vector.extract_strided_slice %3 {offsets = [0, 15], sizes = [24, 1], strides = [1, 1]} : vector<24x64xi32> to vector<24x1xi32>
    %144 = vector.broadcast %143 : vector<24x1xi32> to vector<24x80xi32>
    %145 = arith.cmpi eq, %144, %6 : vector<24x80xi32>
    %146 = vector.extract_strided_slice %5 {offsets = [0, 15], sizes = [24, 1], strides = [1, 1]} : vector<24x64xf32> to vector<24x1xf32>
    %cst_23 = arith.constant 0.000000e+00 : f32
    %147 = vector.shape_cast %146 : vector<24x1xf32> to vector<24x1xf32>
    %148 = vector.broadcast %147 : vector<24x1xf32> to vector<24x80xf32>
    %149 = vector.broadcast %cst_23 : f32 to vector<24x80xf32>
    %150 = arith.select %145, %148, %149 : vector<24x80xi1>, vector<24x80xf32>
    %151 = arith.addf %142, %150 : vector<24x80xf32>
    %152 = vector.extract_strided_slice %1 {offsets = [0, 0], sizes = [80, 8], strides = [1, 1]} : vector<80x32xf32> to vector<80x8xf32>
    %153 = arith.truncf %151 : vector<24x80xf32> to vector<24x80xbf16>
    %154 = arith.truncf %152 : vector<80x8xf32> to vector<80x8xbf16>
    %cst_24 = arith.constant dense<0.000000e+00> : vector<24x8xf32>
    %155 = tpu.matmul %153, %154, %cst_24 {dimension_numbers = #tpu.dot_dimension_numbers<[1], [0], [0], [1], [0, 0, 1, 1], [], []>} : vector<24x80xbf16>, vector<80x8xbf16>, vector<24x8xf32> -> vector<24x8xf32>
    %c0_25 = arith.constant 0 : index
    %c0_26 = arith.constant 0 : index
    %c0_27 = arith.constant 0 : index
    %156 = vector.load %arg5[%c0_25, %c0_26, %c0_27] : memref<1x24x32xf32, #tpu.memory_space<vmem>>, vector<1x24x8xf32>
    %157 = vector.shape_cast %156 : vector<1x24x8xf32> to vector<24x8xf32>
    %158 = vector.shape_cast %155 : vector<24x8xf32> to vector<1x24x8xf32>
    tpu.vector_store %arg5[%c0_25, %c0_26, %c0_27], %158 {strides = array<i32>} : memref<1x24x32xf32, #tpu.memory_space<vmem>>, vector<1x24x8xf32>,
    %cst_28 = arith.constant 0.000000e+00 : f32
    %159 = vector.broadcast %cst_28 : f32 to vector<24x80xf32>
    %160 = vector.extract_strided_slice %3 {offsets = [0, 16], sizes = [24, 1], strides = [1, 1]} : vector<24x64xi32> to vector<24x1xi32>
    %161 = vector.broadcast %160 : vector<24x1xi32> to vector<24x80xi32>
    %162 = arith.cmpi eq, %161, %6 : vector<24x80xi32>
    %163 = vector.extract_strided_slice %5 {offsets = [0, 16], sizes = [24, 1], strides = [1, 1]} : vector<24x64xf32> to vector<24x1xf32>
    %cst_29 = arith.constant 0.000000e+00 : f32
    %164 = vector.shape_cast %163 : vector<24x1xf32> to vector<24x1xf32>
    %165 = vector.broadcast %164 : vector<24x1xf32> to vector<24x80xf32>
    %166 = vector.broadcast %cst_29 : f32 to vector<24x80xf32>
    %167 = arith.select %162, %165, %166 : vector<24x80xi1>, vector<24x80xf32>
    %168 = arith.addf %159, %167 : vector<24x80xf32>
    %169 = vector.extract_strided_slice %3 {offsets = [0, 17], sizes = [24, 1], strides = [1, 1]} : vector<24x64xi32> to vector<24x1xi32>
    %170 = vector.broadcast %169 : vector<24x1xi32> to vector<24x80xi32>
    %171 = arith.cmpi eq, %170, %6 : vector<24x80xi32>
    %172 = vector.extract_strided_slice %5 {offsets = [0, 17], sizes = [24, 1], strides = [1, 1]} : vector<24x64xf32> to vector<24x1xf32>
    %cst_30 = arith.constant 0.000000e+00 : f32
    %173 = vector.shape_cast %172 : vector<24x1xf32> to vector<24x1xf32>
    %174 = vector.broadcast %173 : vector<24x1xf32> to vector<24x80xf32>
    %175 = vector.broadcast %cst_30 : f32 to vector<24x80xf32>
    %176 = arith.select %171, %174, %175 : vector<24x80xi1>, vector<24x80xf32>
    %177 = arith.addf %168, %176 : vector<24x80xf32>
    %178 = vector.extract_strided_slice %3 {offsets = [0, 18], sizes = [24, 1], strides = [1, 1]} : vector<24x64xi32> to vector<24x1xi32>
    %179 = vector.broadcast %178 : vector<24x1xi32> to vector<24x80xi32>
    %180 = arith.cmpi eq, %179, %6 : vector<24x80xi32>
    %181 = vector.extract_strided_slice %5 {offsets = [0, 18], sizes = [24, 1], strides = [1, 1]} : vector<24x64xf32> to vector<24x1xf32>
    %cst_31 = arith.constant 0.000000e+00 : f32
    %182 = vector.shape_cast %181 : vector<24x1xf32> to vector<24x1xf32>
    %183 = vector.broadcast %182 : vector<24x1xf32> to vector<24x80xf32>
    %184 = vector.broadcast %cst_31 : f32 to vector<24x80xf32>
    %185 = arith.select %180, %183, %184 : vector<24x80xi1>, vector<24x80xf32>
    %186 = arith.addf %177, %185 : vector<24x80xf32>
    %187 = vector.extract_strided_slice %3 {offsets = [0, 19], sizes = [24, 1], strides = [1, 1]} : vector<24x64xi32> to vector<24x1xi32>
    %188 = vector.broadcast %187 : vector<24x1xi32> to vector<24x80xi32>
    %189 = arith.cmpi eq, %188, %6 : vector<24x80xi32>
    %190 = vector.extract_strided_slice %5 {offsets = [0, 19], sizes = [24, 1], strides = [1, 1]} : vector<24x64xf32> to vector<24x1xf32>
    %cst_32 = arith.constant 0.000000e+00 : f32
    %191 = vector.shape_cast %190 : vector<24x1xf32> to vector<24x1xf32>
    %192 = vector.broadcast %191 : vector<24x1xf32> to vector<24x80xf32>
    %193 = vector.broadcast %cst_32 : f32 to vector<24x80xf32>
    %194 = arith.select %189, %192, %193 : vector<24x80xi1>, vector<24x80xf32>
    %195 = arith.addf %186, %194 : vector<24x80xf32>
    %196 = vector.extract_strided_slice %3 {offsets = [0, 20], sizes = [24, 1], strides = [1, 1]} : vector<24x64xi32> to vector<24x1xi32>
    %197 = vector.broadcast %196 : vector<24x1xi32> to vector<24x80xi32>
    %198 = arith.cmpi eq, %197, %6 : vector<24x80xi32>
    %199 = vector.extract_strided_slice %5 {offsets = [0, 20], sizes = [24, 1], strides = [1, 1]} : vector<24x64xf32> to vector<24x1xf32>
    %cst_33 = arith.constant 0.000000e+00 : f32
    %200 = vector.shape_cast %199 : vector<24x1xf32> to vector<24x1xf32>
    %201 = vector.broadcast %200 : vector<24x1xf32> to vector<24x80xf32>
    %202 = vector.broadcast %cst_33 : f32 to vector<24x80xf32>
    %203 = arith.select %198, %201, %202 : vector<24x80xi1>, vector<24x80xf32>
    %204 = arith.addf %195, %203 : vector<24x80xf32>
    %205 = vector.extract_strided_slice %3 {offsets = [0, 21], sizes = [24, 1], strides = [1, 1]} : vector<24x64xi32> to vector<24x1xi32>
    %206 = vector.broadcast %205 : vector<24x1xi32> to vector<24x80xi32>
    %207 = arith.cmpi eq, %206, %6 : vector<24x80xi32>
    %208 = vector.extract_strided_slice %5 {offsets = [0, 21], sizes = [24, 1], strides = [1, 1]} : vector<24x64xf32> to vector<24x1xf32>
    %cst_34 = arith.constant 0.000000e+00 : f32
    %209 = vector.shape_cast %208 : vector<24x1xf32> to vector<24x1xf32>
    %210 = vector.broadcast %209 : vector<24x1xf32> to vector<24x80xf32>
    %211 = vector.broadcast %cst_34 : f32 to vector<24x80xf32>
    %212 = arith.select %207, %210, %211 : vector<24x80xi1>, vector<24x80xf32>
    %213 = arith.addf %204, %212 : vector<24x80xf32>
    %214 = vector.extract_strided_slice %3 {offsets = [0, 22], sizes = [24, 1], strides = [1, 1]} : vector<24x64xi32> to vector<24x1xi32>
    %215 = vector.broadcast %214 : vector<24x1xi32> to vector<24x80xi32>
    %216 = arith.cmpi eq, %215, %6 : vector<24x80xi32>
    %217 = vector.extract_strided_slice %5 {offsets = [0, 22], sizes = [24, 1], strides = [1, 1]} : vector<24x64xf32> to vector<24x1xf32>
    %cst_35 = arith.constant 0.000000e+00 : f32
    %218 = vector.shape_cast %217 : vector<24x1xf32> to vector<24x1xf32>
    %219 = vector.broadcast %218 : vector<24x1xf32> to vector<24x80xf32>
    %220 = vector.broadcast %cst_35 : f32 to vector<24x80xf32>
    %221 = arith.select %216, %219, %220 : vector<24x80xi1>, vector<24x80xf32>
    %222 = arith.addf %213, %221 : vector<24x80xf32>
    %223 = vector.extract_strided_slice %3 {offsets = [0, 23], sizes = [24, 1], strides = [1, 1]} : vector<24x64xi32> to vector<24x1xi32>
    %224 = vector.broadcast %223 : vector<24x1xi32> to vector<24x80xi32>
    %225 = arith.cmpi eq, %224, %6 : vector<24x80xi32>
    %226 = vector.extract_strided_slice %5 {offsets = [0, 23], sizes = [24, 1], strides = [1, 1]} : vector<24x64xf32> to vector<24x1xf32>
    %cst_36 = arith.constant 0.000000e+00 : f32
    %227 = vector.shape_cast %226 : vector<24x1xf32> to vector<24x1xf32>
    %228 = vector.broadcast %227 : vector<24x1xf32> to vector<24x80xf32>
    %229 = vector.broadcast %cst_36 : f32 to vector<24x80xf32>
    %230 = arith.select %225, %228, %229 : vector<24x80xi1>, vector<24x80xf32>
    %231 = arith.addf %222, %230 : vector<24x80xf32>
    %232 = vector.extract_strided_slice %3 {offsets = [0, 24], sizes = [24, 1], strides = [1, 1]} : vector<24x64xi32> to vector<24x1xi32>
    %233 = vector.broadcast %232 : vector<24x1xi32> to vector<24x80xi32>
    %234 = arith.cmpi eq, %233, %6 : vector<24x80xi32>
    %235 = vector.extract_strided_slice %5 {offsets = [0, 24], sizes = [24, 1], strides = [1, 1]} : vector<24x64xf32> to vector<24x1xf32>
    %cst_37 = arith.constant 0.000000e+00 : f32
    %236 = vector.shape_cast %235 : vector<24x1xf32> to vector<24x1xf32>
    %237 = vector.broadcast %236 : vector<24x1xf32> to vector<24x80xf32>
    %238 = vector.broadcast %cst_37 : f32 to vector<24x80xf32>
    %239 = arith.select %234, %237, %238 : vector<24x80xi1>, vector<24x80xf32>
    %240 = arith.addf %231, %239 : vector<24x80xf32>
    %241 = vector.extract_strided_slice %3 {offsets = [0, 25], sizes = [24, 1], strides = [1, 1]} : vector<24x64xi32> to vector<24x1xi32>
    %242 = vector.broadcast %241 : vector<24x1xi32> to vector<24x80xi32>
    %243 = arith.cmpi eq, %242, %6 : vector<24x80xi32>
    %244 = vector.extract_strided_slice %5 {offsets = [0, 25], sizes = [24, 1], strides = [1, 1]} : vector<24x64xf32> to vector<24x1xf32>
    %cst_38 = arith.constant 0.000000e+00 : f32
    %245 = vector.shape_cast %244 : vector<24x1xf32> to vector<24x1xf32>
    %246 = vector.broadcast %245 : vector<24x1xf32> to vector<24x80xf32>
    %247 = vector.broadcast %cst_38 : f32 to vector<24x80xf32>
    %248 = arith.select %243, %246, %247 : vector<24x80xi1>, vector<24x80xf32>
    %249 = arith.addf %240, %248 : vector<24x80xf32>
    %250 = vector.extract_strided_slice %3 {offsets = [0, 26], sizes = [24, 1], strides = [1, 1]} : vector<24x64xi32> to vector<24x1xi32>
    %251 = vector.broadcast %250 : vector<24x1xi32> to vector<24x80xi32>
    %252 = arith.cmpi eq, %251, %6 : vector<24x80xi32>
    %253 = vector.extract_strided_slice %5 {offsets = [0, 26], sizes = [24, 1], strides = [1, 1]} : vector<24x64xf32> to vector<24x1xf32>
    %cst_39 = arith.constant 0.000000e+00 : f32
    %254 = vector.shape_cast %253 : vector<24x1xf32> to vector<24x1xf32>
    %255 = vector.broadcast %254 : vector<24x1xf32> to vector<24x80xf32>
    %256 = vector.broadcast %cst_39 : f32 to vector<24x80xf32>
    %257 = arith.select %252, %255, %256 : vector<24x80xi1>, vector<24x80xf32>
    %258 = arith.addf %249, %257 : vector<24x80xf32>
    %259 = vector.extract_strided_slice %3 {offsets = [0, 27], sizes = [24, 1], strides = [1, 1]} : vector<24x64xi32> to vector<24x1xi32>
    %260 = vector.broadcast %259 : vector<24x1xi32> to vector<24x80xi32>
    %261 = arith.cmpi eq, %260, %6 : vector<24x80xi32>
    %262 = vector.extract_strided_slice %5 {offsets = [0, 27], sizes = [24, 1], strides = [1, 1]} : vector<24x64xf32> to vector<24x1xf32>
    %cst_40 = arith.constant 0.000000e+00 : f32
    %263 = vector.shape_cast %262 : vector<24x1xf32> to vector<24x1xf32>
    %264 = vector.broadcast %263 : vector<24x1xf32> to vector<24x80xf32>
    %265 = vector.broadcast %cst_40 : f32 to vector<24x80xf32>
    %266 = arith.select %261, %264, %265 : vector<24x80xi1>, vector<24x80xf32>
    %267 = arith.addf %258, %266 : vector<24x80xf32>
    %268 = vector.extract_strided_slice %3 {offsets = [0, 28], sizes = [24, 1], strides = [1, 1]} : vector<24x64xi32> to vector<24x1xi32>
    %269 = vector.broadcast %268 : vector<24x1xi32> to vector<24x80xi32>
    %270 = arith.cmpi eq, %269, %6 : vector<24x80xi32>
    %271 = vector.extract_strided_slice %5 {offsets = [0, 28], sizes = [24, 1], strides = [1, 1]} : vector<24x64xf32> to vector<24x1xf32>
    %cst_41 = arith.constant 0.000000e+00 : f32
    %272 = vector.shape_cast %271 : vector<24x1xf32> to vector<24x1xf32>
    %273 = vector.broadcast %272 : vector<24x1xf32> to vector<24x80xf32>
    %274 = vector.broadcast %cst_41 : f32 to vector<24x80xf32>
    %275 = arith.select %270, %273, %274 : vector<24x80xi1>, vector<24x80xf32>
    %276 = arith.addf %267, %275 : vector<24x80xf32>
    %277 = vector.extract_strided_slice %3 {offsets = [0, 29], sizes = [24, 1], strides = [1, 1]} : vector<24x64xi32> to vector<24x1xi32>
    %278 = vector.broadcast %277 : vector<24x1xi32> to vector<24x80xi32>
    %279 = arith.cmpi eq, %278, %6 : vector<24x80xi32>
    %280 = vector.extract_strided_slice %5 {offsets = [0, 29], sizes = [24, 1], strides = [1, 1]} : vector<24x64xf32> to vector<24x1xf32>
    %cst_42 = arith.constant 0.000000e+00 : f32
    %281 = vector.shape_cast %280 : vector<24x1xf32> to vector<24x1xf32>
    %282 = vector.broadcast %281 : vector<24x1xf32> to vector<24x80xf32>
    %283 = vector.broadcast %cst_42 : f32 to vector<24x80xf32>
    %284 = arith.select %279, %282, %283 : vector<24x80xi1>, vector<24x80xf32>
    %285 = arith.addf %276, %284 : vector<24x80xf32>
    %286 = vector.extract_strided_slice %3 {offsets = [0, 30], sizes = [24, 1], strides = [1, 1]} : vector<24x64xi32> to vector<24x1xi32>
    %287 = vector.broadcast %286 : vector<24x1xi32> to vector<24x80xi32>
    %288 = arith.cmpi eq, %287, %6 : vector<24x80xi32>
    %289 = vector.extract_strided_slice %5 {offsets = [0, 30], sizes = [24, 1], strides = [1, 1]} : vector<24x64xf32> to vector<24x1xf32>
    %cst_43 = arith.constant 0.000000e+00 : f32
    %290 = vector.shape_cast %289 : vector<24x1xf32> to vector<24x1xf32>
    %291 = vector.broadcast %290 : vector<24x1xf32> to vector<24x80xf32>
    %292 = vector.broadcast %cst_43 : f32 to vector<24x80xf32>
    %293 = arith.select %288, %291, %292 : vector<24x80xi1>, vector<24x80xf32>
    %294 = arith.addf %285, %293 : vector<24x80xf32>
    %295 = vector.extract_strided_slice %3 {offsets = [0, 31], sizes = [24, 1], strides = [1, 1]} : vector<24x64xi32> to vector<24x1xi32>
    %296 = vector.broadcast %295 : vector<24x1xi32> to vector<24x80xi32>
    %297 = arith.cmpi eq, %296, %6 : vector<24x80xi32>
    %298 = vector.extract_strided_slice %5 {offsets = [0, 31], sizes = [24, 1], strides = [1, 1]} : vector<24x64xf32> to vector<24x1xf32>
    %cst_44 = arith.constant 0.000000e+00 : f32
    %299 = vector.shape_cast %298 : vector<24x1xf32> to vector<24x1xf32>
    %300 = vector.broadcast %299 : vector<24x1xf32> to vector<24x80xf32>
    %301 = vector.broadcast %cst_44 : f32 to vector<24x80xf32>
    %302 = arith.select %297, %300, %301 : vector<24x80xi1>, vector<24x80xf32>
    %303 = arith.addf %294, %302 : vector<24x80xf32>
    %304 = vector.extract_strided_slice %1 {offsets = [0, 8], sizes = [80, 8], strides = [1, 1]} : vector<80x32xf32> to vector<80x8xf32>
    %305 = arith.truncf %303 : vector<24x80xf32> to vector<24x80xbf16>
    %306 = arith.truncf %304 : vector<80x8xf32> to vector<80x8xbf16>
    %cst_45 = arith.constant dense<0.000000e+00> : vector<24x8xf32>
    %307 = tpu.matmul %305, %306, %cst_45 {dimension_numbers = #tpu.dot_dimension_numbers<[1], [0], [0], [1], [0, 0, 1, 1], [], []>} : vector<24x80xbf16>, vector<80x8xbf16>, vector<24x8xf32> -> vector<24x8xf32>
    %c0_46 = arith.constant 0 : index
    %c0_47 = arith.constant 0 : index
    %c8 = arith.constant 8 : index
    %308 = vector.load %arg5[%c0_46, %c0_47, %c8] : memref<1x24x32xf32, #tpu.memory_space<vmem>>, vector<1x24x8xf32>
    %309 = vector.shape_cast %308 : vector<1x24x8xf32> to vector<24x8xf32>
    %310 = vector.shape_cast %307 : vector<24x8xf32> to vector<1x24x8xf32>
    tpu.vector_store %arg5[%c0_46, %c0_47, %c8], %310 {strides = array<i32>} : memref<1x24x32xf32, #tpu.memory_space<vmem>>, vector<1x24x8xf32>,
    %cst_48 = arith.constant 0.000000e+00 : f32
    %311 = vector.broadcast %cst_48 : f32 to vector<24x80xf32>
    %312 = vector.extract_strided_slice %3 {offsets = [0, 32], sizes = [24, 1], strides = [1, 1]} : vector<24x64xi32> to vector<24x1xi32>
    %313 = vector.broadcast %312 : vector<24x1xi32> to vector<24x80xi32>
    %314 = arith.cmpi eq, %313, %6 : vector<24x80xi32>
    %315 = vector.extract_strided_slice %5 {offsets = [0, 32], sizes = [24, 1], strides = [1, 1]} : vector<24x64xf32> to vector<24x1xf32>
    %cst_49 = arith.constant 0.000000e+00 : f32
    %316 = vector.shape_cast %315 : vector<24x1xf32> to vector<24x1xf32>
    %317 = vector.broadcast %316 : vector<24x1xf32> to vector<24x80xf32>
    %318 = vector.broadcast %cst_49 : f32 to vector<24x80xf32>
    %319 = arith.select %314, %317, %318 : vector<24x80xi1>, vector<24x80xf32>
    %320 = arith.addf %311, %319 : vector<24x80xf32>
    %321 = vector.extract_strided_slice %3 {offsets = [0, 33], sizes = [24, 1], strides = [1, 1]} : vector<24x64xi32> to vector<24x1xi32>
    %322 = vector.broadcast %321 : vector<24x1xi32> to vector<24x80xi32>
    %323 = arith.cmpi eq, %322, %6 : vector<24x80xi32>
    %324 = vector.extract_strided_slice %5 {offsets = [0, 33], sizes = [24, 1], strides = [1, 1]} : vector<24x64xf32> to vector<24x1xf32>
    %cst_50 = arith.constant 0.000000e+00 : f32
    %325 = vector.shape_cast %324 : vector<24x1xf32> to vector<24x1xf32>
    %326 = vector.broadcast %325 : vector<24x1xf32> to vector<24x80xf32>
    %327 = vector.broadcast %cst_50 : f32 to vector<24x80xf32>
    %328 = arith.select %323, %326, %327 : vector<24x80xi1>, vector<24x80xf32>
    %329 = arith.addf %320, %328 : vector<24x80xf32>
    %330 = vector.extract_strided_slice %3 {offsets = [0, 34], sizes = [24, 1], strides = [1, 1]} : vector<24x64xi32> to vector<24x1xi32>
    %331 = vector.broadcast %330 : vector<24x1xi32> to vector<24x80xi32>
    %332 = arith.cmpi eq, %331, %6 : vector<24x80xi32>
    %333 = vector.extract_strided_slice %5 {offsets = [0, 34], sizes = [24, 1], strides = [1, 1]} : vector<24x64xf32> to vector<24x1xf32>
    %cst_51 = arith.constant 0.000000e+00 : f32
    %334 = vector.shape_cast %333 : vector<24x1xf32> to vector<24x1xf32>
    %335 = vector.broadcast %334 : vector<24x1xf32> to vector<24x80xf32>
    %336 = vector.broadcast %cst_51 : f32 to vector<24x80xf32>
    %337 = arith.select %332, %335, %336 : vector<24x80xi1>, vector<24x80xf32>
    %338 = arith.addf %329, %337 : vector<24x80xf32>
    %339 = vector.extract_strided_slice %3 {offsets = [0, 35], sizes = [24, 1], strides = [1, 1]} : vector<24x64xi32> to vector<24x1xi32>
    %340 = vector.broadcast %339 : vector<24x1xi32> to vector<24x80xi32>
    %341 = arith.cmpi eq, %340, %6 : vector<24x80xi32>
    %342 = vector.extract_strided_slice %5 {offsets = [0, 35], sizes = [24, 1], strides = [1, 1]} : vector<24x64xf32> to vector<24x1xf32>
    %cst_52 = arith.constant 0.000000e+00 : f32
    %343 = vector.shape_cast %342 : vector<24x1xf32> to vector<24x1xf32>
    %344 = vector.broadcast %343 : vector<24x1xf32> to vector<24x80xf32>
    %345 = vector.broadcast %cst_52 : f32 to vector<24x80xf32>
    %346 = arith.select %341, %344, %345 : vector<24x80xi1>, vector<24x80xf32>
    %347 = arith.addf %338, %346 : vector<24x80xf32>
    %348 = vector.extract_strided_slice %3 {offsets = [0, 36], sizes = [24, 1], strides = [1, 1]} : vector<24x64xi32> to vector<24x1xi32>
    %349 = vector.broadcast %348 : vector<24x1xi32> to vector<24x80xi32>
    %350 = arith.cmpi eq, %349, %6 : vector<24x80xi32>
    %351 = vector.extract_strided_slice %5 {offsets = [0, 36], sizes = [24, 1], strides = [1, 1]} : vector<24x64xf32> to vector<24x1xf32>
    %cst_53 = arith.constant 0.000000e+00 : f32
    %352 = vector.shape_cast %351 : vector<24x1xf32> to vector<24x1xf32>
    %353 = vector.broadcast %352 : vector<24x1xf32> to vector<24x80xf32>
    %354 = vector.broadcast %cst_53 : f32 to vector<24x80xf32>
    %355 = arith.select %350, %353, %354 : vector<24x80xi1>, vector<24x80xf32>
    %356 = arith.addf %347, %355 : vector<24x80xf32>
    %357 = vector.extract_strided_slice %3 {offsets = [0, 37], sizes = [24, 1], strides = [1, 1]} : vector<24x64xi32> to vector<24x1xi32>
    %358 = vector.broadcast %357 : vector<24x1xi32> to vector<24x80xi32>
    %359 = arith.cmpi eq, %358, %6 : vector<24x80xi32>
    %360 = vector.extract_strided_slice %5 {offsets = [0, 37], sizes = [24, 1], strides = [1, 1]} : vector<24x64xf32> to vector<24x1xf32>
    %cst_54 = arith.constant 0.000000e+00 : f32
    %361 = vector.shape_cast %360 : vector<24x1xf32> to vector<24x1xf32>
    %362 = vector.broadcast %361 : vector<24x1xf32> to vector<24x80xf32>
    %363 = vector.broadcast %cst_54 : f32 to vector<24x80xf32>
    %364 = arith.select %359, %362, %363 : vector<24x80xi1>, vector<24x80xf32>
    %365 = arith.addf %356, %364 : vector<24x80xf32>
    %366 = vector.extract_strided_slice %3 {offsets = [0, 38], sizes = [24, 1], strides = [1, 1]} : vector<24x64xi32> to vector<24x1xi32>
    %367 = vector.broadcast %366 : vector<24x1xi32> to vector<24x80xi32>
    %368 = arith.cmpi eq, %367, %6 : vector<24x80xi32>
    %369 = vector.extract_strided_slice %5 {offsets = [0, 38], sizes = [24, 1], strides = [1, 1]} : vector<24x64xf32> to vector<24x1xf32>
    %cst_55 = arith.constant 0.000000e+00 : f32
    %370 = vector.shape_cast %369 : vector<24x1xf32> to vector<24x1xf32>
    %371 = vector.broadcast %370 : vector<24x1xf32> to vector<24x80xf32>
    %372 = vector.broadcast %cst_55 : f32 to vector<24x80xf32>
    %373 = arith.select %368, %371, %372 : vector<24x80xi1>, vector<24x80xf32>
    %374 = arith.addf %365, %373 : vector<24x80xf32>
    %375 = vector.extract_strided_slice %3 {offsets = [0, 39], sizes = [24, 1], strides = [1, 1]} : vector<24x64xi32> to vector<24x1xi32>
    %376 = vector.broadcast %375 : vector<24x1xi32> to vector<24x80xi32>
    %377 = arith.cmpi eq, %376, %6 : vector<24x80xi32>
    %378 = vector.extract_strided_slice %5 {offsets = [0, 39], sizes = [24, 1], strides = [1, 1]} : vector<24x64xf32> to vector<24x1xf32>
    %cst_56 = arith.constant 0.000000e+00 : f32
    %379 = vector.shape_cast %378 : vector<24x1xf32> to vector<24x1xf32>
    %380 = vector.broadcast %379 : vector<24x1xf32> to vector<24x80xf32>
    %381 = vector.broadcast %cst_56 : f32 to vector<24x80xf32>
    %382 = arith.select %377, %380, %381 : vector<24x80xi1>, vector<24x80xf32>
    %383 = arith.addf %374, %382 : vector<24x80xf32>
    %384 = vector.extract_strided_slice %3 {offsets = [0, 40], sizes = [24, 1], strides = [1, 1]} : vector<24x64xi32> to vector<24x1xi32>
    %385 = vector.broadcast %384 : vector<24x1xi32> to vector<24x80xi32>
    %386 = arith.cmpi eq, %385, %6 : vector<24x80xi32>
    %387 = vector.extract_strided_slice %5 {offsets = [0, 40], sizes = [24, 1], strides = [1, 1]} : vector<24x64xf32> to vector<24x1xf32>
    %cst_57 = arith.constant 0.000000e+00 : f32
    %388 = vector.shape_cast %387 : vector<24x1xf32> to vector<24x1xf32>
    %389 = vector.broadcast %388 : vector<24x1xf32> to vector<24x80xf32>
    %390 = vector.broadcast %cst_57 : f32 to vector<24x80xf32>
    %391 = arith.select %386, %389, %390 : vector<24x80xi1>, vector<24x80xf32>
    %392 = arith.addf %383, %391 : vector<24x80xf32>
    %393 = vector.extract_strided_slice %3 {offsets = [0, 41], sizes = [24, 1], strides = [1, 1]} : vector<24x64xi32> to vector<24x1xi32>
    %394 = vector.broadcast %393 : vector<24x1xi32> to vector<24x80xi32>
    %395 = arith.cmpi eq, %394, %6 : vector<24x80xi32>
    %396 = vector.extract_strided_slice %5 {offsets = [0, 41], sizes = [24, 1], strides = [1, 1]} : vector<24x64xf32> to vector<24x1xf32>
    %cst_58 = arith.constant 0.000000e+00 : f32
    %397 = vector.shape_cast %396 : vector<24x1xf32> to vector<24x1xf32>
    %398 = vector.broadcast %397 : vector<24x1xf32> to vector<24x80xf32>
    %399 = vector.broadcast %cst_58 : f32 to vector<24x80xf32>
    %400 = arith.select %395, %398, %399 : vector<24x80xi1>, vector<24x80xf32>
    %401 = arith.addf %392, %400 : vector<24x80xf32>
    %402 = vector.extract_strided_slice %3 {offsets = [0, 42], sizes = [24, 1], strides = [1, 1]} : vector<24x64xi32> to vector<24x1xi32>
    %403 = vector.broadcast %402 : vector<24x1xi32> to vector<24x80xi32>
    %404 = arith.cmpi eq, %403, %6 : vector<24x80xi32>
    %405 = vector.extract_strided_slice %5 {offsets = [0, 42], sizes = [24, 1], strides = [1, 1]} : vector<24x64xf32> to vector<24x1xf32>
    %cst_59 = arith.constant 0.000000e+00 : f32
    %406 = vector.shape_cast %405 : vector<24x1xf32> to vector<24x1xf32>
    %407 = vector.broadcast %406 : vector<24x1xf32> to vector<24x80xf32>
    %408 = vector.broadcast %cst_59 : f32 to vector<24x80xf32>
    %409 = arith.select %404, %407, %408 : vector<24x80xi1>, vector<24x80xf32>
    %410 = arith.addf %401, %409 : vector<24x80xf32>
    %411 = vector.extract_strided_slice %3 {offsets = [0, 43], sizes = [24, 1], strides = [1, 1]} : vector<24x64xi32> to vector<24x1xi32>
    %412 = vector.broadcast %411 : vector<24x1xi32> to vector<24x80xi32>
    %413 = arith.cmpi eq, %412, %6 : vector<24x80xi32>
    %414 = vector.extract_strided_slice %5 {offsets = [0, 43], sizes = [24, 1], strides = [1, 1]} : vector<24x64xf32> to vector<24x1xf32>
    %cst_60 = arith.constant 0.000000e+00 : f32
    %415 = vector.shape_cast %414 : vector<24x1xf32> to vector<24x1xf32>
    %416 = vector.broadcast %415 : vector<24x1xf32> to vector<24x80xf32>
    %417 = vector.broadcast %cst_60 : f32 to vector<24x80xf32>
    %418 = arith.select %413, %416, %417 : vector<24x80xi1>, vector<24x80xf32>
    %419 = arith.addf %410, %418 : vector<24x80xf32>
    %420 = vector.extract_strided_slice %3 {offsets = [0, 44], sizes = [24, 1], strides = [1, 1]} : vector<24x64xi32> to vector<24x1xi32>
    %421 = vector.broadcast %420 : vector<24x1xi32> to vector<24x80xi32>
    %422 = arith.cmpi eq, %421, %6 : vector<24x80xi32>
    %423 = vector.extract_strided_slice %5 {offsets = [0, 44], sizes = [24, 1], strides = [1, 1]} : vector<24x64xf32> to vector<24x1xf32>
    %cst_61 = arith.constant 0.000000e+00 : f32
    %424 = vector.shape_cast %423 : vector<24x1xf32> to vector<24x1xf32>
    %425 = vector.broadcast %424 : vector<24x1xf32> to vector<24x80xf32>
    %426 = vector.broadcast %cst_61 : f32 to vector<24x80xf32>
    %427 = arith.select %422, %425, %426 : vector<24x80xi1>, vector<24x80xf32>
    %428 = arith.addf %419, %427 : vector<24x80xf32>
    %429 = vector.extract_strided_slice %3 {offsets = [0, 45], sizes = [24, 1], strides = [1, 1]} : vector<24x64xi32> to vector<24x1xi32>
    %430 = vector.broadcast %429 : vector<24x1xi32> to vector<24x80xi32>
    %431 = arith.cmpi eq, %430, %6 : vector<24x80xi32>
    %432 = vector.extract_strided_slice %5 {offsets = [0, 45], sizes = [24, 1], strides = [1, 1]} : vector<24x64xf32> to vector<24x1xf32>
    %cst_62 = arith.constant 0.000000e+00 : f32
    %433 = vector.shape_cast %432 : vector<24x1xf32> to vector<24x1xf32>
    %434 = vector.broadcast %433 : vector<24x1xf32> to vector<24x80xf32>
    %435 = vector.broadcast %cst_62 : f32 to vector<24x80xf32>
    %436 = arith.select %431, %434, %435 : vector<24x80xi1>, vector<24x80xf32>
    %437 = arith.addf %428, %436 : vector<24x80xf32>
    %438 = vector.extract_strided_slice %3 {offsets = [0, 46], sizes = [24, 1], strides = [1, 1]} : vector<24x64xi32> to vector<24x1xi32>
    %439 = vector.broadcast %438 : vector<24x1xi32> to vector<24x80xi32>
    %440 = arith.cmpi eq, %439, %6 : vector<24x80xi32>
    %441 = vector.extract_strided_slice %5 {offsets = [0, 46], sizes = [24, 1], strides = [1, 1]} : vector<24x64xf32> to vector<24x1xf32>
    %cst_63 = arith.constant 0.000000e+00 : f32
    %442 = vector.shape_cast %441 : vector<24x1xf32> to vector<24x1xf32>
    %443 = vector.broadcast %442 : vector<24x1xf32> to vector<24x80xf32>
    %444 = vector.broadcast %cst_63 : f32 to vector<24x80xf32>
    %445 = arith.select %440, %443, %444 : vector<24x80xi1>, vector<24x80xf32>
    %446 = arith.addf %437, %445 : vector<24x80xf32>
    %447 = vector.extract_strided_slice %3 {offsets = [0, 47], sizes = [24, 1], strides = [1, 1]} : vector<24x64xi32> to vector<24x1xi32>
    %448 = vector.broadcast %447 : vector<24x1xi32> to vector<24x80xi32>
    %449 = arith.cmpi eq, %448, %6 : vector<24x80xi32>
    %450 = vector.extract_strided_slice %5 {offsets = [0, 47], sizes = [24, 1], strides = [1, 1]} : vector<24x64xf32> to vector<24x1xf32>
    %cst_64 = arith.constant 0.000000e+00 : f32
    %451 = vector.shape_cast %450 : vector<24x1xf32> to vector<24x1xf32>
    %452 = vector.broadcast %451 : vector<24x1xf32> to vector<24x80xf32>
    %453 = vector.broadcast %cst_64 : f32 to vector<24x80xf32>
    %454 = arith.select %449, %452, %453 : vector<24x80xi1>, vector<24x80xf32>
    %455 = arith.addf %446, %454 : vector<24x80xf32>
    %456 = vector.extract_strided_slice %1 {offsets = [0, 16], sizes = [80, 8], strides = [1, 1]} : vector<80x32xf32> to vector<80x8xf32>
    %457 = arith.truncf %455 : vector<24x80xf32> to vector<24x80xbf16>
    %458 = arith.truncf %456 : vector<80x8xf32> to vector<80x8xbf16>
    %cst_65 = arith.constant dense<0.000000e+00> : vector<24x8xf32>
    %459 = tpu.matmul %457, %458, %cst_65 {dimension_numbers = #tpu.dot_dimension_numbers<[1], [0], [0], [1], [0, 0, 1, 1], [], []>} : vector<24x80xbf16>, vector<80x8xbf16>, vector<24x8xf32> -> vector<24x8xf32>
    %c0_66 = arith.constant 0 : index
    %c0_67 = arith.constant 0 : index
    %c16 = arith.constant 16 : index
    %460 = vector.load %arg5[%c0_66, %c0_67, %c16] : memref<1x24x32xf32, #tpu.memory_space<vmem>>, vector<1x24x8xf32>
    %461 = vector.shape_cast %460 : vector<1x24x8xf32> to vector<24x8xf32>
    %462 = vector.shape_cast %459 : vector<24x8xf32> to vector<1x24x8xf32>
    tpu.vector_store %arg5[%c0_66, %c0_67, %c16], %462 {strides = array<i32>} : memref<1x24x32xf32, #tpu.memory_space<vmem>>, vector<1x24x8xf32>,
    %cst_68 = arith.constant 0.000000e+00 : f32
    %463 = vector.broadcast %cst_68 : f32 to vector<24x80xf32>
    %464 = vector.extract_strided_slice %3 {offsets = [0, 48], sizes = [24, 1], strides = [1, 1]} : vector<24x64xi32> to vector<24x1xi32>
    %465 = vector.broadcast %464 : vector<24x1xi32> to vector<24x80xi32>
    %466 = arith.cmpi eq, %465, %6 : vector<24x80xi32>
    %467 = vector.extract_strided_slice %5 {offsets = [0, 48], sizes = [24, 1], strides = [1, 1]} : vector<24x64xf32> to vector<24x1xf32>
    %cst_69 = arith.constant 0.000000e+00 : f32
    %468 = vector.shape_cast %467 : vector<24x1xf32> to vector<24x1xf32>
    %469 = vector.broadcast %468 : vector<24x1xf32> to vector<24x80xf32>
    %470 = vector.broadcast %cst_69 : f32 to vector<24x80xf32>
    %471 = arith.select %466, %469, %470 : vector<24x80xi1>, vector<24x80xf32>
    %472 = arith.addf %463, %471 : vector<24x80xf32>
    %473 = vector.extract_strided_slice %3 {offsets = [0, 49], sizes = [24, 1], strides = [1, 1]} : vector<24x64xi32> to vector<24x1xi32>
    %474 = vector.broadcast %473 : vector<24x1xi32> to vector<24x80xi32>
    %475 = arith.cmpi eq, %474, %6 : vector<24x80xi32>
    %476 = vector.extract_strided_slice %5 {offsets = [0, 49], sizes = [24, 1], strides = [1, 1]} : vector<24x64xf32> to vector<24x1xf32>
    %cst_70 = arith.constant 0.000000e+00 : f32
    %477 = vector.shape_cast %476 : vector<24x1xf32> to vector<24x1xf32>
    %478 = vector.broadcast %477 : vector<24x1xf32> to vector<24x80xf32>
    %479 = vector.broadcast %cst_70 : f32 to vector<24x80xf32>
    %480 = arith.select %475, %478, %479 : vector<24x80xi1>, vector<24x80xf32>
    %481 = arith.addf %472, %480 : vector<24x80xf32>
    %482 = vector.extract_strided_slice %3 {offsets = [0, 50], sizes = [24, 1], strides = [1, 1]} : vector<24x64xi32> to vector<24x1xi32>
    %483 = vector.broadcast %482 : vector<24x1xi32> to vector<24x80xi32>
    %484 = arith.cmpi eq, %483, %6 : vector<24x80xi32>
    %485 = vector.extract_strided_slice %5 {offsets = [0, 50], sizes = [24, 1], strides = [1, 1]} : vector<24x64xf32> to vector<24x1xf32>
    %cst_71 = arith.constant 0.000000e+00 : f32
    %486 = vector.shape_cast %485 : vector<24x1xf32> to vector<24x1xf32>
    %487 = vector.broadcast %486 : vector<24x1xf32> to vector<24x80xf32>
    %488 = vector.broadcast %cst_71 : f32 to vector<24x80xf32>
    %489 = arith.select %484, %487, %488 : vector<24x80xi1>, vector<24x80xf32>
    %490 = arith.addf %481, %489 : vector<24x80xf32>
    %491 = vector.extract_strided_slice %3 {offsets = [0, 51], sizes = [24, 1], strides = [1, 1]} : vector<24x64xi32> to vector<24x1xi32>
    %492 = vector.broadcast %491 : vector<24x1xi32> to vector<24x80xi32>
    %493 = arith.cmpi eq, %492, %6 : vector<24x80xi32>
    %494 = vector.extract_strided_slice %5 {offsets = [0, 51], sizes = [24, 1], strides = [1, 1]} : vector<24x64xf32> to vector<24x1xf32>
    %cst_72 = arith.constant 0.000000e+00 : f32
    %495 = vector.shape_cast %494 : vector<24x1xf32> to vector<24x1xf32>
    %496 = vector.broadcast %495 : vector<24x1xf32> to vector<24x80xf32>
    %497 = vector.broadcast %cst_72 : f32 to vector<24x80xf32>
    %498 = arith.select %493, %496, %497 : vector<24x80xi1>, vector<24x80xf32>
    %499 = arith.addf %490, %498 : vector<24x80xf32>
    %500 = vector.extract_strided_slice %3 {offsets = [0, 52], sizes = [24, 1], strides = [1, 1]} : vector<24x64xi32> to vector<24x1xi32>
    %501 = vector.broadcast %500 : vector<24x1xi32> to vector<24x80xi32>
    %502 = arith.cmpi eq, %501, %6 : vector<24x80xi32>
    %503 = vector.extract_strided_slice %5 {offsets = [0, 52], sizes = [24, 1], strides = [1, 1]} : vector<24x64xf32> to vector<24x1xf32>
    %cst_73 = arith.constant 0.000000e+00 : f32
    %504 = vector.shape_cast %503 : vector<24x1xf32> to vector<24x1xf32>
    %505 = vector.broadcast %504 : vector<24x1xf32> to vector<24x80xf32>
    %506 = vector.broadcast %cst_73 : f32 to vector<24x80xf32>
    %507 = arith.select %502, %505, %506 : vector<24x80xi1>, vector<24x80xf32>
    %508 = arith.addf %499, %507 : vector<24x80xf32>
    %509 = vector.extract_strided_slice %3 {offsets = [0, 53], sizes = [24, 1], strides = [1, 1]} : vector<24x64xi32> to vector<24x1xi32>
    %510 = vector.broadcast %509 : vector<24x1xi32> to vector<24x80xi32>
    %511 = arith.cmpi eq, %510, %6 : vector<24x80xi32>
    %512 = vector.extract_strided_slice %5 {offsets = [0, 53], sizes = [24, 1], strides = [1, 1]} : vector<24x64xf32> to vector<24x1xf32>
    %cst_74 = arith.constant 0.000000e+00 : f32
    %513 = vector.shape_cast %512 : vector<24x1xf32> to vector<24x1xf32>
    %514 = vector.broadcast %513 : vector<24x1xf32> to vector<24x80xf32>
    %515 = vector.broadcast %cst_74 : f32 to vector<24x80xf32>
    %516 = arith.select %511, %514, %515 : vector<24x80xi1>, vector<24x80xf32>
    %517 = arith.addf %508, %516 : vector<24x80xf32>
    %518 = vector.extract_strided_slice %3 {offsets = [0, 54], sizes = [24, 1], strides = [1, 1]} : vector<24x64xi32> to vector<24x1xi32>
    %519 = vector.broadcast %518 : vector<24x1xi32> to vector<24x80xi32>
    %520 = arith.cmpi eq, %519, %6 : vector<24x80xi32>
    %521 = vector.extract_strided_slice %5 {offsets = [0, 54], sizes = [24, 1], strides = [1, 1]} : vector<24x64xf32> to vector<24x1xf32>
    %cst_75 = arith.constant 0.000000e+00 : f32
    %522 = vector.shape_cast %521 : vector<24x1xf32> to vector<24x1xf32>
    %523 = vector.broadcast %522 : vector<24x1xf32> to vector<24x80xf32>
    %524 = vector.broadcast %cst_75 : f32 to vector<24x80xf32>
    %525 = arith.select %520, %523, %524 : vector<24x80xi1>, vector<24x80xf32>
    %526 = arith.addf %517, %525 : vector<24x80xf32>
    %527 = vector.extract_strided_slice %3 {offsets = [0, 55], sizes = [24, 1], strides = [1, 1]} : vector<24x64xi32> to vector<24x1xi32>
    %528 = vector.broadcast %527 : vector<24x1xi32> to vector<24x80xi32>
    %529 = arith.cmpi eq, %528, %6 : vector<24x80xi32>
    %530 = vector.extract_strided_slice %5 {offsets = [0, 55], sizes = [24, 1], strides = [1, 1]} : vector<24x64xf32> to vector<24x1xf32>
    %cst_76 = arith.constant 0.000000e+00 : f32
    %531 = vector.shape_cast %530 : vector<24x1xf32> to vector<24x1xf32>
    %532 = vector.broadcast %531 : vector<24x1xf32> to vector<24x80xf32>
    %533 = vector.broadcast %cst_76 : f32 to vector<24x80xf32>
    %534 = arith.select %529, %532, %533 : vector<24x80xi1>, vector<24x80xf32>
    %535 = arith.addf %526, %534 : vector<24x80xf32>
    %536 = vector.extract_strided_slice %3 {offsets = [0, 56], sizes = [24, 1], strides = [1, 1]} : vector<24x64xi32> to vector<24x1xi32>
    %537 = vector.broadcast %536 : vector<24x1xi32> to vector<24x80xi32>
    %538 = arith.cmpi eq, %537, %6 : vector<24x80xi32>
    %539 = vector.extract_strided_slice %5 {offsets = [0, 56], sizes = [24, 1], strides = [1, 1]} : vector<24x64xf32> to vector<24x1xf32>
    %cst_77 = arith.constant 0.000000e+00 : f32
    %540 = vector.shape_cast %539 : vector<24x1xf32> to vector<24x1xf32>
    %541 = vector.broadcast %540 : vector<24x1xf32> to vector<24x80xf32>
    %542 = vector.broadcast %cst_77 : f32 to vector<24x80xf32>
    %543 = arith.select %538, %541, %542 : vector<24x80xi1>, vector<24x80xf32>
    %544 = arith.addf %535, %543 : vector<24x80xf32>
    %545 = vector.extract_strided_slice %3 {offsets = [0, 57], sizes = [24, 1], strides = [1, 1]} : vector<24x64xi32> to vector<24x1xi32>
    %546 = vector.broadcast %545 : vector<24x1xi32> to vector<24x80xi32>
    %547 = arith.cmpi eq, %546, %6 : vector<24x80xi32>
    %548 = vector.extract_strided_slice %5 {offsets = [0, 57], sizes = [24, 1], strides = [1, 1]} : vector<24x64xf32> to vector<24x1xf32>
    %cst_78 = arith.constant 0.000000e+00 : f32
    %549 = vector.shape_cast %548 : vector<24x1xf32> to vector<24x1xf32>
    %550 = vector.broadcast %549 : vector<24x1xf32> to vector<24x80xf32>
    %551 = vector.broadcast %cst_78 : f32 to vector<24x80xf32>
    %552 = arith.select %547, %550, %551 : vector<24x80xi1>, vector<24x80xf32>
    %553 = arith.addf %544, %552 : vector<24x80xf32>
    %554 = vector.extract_strided_slice %3 {offsets = [0, 58], sizes = [24, 1], strides = [1, 1]} : vector<24x64xi32> to vector<24x1xi32>
    %555 = vector.broadcast %554 : vector<24x1xi32> to vector<24x80xi32>
    %556 = arith.cmpi eq, %555, %6 : vector<24x80xi32>
    %557 = vector.extract_strided_slice %5 {offsets = [0, 58], sizes = [24, 1], strides = [1, 1]} : vector<24x64xf32> to vector<24x1xf32>
    %cst_79 = arith.constant 0.000000e+00 : f32
    %558 = vector.shape_cast %557 : vector<24x1xf32> to vector<24x1xf32>
    %559 = vector.broadcast %558 : vector<24x1xf32> to vector<24x80xf32>
    %560 = vector.broadcast %cst_79 : f32 to vector<24x80xf32>
    %561 = arith.select %556, %559, %560 : vector<24x80xi1>, vector<24x80xf32>
    %562 = arith.addf %553, %561 : vector<24x80xf32>
    %563 = vector.extract_strided_slice %3 {offsets = [0, 59], sizes = [24, 1], strides = [1, 1]} : vector<24x64xi32> to vector<24x1xi32>
    %564 = vector.broadcast %563 : vector<24x1xi32> to vector<24x80xi32>
    %565 = arith.cmpi eq, %564, %6 : vector<24x80xi32>
    %566 = vector.extract_strided_slice %5 {offsets = [0, 59], sizes = [24, 1], strides = [1, 1]} : vector<24x64xf32> to vector<24x1xf32>
    %cst_80 = arith.constant 0.000000e+00 : f32
    %567 = vector.shape_cast %566 : vector<24x1xf32> to vector<24x1xf32>
    %568 = vector.broadcast %567 : vector<24x1xf32> to vector<24x80xf32>
    %569 = vector.broadcast %cst_80 : f32 to vector<24x80xf32>
    %570 = arith.select %565, %568, %569 : vector<24x80xi1>, vector<24x80xf32>
    %571 = arith.addf %562, %570 : vector<24x80xf32>
    %572 = vector.extract_strided_slice %3 {offsets = [0, 60], sizes = [24, 1], strides = [1, 1]} : vector<24x64xi32> to vector<24x1xi32>
    %573 = vector.broadcast %572 : vector<24x1xi32> to vector<24x80xi32>
    %574 = arith.cmpi eq, %573, %6 : vector<24x80xi32>
    %575 = vector.extract_strided_slice %5 {offsets = [0, 60], sizes = [24, 1], strides = [1, 1]} : vector<24x64xf32> to vector<24x1xf32>
    %cst_81 = arith.constant 0.000000e+00 : f32
    %576 = vector.shape_cast %575 : vector<24x1xf32> to vector<24x1xf32>
    %577 = vector.broadcast %576 : vector<24x1xf32> to vector<24x80xf32>
    %578 = vector.broadcast %cst_81 : f32 to vector<24x80xf32>
    %579 = arith.select %574, %577, %578 : vector<24x80xi1>, vector<24x80xf32>
    %580 = arith.addf %571, %579 : vector<24x80xf32>
    %581 = vector.extract_strided_slice %3 {offsets = [0, 61], sizes = [24, 1], strides = [1, 1]} : vector<24x64xi32> to vector<24x1xi32>
    %582 = vector.broadcast %581 : vector<24x1xi32> to vector<24x80xi32>
    %583 = arith.cmpi eq, %582, %6 : vector<24x80xi32>
    %584 = vector.extract_strided_slice %5 {offsets = [0, 61], sizes = [24, 1], strides = [1, 1]} : vector<24x64xf32> to vector<24x1xf32>
    %cst_82 = arith.constant 0.000000e+00 : f32
    %585 = vector.shape_cast %584 : vector<24x1xf32> to vector<24x1xf32>
    %586 = vector.broadcast %585 : vector<24x1xf32> to vector<24x80xf32>
    %587 = vector.broadcast %cst_82 : f32 to vector<24x80xf32>
    %588 = arith.select %583, %586, %587 : vector<24x80xi1>, vector<24x80xf32>
    %589 = arith.addf %580, %588 : vector<24x80xf32>
    %590 = vector.extract_strided_slice %3 {offsets = [0, 62], sizes = [24, 1], strides = [1, 1]} : vector<24x64xi32> to vector<24x1xi32>
    %591 = vector.broadcast %590 : vector<24x1xi32> to vector<24x80xi32>
    %592 = arith.cmpi eq, %591, %6 : vector<24x80xi32>
    %593 = vector.extract_strided_slice %5 {offsets = [0, 62], sizes = [24, 1], strides = [1, 1]} : vector<24x64xf32> to vector<24x1xf32>
    %cst_83 = arith.constant 0.000000e+00 : f32
    %594 = vector.shape_cast %593 : vector<24x1xf32> to vector<24x1xf32>
    %595 = vector.broadcast %594 : vector<24x1xf32> to vector<24x80xf32>
    %596 = vector.broadcast %cst_83 : f32 to vector<24x80xf32>
    %597 = arith.select %592, %595, %596 : vector<24x80xi1>, vector<24x80xf32>
    %598 = arith.addf %589, %597 : vector<24x80xf32>
    %599 = vector.extract_strided_slice %3 {offsets = [0, 63], sizes = [24, 1], strides = [1, 1]} : vector<24x64xi32> to vector<24x1xi32>
    %600 = vector.broadcast %599 : vector<24x1xi32> to vector<24x80xi32>
    %601 = arith.cmpi eq, %600, %6 : vector<24x80xi32>
    %602 = vector.extract_strided_slice %5 {offsets = [0, 63], sizes = [24, 1], strides = [1, 1]} : vector<24x64xf32> to vector<24x1xf32>
    %cst_84 = arith.constant 0.000000e+00 : f32
    %603 = vector.shape_cast %602 : vector<24x1xf32> to vector<24x1xf32>
    %604 = vector.broadcast %603 : vector<24x1xf32> to vector<24x80xf32>
    %605 = vector.broadcast %cst_84 : f32 to vector<24x80xf32>
    %606 = arith.select %601, %604, %605 : vector<24x80xi1>, vector<24x80xf32>
    %607 = arith.addf %598, %606 : vector<24x80xf32>
    %608 = vector.extract_strided_slice %1 {offsets = [0, 24], sizes = [80, 8], strides = [1, 1]} : vector<80x32xf32> to vector<80x8xf32>
    %609 = arith.truncf %607 : vector<24x80xf32> to vector<24x80xbf16>
    %610 = arith.truncf %608 : vector<80x8xf32> to vector<80x8xbf16>
    %cst_85 = arith.constant dense<0.000000e+00> : vector<24x8xf32>
    %611 = tpu.matmul %609, %610, %cst_85 {dimension_numbers = #tpu.dot_dimension_numbers<[1], [0], [0], [1], [0, 0, 1, 1], [], []>} : vector<24x80xbf16>, vector<80x8xbf16>, vector<24x8xf32> -> vector<24x8xf32>
    %c0_86 = arith.constant 0 : index
    %c0_87 = arith.constant 0 : index
    %c24 = arith.constant 24 : index
    %612 = vector.load %arg5[%c0_86, %c0_87, %c24] : memref<1x24x32xf32, #tpu.memory_space<vmem>>, vector<1x24x8xf32>
    %613 = vector.shape_cast %612 : vector<1x24x8xf32> to vector<24x8xf32>
    %614 = vector.shape_cast %611 : vector<24x8xf32> to vector<1x24x8xf32>
    tpu.vector_store %arg5[%c0_86, %c0_87, %c24], %614 {strides = array<i32>} : memref<1x24x32xf32, #tpu.memory_space<vmem>>, vector<1x24x8xf32>,
    return
  }
  func.func @transform_0(%arg0: i32, %arg1: i32) -> (i32, i32, i32) {
    %c0_i32 = arith.constant 0 : i32
    %c0_i32_0 = arith.constant 0 : i32
    %c0_i32_1 = arith.constant 0 : i32
    return %arg0, %c0_i32, %c0_i32_0 : i32, i32, i32
  }
  func.func @transform_1(%arg0: i32, %arg1: i32) -> (i32, i32, i32) {
    %c0_i32 = arith.constant 0 : i32
    %c0_i32_0 = arith.constant 0 : i32
    return %arg0, %arg1, %c0_i32 : i32, i32, i32
  }
  func.func @transform_2(%arg0: i32, %arg1: i32) -> (i32, i32, i32) {
    %c0_i32 = arith.constant 0 : i32
    %c0_i32_0 = arith.constant 0 : i32
    return %arg0, %arg1, %c0_i32 : i32, i32, i32
  }
  func.func @transform_3(%arg0: i32, %arg1: i32) -> (i32, i32, i32) {
    %c0_i32 = arith.constant 0 : i32
    %c0_i32_0 = arith.constant 0 : i32
    return %arg0, %arg1, %c0_i32 : i32, i32, i32
  }
}

module attributes {stable_mosaic.version = 11 : i64} {
  func.func @_cross_tail_kernel(%arg0: i32, %arg1: memref<48x32xf32, #tpu.memory_space<vmem>>, %arg2: memref<48x32xf32, #tpu.memory_space<vmem>>, %arg3: memref<32x32xbf16, #tpu.memory_space<vmem>>, %arg4: memref<1x32xf32, #tpu.memory_space<vmem>>, %arg5: memref<1x32xf32, #tpu.memory_space<vmem>>, %arg6: memref<1x32xf32, #tpu.memory_space<vmem>>, %arg7: memref<32x64xbf16, #tpu.memory_space<vmem>>, %arg8: memref<1x64xf32, #tpu.memory_space<vmem>>, %arg9: memref<64x32xbf16, #tpu.memory_space<vmem>>, %arg10: memref<1x32xf32, #tpu.memory_space<vmem>>, %arg11: memref<1x32xf32, #tpu.memory_space<vmem>>, %arg12: memref<1x32xf32, #tpu.memory_space<vmem>>, %arg13: memref<48x32xf32, #tpu.memory_space<vmem>>) attributes {dimension_semantics = [#tpu.dimension_semantics<parallel>], iteration_bounds = array<i64: 1>, scalar_prefetch = 0 : i64, scratch_operands = 0 : i64, tpu.core_type = #tpu.core_type<tc>, window_params = [{transform_indices = @transform_0, window_bounds = array<i64: 48, 32>}, {transform_indices = @transform_1, window_bounds = array<i64: 48, 32>}, {pipeline_mode = #tpu.pipeline_mode<synchronous>, transform_indices = @transform_2, window_bounds = array<i64: 32, 32>}, {pipeline_mode = #tpu.pipeline_mode<synchronous>, transform_indices = @transform_3, window_bounds = array<i64: 1, 32>}, {pipeline_mode = #tpu.pipeline_mode<synchronous>, transform_indices = @transform_4, window_bounds = array<i64: 1, 32>}, {pipeline_mode = #tpu.pipeline_mode<synchronous>, transform_indices = @transform_5, window_bounds = array<i64: 1, 32>}, {pipeline_mode = #tpu.pipeline_mode<synchronous>, transform_indices = @transform_6, window_bounds = array<i64: 32, 64>}, {pipeline_mode = #tpu.pipeline_mode<synchronous>, transform_indices = @transform_7, window_bounds = array<i64: 1, 64>}, {pipeline_mode = #tpu.pipeline_mode<synchronous>, transform_indices = @transform_8, window_bounds = array<i64: 64, 32>}, {pipeline_mode = #tpu.pipeline_mode<synchronous>, transform_indices = @transform_9, window_bounds = array<i64: 1, 32>}, {pipeline_mode = #tpu.pipeline_mode<synchronous>, transform_indices = @transform_10, window_bounds = array<i64: 1, 32>}, {pipeline_mode = #tpu.pipeline_mode<synchronous>, transform_indices = @transform_11, window_bounds = array<i64: 1, 32>}, {transform_indices = @transform_12, window_bounds = array<i64: 48, 32>}]} {
    %c0 = arith.constant 0 : index
    %c0_0 = arith.constant 0 : index
    %0 = vector.load %arg2[%c0, %c0_0] : memref<48x32xf32, #tpu.memory_space<vmem>>, vector<48x32xf32>
    %c0_1 = arith.constant 0 : index
    %c0_2 = arith.constant 0 : index
    %1 = vector.load %arg1[%c0_1, %c0_2] : memref<48x32xf32, #tpu.memory_space<vmem>>, vector<48x32xf32>
    %c0_3 = arith.constant 0 : index
    %c0_4 = arith.constant 0 : index
    %2 = vector.load %arg3[%c0_3, %c0_4] : memref<32x32xbf16, #tpu.memory_space<vmem>>, vector<32x32xbf16>
    %3 = arith.truncf %1 : vector<48x32xf32> to vector<48x32xbf16>
    %cst = arith.constant dense<0.000000e+00> : vector<48x32xf32>
    %4 = tpu.matmul %3, %2, %cst {dimension_numbers = #tpu.dot_dimension_numbers<[1], [0], [0], [1], [0, 0, 1, 1], [], []>} : vector<48x32xbf16>, vector<32x32xbf16>, vector<48x32xf32> -> vector<48x32xf32>
    %5 = arith.addf %0, %4 : vector<48x32xf32>
    %c0_5 = arith.constant 0 : index
    %c0_6 = arith.constant 0 : index
    %6 = vector.load %arg4[%c0_5, %c0_6] : memref<1x32xf32, #tpu.memory_space<vmem>>, vector<1x32xf32>
    %7 = vector.broadcast %6 : vector<1x32xf32> to vector<48x32xf32>
    %8 = arith.addf %5, %7 : vector<48x32xf32>
    %c0_7 = arith.constant 0 : index
    %c0_8 = arith.constant 0 : index
    %9 = vector.load %arg5[%c0_7, %c0_8] : memref<1x32xf32, #tpu.memory_space<vmem>>, vector<1x32xf32>
    %c0_9 = arith.constant 0 : index
    %c0_10 = arith.constant 0 : index
    %10 = vector.load %arg6[%c0_9, %c0_10] : memref<1x32xf32, #tpu.memory_space<vmem>>, vector<1x32xf32>
    %cst_11 = arith.constant dense<0.000000e+00> : vector<48xf32>
    %11 = vector.multi_reduction <add>, %8, %cst_11 [1] : vector<48x32xf32> to vector<48xf32>
    %12 = vector.shape_cast %11 : vector<48xf32> to vector<48x1xf32>
    %cst_12 = arith.constant 3.200000e+01 : f32
    %13 = vector.broadcast %cst_12 : f32 to vector<48x1xf32>
    %14 = arith.divf %12, %13 : vector<48x1xf32>
    %15 = vector.broadcast %14 : vector<48x1xf32> to vector<48x32xf32>
    %16 = arith.subf %8, %15 : vector<48x32xf32>
    %17 = arith.mulf %16, %16 : vector<48x32xf32>
    %cst_13 = arith.constant dense<0.000000e+00> : vector<48xf32>
    %18 = vector.multi_reduction <add>, %17, %cst_13 [1] : vector<48x32xf32> to vector<48xf32>
    %19 = vector.shape_cast %18 : vector<48xf32> to vector<48x1xf32>
    %cst_14 = arith.constant 3.200000e+01 : f32
    %20 = vector.broadcast %cst_14 : f32 to vector<48x1xf32>
    %21 = arith.divf %19, %20 : vector<48x1xf32>
    %cst_15 = arith.constant 9.99999974E-6 : f32
    %22 = vector.broadcast %cst_15 : f32 to vector<48x1xf32>
    %23 = arith.addf %21, %22 : vector<48x1xf32>
    %24 = math.rsqrt %23 : vector<48x1xf32>
    %25 = vector.broadcast %24 : vector<48x1xf32> to vector<48x32xf32>
    %26 = arith.mulf %16, %25 : vector<48x32xf32>
    %27 = vector.broadcast %9 : vector<1x32xf32> to vector<48x32xf32>
    %28 = arith.mulf %26, %27 : vector<48x32xf32>
    %29 = vector.broadcast %10 : vector<1x32xf32> to vector<48x32xf32>
    %30 = arith.addf %28, %29 : vector<48x32xf32>
    %c0_16 = arith.constant 0 : index
    %c0_17 = arith.constant 0 : index
    %31 = vector.load %arg7[%c0_16, %c0_17] : memref<32x64xbf16, #tpu.memory_space<vmem>>, vector<32x64xbf16>
    %32 = arith.truncf %30 : vector<48x32xf32> to vector<48x32xbf16>
    %cst_18 = arith.constant dense<0.000000e+00> : vector<48x64xf32>
    %33 = tpu.matmul %32, %31, %cst_18 {dimension_numbers = #tpu.dot_dimension_numbers<[1], [0], [0], [1], [0, 0, 1, 1], [], []>} : vector<48x32xbf16>, vector<32x64xbf16>, vector<48x64xf32> -> vector<48x64xf32>
    %c0_19 = arith.constant 0 : index
    %c0_20 = arith.constant 0 : index
    %34 = vector.load %arg8[%c0_19, %c0_20] : memref<1x64xf32, #tpu.memory_space<vmem>>, vector<1x64xf32>
    %35 = vector.broadcast %34 : vector<1x64xf32> to vector<48x64xf32>
    %36 = arith.addf %33, %35 : vector<48x64xf32>
    %cst_21 = arith.constant 0.000000e+00 : f32
    %37 = vector.broadcast %cst_21 : f32 to vector<48x64xf32>
    %38 = arith.maximumf %36, %37 : vector<48x64xf32>
    %c0_22 = arith.constant 0 : index
    %c0_23 = arith.constant 0 : index
    %39 = vector.load %arg9[%c0_22, %c0_23] : memref<64x32xbf16, #tpu.memory_space<vmem>>, vector<64x32xbf16>
    %40 = arith.truncf %38 : vector<48x64xf32> to vector<48x64xbf16>
    %cst_24 = arith.constant dense<0.000000e+00> : vector<48x32xf32>
    %41 = tpu.matmul %40, %39, %cst_24 {dimension_numbers = #tpu.dot_dimension_numbers<[1], [0], [0], [1], [0, 0, 1, 1], [], []>} : vector<48x64xbf16>, vector<64x32xbf16>, vector<48x32xf32> -> vector<48x32xf32>
    %42 = arith.addf %30, %41 : vector<48x32xf32>
    %c0_25 = arith.constant 0 : index
    %c0_26 = arith.constant 0 : index
    %43 = vector.load %arg10[%c0_25, %c0_26] : memref<1x32xf32, #tpu.memory_space<vmem>>, vector<1x32xf32>
    %44 = vector.broadcast %43 : vector<1x32xf32> to vector<48x32xf32>
    %45 = arith.addf %42, %44 : vector<48x32xf32>
    %c0_27 = arith.constant 0 : index
    %c0_28 = arith.constant 0 : index
    %46 = vector.load %arg11[%c0_27, %c0_28] : memref<1x32xf32, #tpu.memory_space<vmem>>, vector<1x32xf32>
    %c0_29 = arith.constant 0 : index
    %c0_30 = arith.constant 0 : index
    %47 = vector.load %arg12[%c0_29, %c0_30] : memref<1x32xf32, #tpu.memory_space<vmem>>, vector<1x32xf32>
    %cst_31 = arith.constant dense<0.000000e+00> : vector<48xf32>
    %48 = vector.multi_reduction <add>, %45, %cst_31 [1] : vector<48x32xf32> to vector<48xf32>
    %49 = vector.shape_cast %48 : vector<48xf32> to vector<48x1xf32>
    %cst_32 = arith.constant 3.200000e+01 : f32
    %50 = vector.broadcast %cst_32 : f32 to vector<48x1xf32>
    %51 = arith.divf %49, %50 : vector<48x1xf32>
    %52 = vector.broadcast %51 : vector<48x1xf32> to vector<48x32xf32>
    %53 = arith.subf %45, %52 : vector<48x32xf32>
    %54 = arith.mulf %53, %53 : vector<48x32xf32>
    %cst_33 = arith.constant dense<0.000000e+00> : vector<48xf32>
    %55 = vector.multi_reduction <add>, %54, %cst_33 [1] : vector<48x32xf32> to vector<48xf32>
    %56 = vector.shape_cast %55 : vector<48xf32> to vector<48x1xf32>
    %cst_34 = arith.constant 3.200000e+01 : f32
    %57 = vector.broadcast %cst_34 : f32 to vector<48x1xf32>
    %58 = arith.divf %56, %57 : vector<48x1xf32>
    %cst_35 = arith.constant 9.99999974E-6 : f32
    %59 = vector.broadcast %cst_35 : f32 to vector<48x1xf32>
    %60 = arith.addf %58, %59 : vector<48x1xf32>
    %61 = math.rsqrt %60 : vector<48x1xf32>
    %62 = vector.broadcast %61 : vector<48x1xf32> to vector<48x32xf32>
    %63 = arith.mulf %53, %62 : vector<48x32xf32>
    %64 = vector.broadcast %46 : vector<1x32xf32> to vector<48x32xf32>
    %65 = arith.mulf %63, %64 : vector<48x32xf32>
    %66 = vector.broadcast %47 : vector<1x32xf32> to vector<48x32xf32>
    %67 = arith.addf %65, %66 : vector<48x32xf32>
    %c0_36 = arith.constant 0 : index
    %c0_37 = arith.constant 0 : index
    %68 = vector.load %arg13[%c0_36, %c0_37] : memref<48x32xf32, #tpu.memory_space<vmem>>, vector<48x32xf32>
    tpu.vector_store %arg13[%c0_36, %c0_37], %67 {strides = array<i32>} : memref<48x32xf32, #tpu.memory_space<vmem>>, vector<48x32xf32>,
    return
  }
  func.func @transform_0(%arg0: i32) -> (i32, i32) {
    %c0_i32 = arith.constant 0 : i32
    %c0_i32_0 = arith.constant 0 : i32
    return %arg0, %c0_i32 : i32, i32
  }
  func.func @transform_1(%arg0: i32) -> (i32, i32) {
    %c0_i32 = arith.constant 0 : i32
    %c0_i32_0 = arith.constant 0 : i32
    return %arg0, %c0_i32 : i32, i32
  }
  func.func @transform_2(%arg0: i32) -> (i32, i32) {
    %c0_i32 = arith.constant 0 : i32
    %c0_i32_0 = arith.constant 0 : i32
    %c0_i32_1 = arith.constant 0 : i32
    return %c0_i32, %c0_i32_0 : i32, i32
  }
  func.func @transform_3(%arg0: i32) -> (i32, i32) {
    %c0_i32 = arith.constant 0 : i32
    %c0_i32_0 = arith.constant 0 : i32
    %c0_i32_1 = arith.constant 0 : i32
    return %c0_i32, %c0_i32_0 : i32, i32
  }
  func.func @transform_4(%arg0: i32) -> (i32, i32) {
    %c0_i32 = arith.constant 0 : i32
    %c0_i32_0 = arith.constant 0 : i32
    %c0_i32_1 = arith.constant 0 : i32
    return %c0_i32, %c0_i32_0 : i32, i32
  }
  func.func @transform_5(%arg0: i32) -> (i32, i32) {
    %c0_i32 = arith.constant 0 : i32
    %c0_i32_0 = arith.constant 0 : i32
    %c0_i32_1 = arith.constant 0 : i32
    return %c0_i32, %c0_i32_0 : i32, i32
  }
  func.func @transform_6(%arg0: i32) -> (i32, i32) {
    %c0_i32 = arith.constant 0 : i32
    %c0_i32_0 = arith.constant 0 : i32
    %c0_i32_1 = arith.constant 0 : i32
    return %c0_i32, %c0_i32_0 : i32, i32
  }
  func.func @transform_7(%arg0: i32) -> (i32, i32) {
    %c0_i32 = arith.constant 0 : i32
    %c0_i32_0 = arith.constant 0 : i32
    %c0_i32_1 = arith.constant 0 : i32
    return %c0_i32, %c0_i32_0 : i32, i32
  }
  func.func @transform_8(%arg0: i32) -> (i32, i32) {
    %c0_i32 = arith.constant 0 : i32
    %c0_i32_0 = arith.constant 0 : i32
    %c0_i32_1 = arith.constant 0 : i32
    return %c0_i32, %c0_i32_0 : i32, i32
  }
  func.func @transform_9(%arg0: i32) -> (i32, i32) {
    %c0_i32 = arith.constant 0 : i32
    %c0_i32_0 = arith.constant 0 : i32
    %c0_i32_1 = arith.constant 0 : i32
    return %c0_i32, %c0_i32_0 : i32, i32
  }
  func.func @transform_10(%arg0: i32) -> (i32, i32) {
    %c0_i32 = arith.constant 0 : i32
    %c0_i32_0 = arith.constant 0 : i32
    %c0_i32_1 = arith.constant 0 : i32
    return %c0_i32, %c0_i32_0 : i32, i32
  }
  func.func @transform_11(%arg0: i32) -> (i32, i32) {
    %c0_i32 = arith.constant 0 : i32
    %c0_i32_0 = arith.constant 0 : i32
    %c0_i32_1 = arith.constant 0 : i32
    return %c0_i32, %c0_i32_0 : i32, i32
  }
  func.func @transform_12(%arg0: i32) -> (i32, i32) {
    %c0_i32 = arith.constant 0 : i32
    %c0_i32_0 = arith.constant 0 : i32
    return %arg0, %c0_i32 : i32, i32
  }
}

</mosaic_0001>

<bundles_post_ra>
// kernel: deformable_control_layer_forward.7
= control target key start
LH: loop header
LB: loop body
LE: loop exit
PB: predicated region body
PF: predicated region fallthrough
CT: control target
= control target key end

     0   :  { %v467_v0 = vmov 0.0   ;;  %vm468_vm0 = vmmov 0   ;;  %vm67_vm1 = vcmask 261120   ;;  %vm140_vm2 = vcmask 392448   ;;  %s639_s2 = inlined_call_operand.vmem [shape: bf16[32,48], index: 2, kind: input, shape index: {}]   ;;  %s640_s0 = inlined_call_operand.vmem [shape: f32[48,32], index: 0, kind: input, shape index: {}]   ;;  %s641_s1 = inlined_call_operand.vmem [shape: f32[48,32], index: 1, kind: input, shape index: {}]   ;;  %s642_s3 = inlined_call_operand.vmem [shape: f32[1,48], index: 3, kind: input, shape index: {}]   ;;  %s643_s5 = inlined_call_operand.vmem [shape: f32[48,32], index: 5, kind: output, shape index: {0}]   ;;  %s644_s4 = inlined_call_operand.vmem [shape: f32[16,16], index: 4, kind: input, shape index: {}]   ;;  %s645_s6 = inlined_call_operand.vmem [shape: f32[48,16], index: 6, kind: output, shape index: {1}]  }
   0x1   :  { %404 = vmatprep.subr.bf16.mxu0 %v467_v0  ;;  %v441_v1 = vld [vmem:[%s639_s2] sm:$0xff]   ;;  %408 = vmatprep.mubr.msk.bf16.mxu0 %vm468_vm0, %v467_v0  ;;  %v442_v2 = vld [vmem:[%s639_s2 + $0x8] sm:$0xff]   ;;  %v25_v9 = vld [vmem:[%s640_s0 + $0x10] sm:$0xff]  ;;  %vm197_vm3 = vcmask 130048  }
   0x2   :  { %405 = vmatpush3.bf16.msra.mxu0 %v441_v1  ;;  %v23_v3 = vld [vmem:[%s640_s0] sm:$0xff]  ;;  %v24_v4 = vld [vmem:[%s640_s0 + $0x8] sm:$0xff]  ;;  %v26_v11 = vld [vmem:[%s640_s0 + $0x18] sm:$0xff] }
   0x3   :  { %v29_v5 = vld [vmem:[%s641_s1] sm:$0xff]  ;;  %406 = vmatprep.subr.bf16.mxu0 %v467_v0  ;;  %v30_v6 = vld [vmem:[%s641_s1 + $0x8] sm:$0xff]  ;;  %v31_v12 = vld [vmem:[%s641_s1 + $0x10] sm:$0xff] }
   0x4   :  { %v35_v7 = vadd.f32 %v29_v5, %v23_v3  ;;  %v36_v8 = vadd.f32 %v30_v6, %v24_v4  ;;  %v32_v13 = vld [vmem:[%s641_s1 + $0x18] sm:$0xff]  ;;  %v37_v14 = vadd.f32 %v31_v12, %v25_v9  ;;  %v27_v17 = vld [vmem:[%s640_s0 + $0x20] sm:$0xff]  ;;  %v28_v18 = vld [vmem:[%s640_s0 + $0x28] sm:$0xff] }
   0x5   :  { %v38_v15 = vadd.f32 %v32_v13, %v26_v11  ;;  %v33_v19 = vld [vmem:[%s641_s1 + $0x20] sm:$0xff]  ;;  %v34_v20 = vld [vmem:[%s641_s1 + $0x28] sm:$0xff] }
   0x6   :  { %407 = vmatpush3.bf16.msra.mxu0 %v442_v2  ;;  %v45_v10 = vpack.c.bf16 %v36_v8, %v35_v7  ;;  %v39_v21 = vadd.f32 %v33_v19, %v27_v17  ;;  %v40_v22 = vadd.f32 %v34_v20, %v28_v18  ;;  %v379_v24 = vld [vmem:[%s642_s3] ss:$0 sm:$0xff]  ;;  %v178_v51 = vld [vmem:[%s644_s4 + $0x8] sm:$0xff] }
   0x7   :  { %v46_v16 = vpack.c.bf16 %v38_v15, %v37_v14  ;;  %v177_v50 = vld [vmem:[%s644_s4] sm:$0xff]  ;;  %s469_s4 = smov 96  }
   0x8   :  { %v47_v23 = vpack.c.bf16 %v40_v22, %v39_v21  ;;  %v433_v53 = vpack.c.bf16 %v178_v51, %v177_v50 }
   0x9   :  { %409 = vmatmul.mubr.msk.bf16.vlgmr.msra.gmra.mrb[0].mxu0 %vm67_vm1, %v45_v10 }
   0xa   :  { %412 = vmatprep.mubr.msk.bf16.mxu0 %vm468_vm0, %v467_v0  ;;  %434 = vmatprep.subr.bf16.mxu1 %v433_v53 }
   0xb   :  { %436 = vmatpush3.bf16.msra.mxu1 %v433_v53 }
  0x11   :  { %413 = vmatmul.mubr.msk.bf16.gmra.mrb[4].mxu0 %vm67_vm1, %v46_v16 }
  0x12   :  { %416 = vmatprep.mubr.msk.bf16.mxu0 %vm468_vm0, %v467_v0 }
  0x19   :  { %417 = vmatmul.mubr.msk.bf16.gmra.mrb[8].mxu0 %vm67_vm1, %v47_v23 }
  0xdc   :  { %v111_v25 = vpop.f32.mrb[0].mxu0 }
  0xdd   :  { %v112_v26 = vadd.f32 %v379_v24, %v111_v25  ;;  %v410_v27 = vpop.f32.mrb[1].mxu0 }
  0xde   :  { %v114_v28 = vpop.f32.mrb[2].mxu0 }
  0xdf   :  { %134 = vst.msk [vmem:[%s643_s5] sm:$0xff] %vm67_vm1, %v112_v26  ;;  %v115_v29 = vadd.f32 %v379_v24, %v114_v28  ;;  %v411_v30 = vpop.f32.mrb[3].mxu0  ;;  %v141_v31 = vsel %vm140_vm2, %v112_v26, -inf }
  0xe0   :  { %142 = vmax.xlane.f32.xlu0 %v141_v31 }
  0xe1   :  { %135 = vst.msk [vmem:[%s643_s5 + $0x8] sm:$0xff] %vm67_vm1, %v115_v29  ;;  %v144_v32 = vsel %vm140_vm2, %v115_v29, -inf }
  0xe4   :  { %145 = vmax.xlane.f32.xlu0 %v144_v32  ;;  %v119_v33 = vpop.f32.mrb[4].mxu0 }
  0xe5   :  { %v120_v34 = vadd.f32 %v379_v24, %v119_v33  ;;  %v414_v35 = vpop.f32.mrb[5].mxu0 }
  0xe6   :  { %v122_v36 = vpop.f32.mrb[6].mxu0 }
  0xe7   :  { %136 = vst.msk [vmem:[%s643_s5 + $0x10] sm:$0xff] %vm67_vm1, %v120_v34  ;;  %v123_v37 = vadd.f32 %v379_v24, %v122_v36  ;;  %v415_v38 = vpop.f32.mrb[7].mxu0  ;;  %v147_v39 = vsel %vm140_vm2, %v120_v34, -inf }
  0xe8   :  { %148 = vmax.xlane.f32.xlu1 %v147_v39 }
  0xe9   :  { %137 = vst.msk [vmem:[%s643_s5 + $0x18] sm:$0xff] %vm67_vm1, %v123_v37  ;;  %v150_v40 = vsel %vm140_vm2, %v123_v37, -inf }
  0xec   :  { %151 = vmax.xlane.f32.xlu1 %v150_v40  ;;  %v127_v41 = vpop.f32.mrb[8].mxu0 }
  0xed   :  { %v128_v42 = vadd.f32 %v379_v24, %v127_v41  ;;  %v418_v43 = vpop.f32.mrb[9].mxu0 }
  0xee   :  { %v130_v44 = vpop.f32.mrb[10].mxu0 }
  0xef   :  { %138 = vst.msk [vmem:[%s643_s5 + $0x20] sm:$0xff] %vm67_vm1, %v128_v42  ;;  %v131_v45 = vadd.f32 %v379_v24, %v130_v44  ;;  %v419_v46 = vpop.f32.mrb[11].mxu0  ;;  %v153_v47 = vsel %vm140_vm2, %v128_v42, -inf }
  0xf0   :  { %154 = vmax.xlane.f32.xlu0 %v153_v47 }
  0xf1   :  { %139 = vst.msk [vmem:[%s643_s5 + $0x28] sm:$0xff] %vm67_vm1, %v131_v45  ;;  %v156_v48 = vsel %vm140_vm2, %v131_v45, -inf  ;;  %s470_s5 = smov 32  }
  0xf2   :  { %157 = vmax.xlane.f32.xlu1 %v156_v48 }
 0x16d   :  { %v143_v49 = vpop.xlane.xlu0 %142 }
 0x16e   :  { %v159_v52 = vsub.f32 %v112_v26, %v143_v49 }
 0x170   :  { %v165_v54 = vmul.f32 1.442695, %v159_v52 }
 0x171   :  { %v146_v55 = vpop.xlane.xlu0 %145 }
 0x172   :  { %443 = vpow2.f32 %v165_v54  ;;  %v160_v56 = vsub.f32 %v115_v29, %v146_v55 }
 0x174   :  { %v167_v57 = vmul.f32 1.442695, %v160_v56 }
 0x175   :  { %v149_v58 = vpop.xlane.xlu1 %148 }
 0x176   :  { %445 = vpow2.f32 %v167_v57  ;;  %v161_v59 = vsub.f32 %v120_v34, %v149_v58 }
 0x178   :  { %v169_v60 = vmul.f32 1.442695, %v161_v59 }
 0x179   :  { %v152_v61 = vpop.xlane.xlu1 %151 }
 0x17a   :  { %447 = vpow2.f32 %v169_v60  ;;  %v162_v62 = vsub.f32 %v123_v37, %v152_v61 }
 0x17c   :  { %v593_v63 = vpop.eup %443  ;;  %v171_v0 = vmul.f32 1.442695, %v162_v62 }
 0x17d   :  { %185 = vrot.lane.b32.xlu0 %v593_v63, %s469_s4  ;;  %v155_v1 = vpop.xlane.xlu0 %154 }
 0x17e   :  { %449 = vpow2.f32 %v171_v0  ;;  %v163_v2 = vsub.f32 %v128_v42, %v155_v1 }
 0x17f   :  { %v158_v3 = vpop.xlane.xlu1 %157 }
 0x180   :  { %v446_v4 = vpop.eup %445  ;;  %v173_v5 = vmul.f32 1.442695, %v163_v2  ;;  %v164_v6 = vsub.f32 %v131_v45, %v158_v3 }
 0x181   :  { %187 = vrot.lane.b32.xlu1 %v446_v4, %s469_s4 }
 0x182   :  { %451 = vpow2.f32 %v173_v5  ;;  %v175_v7 = vmul.f32 1.442695, %v164_v6 }
 0x184   :  { %v448_v8 = vpop.eup %447  ;;  %453 = vpow2.f32 %v175_v7 }
 0x185   :  { %189 = vrot.lane.b32.xlu1 %v448_v8, %s469_s4 }
 0x188   :  { %v450_v9 = vpop.eup %449 }
 0x189   :  { %191 = vrot.lane.b32.xlu1 %v450_v9, %s469_s4 }
 0x18c   :  { %v452_v10 = vpop.eup %451 }
 0x18d   :  { %193 = vrot.lane.b32.xlu0 %v452_v10, %s469_s4 }
 0x18e   :  { %v454_v11 = vpop.eup %453 }
 0x18f   :  { %195 = vrot.lane.b32.xlu1 %v454_v11, %s469_s4 }
 0x1ef   :  { %v186_v12 = vpop.permute.xlu0 %185 }
 0x1f0   :  { %424 = vmatprep.mubr.msk.f32.mxu1 %vm197_vm3, %v186_v12 }
 0x1f3   :  { %v188_v13 = vpop.permute.xlu1 %187 }
 0x1f4   :  { %425 = vmatmul.mubr.msk.f32.vlgmr.msra.gmra.mrb[0].mxu1 %vm197_vm3, %v188_v13 }
 0x1f7   :  { %v190_v14 = vpop.permute.xlu1 %189 }
 0x1f8   :  { %427 = vmatprep.mubr.msk.f32.mxu1 %vm197_vm3, %v190_v14 }
 0x1fb   :  { %v192_v15 = vpop.permute.xlu1 %191 }
 0x1fc   :  { %428 = vmatmul.mubr.msk.f32.gmra.mrb[2].mxu1 %vm197_vm3, %v192_v15 }
 0x1ff   :  { %v194_v16 = vpop.permute.xlu0 %193 }
 0x200   :  { %430 = vmatprep.mubr.msk.f32.mxu1 %vm197_vm3, %v194_v16 }
 0x201   :  { %v196_v17 = vpop.permute.xlu1 %195 }
 0x202   :  { %431 = vmatmul.mubr.msk.f32.gmra.mrb[4].mxu1 %vm197_vm3, %v196_v17 }
 0x2c7   :  { %v426_v18 = vpop.f32.mrb[0].mxu1 }
 0x2c8   :  { %455 = vrcp.f32 %v426_v18  ;;  %v276_v19 = vpop.f32.mrb[1].mxu1 }
 0x2c9   :  { %457 = vrcp.f32 %v276_v19 }
 0x2cf   :  { %v429_v20 = vpop.f32.mrb[2].mxu1 }
 0x2d0   :  { %459 = vrcp.f32 %v429_v20  ;;  %v286_v21 = vpop.f32.mrb[3].mxu1 }
 0x2d1   :  { %461 = vrcp.f32 %v286_v21 }
 0x2d2   :  { %v456_v22 = vpop.eup %455 }
 0x2d3   :  { %v458_v23 = vpop.eup %457  ;;  %319 = vrot.lane.b32.xlu1 %v456_v22, %s470_s5 }
 0x2d4   :  { %317 = vrot.lane.b32.xlu0 %v458_v23, %s470_s5 }
 0x2d5   :  { %v432_v24 = vpop.f32.mrb[4].mxu1 }
 0x2d6   :  { %463 = vrcp.f32 %v432_v24  ;;  %v296_v25 = vpop.f32.mrb[5].mxu1 }
 0x2d7   :  { %465 = vrcp.f32 %v296_v25 }
 0x2da   :  { %v460_v26 = vpop.eup %459 }
 0x2db   :  { %v462_v27 = vpop.eup %461  ;;  %323 = vrot.lane.b32.xlu1 %v460_v26, %s470_s5 }
 0x2dc   :  { %321 = vrot.lane.b32.xlu0 %v462_v27, %s470_s5 }
 0x2e0   :  { %v464_v28 = vpop.eup %463 }
 0x2e1   :  { %v466_v29 = vpop.eup %465  ;;  %327 = vrot.lane.b32.xlu1 %v464_v28, %s470_s5 }
 0x2e2   :  { %325 = vrot.lane.b32.xlu0 %v466_v29, %s470_s5 }
 0x345   :  { %v320_v30 = vpop.permute.xlu1 %319 }
 0x346   :  { %v336_v31 = vmul.f32 %v446_v4, %v320_v30  ;;  %v318_v32 = vpop.permute.xlu0 %317 }
 0x347   :  { %v335_v33 = vmul.f32 %v593_v63, %v318_v32 }
 0x348   :  { %349 = vrot.lane.b32.xlu1 %v336_v31, %s469_s4 }
 0x349   :  { %347 = vrot.lane.b32.xlu0 %v335_v33, %s469_s4 }
 0x34d   :  { %v324_v34 = vpop.permute.xlu1 %323 }
 0x34e   :  { %v338_v35 = vmul.f32 %v450_v9, %v324_v34  ;;  %v322_v36 = vpop.permute.xlu0 %321 }
 0x34f   :  { %v337_v37 = vmul.f32 %v448_v8, %v322_v36 }
 0x350   :  { %353 = vrot.lane.b32.xlu1 %v338_v35, %s469_s4 }
 0x351   :  { %351 = vrot.lane.b32.xlu0 %v337_v37, %s469_s4 }
 0x353   :  { %v328_v38 = vpop.permute.xlu1 %327 }
 0x354   :  { %v340_v39 = vmul.f32 %v454_v11, %v328_v38  ;;  %v326_v40 = vpop.permute.xlu0 %325 }
 0x355   :  { %v339_v41 = vmul.f32 %v452_v10, %v326_v40 }
 0x356   :  { %357 = vrot.lane.b32.xlu1 %v340_v39, %s469_s4 }
 0x357   :  { %355 = vrot.lane.b32.xlu0 %v339_v41, %s469_s4 }
 0x3ba   :  { %v350_v42 = vpop.permute.xlu1 %349 }
 0x3bb   :  { %366 = vst.msk [vmem:[%s645_s6 + $0x8] sm:$0xff] %vm197_vm3, %v350_v42  ;;  %v348_v43 = vpop.permute.xlu0 %347 }
 0x3bc   :  { %365 = vst.msk [vmem:[%s645_s6] sm:$0xff] %vm197_vm3, %v348_v43 }
 0x3c2   :  { %v354_v44 = vpop.permute.xlu1 %353 }
 0x3c3   :  { %368 = vst.msk [vmem:[%s645_s6 + $0x18] sm:$0xff] %vm197_vm3, %v354_v44  ;;  %v352_v45 = vpop.permute.xlu0 %351 }
 0x3c4   :  { %367 = vst.msk [vmem:[%s645_s6 + $0x10] sm:$0xff] %vm197_vm3, %v352_v45 }
 0x3c8   :  { %v358_v46 = vpop.permute.xlu1 %357 }
 0x3c9   :  { %370 = vst.msk [vmem:[%s645_s6 + $0x28] sm:$0xff] %vm197_vm3, %v358_v46  ;;  %v356_v47 = vpop.permute.xlu0 %355 }
 0x3ca   :  { %369 = vst.msk [vmem:[%s645_s6 + $0x20] sm:$0xff] %vm197_vm3, %v356_v47 }

// kernel: deformable_control_layer_forward.6
= control target key start
LH: loop header
LB: loop body
LE: loop exit
PB: predicated region body
PF: predicated region fallthrough
CT: control target
= control target key end

     0   :  { %vm68_vm0 = vcmask 261120   ;;  %s470_s1 = inlined_call_operand.vmem [shape: bf16[32,32], index: 1, kind: input, shape index: {}]   ;;  %s471_s0 = inlined_call_operand.vmem [shape: f32[160,32], index: 0, kind: input, shape index: {}]   ;;  %s472_s2 = inlined_call_operand.vmem [shape: f32[1,32], index: 2, kind: input, shape index: {}]   ;;  %s473_s3 = inlined_call_operand.vmem [shape: f32[160,32], index: 3, kind: output, shape index: {}]  }
   0x1   :  { %v289_v0 = vld [vmem:[%s470_s1] sm:$0xff]   ;;  %v290_v1 = vld [vmem:[%s470_s1 + $0x8] sm:$0xff]   ;;  %v17_v4 = vld [vmem:[%s471_s0 + $0x10] sm:$0xff] }
   0x2   :  { %261 = vmatprep.subr.bf16.mxu0 %v289_v0  ;;  %285 = vmatprep.subr.bf16.mxu1 %v289_v0  ;;  %v15_v2 = vld [vmem:[%s471_s0] sm:$0xff]  ;;  %v16_v3 = vld [vmem:[%s471_s0 + $0x8] sm:$0xff]  ;;  %v18_v6 = vld [vmem:[%s471_s0 + $0x18] sm:$0xff] }
   0x3   :  { %262 = vmatpush3.bf16.msra.mxu0 %v289_v0  ;;  %287 = vmatpush3.bf16.msra.mxu1 %v289_v0  ;;  %v39_v5 = vpack.c.bf16 %v16_v3, %v15_v2  ;;  %v27_v7 = vld [vmem:[%s471_s0 + $0x60] sm:$0xff]  ;;  %v28_v8 = vld [vmem:[%s471_s0 + $0x68] sm:$0xff]  ;;  %v29_v10 = vld [vmem:[%s471_s0 + $0x70] sm:$0xff]  ;;  %v40_v14 = vpack.c.bf16 %v18_v6, %v17_v4 }
   0x4   :  { %263 = vmatprep.subr.bf16.mxu0 %v290_v1  ;;  %286 = vmatprep.subr.bf16.mxu1 %v290_v1  ;;  %v45_v9 = vpack.c.bf16 %v28_v8, %v27_v7  ;;  %v30_v11 = vld [vmem:[%s471_s0 + $0x78] sm:$0xff]  ;;  %v19_v12 = vld [vmem:[%s471_s0 + $0x20] sm:$0xff]  ;;  %v20_v13 = vld [vmem:[%s471_s0 + $0x28] sm:$0xff] }
   0x5   :  { %265 = vmatprep.mubr.msk.bf16.mxu0 %vm68_vm0, %v39_v5  ;;  %v46_v15 = vpack.c.bf16 %v30_v11, %v29_v10  ;;  %v31_v16 = vld [vmem:[%s471_s0 + $0x80] sm:$0xff]  ;;  %v32_v17 = vld [vmem:[%s471_s0 + $0x88] sm:$0xff]  ;;  %v41_v18 = vpack.c.bf16 %v20_v13, %v19_v12  ;;  %v21_v20 = vld [vmem:[%s471_s0 + $0x30] sm:$0xff] }
   0x6   :  { %277 = vmatprep.mubr.msk.bf16.mxu1 %vm68_vm0, %v45_v9  ;;  %v47_v19 = vpack.c.bf16 %v32_v17, %v31_v16  ;;  %v22_v21 = vld [vmem:[%s471_s0 + $0x38] sm:$0xff]  ;;  %v33_v22 = vld [vmem:[%s471_s0 + $0x90] sm:$0xff]  ;;  %v23_v24 = vld [vmem:[%s471_s0 + $0x40] sm:$0xff] }
   0x7   :  { %264 = vmatpush3.bf16.msra.mxu0 %v290_v1  ;;  %288 = vmatpush3.bf16.msra.mxu1 %v290_v1  ;;  %v34_v23 = vld [vmem:[%s471_s0 + $0x98] sm:$0xff]  ;;  %v24_v25 = vld [vmem:[%s471_s0 + $0x48] sm:$0xff]  ;;  %v42_v26 = vpack.c.bf16 %v22_v21, %v21_v20  ;;  %v25_v29 = vld [vmem:[%s471_s0 + $0x50] sm:$0xff] }
   0x8   :  { %v48_v27 = vpack.c.bf16 %v34_v23, %v33_v22  ;;  %v43_v28 = vpack.c.bf16 %v24_v25, %v23_v24  ;;  %v26_v30 = vld [vmem:[%s471_s0 + $0x58] sm:$0xff]  ;;  %v236_v32 = vld [vmem:[%s472_s2] ss:$0 sm:$0xff] }
   0x9   :  { %v44_v31 = vpack.c.bf16 %v26_v30, %v25_v29 }
   0xa   :  { %266 = vmatmul.mubr.msk.bf16.vlgmr.msra.gmra.mrb[0].mxu0 %vm68_vm0, %v40_v14  ;;  %278 = vmatmul.mubr.msk.bf16.vlgmr.msra.gmra.mrb[0].mxu1 %vm68_vm0, %v46_v15 }
   0xb   :  { %269 = vmatprep.mubr.msk.bf16.mxu0 %vm68_vm0, %v41_v18  ;;  %281 = vmatprep.mubr.msk.bf16.mxu1 %vm68_vm0, %v47_v19 }
  0x12   :  { %270 = vmatmul.mubr.msk.bf16.gmra.mrb[4].mxu0 %vm68_vm0, %v42_v26  ;;  %282 = vmatmul.mubr.msk.bf16.gmra.mrb[4].mxu1 %vm68_vm0, %v48_v27 }
  0x13   :  { %273 = vmatprep.mubr.msk.bf16.mxu0 %vm68_vm0, %v43_v28 }
  0x1a   :  { %274 = vmatmul.mubr.msk.bf16.gmra.mrb[8].mxu0 %vm68_vm0, %v44_v31 }
  0xdd   :  { %v267_v33 = vpop.f32.mrb[0].mxu0  ;;  %v279_v34 = vpop.f32.mrb[0].mxu1 }
  0xde   :  { %v142_v35 = vadd.f32 %v267_v33, %v236_v32  ;;  %v133_v36 = vpop.f32.mrb[1].mxu0  ;;  %v190_v37 = vadd.f32 %v279_v34, %v236_v32  ;;  %v181_v38 = vpop.f32.mrb[1].mxu1 }
  0xdf   :  { %v134_v39 = vadd.f32 %v236_v32, %v133_v36  ;;  %v268_v40 = vpop.f32.mrb[2].mxu0  ;;  %v182_v41 = vadd.f32 %v236_v32, %v181_v38  ;;  %v280_v42 = vpop.f32.mrb[2].mxu1 }
  0xe0   :  { %214 = vst.msk [vmem:[%s473_s3 + $0x10] sm:$0xff] %vm68_vm0, %v142_v35  ;;  %v145_v43 = vadd.f32 %v268_v40, %v236_v32  ;;  %v136_v44 = vpop.f32.mrb[3].mxu0  ;;  %226 = vst.msk [vmem:[%s473_s3 + $0x70] sm:$0xff] %vm68_vm0, %v190_v37  ;;  %v193_v45 = vadd.f32 %v280_v42, %v236_v32  ;;  %v184_v46 = vpop.f32.mrb[3].mxu1 }
  0xe1   :  { %212 = vst.msk [vmem:[%s473_s3] sm:$0xff] %vm68_vm0, %v134_v39  ;;  %v137_v47 = vadd.f32 %v236_v32, %v136_v44  ;;  %224 = vst.msk [vmem:[%s473_s3 + $0x60] sm:$0xff] %vm68_vm0, %v182_v41  ;;  %v185_v48 = vadd.f32 %v236_v32, %v184_v46 }
  0xe2   :  { %215 = vst.msk [vmem:[%s473_s3 + $0x18] sm:$0xff] %vm68_vm0, %v145_v43  ;;  %227 = vst.msk [vmem:[%s473_s3 + $0x78] sm:$0xff] %vm68_vm0, %v193_v45 }
  0xe3   :  { %213 = vst.msk [vmem:[%s473_s3 + $0x8] sm:$0xff] %vm68_vm0, %v137_v47  ;;  %225 = vst.msk [vmem:[%s473_s3 + $0x68] sm:$0xff] %vm68_vm0, %v185_v48 }
  0xe5   :  { %v271_v49 = vpop.f32.mrb[4].mxu0  ;;  %v283_v50 = vpop.f32.mrb[4].mxu1 }
  0xe6   :  { %v158_v51 = vadd.f32 %v271_v49, %v236_v32  ;;  %v149_v52 = vpop.f32.mrb[5].mxu0  ;;  %v206_v53 = vadd.f32 %v283_v50, %v236_v32  ;;  %v197_v54 = vpop.f32.mrb[5].mxu1 }
  0xe7   :  { %v150_v55 = vadd.f32 %v236_v32, %v149_v52  ;;  %v272_v56 = vpop.f32.mrb[6].mxu0  ;;  %v198_v57 = vadd.f32 %v236_v32, %v197_v54  ;;  %v284_v58 = vpop.f32.mrb[6].mxu1 }
  0xe8   :  { %218 = vst.msk [vmem:[%s473_s3 + $0x30] sm:$0xff] %vm68_vm0, %v158_v51  ;;  %v161_v59 = vadd.f32 %v272_v56, %v236_v32  ;;  %v152_v60 = vpop.f32.mrb[7].mxu0  ;;  %230 = vst.msk [vmem:[%s473_s3 + $0x90] sm:$0xff] %vm68_vm0, %v206_v53  ;;  %v209_v61 = vadd.f32 %v284_v58, %v236_v32  ;;  %v200_v62 = vpop.f32.mrb[7].mxu1 }
  0xe9   :  { %216 = vst.msk [vmem:[%s473_s3 + $0x20] sm:$0xff] %vm68_vm0, %v150_v55  ;;  %v153_v63 = vadd.f32 %v236_v32, %v152_v60  ;;  %228 = vst.msk [vmem:[%s473_s3 + $0x80] sm:$0xff] %vm68_vm0, %v198_v57  ;;  %v201_v0 = vadd.f32 %v236_v32, %v200_v62 }
  0xea   :  { %219 = vst.msk [vmem:[%s473_s3 + $0x38] sm:$0xff] %vm68_vm0, %v161_v59  ;;  %231 = vst.msk [vmem:[%s473_s3 + $0x98] sm:$0xff] %vm68_vm0, %v209_v61 }
  0xeb   :  { %217 = vst.msk [vmem:[%s473_s3 + $0x28] sm:$0xff] %vm68_vm0, %v153_v63  ;;  %229 = vst.msk [vmem:[%s473_s3 + $0x88] sm:$0xff] %vm68_vm0, %v201_v0 }
  0xed   :  { %v275_v1 = vpop.f32.mrb[8].mxu0 }
  0xee   :  { %v174_v2 = vadd.f32 %v275_v1, %v236_v32  ;;  %v165_v3 = vpop.f32.mrb[9].mxu0 }
  0xef   :  { %v166_v4 = vadd.f32 %v236_v32, %v165_v3  ;;  %v276_v5 = vpop.f32.mrb[10].mxu0 }
  0xf0   :  { %222 = vst.msk [vmem:[%s473_s3 + $0x50] sm:$0xff] %vm68_vm0, %v174_v2  ;;  %v177_v6 = vadd.f32 %v276_v5, %v236_v32  ;;  %v168_v7 = vpop.f32.mrb[11].mxu0 }
  0xf1   :  { %220 = vst.msk [vmem:[%s473_s3 + $0x40] sm:$0xff] %vm68_vm0, %v166_v4  ;;  %v169_v8 = vadd.f32 %v236_v32, %v168_v7 }
  0xf2   :  { %223 = vst.msk [vmem:[%s473_s3 + $0x58] sm:$0xff] %vm68_vm0, %v177_v6 }
  0xf3   :  { %221 = vst.msk [vmem:[%s473_s3 + $0x48] sm:$0xff] %vm68_vm0, %v169_v8 }

// kernel: deformable_control_layer_forward.9
= control target key start
LH: loop header
LB: loop body
LE: loop exit
PB: predicated region body
PF: predicated region fallthrough
CT: control target
= control target key end

     0   :  { %v768_v1 = vmov 0.0   ;;  %vm769_vm0 = vmmov 0   ;;  %vm74_vm1 = vcmask 261120   ;;  %s1052_s0 = inlined_call_operand.vmem [shape: f32[48,32], index: 0, kind: input, shape index: {}]   ;;  %s1053_s1 = inlined_call_operand.vmem [shape: f32[48,32], index: 1, kind: input, shape index: {}]   ;;  %s1054_s2 = inlined_call_operand.vmem [shape: bf16[32,32], index: 2, kind: input, shape index: {}]   ;;  %s1055_s3 = inlined_call_operand.vmem [shape: f32[1,32], index: 3, kind: input, shape index: {}]   ;;  %s1056_s4 = inlined_call_operand.vmem [shape: f32[1,32], index: 4, kind: input, shape index: {}]   ;;  %s1057_s5 = inlined_call_operand.vmem [shape: f32[1,32], index: 5, kind: input, shape index: {}]   ;;  %s1058_s6 = inlined_call_operand.vmem [shape: bf16[32,64], index: 6, kind: input, shape index: {}]   ;;  %s1059_s7 = inlined_call_operand.vmem [shape: f32[1,64], index: 7, kind: input, shape index: {}]   ;;  %s1060_s8 = inlined_call_operand.vmem [shape: bf16[64,32], index: 8, kind: input, shape index: {}]   ;;  %s1061_s9 = inlined_call_operand.vmem [shape: f32[1,32], index: 9, kind: input, shape index: {}]   ;;  %s1062_s10 = inlined_call_operand.vmem [shape: f32[1,32], index: 10, kind: input, shape index: {}]   ;;  %s1063_s11 = inlined_call_operand.vmem [shape: f32[1,32], index: 11, kind: input, shape index: {}]   ;;  %s1064_s12 = inlined_call_operand.hbm [shape: f32[48,32], index: 12, kind: output, shape index: {}]  }
   0x1   :  { %v712_v0 = vld [vmem:[%s1054_s2] sm:$0xff]   ;;  %651 = vmatprep.subr.bf16.mxu0 %v768_v1  ;;  %703 = vmatprep.subr.bf16.mxu1 %v768_v1  ;;  %v713_v2 = vld [vmem:[%s1054_s2 + $0x8] sm:$0xff]  }
   0x2   :  { %652 = vmatpush3.bf16.msra.mxu0 %v712_v0  ;;  %655 = vmatprep.mubr.msk.bf16.mxu0 %vm769_vm0, %v768_v1  ;;  %v49_v3 = vld [vmem:[%s1052_s0] sm:$0xff]  ;;  %v50_v4 = vld [vmem:[%s1052_s0 + $0x8] sm:$0xff] }
   0x3   :  { %653 = vmatprep.subr.bf16.mxu0 %v768_v1  ;;  %705 = vmatpush3.bf16.msra.mxu1 %v712_v0  ;;  %v53_v5 = vld [vmem:[%s1052_s0 + $0x20] sm:$0xff]  ;;  %v54_v6 = vld [vmem:[%s1052_s0 + $0x28] sm:$0xff]  ;;  %v59_v7 = vpack.c.bf16 %v50_v4, %v49_v3 }
   0x4   :  { %704 = vmatprep.subr.bf16.mxu1 %v768_v1  ;;  %663 = vmatprep.mubr.msk.bf16.mxu1 %vm769_vm0, %v768_v1  ;;  %v61_v8 = vpack.c.bf16 %v54_v6, %v53_v5 }
   0x6   :  { %654 = vmatpush3.bf16.msra.mxu0 %v713_v2 }
   0x7   :  { %706 = vmatpush3.bf16.msra.mxu1 %v713_v2  ;;  %683 = vmatprep.subr.bf16.mxu0 %v768_v1 }
   0x8   :  { %667 = vmatprep.subr.bf16.mxu1 %v768_v1 }
   0x9   :  { %17 = vsyncpa [#allocation3], 0  ;;  %656 = vmatmul.mubr.msk.bf16.vlgmr.msra.gmra.mrb[0].mxu0 %vm74_vm1, %v59_v7  ;;  %v51_v9 = vld [vmem:[%s1052_s0 + $0x10] sm:$0xff]  ;;  %v52_v10 = vld [vmem:[%s1052_s0 + $0x18] sm:$0xff]  ;;  %vm398_vm2 = vcmask 523264  }
   0xa   :  { %659 = vmatprep.mubr.msk.bf16.mxu0 %vm769_vm0, %v768_v1  ;;  %664 = vmatmul.mubr.msk.bf16.vlgmr.msra.gmra.mrb[0].mxu1 %vm74_vm1, %v61_v8  ;;  %v60_v11 = vpack.c.bf16 %v52_v10, %v51_v9  ;;  %v43_v12 = vld [vmem:[%s1053_s1] sm:$0xff]  ;;  %v44_v14 = vld [vmem:[%s1053_s1 + $0x8] sm:$0xff]  ;;  %v45_v30 = vld [vmem:[%s1053_s1 + $0x10] sm:$0xff] }
   0xb   :  { %671 = vmatprep.mubr.msk.bf16.mxu1 %vm769_vm0, %v768_v1  ;;  %v615_v15 = vld [vmem:[%s1055_s3] ss:$0 sm:$0xff]  ;;  %v46_v33 = vld [vmem:[%s1053_s1 + $0x18] sm:$0xff]  ;;  %v48_v34 = vld [vmem:[%s1053_s1 + $0x28] sm:$0xff] }
   0xc   :  { %v47_v16 = vld [vmem:[%s1053_s1 + $0x20] sm:$0xff] }
  0x11   :  { %660 = vmatmul.mubr.msk.bf16.gmra.mrb[4].mxu0 %vm74_vm1, %v60_v11 }
  0x12   :  { %691 = vmatprep.mubr.msk.bf16.mxu0 %vm769_vm0, %v768_v1 }
  0xdc   :  { %v118_v13 = vpop.f32.mrb[0].mxu0 }
  0xdd   :  { %v141_v17 = vadd.f32 %v118_v13, %v43_v12  ;;  %v657_v18 = vpop.f32.mrb[1].mxu0  ;;  %v134_v19 = vpop.f32.mrb[0].mxu1 }
  0xde   :  { %v121_v20 = vpop.f32.mrb[2].mxu0  ;;  %v665_v21 = vpop.f32.mrb[1].mxu1  ;;  %v145_v25 = vadd.f32 %v134_v19, %v47_v16  ;;  %v714_v16 = vld [vmem:[%s1058_s6] sm:$0xff]   ;;  %v717_v19 = vld [vmem:[%s1060_s8 + $0x8] sm:$0xff]  }
  0xdf   :  { %v142_v22 = vadd.f32 %v121_v20, %v44_v14  ;;  %v658_v23 = vpop.f32.mrb[3].mxu0  ;;  %v154_v24 = vadd.f32 %v615_v15, %v141_v17  ;;  %v137_v26 = vpop.f32.mrb[2].mxu1  ;;  %668 = vmatpush3.bf16.msra.mxu1 %v714_v16  ;;  %v715_v17 = vld [vmem:[%s1058_s6 + $0x8] sm:$0xff]   ;;  %v716_v18 = vld [vmem:[%s1060_s8] sm:$0xff]  }
  0xe0   :  { %v666_v27 = vpop.f32.mrb[3].mxu1  ;;  %v158_v31 = vadd.f32 %v615_v15, %v145_v25  ;;  %v146_v43 = vadd.f32 %v137_v26, %v48_v34  ;;  %669 = vmatprep.subr.bf16.mxu1 %v768_v1  ;;  %684 = vmatpush3.bf16.msra.mxu0 %v716_v18 }
  0xe1   :  { %v162_v28 = vsel %vm74_vm1, %v154_v24, 0.0  ;;  %v155_v29 = vadd.f32 %v615_v15, %v142_v22  ;;  %685 = vmatprep.subr.bf16.mxu0 %v768_v1 }
  0xe2   :  { %163 = vadd.xlane.f32.xlu0 %v162_v28  ;;  %v174_v42 = vsel %vm74_vm1, %v158_v31, 0.0  ;;  %v159_v46 = vadd.f32 %v615_v15, %v146_v43 }
  0xe3   :  { %v165_v37 = vsel %vm74_vm1, %v155_v29, 0.0  ;;  %670 = vmatpush3.bf16.msra.mxu1 %v715_v17 }
  0xe4   :  { %v126_v32 = vpop.f32.mrb[4].mxu0  ;;  %v177_v48 = vsel %vm74_vm1, %v159_v46, 0.0  ;;  %686 = vmatpush3.bf16.msra.mxu0 %v717_v19 }
  0xe5   :  { %v143_v35 = vadd.f32 %v126_v32, %v45_v30  ;;  %v661_v36 = vpop.f32.mrb[5].mxu0  ;;  %687 = vmatprep.subr.bf16.mxu0 %v768_v1 }
  0xe6   :  { %v129_v38 = vpop.f32.mrb[6].mxu0  ;;  %166 = vadd.xlane.f32.xlu0 %v165_v37 }
  0xe7   :  { %v144_v39 = vadd.f32 %v129_v38, %v46_v33  ;;  %v662_v40 = vpop.f32.mrb[7].mxu0  ;;  %v156_v41 = vadd.f32 %v615_v15, %v143_v35  ;;  %v616_v38 = vld [vmem:[%s1056_s4] ss:$0 sm:$0xff] }
  0xe9   :  { %v168_v44 = vsel %vm74_vm1, %v156_v41, 0.0  ;;  %v157_v45 = vadd.f32 %v615_v15, %v144_v39 }
  0xea   :  { %169 = vadd.xlane.f32.xlu1 %v168_v44  ;;  %175 = vadd.xlane.f32.xlu0 %v174_v42  ;;  %v617_v44 = vld [vmem:[%s1057_s5] ss:$0 sm:$0xff] }
  0xeb   :  { %v171_v47 = vsel %vm74_vm1, %v157_v45, 0.0 }
  0xee   :  { %172 = vadd.xlane.f32.xlu1 %v171_v47 }
  0xf2   :  { %178 = vadd.xlane.f32.xlu1 %v177_v48 }
 0x16f   :  { %v164_v49 = vpop.xlane.xlu0 %163 }
 0x170   :  { %v181_v50 = vmul.f32 0.03125, %v164_v49 }
 0x172   :  { %v908_v51 = vsub.f32 %v154_v24, %v181_v50 }
 0x173   :  { %v167_v52 = vpop.xlane.xlu0 %166 }
 0x174   :  { %v182_v53 = vmul.f32 0.03125, %v167_v52  ;;  %v193_v54 = vmul.f32 %v908_v51, %v908_v51 }
 0x176   :  { %v912_v55 = vsub.f32 %v155_v29, %v182_v53  ;;  %v199_v56 = vsel %vm74_vm1, %v193_v54, 0.0 }
 0x177   :  { %v170_v57 = vpop.xlane.xlu1 %169  ;;  %200 = vadd.xlane.f32.xlu0 %v199_v56  ;;  %v176_v58 = vpop.xlane.xlu0 %175 }
 0x178   :  { %v183_v59 = vmul.f32 0.03125, %v170_v57  ;;  %v185_v60 = vmul.f32 0.03125, %v176_v58  ;;  %v194_v61 = vmul.f32 %v912_v55, %v912_v55 }
 0x17a   :  { %v917_v62 = vsub.f32 %v156_v41, %v183_v59  ;;  %v919_v63 = vsub.f32 %v158_v31, %v185_v60  ;;  %v202_v0 = vsel %vm74_vm1, %v194_v61, 0.0 }
 0x17b   :  { %v173_v2 = vpop.xlane.xlu1 %172  ;;  %203 = vadd.xlane.f32.xlu1 %v202_v0 }
 0x17c   :  { %v184_v3 = vmul.f32 0.03125, %v173_v2  ;;  %v195_v4 = vmul.f32 %v917_v62, %v917_v62  ;;  %v197_v7 = vmul.f32 %v919_v63, %v919_v63 }
 0x17e   :  { %v924_v5 = vsub.f32 %v157_v45, %v184_v3  ;;  %v205_v6 = vsel %vm74_vm1, %v195_v4, 0.0  ;;  %v211_v13 = vsel %vm74_vm1, %v197_v7, 0.0  ;;  %v718_v4 = vld [vmem:[%s1060_s8 + $0x10] sm:$0xff]  }
 0x17f   :  { %v179_v8 = vpop.xlane.xlu1 %178  ;;  %206 = vadd.xlane.f32.xlu0 %v205_v6  ;;  %688 = vmatpush3.bf16.msra.mxu0 %v718_v4  ;;  %v618_v6 = vld [vmem:[%s1059_s7] ss:$0 sm:$0xff] }
 0x180   :  { %v186_v9 = vmul.f32 0.03125, %v179_v8  ;;  %v196_v10 = vmul.f32 %v924_v5, %v924_v5  ;;  %689 = vmatprep.subr.bf16.mxu0 %v768_v1 }
 0x182   :  { %v931_v11 = vsub.f32 %v159_v46, %v186_v9  ;;  %v208_v12 = vsel %vm74_vm1, %v196_v10, 0.0 }
 0x183   :  { %209 = vadd.xlane.f32.xlu1 %v208_v12  ;;  %212 = vadd.xlane.f32.xlu0 %v211_v13 }
 0x184   :  { %v198_v14 = vmul.f32 %v931_v11, %v931_v11 }
 0x186   :  { %v214_v15 = vsel %vm74_vm1, %v198_v14, 0.0 }
 0x187   :  { %215 = vadd.xlane.f32.xlu1 %v214_v15 }
 0x204   :  { %v201_v20 = vpop.xlane.xlu0 %200 }
 0x205   :  { %v217_v21 = vmul.f32 0.03125, %v201_v20 }
 0x207   :  { %v223_v22 = vadd.f32 1e-05, %v217_v21 }
 0x208   :  { %v204_v23 = vpop.xlane.xlu1 %203 }
 0x209   :  { %720 = vrsqrt.f32 %v223_v22  ;;  %v218_v24 = vmul.f32 0.03125, %v204_v23 }
 0x20b   :  { %v224_v25 = vadd.f32 1e-05, %v218_v24 }
 0x20c   :  { %v207_v26 = vpop.xlane.xlu0 %206 }
 0x20d   :  { %722 = vrsqrt.f32 %v224_v25  ;;  %v219_v27 = vmul.f32 0.03125, %v207_v26 }
 0x20f   :  { %v225_v28 = vadd.f32 1e-05, %v219_v27 }
 0x210   :  { %v210_v29 = vpop.xlane.xlu1 %209  ;;  %v213_v30 = vpop.xlane.xlu0 %212 }
 0x211   :  { %724 = vrsqrt.f32 %v225_v28  ;;  %v220_v31 = vmul.f32 0.03125, %v210_v29  ;;  %v221_v32 = vmul.f32 0.03125, %v213_v30 }
 0x213   :  { %v721_v33 = vpop.eup %720  ;;  %v226_v34 = vadd.f32 1e-05, %v220_v31  ;;  %v227_v35 = vadd.f32 1e-05, %v221_v32 }
 0x214   :  { %v235_v36 = vmul.f32 %v721_v33, %v908_v51  ;;  %v216_v37 = vpop.xlane.xlu1 %215 }
 0x215   :  { %726 = vrsqrt.f32 %v226_v34  ;;  %v222_v39 = vmul.f32 0.03125, %v216_v37 }
 0x216   :  { %728 = vrsqrt.f32 %v227_v35  ;;  %v247_v42 = vmul.f32 %v616_v38, %v235_v36  ;;  %v631_v35 = vld [vmem:[%s1061_s9] ss:$0 sm:$0xff] }
 0x217   :  { %v723_v40 = vpop.eup %722  ;;  %v228_v41 = vadd.f32 1e-05, %v222_v39 }
 0x218   :  { %v236_v43 = vmul.f32 %v723_v40, %v912_v55  ;;  %v962_v48 = vadd.f32 %v617_v44, %v247_v42 }
 0x219   :  { %730 = vrsqrt.f32 %v228_v41 }
 0x21a   :  { %v248_v45 = vmul.f32 %v616_v38, %v236_v43 }
 0x21b   :  { %v725_v46 = vpop.eup %724 }
 0x21c   :  { %v237_v47 = vmul.f32 %v725_v46, %v917_v62  ;;  %v964_v49 = vadd.f32 %v617_v44, %v248_v45 }
 0x21e   :  { %v269_v50 = vpack.c.bf16 %v964_v49, %v962_v48  ;;  %v249_v53 = vmul.f32 %v616_v38, %v237_v47 }
 0x21f   :  { %v727_v51 = vpop.eup %726 }
 0x220   :  { %v238_v52 = vmul.f32 %v727_v51, %v924_v5  ;;  %672 = vmatmul.mubr.msk.bf16.vlgmr.msra.gmra.mrb[4].mxu1 %vm74_vm1, %v269_v50  ;;  %v729_v54 = vpop.eup %728  ;;  %v974_v59 = vadd.f32 %v617_v44, %v249_v53  ;;  %v719_v5 = vld [vmem:[%s1060_s8 + $0x18] sm:$0xff]  }
 0x221   :  { %675 = vmatprep.mubr.msk.bf16.mxu1 %vm769_vm0, %v768_v1  ;;  %v239_v57 = vmul.f32 %v729_v54, %v919_v63  ;;  %690 = vmatpush3.bf16.msra.mxu0 %v719_v5 }
 0x222   :  { %v250_v55 = vmul.f32 %v616_v38, %v238_v52 }
 0x223   :  { %v731_v56 = vpop.eup %730  ;;  %v251_v0 = vmul.f32 %v616_v38, %v239_v57 }
 0x224   :  { %v240_v58 = vmul.f32 %v731_v56, %v931_v11  ;;  %v976_v60 = vadd.f32 %v617_v44, %v250_v55 }
 0x225   :  { %v985_v3 = vadd.f32 %v617_v44, %v251_v0 }
 0x226   :  { %v270_v61 = vpack.c.bf16 %v976_v60, %v974_v59  ;;  %v252_v62 = vmul.f32 %v616_v38, %v240_v58 }
 0x228   :  { %676 = vmatmul.mubr.msk.bf16.gmra.mrb[8].mxu1 %vm74_vm1, %v270_v61  ;;  %v983_v2 = vadd.f32 %v617_v44, %v252_v62 }
 0x229   :  { %679 = vmatprep.mubr.msk.bf16.mxu1 %vm769_vm0, %v768_v1 }
 0x22a   :  { %v271_v63 = vpack.c.bf16 %v983_v2, %v985_v3 }
 0x230   :  { %680 = vmatmul.mubr.msk.bf16.gmra.mrb[12].mxu1 %vm74_vm1, %v271_v63 }
 0x2f3   :  { %v334_v7 = vpop.f32.mrb[4].mxu1 }
 0x2f4   :  { %v335_v8 = vadd.f32 %v618_v6, %v334_v7  ;;  %v673_v9 = vpop.f32.mrb[5].mxu1 }
 0x2f5   :  { %v337_v10 = vpop.f32.mrb[6].mxu1 }
 0x2f6   :  { %v338_v11 = vadd.f32 %v618_v6, %v337_v10  ;;  %v674_v12 = vpop.f32.mrb[7].mxu1  ;;  %v357_v13 = vmax.f32 %v335_v8, 0.0 }
 0x2f8   :  { %v358_v14 = vmax.f32 %v338_v11, 0.0 }
 0x2fa   :  { %v371_v15 = vpack.c.bf16 %v358_v14, %v357_v13 }
 0x2fb   :  { %v342_v16 = vpop.f32.mrb[8].mxu1 }
 0x2fc   :  { %v343_v17 = vadd.f32 %v618_v6, %v342_v16  ;;  %v677_v18 = vpop.f32.mrb[9].mxu1  ;;  %692 = vmatmul.mubr.msk.bf16.vlgmr.msra.gmra.mrb[8].mxu0 %vm398_vm2, %v371_v15 }
 0x2fd   :  { %v345_v19 = vpop.f32.mrb[10].mxu1  ;;  %695 = vmatprep.mubr.msk.bf16.mxu0 %vm769_vm0, %v768_v1 }
 0x2fe   :  { %v346_v20 = vadd.f32 %v618_v6, %v345_v19  ;;  %v678_v21 = vpop.f32.mrb[11].mxu1  ;;  %v359_v22 = vmax.f32 %v343_v17, 0.0 }
 0x300   :  { %v360_v23 = vmax.f32 %v346_v20, 0.0 }
 0x302   :  { %v372_v24 = vpack.c.bf16 %v360_v23, %v359_v22 }
 0x303   :  { %v350_v25 = vpop.f32.mrb[12].mxu1 }
 0x304   :  { %v351_v26 = vadd.f32 %v618_v6, %v350_v25  ;;  %v681_v27 = vpop.f32.mrb[13].mxu1  ;;  %696 = vmatmul.mubr.msk.bf16.gmra.mrb[12].mxu0 %vm398_vm2, %v372_v24 }
 0x305   :  { %v353_v28 = vpop.f32.mrb[14].mxu1  ;;  %699 = vmatprep.mubr.msk.bf16.mxu0 %vm769_vm0, %v768_v1 }
 0x306   :  { %v354_v29 = vadd.f32 %v618_v6, %v353_v28  ;;  %v682_v30 = vpop.f32.mrb[15].mxu1  ;;  %v361_v31 = vmax.f32 %v351_v26, 0.0 }
 0x308   :  { %v362_v32 = vmax.f32 %v354_v29, 0.0 }
 0x30a   :  { %v373_v33 = vpack.c.bf16 %v362_v32, %v361_v31 }
 0x30c   :  { %700 = vmatmul.mubr.msk.bf16.gmra.mrb[16].mxu0 %vm398_vm2, %v373_v33 }
 0x3cf   :  { %v442_v34 = vpop.f32.mrb[8].mxu0 }
 0x3d0   :  { %v465_v36 = vadd.f32 %v442_v34, %v962_v48  ;;  %v693_v37 = vpop.f32.mrb[9].mxu0 }
 0x3d1   :  { %v445_v38 = vpop.f32.mrb[10].mxu0 }
 0x3d2   :  { %v466_v39 = vadd.f32 %v445_v38, %v964_v49  ;;  %v694_v40 = vpop.f32.mrb[11].mxu0  ;;  %v478_v1 = vadd.f32 %v631_v35, %v465_v36 }
 0x3d4   :  { %v486_v41 = vsel %vm74_vm1, %v478_v1, 0.0  ;;  %v479_v42 = vadd.f32 %v631_v35, %v466_v39 }
 0x3d5   :  { %487 = vadd.xlane.f32.xlu0 %v486_v41 }
 0x3d6   :  { %v489_v43 = vsel %vm74_vm1, %v479_v42, 0.0 }
 0x3d7   :  { %490 = vadd.xlane.f32.xlu1 %v489_v43  ;;  %v450_v44 = vpop.f32.mrb[12].mxu0  ;;  %v632_v43 = vld [vmem:[%s1062_s10] ss:$0 sm:$0xff]  ;;  %s770_s10 = smov [#allocation2]  }
 0x3d8   :  { %v467_v45 = vadd.f32 %v450_v44, %v974_v59  ;;  %v697_v46 = vpop.f32.mrb[13].mxu0 }
 0x3d9   :  { %v453_v47 = vpop.f32.mrb[14].mxu0 }
 0x3da   :  { %v468_v48 = vadd.f32 %v453_v47, %v976_v60  ;;  %v698_v50 = vpop.f32.mrb[15].mxu0  ;;  %v480_v51 = vadd.f32 %v631_v35, %v467_v45  ;;  %v633_v47 = vld [vmem:[%s1063_s11] ss:$0 sm:$0xff]  ;;  %s599_s11 = sshll.u32 %s770_s10, 4  ;;  %s600_s11 = int_to_ptr.vmem [resolvable:$true] %s599_s11 }
 0x3db   :  { %s744_s26 = scalar_lea.vmem %s600_s11, 768  ;;  %p749_p1 = scmp.lt.s32.totalorder %s600_s11, %s600_s11 }
 0x3dc   :  { %v492_v49 = vsel %vm74_vm1, %v480_v51, 0.0  ;;  %v481_v52 = vadd.f32 %v631_v35, %v468_v48  ;;  %p745_p0 = scmp.ne.s32.totalorder %s600_s11, %s744_s26  ;;  %p750_p2 = scmp.lt.s32.totalorder %s744_s26, %s744_s26 }
 0x3dd   :  { %493 = vadd.xlane.f32.xlu0 %v492_v49 }
 0x3de   :  { %v495_v53 = vsel %vm74_vm1, %v481_v52, 0.0  ;;  %p751_p3 = por %p750_p2, %p749_p1 }
 0x3df   :  { %496 = vadd.xlane.f32.xlu1 %v495_v53  ;;  %v458_v54 = vpop.f32.mrb[16].mxu0 }
 0x3e0   :  { %v469_v55 = vadd.f32 %v458_v54, %v985_v3  ;;  %v701_v56 = vpop.f32.mrb[17].mxu0  ;;  %p752_p4 = pnand %p751_p3, %p745_p0 }
 0x3e1   :  { %v461_v57 = vpop.f32.mrb[18].mxu0 }
 0x3e2   :  { %v470_v58 = vadd.f32 %v461_v57, %v983_v2  ;;  %v702_v59 = vpop.f32.mrb[19].mxu0  ;;  %v482_v61 = vadd.f32 %v631_v35, %v469_v55 }
 0x3e4   :  { %v498_v60 = vsel %vm74_vm1, %v482_v61, 0.0  ;;  %v483_v62 = vadd.f32 %v631_v35, %v470_v58 }
 0x3e5   :  { %499 = vadd.xlane.f32.xlu0 %v498_v60 }
 0x3e6   :  { %v501_v0 = vsel %vm74_vm1, %v483_v62, 0.0 }
 0x3e7   :  { %502 = vadd.xlane.f32.xlu1 %v501_v0 }
 0x462   :  { %v488_v63 = vpop.xlane.xlu0 %487 }
 0x463   :  { %v504_v4 = vmul.f32 0.03125, %v488_v63 }
 0x464   :  { %v491_v5 = vpop.xlane.xlu1 %490 }
 0x465   :  { %v510_v6 = vsub.f32 %v478_v1, %v504_v4  ;;  %v505_v7 = vmul.f32 0.03125, %v491_v5 }
 0x467   :  { %v511_v8 = vsub.f32 %v479_v42, %v505_v7  ;;  %v516_v3 = vmul.f32 %v510_v6, %v510_v6 }
 0x469   :  { %v522_v9 = vsel %vm74_vm1, %v516_v3, 0.0  ;;  %v517_v10 = vmul.f32 %v511_v8, %v511_v8 }
 0x46a   :  { %523 = vadd.xlane.f32.xlu0 %v522_v9  ;;  %v494_v2 = vpop.xlane.xlu0 %493 }
 0x46b   :  { %v506_v11 = vmul.f32 0.03125, %v494_v2  ;;  %v525_v12 = vsel %vm74_vm1, %v517_v10, 0.0 }
 0x46c   :  { %v497_v13 = vpop.xlane.xlu1 %496  ;;  %526 = vadd.xlane.f32.xlu1 %v525_v12 }
 0x46d   :  { %v512_v14 = vsub.f32 %v480_v51, %v506_v11  ;;  %v507_v15 = vmul.f32 0.03125, %v497_v13 }
 0x46f   :  { %v513_v16 = vsub.f32 %v481_v52, %v507_v15  ;;  %v518_v17 = vmul.f32 %v512_v14, %v512_v14 }
 0x471   :  { %v528_v18 = vsel %vm74_vm1, %v518_v17, 0.0  ;;  %v519_v19 = vmul.f32 %v513_v16, %v513_v16 }
 0x472   :  { %529 = vadd.xlane.f32.xlu0 %v528_v18  ;;  %v500_v20 = vpop.xlane.xlu0 %499 }
 0x473   :  { %v508_v21 = vmul.f32 0.03125, %v500_v20  ;;  %v531_v22 = vsel %vm74_vm1, %v519_v19, 0.0 }
 0x474   :  { %532 = vadd.xlane.f32.xlu1 %v531_v22  ;;  %v503_v23 = vpop.xlane.xlu1 %502 }
 0x475   :  { %v514_v24 = vsub.f32 %v482_v61, %v508_v21  ;;  %v509_v25 = vmul.f32 0.03125, %v503_v23 }
 0x477   :  { %v515_v26 = vsub.f32 %v483_v62, %v509_v25  ;;  %v520_v27 = vmul.f32 %v514_v24, %v514_v24 }
 0x479   :  { %v534_v28 = vsel %vm74_vm1, %v520_v27, 0.0  ;;  %v521_v29 = vmul.f32 %v515_v26, %v515_v26 }
 0x47a   :  { %535 = vadd.xlane.f32.xlu0 %v534_v28 }
 0x47b   :  { %v537_v30 = vsel %vm74_vm1, %v521_v29, 0.0 }
 0x47c   :  { %538 = vadd.xlane.f32.xlu1 %v537_v30 }
 0x4f7   :  { %v524_v31 = vpop.xlane.xlu0 %523 }
 0x4f8   :  { %v540_v32 = vmul.f32 0.03125, %v524_v31 }
 0x4f9   :  { %v527_v33 = vpop.xlane.xlu1 %526 }
 0x4fa   :  { %v546_v34 = vadd.f32 1e-05, %v540_v32  ;;  %v541_v35 = vmul.f32 0.03125, %v527_v33 }
 0x4fc   :  { %732 = vrsqrt.f32 %v546_v34  ;;  %v547_v36 = vadd.f32 1e-05, %v541_v35 }
 0x4fe   :  { %734 = vrsqrt.f32 %v547_v36 }
 0x4ff   :  { %v530_v37 = vpop.xlane.xlu0 %529 }
 0x500   :  { %v542_v38 = vmul.f32 0.03125, %v530_v37 }
 0x501   :  { %v533_v39 = vpop.xlane.xlu1 %532 }
 0x502   :  { %v548_v40 = vadd.f32 1e-05, %v542_v38  ;;  %v543_v1 = vmul.f32 0.03125, %v533_v39 }
 0x504   :  { %736 = vrsqrt.f32 %v548_v40  ;;  %v549_v41 = vadd.f32 1e-05, %v543_v1 }
 0x506   :  { %v733_v42 = vpop.eup %732  ;;  %738 = vrsqrt.f32 %v549_v41 }
 0x507   :  { %v558_v44 = vmul.f32 %v733_v42, %v510_v6  ;;  %v536_v45 = vpop.xlane.xlu0 %535 }
 0x508   :  { %v735_v46 = vpop.eup %734  ;;  %v544_v48 = vmul.f32 0.03125, %v536_v45 }
 0x509   :  { %v570_v50 = vmul.f32 %v632_v43, %v558_v44  ;;  %v559_v51 = vmul.f32 %v735_v46, %v511_v8  ;;  %v539_v49 = vpop.xlane.xlu1 %538 }
 0x50a   :  { %v550_v52 = vadd.f32 1e-05, %v544_v48  ;;  %v545_v53 = vmul.f32 0.03125, %v539_v49 }
 0x50b   :  { %v582_v54 = vadd.f32 %v633_v47, %v570_v50  ;;  %v571_v55 = vmul.f32 %v632_v43, %v559_v51 }
 0x50c   :  { %740 = vrsqrt.f32 %v550_v52  ;;  %v551_v56 = vadd.f32 1e-05, %v545_v53 }
 0x50d   :  { %588 = vst.msk [vmem:[#allocation2] sm:$0xff] %vm74_vm1, %v582_v54  ;;  %v583_v57 = vadd.f32 %v633_v47, %v571_v55 }
 0x50e   :  { %v737_v58 = vpop.eup %736  ;;  %742 = vrsqrt.f32 %v551_v56 }
 0x50f   :  { %589 = vst.msk [vmem:[#allocation2 + $0x8] sm:$0xff] %vm74_vm1, %v583_v57  ;;  %v560_v59 = vmul.f32 %v737_v58, %v512_v14 }
 0x510   :  { %v739_v61 = vpop.eup %738 }
 0x511   :  { %v572_v60 = vmul.f32 %v632_v43, %v560_v59  ;;  %v561_v62 = vmul.f32 %v739_v61, %v513_v16 }
 0x513   :  { %v584_v0 = vadd.f32 %v633_v47, %v572_v60  ;;  %v573_v63 = vmul.f32 %v632_v43, %v561_v62 }
 0x515   :  { %590 = vst.msk [vmem:[#allocation2 + $0x10] sm:$0xff] %vm74_vm1, %v584_v0  ;;  %v585_v4 = vadd.f32 %v633_v47, %v573_v63 }
 0x516   :  { %v741_v5 = vpop.eup %740 }
 0x517   :  { %591 = vst.msk [vmem:[#allocation2 + $0x18] sm:$0xff] %vm74_vm1, %v585_v4  ;;  %v562_v6 = vmul.f32 %v741_v5, %v514_v24 }
 0x518   :  { %v743_v7 = vpop.eup %742 }
 0x519   :  { %v574_v8 = vmul.f32 %v632_v43, %v562_v6  ;;  %v563_v3 = vmul.f32 %v743_v7, %v515_v26 }
 0x51b   :  { %v586_v9 = vadd.f32 %v633_v47, %v574_v8  ;;  %v575_v10 = vmul.f32 %v632_v43, %v563_v3 }
 0x51d   :  { %592 = vst.msk [vmem:[#allocation2 + $0x20] sm:$0xff] %vm74_vm1, %v586_v9  ;;  %v587_v2 = vadd.f32 %v633_v47, %v575_v10 }
 0x51f   :  { %593 = vst.msk [vmem:[#allocation2 + $0x28] sm:$0xff] %vm74_vm1, %v587_v2 }
 0x520   :  { %755 = shalt.err (!%p752_p4)
}
 0x521   :  { %s756_s29 = scalar_lea.hbm %s1064_s12, 768 }
 0x522   :  { %p757_p5 = scmp.ne.s32.totalorder %s1064_s12, %s756_s29  ;;  %p760_p6 = scmp.lt.u32.totalorder %s756_s29, %s1064_s12 }
 0x524   :  { %p762_p7 = pnand %p760_p6, %p757_p5 }
 0x526   :  { %765 = shalt.err (!%p762_p7)
}
 0x527   :  { %s771_s14 = smov 128   ;;  %s772_s15 = smov 8  }
 0x528   :  { %605 = dma.vmem_to_hbm [thread:$0]  %s600_s11, 768, %s1064_s12, [#allocation3], %s771_s14, %s771_s14, %s772_s15  }
 0x529   :  { %766 = dma.done.wait [#allocation3], 768  }
 0x52a   :  { %767 = vsyncadd [#allocation3], 4294966528 }
 0x52b   :  { %609 = vsyncpa [#allocation3], 1 }

// kernel: deformable_control_layer_forward.5
= control target key start
LH: loop header
LB: loop body
LE: loop exit
PB: predicated region body
PF: predicated region fallthrough
CT: control target
= control target key end

     0   :  { %v4089_v0 = vmov 0.0   ;;  %vm4090_vm0 = vmmov 0   ;;  %vm80_vm1 = vcmask 261120   ;;  %s4091_s23 = smov 96   ;;  %vm277_vm2 = vcmask 64512   ;;  %s4093_s25 = smov 120   ;;  %s4842_s2 = inlined_call_operand.vmem [shape: bf16[32,64], index: 2, kind: input, shape index: {}]   ;;  %s4843_s0 = inlined_call_operand.vmem [shape: f32[6,8,32], index: 0, kind: input, shape index: {}]   ;;  %s4844_s1 = inlined_call_operand.vmem [shape: f32[6,8,32], index: 1, kind: input, shape index: {}]   ;;  %s4845_s4 = inlined_call_operand.vmem [shape: bf16[32,32], index: 4, kind: input, shape index: {}]   ;;  %s4846_s3 = inlined_call_operand.vmem [shape: f32[1,64], index: 3, kind: input, shape index: {}]   ;;  %s4847_s5 = inlined_call_operand.vmem [shape: f32[1,32], index: 5, kind: input, shape index: {}]   ;;  %s4848_s6 = inlined_call_operand.vmem [shape: bf16[32,32], index: 6, kind: input, shape index: {}]   ;;  %s4849_s7 = inlined_call_operand.vmem [shape: f32[1,32], index: 7, kind: input, shape index: {}]   ;;  %s4850_s8 = inlined_call_operand.vmem [shape: f32[1,32], index: 8, kind: input, shape index: {}]   ;;  %s4851_s9 = inlined_call_operand.vmem [shape: f32[1,32], index: 9, kind: input, shape index: {}]   ;;  %s4852_s10 = inlined_call_operand.vmem [shape: f32[6,8,32], index: 10, kind: output, shape index: {}]  }
   0x1   :  { %3540 = vmatprep.subr.bf16.mxu0 %v4089_v0  ;;  %v3971_v1 = vld [vmem:[%s4842_s2] sm:$0xff]   ;;  %3544 = vmatprep.mubr.msk.bf16.mxu0 %vm4090_vm0, %v4089_v0  ;;  %v3972_v2 = vld [vmem:[%s4842_s2 + $0x8] sm:$0xff]   ;;  %v38_v8 = vld [vmem:[%s4843_s0 + $0x10] sm:$0xff]  ;;  %vm650_vm3 = vcmask 1043456   ;;  %s4094_s28 = smov 112   ;;  %s4095_s29 = smov 80  }
   0x2   :  { %3916 = vmatprep.subr.bf16.mxu1 %v4089_v0  ;;  %3548 = vmatprep.mubr.msk.bf16.mxu1 %vm4090_vm0, %v4089_v0  ;;  %v36_v3 = vld [vmem:[%s4843_s0] sm:$0xff]  ;;  %v37_v4 = vld [vmem:[%s4843_s0 + $0x8] sm:$0xff]  ;;  %v39_v9 = vld [vmem:[%s4843_s0 + $0x18] sm:$0xff]  ;;  %s4096_s12 = smov 72   ;;  %s4097_s13 = smov 104  }
   0x3   :  { %3541 = vmatpush3.bf16.msra.mxu0 %v3971_v1  ;;  %v42_v5 = vld [vmem:[%s4844_s1] sm:$0xff]  ;;  %3918 = vmatpush3.bf16.msra.mxu1 %v3971_v1  ;;  %v43_v6 = vld [vmem:[%s4844_s1 + $0x8] sm:$0xff]  ;;  %v44_v11 = vld [vmem:[%s4844_s1 + $0x10] sm:$0xff]  ;;  %v151_v26 = vpack.c.bf16 %v37_v4, %v36_v3  ;;  %v152_v27 = vpack.c.bf16 %v39_v9, %v38_v8 }
   0x4   :  { %3542 = vmatprep.subr.bf16.mxu0 %v4089_v0  ;;  %v48_v7 = vadd.f32 %v42_v5, %v36_v3  ;;  %3917 = vmatprep.subr.bf16.mxu1 %v4089_v0  ;;  %v49_v10 = vadd.f32 %v43_v6, %v37_v4  ;;  %v45_v12 = vld [vmem:[%s4844_s1 + $0x18] sm:$0xff]  ;;  %v50_v13 = vadd.f32 %v44_v11, %v38_v8  ;;  %v40_v15 = vld [vmem:[%s4843_s0 + $0x20] sm:$0xff]  ;;  %v41_v17 = vld [vmem:[%s4843_s0 + $0x28] sm:$0xff] }
   0x5   :  { %v51_v14 = vadd.f32 %v45_v12, %v39_v9  ;;  %v46_v18 = vld [vmem:[%s4844_s1 + $0x20] sm:$0xff]  ;;  %v47_v19 = vld [vmem:[%s4844_s1 + $0x28] sm:$0xff]  ;;  %v153_v28 = vpack.c.bf16 %v41_v17, %v40_v15 }
   0x6   :  { %v58_v16 = vpack.c.bf16 %v49_v10, %v48_v7  ;;  %v52_v21 = vadd.f32 %v46_v18, %v40_v15  ;;  %v53_v22 = vadd.f32 %v47_v19, %v41_v17  ;;  %v3973_v24 = vld [vmem:[%s4845_s4] sm:$0xff]   ;;  %v3974_v25 = vld [vmem:[%s4845_s4 + $0x8] sm:$0xff]  }
   0x7   :  { %3543 = vmatpush3.bf16.msra.mxu0 %v3972_v2  ;;  %3919 = vmatpush3.bf16.msra.mxu1 %v3972_v2  ;;  %v59_v20 = vpack.c.bf16 %v51_v14, %v50_v13  ;;  %v3343_v29 = vld [vmem:[%s4846_s3] ss:$0 sm:$0xff] }
   0x8   :  { %3556 = vmatprep.subr.bf16.mxu1 %v4089_v0  ;;  %3572 = vmatprep.subr.bf16.mxu0 %v4089_v0  ;;  %v60_v23 = vpack.c.bf16 %v53_v22, %v52_v21 }
   0xa   :  { %3545 = vmatmul.mubr.msk.bf16.vlgmr.msra.gmra.mrb[0].mxu0 %vm80_vm1, %v58_v16  ;;  %3549 = vmatmul.mubr.msk.bf16.vlgmr.msra.gmra.mrb[0].mxu1 %vm80_vm1, %v59_v20 }
   0xb   :  { %3552 = vmatprep.mubr.msk.bf16.mxu1 %vm4090_vm0, %v4089_v0  ;;  %3574 = vmatprep.mubr.msk.bf16.mxu0 %vm4090_vm0, %v4089_v0 }
   0xc   :  { %3557 = vmatpush3.bf16.msra.mxu1 %v3973_v24 }
   0xd   :  { %3558 = vmatprep.subr.bf16.mxu1 %v4089_v0 }
  0x10   :  { %3559 = vmatpush3.bf16.msra.mxu1 %v3974_v25 }
  0x11   :  { %3578 = vmatprep.subr.bf16.mxu1 %v4089_v0 }
  0x12   :  { %3553 = vmatmul.mubr.msk.bf16.gmra.mrb[4].mxu1 %vm80_vm1, %v60_v23  ;;  %v4307_v23 = vld [vmem:[%s4847_s5] ss:$0 sm:$0xff]  ;;  %s4092_s5 = smov 88  }
  0x13   :  { %3560 = vmatprep.mubr.msk.bf16.mxu1 %vm4090_vm0, %v4089_v0 }
  0x1a   :  { %3561 = vmatmul.mubr.msk.bf16.vlgmr.msra.gmra.mrb[8].mxu1 %vm80_vm1, %v151_v26 }
  0x1b   :  { %3564 = vmatprep.mubr.msk.bf16.mxu1 %vm4090_vm0, %v4089_v0 }
  0x22   :  { %3565 = vmatmul.mubr.msk.bf16.gmra.mrb[12].mxu1 %vm80_vm1, %v152_v27 }
  0x23   :  { %3568 = vmatprep.mubr.msk.bf16.mxu1 %vm4090_vm0, %v4089_v0 }
  0x2a   :  { %3569 = vmatmul.mubr.msk.bf16.gmra.mrb[16].mxu1 %vm80_vm1, %v153_v28 }
  0x2b   :  { %3580 = vmatprep.mubr.msk.bf16.mxu1 %vm4090_vm0, %v4089_v0 }
  0xdd   :  { %v124_v30 = vpop.f32.mrb[0].mxu0  ;;  %v132_v31 = vpop.f32.mrb[0].mxu1 }
  0xde   :  { %v125_v32 = vadd.f32 %v3343_v29, %v124_v30  ;;  %v3546_v33 = vpop.f32.mrb[1].mxu0  ;;  %v133_v34 = vadd.f32 %v3343_v29, %v132_v31  ;;  %v3550_v35 = vpop.f32.mrb[1].mxu1 }
  0xdf   :  { %v127_v36 = vpop.f32.mrb[2].mxu0  ;;  %v135_v37 = vpop.f32.mrb[2].mxu1 }
  0xe0   :  { %v4234_v38 = vpack.c.bf16 %v125_v32, %v125_v32  ;;  %v128_v39 = vadd.f32 %v3343_v29, %v127_v36  ;;  %v3547_v40 = vpop.f32.mrb[3].mxu0  ;;  %v3551_v41 = vpop.f32.mrb[3].mxu1  ;;  %v4236_v42 = vpack.c.bf16 %v133_v34, %v133_v34  ;;  %v136_v43 = vadd.f32 %v3343_v29, %v135_v37 }
  0xe1   :  { %v239_v1 = vmul.f32 0.35355338, %v125_v32  ;;  %v241_v10 = vmul.f32 0.35355338, %v133_v34 }
  0xe2   :  { %275 = vrot.lane.b32.xlu0 %v4234_v38, %s4091_s23  ;;  %v4239_v44 = vpack.c.bf16 %v136_v43, %v136_v43  ;;  %374 = vrot.lane.b32.xlu1 %v4236_v42, %s4091_s23  ;;  %v4242_v45 = vpack.c.bf16 %v128_v39, %v128_v39  ;;  %v240_v6 = vmul.f32 0.35355338, %v128_v39  ;;  %v242_v14 = vmul.f32 0.35355338, %v136_v43 }
  0xe3   :  { %v4259_v5 = vpack.c.bf16 %v239_v1, %v239_v1  ;;  %v4275_v13 = vpack.c.bf16 %v241_v10, %v241_v10 }
  0xe4   :  { %v4267_v9 = vpack.c.bf16 %v240_v6, %v240_v6  ;;  %v4283_v17 = vpack.c.bf16 %v242_v14, %v242_v14 }
  0xe5   :  { %v140_v46 = vpop.f32.mrb[4].mxu1 }
  0xe6   :  { %325 = vrot.lane.b32.xlu0 %v4242_v45, %s4091_s23  ;;  %v141_v47 = vadd.f32 %v3343_v29, %v140_v46  ;;  %v3554_v48 = vpop.f32.mrb[5].mxu1  ;;  %423 = vrot.lane.b32.xlu1 %v4239_v44, %s4091_s23 }
  0xe7   :  { %v143_v49 = vpop.f32.mrb[6].mxu1 }
  0xe8   :  { %v4246_v50 = vpack.c.bf16 %v141_v47, %v141_v47  ;;  %v144_v51 = vadd.f32 %v3343_v29, %v143_v49  ;;  %v3555_v52 = vpop.f32.mrb[7].mxu1  ;;  %v243_v18 = vmul.f32 0.35355338, %v141_v47 }
  0xea   :  { %v4248_v53 = vpack.c.bf16 %v144_v51, %v144_v51  ;;  %472 = vrot.lane.b32.xlu0 %v4246_v50, %s4091_s23  ;;  %v4291_v20 = vpack.c.bf16 %v243_v18, %v243_v18  ;;  %v244_v21 = vmul.f32 0.35355338, %v144_v51 }
  0xec   :  { %521 = vrot.lane.b32.xlu1 %v4248_v53, %s4091_s23  ;;  %v4298_v22 = vpack.c.bf16 %v244_v21, %v244_v21 }
  0xed   :  { %v216_v54 = vpop.f32.mrb[8].mxu1 }
  0xee   :  { %v3562_v55 = vpop.f32.mrb[9].mxu1  ;;  %v217_v24 = vadd.f32 %v4307_v23, %v216_v54 }
  0xef   :  { %v219_v56 = vpop.f32.mrb[10].mxu1 }
  0xf0   :  { %v3563_v57 = vpop.f32.mrb[11].mxu1  ;;  %v220_v25 = vadd.f32 %v4307_v23, %v219_v56  ;;  %v4311_v26 = vpack.c.bf16 %v217_v24, %v217_v24 }
  0xf2   :  { %v4313_v27 = vpack.c.bf16 %v220_v25, %v220_v25  ;;  %v652_v28 = vsel %vm650_vm3, %v4311_v26, 0 }
  0xf4   :  { %v698_v29 = vsel %vm650_vm3, %v4313_v27, 0 }
  0xf5   :  { %v4252_v58 = vpop.f32.mrb[12].mxu1 }
  0xf6   :  { %v3566_v59 = vpop.f32.mrb[13].mxu1 }
  0xf7   :  { %v4254_v60 = vpop.f32.mrb[14].mxu1 }
  0xf8   :  { %v3567_v62 = vpop.f32.mrb[15].mxu1 }
  0xfd   :  { %v4321_v30 = vpop.f32.mrb[16].mxu1 }
  0xfe   :  { %v3570_v31 = vpop.f32.mrb[17].mxu1 }
  0xff   :  { %v4323_v32 = vpop.f32.mrb[18].mxu1 }
 0x100   :  { %v3571_v33 = vpop.f32.mrb[19].mxu1 }
 0x154   :  { %v276_v61 = vpop.permute.xlu0 %275  ;;  %v375_v3 = vpop.permute.xlu1 %374 }
 0x155   :  { %v282_v63 = vsel %vm277_vm2, %v276_v61, 0  ;;  %v380_v7 = vsel %vm277_vm2, %v375_v3, 0 }
 0x156   :  { %3573 = vmatpush3.bf16.xpose.msra.mxu0 %v282_v63 }
 0x157   :  { %3584 = vmatprep.subr.bf16.mxu0 %v4089_v0 }
 0x158   :  { %v326_v2 = vpop.permute.xlu0 %325  ;;  %v424_v8 = vpop.permute.xlu1 %423 }
 0x159   :  { %v331_v4 = vsel %vm277_vm2, %v326_v2, 0  ;;  %v429_v12 = vsel %vm277_vm2, %v424_v8, 0 }
 0x15a   :  { %3579 = vmatpush3.bf16.xpose.msra.mxu1 %v331_v4 }
 0x15b   :  { %3590 = vmatprep.subr.bf16.mxu1 %v4089_v0 }
 0x15c   :  { %v473_v11 = vpop.permute.xlu0 %472 }
 0x15d   :  { %3575 = vmatmul.mubr.msk.bf16.vlgmr.msra.gmra.mrb[4].mxu0 %vm277_vm2, %v4259_v5  ;;  %v478_v15 = vsel %vm277_vm2, %v473_v11, 0 }
 0x15e   :  { %3585 = vmatpush3.bf16.xpose.msra.mxu0 %v380_v7  ;;  %3586 = vmatprep.mubr.msk.bf16.mxu0 %vm4090_vm0, %v4089_v0  ;;  %v522_v16 = vpop.permute.xlu1 %521 }
 0x15f   :  { %3596 = vmatprep.subr.bf16.mxu0 %v4089_v0  ;;  %v527_v19 = vsel %vm277_vm2, %v522_v16, 0 }
 0x161   :  { %3581 = vmatmul.mubr.msk.bf16.vlgmr.msra.gmra.mrb[20].mxu1 %vm277_vm2, %v4267_v9 }
 0x162   :  { %3591 = vmatpush3.bf16.xpose.msra.mxu1 %v429_v12  ;;  %3592 = vmatprep.mubr.msk.bf16.mxu1 %vm4090_vm0, %v4089_v0 }
 0x163   :  { %3602 = vmatprep.subr.bf16.mxu1 %v4089_v0 }
 0x165   :  { %3587 = vmatmul.mubr.msk.bf16.vlgmr.msra.gmra.mrb[8].mxu0 %vm277_vm2, %v4275_v13 }
 0x166   :  { %3597 = vmatpush3.bf16.xpose.msra.mxu0 %v478_v15  ;;  %3598 = vmatprep.mubr.msk.bf16.mxu0 %vm4090_vm0, %v4089_v0 }
 0x167   :  { %3608 = vmatprep.subr.bf16.mxu0 %v4089_v0 }
 0x169   :  { %3593 = vmatmul.mubr.msk.bf16.vlgmr.msra.gmra.mrb[24].mxu1 %vm277_vm2, %v4283_v17 }
 0x16a   :  { %3603 = vmatpush3.bf16.xpose.msra.mxu1 %v527_v19  ;;  %3604 = vmatprep.mubr.msk.bf16.mxu1 %vm4090_vm0, %v4089_v0 }
 0x16b   :  { %3614 = vmatprep.subr.bf16.mxu1 %v4089_v0 }
 0x16d   :  { %3599 = vmatmul.mubr.msk.bf16.vlgmr.msra.gmra.mrb[12].mxu0 %vm277_vm2, %v4291_v20 }
 0x16e   :  { %3610 = vmatprep.mubr.msk.bf16.mxu0 %vm4090_vm0, %v4089_v0  ;;  %3609 = vmatpush3.bf16.msra.mxu0 %v652_v28 }
 0x16f   :  { %3620 = vmatprep.subr.bf16.mxu0 %v4089_v0 }
 0x171   :  { %3605 = vmatmul.mubr.msk.bf16.vlgmr.msra.gmra.mrb[28].mxu1 %vm277_vm2, %v4298_v22 }
 0x172   :  { %3616 = vmatprep.mubr.msk.bf16.mxu1 %vm4090_vm0, %v4089_v0  ;;  %3615 = vmatpush3.bf16.msra.mxu1 %v698_v29 }
 0x173   :  { %3626 = vmatprep.subr.bf16.mxu1 %v4089_v0 }
 0x230   :  { %v318_v34 = vpop.f32.mrb[4].mxu0 }
 0x231   :  { %v3576_v35 = vpop.f32.mrb[5].mxu0  ;;  %v569_v36 = vsel %vm277_vm2, %v318_v34, -inf }
 0x232   :  { %570 = vmax.xlane.f32.xlu0 %v569_v36  ;;  %v321_v37 = vpop.f32.mrb[6].mxu0 }
 0x233   :  { %v3577_v39 = vpop.f32.mrb[7].mxu0 }
 0x234   :  { %v367_v40 = vpop.f32.mrb[20].mxu1 }
 0x235   :  { %v3582_v41 = vpop.f32.mrb[21].mxu1  ;;  %v572_v43 = vsel %vm277_vm2, %v367_v40, -inf }
 0x236   :  { %573 = vmax.xlane.f32.xlu1 %v572_v43  ;;  %v370_v46 = vpop.f32.mrb[22].mxu1 }
 0x237   :  { %v3583_v47 = vpop.f32.mrb[23].mxu1 }
 0x238   :  { %v416_v48 = vpop.f32.mrb[8].mxu0 }
 0x239   :  { %v3588_v49 = vpop.f32.mrb[9].mxu0  ;;  %v575_v51 = vsel %vm277_vm2, %v416_v48, -inf }
 0x23a   :  { %576 = vmax.xlane.f32.xlu0 %v575_v51  ;;  %v419_v52 = vpop.f32.mrb[10].mxu0 }
 0x23b   :  { %v3589_v54 = vpop.f32.mrb[11].mxu0 }
 0x23c   :  { %v465_v55 = vpop.f32.mrb[24].mxu1 }
 0x23d   :  { %v3594_v56 = vpop.f32.mrb[25].mxu1  ;;  %v578_v57 = vsel %vm277_vm2, %v465_v55, -inf }
 0x23e   :  { %v468_v59 = vpop.f32.mrb[26].mxu1  ;;  %579 = vmax.xlane.f32.xlu0 %v578_v57 }
 0x23f   :  { %v3595_v61 = vpop.f32.mrb[27].mxu1  ;;  %v225_v59 = vadd.f32 %v4307_v23, %v4252_v58 }
 0x240   :  { %v514_v62 = vpop.f32.mrb[12].mxu0 }
 0x241   :  { %v3600_v63 = vpop.f32.mrb[13].mxu0  ;;  %v581_v1 = vsel %vm277_vm2, %v514_v62, -inf }
 0x242   :  { %582 = vmax.xlane.f32.xlu1 %v581_v1  ;;  %v517_v2 = vpop.f32.mrb[14].mxu0  ;;  %v4366_v63 = vpack.c.bf16 %v225_v59, %v225_v59  ;;  %v228_v1 = vadd.f32 %v4307_v23, %v4254_v60 }
 0x243   :  { %v3601_v3 = vpop.f32.mrb[15].mxu0 }
 0x244   :  { %v563_v4 = vpop.f32.mrb[28].mxu1  ;;  %v744_v58 = vsel %vm650_vm3, %v4366_v63, 0 }
 0x245   :  { %v3606_v6 = vpop.f32.mrb[29].mxu1  ;;  %v584_v7 = vsel %vm277_vm2, %v563_v4, -inf }
 0x246   :  { %v566_v8 = vpop.f32.mrb[30].mxu1  ;;  %585 = vmax.xlane.f32.xlu0 %v584_v7  ;;  %v4370_v7 = vpack.c.bf16 %v228_v1, %v228_v1 }
 0x247   :  { %v3607_v10 = vpop.f32.mrb[31].mxu1  ;;  %v233_v8 = vadd.f32 %v4307_v23, %v4321_v30  ;;  %v236_v30 = vadd.f32 %v4307_v23, %v4323_v32 }
 0x2bf   :  { %v571_v11 = vpop.xlane.xlu0 %570 }
 0x2c0   :  { %v587_v12 = vsub.f32 %v318_v34, %v571_v11 }
 0x2c2   :  { %v593_v14 = vmul.f32 1.442695, %v587_v12 }
 0x2c3   :  { %v574_v15 = vpop.xlane.xlu1 %573 }
 0x2c4   :  { %3975 = vpow2.f32 %v593_v14  ;;  %v588_v16 = vsub.f32 %v367_v40, %v574_v15  ;;  %v4380_v14 = vpack.c.bf16 %v233_v8, %v233_v8  ;;  %v790_v15 = vsel %vm650_vm3, %v4370_v7, 0 }
 0x2c6   :  { %v595_v18 = vmul.f32 1.442695, %v588_v16  ;;  %v836_v23 = vsel %vm650_vm3, %v4380_v14, 0 }
 0x2c7   :  { %v577_v19 = vpop.xlane.xlu0 %576 }
 0x2c8   :  { %3977 = vpow2.f32 %v595_v18  ;;  %v589_v21 = vsub.f32 %v416_v48, %v577_v19 }
 0x2ca   :  { %v597_v24 = vmul.f32 1.442695, %v589_v21 }
 0x2cb   :  { %v580_v25 = vpop.xlane.xlu0 %579 }
 0x2cc   :  { %3979 = vpow2.f32 %v597_v24  ;;  %v590_v28 = vsub.f32 %v465_v55, %v580_v25  ;;  %v4390_v24 = vpack.c.bf16 %v236_v30, %v236_v30 }
 0x2ce   :  { %v3976_v29 = vpop.eup %3975  ;;  %v599_v31 = vmul.f32 1.442695, %v590_v28 }
 0x2cf   :  { %v583_v33 = vpop.xlane.xlu1 %582  ;;  %v605_v35 = vsel %vm277_vm2, %v3976_v29, 0.0 }
 0x2d0   :  { %3981 = vpow2.f32 %v599_v31  ;;  %v591_v36 = vsub.f32 %v514_v62, %v583_v33  ;;  %606 = vadd.xlane.f32.xlu1 %v605_v35  ;;  %v882_v31 = vsel %vm650_vm3, %v4390_v24, 0 }
 0x2d2   :  { %v3978_v34 = vpop.eup %3977  ;;  %v601_v37 = vmul.f32 1.442695, %v591_v36 }
 0x2d3   :  { %v586_v39 = vpop.xlane.xlu0 %585  ;;  %v608_v40 = vsel %vm277_vm2, %v3978_v34, 0.0 }
 0x2d4   :  { %3983 = vpow2.f32 %v601_v37  ;;  %v592_v41 = vsub.f32 %v563_v4, %v586_v39  ;;  %609 = vadd.xlane.f32.xlu0 %v608_v40 }
 0x2d6   :  { %v3980_v43 = vpop.eup %3979  ;;  %v603_v46 = vmul.f32 1.442695, %v592_v41 }
 0x2d7   :  { %v611_v47 = vsel %vm277_vm2, %v3980_v43, 0.0 }
 0x2d8   :  { %3985 = vpow2.f32 %v603_v46  ;;  %612 = vadd.xlane.f32.xlu1 %v611_v47 }
 0x2da   :  { %v4334_v48 = vpop.eup %3981 }
 0x2db   :  { %v614_v49 = vsel %vm277_vm2, %v4334_v48, 0.0 }
 0x2dc   :  { %615 = vadd.xlane.f32.xlu0 %v614_v49 }
 0x2de   :  { %v4338_v51 = vpop.eup %3983 }
 0x2df   :  { %v617_v52 = vsel %vm277_vm2, %v4338_v51, 0.0 }
 0x2e0   :  { %618 = vadd.xlane.f32.xlu1 %v617_v52 }
 0x2e2   :  { %v4342_v54 = vpop.eup %3985 }
 0x2e3   :  { %v620_v55 = vsel %vm277_vm2, %v4342_v54, 0.0 }
 0x2e4   :  { %621 = vadd.xlane.f32.xlu0 %v620_v55 }
 0x2f1   :  { %1005 = vrot.lane.b32.xlu1 %v4234_v38, %s4092_s5 }
 0x2f5   :  { %1056 = vrot.lane.b32.xlu1 %v4242_v45, %s4092_s5 }
 0x2f9   :  { %1054 = vrot.lane.b32.xlu1 %v4267_v9, %s4093_s25 }
 0x2fa   :  { %1003 = vrot.lane.b32.xlu0 %v4259_v5, %s4093_s25 }
 0x2fd   :  { %1158 = vrot.lane.b32.xlu1 %v4239_v44, %s4092_s5 }
 0x2fe   :  { %1107 = vrot.lane.b32.xlu0 %v4236_v42, %s4092_s5 }
 0x301   :  { %1156 = vrot.lane.b32.xlu1 %v4283_v17, %s4093_s25 }
 0x302   :  { %1105 = vrot.lane.b32.xlu0 %v4275_v13, %s4093_s25 }
 0x305   :  { %1260 = vrot.lane.b32.xlu1 %v4248_v53, %s4092_s5 }
 0x306   :  { %1209 = vrot.lane.b32.xlu0 %v4246_v50, %s4092_s5 }
 0x309   :  { %1258 = vrot.lane.b32.xlu1 %v4298_v22, %s4093_s25 }
 0x30a   :  { %1207 = vrot.lane.b32.xlu0 %v4291_v20, %s4093_s25 }
 0x35d   :  { %v607_v56 = vpop.xlane.xlu1 %606 }
 0x35e   :  { %3987 = vrcp.f32 %v607_v56 }
 0x361   :  { %v610_v57 = vpop.xlane.xlu0 %609 }
 0x362   :  { %3989 = vrcp.f32 %v610_v57 }
 0x365   :  { %v613_v61 = vpop.xlane.xlu1 %612 }
 0x366   :  { %3991 = vrcp.f32 %v613_v61 }
 0x368   :  { %v3988_v62 = vpop.eup %3987 }
 0x369   :  { %v616_v2 = vpop.xlane.xlu0 %615  ;;  %v629_v3 = vmul.f32 %v3988_v62, %v3976_v29  ;;  %v245_v29 = vld [vmem:[%s4848_s6] sm:$0xf] }
 0x36a   :  { %3993 = vrcp.f32 %v616_v2  ;;  %v937_v36 = vsel %vm650_vm3, %v245_v29, 0 }
 0x36b   :  { %v635_v4 = vpack.c.bf16 %v629_v3, %v629_v3 }
 0x36c   :  { %v3990_v6 = vpop.eup %3989 }
 0x36d   :  { %3611 = vmatmul.mubr.msk.bf16.vlgmr.msra.gmra.mrb[16].mxu0 %vm277_vm2, %v635_v4  ;;  %v619_v10 = vpop.xlane.xlu1 %618  ;;  %v630_v11 = vmul.f32 %v3990_v6, %v3978_v34 }
 0x36e   :  { %3621 = vmatpush3.bf16.msra.mxu0 %v744_v58  ;;  %3995 = vrcp.f32 %v619_v10  ;;  %3622 = vmatprep.mubr.msk.bf16.mxu0 %vm4090_vm0, %v4089_v0 }
 0x36f   :  { %v636_v60 = vpack.c.bf16 %v630_v11, %v630_v11  ;;  %3632 = vmatprep.subr.bf16.mxu0 %v4089_v0 }
 0x370   :  { %v3992_v12 = vpop.eup %3991 }
 0x371   :  { %3617 = vmatmul.mubr.msk.bf16.vlgmr.msra.gmra.mrb[32].mxu1 %vm277_vm2, %v636_v60  ;;  %v622_v16 = vpop.xlane.xlu0 %621  ;;  %v631_v18 = vmul.f32 %v3992_v12, %v3980_v43  ;;  %v1006_v39 = vpop.permute.xlu1 %1005 }
 0x372   :  { %3627 = vmatpush3.bf16.msra.mxu1 %v790_v15  ;;  %3997 = vrcp.f32 %v622_v16  ;;  %3628 = vmatprep.mubr.msk.bf16.mxu1 %vm4090_vm0, %v4089_v0  ;;  %v1011_v41 = vsel %vm277_vm2, %v1006_v39, 0 }
 0x373   :  { %v637_v19 = vpack.c.bf16 %v631_v18, %v631_v18  ;;  %3638 = vmatprep.subr.bf16.mxu1 %v4089_v0 }
 0x374   :  { %v3994_v21 = vpop.eup %3993 }
 0x375   :  { %3623 = vmatmul.mubr.msk.bf16.vlgmr.msra.gmra.mrb[20].mxu0 %vm277_vm2, %v637_v19  ;;  %v632_v32 = vmul.f32 %v3994_v21, %v4334_v48  ;;  %v1004_v43 = vpop.permute.xlu0 %1003  ;;  %v1057_v46 = vpop.permute.xlu1 %1056 }
 0x376   :  { %3633 = vmatpush3.bf16.msra.mxu0 %v836_v23  ;;  %3634 = vmatprep.mubr.msk.bf16.mxu0 %vm4090_vm0, %v4089_v0  ;;  %v1062_v47 = vsel %vm277_vm2, %v1057_v46, 0 }
 0x377   :  { %v638_v25 = vpack.c.bf16 %v632_v32, %v632_v32  ;;  %3644 = vmatprep.subr.bf16.mxu0 %v4089_v0 }
 0x378   :  { %v3996_v28 = vpop.eup %3995 }
 0x379   :  { %3629 = vmatmul.mubr.msk.bf16.vlgmr.msra.gmra.mrb[36].mxu1 %vm277_vm2, %v638_v25  ;;  %v633_v33 = vmul.f32 %v3996_v28, %v4338_v51  ;;  %v1108_v48 = vpop.permute.xlu0 %1107  ;;  %v1055_v49 = vpop.permute.xlu1 %1054 }
 0x37a   :  { %3639 = vmatpush3.bf16.msra.mxu1 %v882_v31  ;;  %3640 = vmatprep.mubr.msk.bf16.mxu1 %vm4090_vm0, %v4089_v0  ;;  %v1113_v52 = vsel %vm277_vm2, %v1108_v48, 0 }
 0x37b   :  { %v639_v35 = vpack.c.bf16 %v633_v33, %v633_v33  ;;  %3658 = vmatprep.subr.bf16.mxu1 %v4089_v0 }
 0x37c   :  { %v3998_v34 = vpop.eup %3997 }
 0x37d   :  { %3635 = vmatmul.mubr.msk.bf16.vlgmr.msra.gmra.mrb[24].mxu0 %vm277_vm2, %v639_v35  ;;  %v634_v37 = vmul.f32 %v3998_v34, %v4342_v54  ;;  %v1106_v51 = vpop.permute.xlu0 %1105  ;;  %v1159_v1 = vpop.permute.xlu1 %1158 }
 0x37e   :  { %3645 = vmatpush3.bf16.msra.mxu0 %v937_v36  ;;  %3646 = vmatprep.mubr.msk.bf16.mxu0 %vm4090_vm0, %v4089_v0  ;;  %v1164_v8 = vsel %vm277_vm2, %v1159_v1, 0 }
 0x37f   :  { %v640_v40 = vpack.c.bf16 %v634_v37, %v634_v37  ;;  %3676 = vmatprep.subr.bf16.mxu0 %v4089_v0 }
 0x381   :  { %3641 = vmatmul.mubr.msk.bf16.vlgmr.msra.gmra.mrb[40].mxu1 %vm277_vm2, %v640_v40  ;;  %v1210_v54 = vpop.permute.xlu0 %1209  ;;  %v1157_v33 = vpop.permute.xlu1 %1156 }
 0x382   :  { %3660 = vmatprep.mubr.msk.bf16.mxu1 %vm4090_vm0, %v4089_v0  ;;  %v1215_v55 = vsel %vm277_vm2, %v1210_v54, 0 }
 0x383   :  { %3659 = vmatpush3.bf16.xpose.msra.mxu1 %v1011_v41 }
 0x384   :  { %3664 = vmatprep.subr.bf16.mxu1 %v4089_v0 }
 0x385   :  { %v1208_v56 = vpop.permute.xlu0 %1207  ;;  %v1261_v34 = vpop.permute.xlu1 %1260 }
 0x386   :  { %v1266_v41 = vsel %vm277_vm2, %v1261_v34, 0 }
 0x389   :  { %v1259_v48 = vpop.permute.xlu1 %1258 }
 0x38a   :  { %3661 = vmatmul.mubr.msk.bf16.vlgmr.msra.gmra.mrb[44].mxu1 %vm277_vm2, %v1004_v43 }
 0x38b   :  { %3665 = vmatpush3.bf16.xpose.msra.mxu1 %v1062_v47  ;;  %3666 = vmatprep.mubr.msk.bf16.mxu1 %vm4090_vm0, %v4089_v0 }
 0x38c   :  { %3670 = vmatprep.subr.bf16.mxu1 %v4089_v0 }
 0x392   :  { %3667 = vmatmul.mubr.msk.bf16.vlgmr.msra.gmra.mrb[48].mxu1 %vm277_vm2, %v1055_v49 }
 0x393   :  { %3671 = vmatpush3.bf16.xpose.msra.mxu1 %v1113_v52  ;;  %3672 = vmatprep.mubr.msk.bf16.mxu1 %vm4090_vm0, %v4089_v0 }
 0x394   :  { %3682 = vmatprep.subr.bf16.mxu1 %v4089_v0 }
 0x39a   :  { %3673 = vmatmul.mubr.msk.bf16.vlgmr.msra.gmra.mrb[52].mxu1 %vm277_vm2, %v1106_v51 }
 0x39b   :  { %3683 = vmatpush3.bf16.xpose.msra.mxu1 %v1215_v55  ;;  %3684 = vmatprep.mubr.msk.bf16.mxu1 %vm4090_vm0, %v4089_v0 }
 0x39c   :  { %3694 = vmatprep.subr.bf16.mxu1 %v4089_v0 }
 0x3a2   :  { %3685 = vmatmul.mubr.msk.bf16.vlgmr.msra.gmra.mrb[56].mxu1 %vm277_vm2, %v1208_v56 }
 0x3a3   :  { %3696 = vmatprep.mubr.msk.bf16.mxu1 %vm4090_vm0, %v4089_v0 }
 0x440   :  { %v688_v57 = vpop.f32.mrb[16].mxu0 }
 0x441   :  { %v3612_v59 = vpop.f32.mrb[17].mxu0 }
 0x442   :  { %v691_v61 = vpop.f32.mrb[18].mxu0 }
 0x443   :  { %v3613_v62 = vpop.f32.mrb[19].mxu0 }
 0x444   :  { %v734_v2 = vpop.f32.mrb[32].mxu1 }
 0x445   :  { %v924_v3 = vpack.c.bf16 %v734_v2, %v688_v57  ;;  %v3618_v4 = vpop.f32.mrb[33].mxu1 }
 0x446   :  { %v737_v6 = vpop.f32.mrb[34].mxu1 }
 0x447   :  { %v3619_v58 = vpop.f32.mrb[35].mxu1  ;;  %3647 = vmatmul.mubr.msk.bf16.vlgmr.msra.gmra.mrb[28].mxu0 %vm277_vm2, %v924_v3 }
 0x448   :  { %3677 = vmatpush3.bf16.xpose.msra.mxu0 %v1164_v8  ;;  %v780_v10 = vpop.f32.mrb[20].mxu0  ;;  %3650 = vmatprep.mubr.msk.bf16.mxu0 %vm4090_vm0, %v4089_v0 }
 0x449   :  { %v3624_v11 = vpop.f32.mrb[21].mxu0  ;;  %3688 = vmatprep.subr.bf16.mxu0 %v4089_v0 }
 0x44a   :  { %v783_v60 = vpop.f32.mrb[22].mxu0 }
 0x44b   :  { %v3625_v12 = vpop.f32.mrb[23].mxu0 }
 0x44c   :  { %v826_v30 = vpop.f32.mrb[36].mxu1 }
 0x44d   :  { %v925_v15 = vpack.c.bf16 %v826_v30, %v780_v10  ;;  %v3630_v16 = vpop.f32.mrb[37].mxu1 }
 0x44e   :  { %v829_v18 = vpop.f32.mrb[38].mxu1 }
 0x44f   :  { %v3631_v19 = vpop.f32.mrb[39].mxu1  ;;  %3651 = vmatmul.mubr.msk.bf16.gmra.mrb[32].mxu0 %vm277_vm2, %v925_v15 }
 0x450   :  { %v872_v21 = vpop.f32.mrb[24].mxu0  ;;  %3654 = vmatprep.mubr.msk.bf16.mxu0 %vm4090_vm0, %v4089_v0 }
 0x451   :  { %v3636_v23 = vpop.f32.mrb[25].mxu0 }
 0x452   :  { %v875_v32 = vpop.f32.mrb[26].mxu0 }
 0x453   :  { %v3637_v25 = vpop.f32.mrb[27].mxu0 }
 0x454   :  { %v918_v28 = vpop.f32.mrb[40].mxu1 }
 0x455   :  { %v926_v29 = vpack.c.bf16 %v918_v28, %v872_v21  ;;  %v3642_v31 = vpop.f32.mrb[41].mxu1 }
 0x456   :  { %v921_v35 = vpop.f32.mrb[42].mxu1 }
 0x457   :  { %v3643_v36 = vpop.f32.mrb[43].mxu1  ;;  %3655 = vmatmul.mubr.msk.bf16.gmra.mrb[36].mxu0 %vm277_vm2, %v926_v29 }
 0x458   :  { %3678 = vmatprep.mubr.msk.bf16.mxu0 %vm4090_vm0, %v4089_v0 }
 0x45d   :  { %v1047_v37 = vpop.f32.mrb[44].mxu1 }
 0x45e   :  { %v3662_v39 = vpop.f32.mrb[45].mxu1  ;;  %v1308_v40 = vsel %vm277_vm2, %v1047_v37, -inf }
 0x45f   :  { %1309 = vmax.xlane.f32.xlu0 %v1308_v40  ;;  %v1050_v43 = vpop.f32.mrb[46].mxu1  ;;  %3679 = vmatmul.mubr.msk.bf16.vlgmr.msra.gmra.mrb[40].mxu0 %vm277_vm2, %v1157_v33 }
 0x460   :  { %v3663_v46 = vpop.f32.mrb[47].mxu1  ;;  %3689 = vmatpush3.bf16.xpose.msra.mxu0 %v1266_v41  ;;  %3690 = vmatprep.mubr.msk.bf16.mxu0 %vm4090_vm0, %v4089_v0 }
 0x461   :  { %3700 = vmatprep.subr.bf16.mxu0 %v4089_v0 }
 0x465   :  { %v1098_v47 = vpop.f32.mrb[48].mxu1 }
 0x466   :  { %v3668_v49 = vpop.f32.mrb[49].mxu1  ;;  %v1311_v51 = vsel %vm277_vm2, %v1098_v47, -inf }
 0x467   :  { %1312 = vmax.xlane.f32.xlu1 %v1311_v51  ;;  %v1101_v52 = vpop.f32.mrb[50].mxu1  ;;  %3691 = vmatmul.mubr.msk.bf16.vlgmr.msra.gmra.mrb[44].mxu0 %vm277_vm2, %v1259_v48 }
 0x468   :  { %v3669_v54 = vpop.f32.mrb[51].mxu1  ;;  %3702 = vmatprep.mubr.msk.bf16.mxu0 %vm4090_vm0, %v4089_v0 }
 0x46d   :  { %v1149_v55 = vpop.f32.mrb[52].mxu1 }
 0x46e   :  { %v3674_v56 = vpop.f32.mrb[53].mxu1  ;;  %v1314_v57 = vsel %vm277_vm2, %v1149_v55, -inf }
 0x46f   :  { %1315 = vmax.xlane.f32.xlu0 %v1314_v57  ;;  %v1152_v59 = vpop.f32.mrb[54].mxu1 }
 0x470   :  { %v3675_v61 = vpop.f32.mrb[55].mxu1 }
 0x475   :  { %v1251_v62 = vpop.f32.mrb[56].mxu1 }
 0x476   :  { %v3686_v1 = vpop.f32.mrb[57].mxu1  ;;  %v1320_v2 = vsel %vm277_vm2, %v1251_v62, -inf }
 0x477   :  { %1321 = vmax.xlane.f32.xlu1 %v1320_v2  ;;  %v1254_v3 = vpop.f32.mrb[58].mxu1 }
 0x478   :  { %v3687_v4 = vpop.f32.mrb[59].mxu1 }
 0x4ec   :  { %v1310_v6 = vpop.xlane.xlu0 %1309 }
 0x4ed   :  { %v1326_v8 = vsub.f32 %v1047_v37, %v1310_v6 }
 0x4ef   :  { %v1332_v58 = vmul.f32 1.442695, %v1326_v8 }
 0x4f1   :  { %3999 = vpow2.f32 %v1332_v58 }
 0x4f4   :  { %v1313_v15 = vpop.xlane.xlu1 %1312 }
 0x4f5   :  { %v1327_v28 = vsub.f32 %v1098_v47, %v1313_v15 }
 0x4f7   :  { %v1334_v29 = vmul.f32 1.442695, %v1327_v28 }
 0x4fb   :  { %v4000_v10 = vpop.eup %3999 }
 0x4fc   :  { %v1316_v11 = vpop.xlane.xlu0 %1315  ;;  %v1344_v60 = vsel %vm277_vm2, %v4000_v10, 0.0 }
 0x4fd   :  { %v1328_v12 = vsub.f32 %v1149_v55, %v1316_v11  ;;  %1345 = vadd.xlane.f32.xlu1 %v1344_v60 }
 0x4ff   :  { %v1336_v30 = vmul.f32 1.442695, %v1328_v12 }
 0x501   :  { %4001 = vpow2.f32 %v1336_v30 }
 0x504   :  { %v1322_v16 = vpop.xlane.xlu1 %1321 }
 0x505   :  { %v1330_v18 = vsub.f32 %v1251_v62, %v1322_v16 }
 0x507   :  { %v1340_v19 = vmul.f32 1.442695, %v1330_v18 }
 0x509   :  { %4003 = vpow2.f32 %v1340_v19 }
 0x50a   :  { %4005 = vpow2.f32 %v1334_v29 }
 0x50b   :  { %v4002_v21 = vpop.eup %4001 }
 0x50c   :  { %v1350_v23 = vsel %vm277_vm2, %v4002_v21, 0.0 }
 0x50d   :  { %1351 = vadd.xlane.f32.xlu1 %v1350_v23 }
 0x513   :  { %v4463_v32 = vpop.eup %4003 }
 0x514   :  { %v1356_v25 = vsel %vm277_vm2, %v4463_v32, 0.0  ;;  %v4006_v41 = vpop.eup %4005 }
 0x515   :  { %1357 = vadd.xlane.f32.xlu1 %v1356_v25  ;;  %v1347_v47 = vsel %vm277_vm2, %v4006_v41, 0.0 }
 0x526   :  { %1381 = vrot.lane.b32.xlu1 %v4311_v26, %s4093_s25 }
 0x52a   :  { %1479 = vrot.lane.b32.xlu1 %v4366_v63, %s4093_s25 }
 0x52e   :  { %1528 = vrot.lane.b32.xlu1 %v4370_v7, %s4093_s25 }
 0x532   :  { %1626 = vrot.lane.b32.xlu1 %v4390_v24, %s4093_s25  ;;  %v1200_v31 = vpop.f32.mrb[40].mxu0 }
 0x533   :  { %v3680_v33 = vpop.f32.mrb[41].mxu0  ;;  %v1317_v35 = vsel %vm277_vm2, %v1200_v31, -inf }
 0x534   :  { %1318 = vmax.xlane.f32.xlu0 %v1317_v35  ;;  %v1203_v36 = vpop.f32.mrb[42].mxu0 }
 0x535   :  { %v3681_v34 = vpop.f32.mrb[43].mxu0 }
 0x536   :  { %1752 = vrot.lane.b32.xlu1 %v4259_v5, %s4094_s28 }
 0x53a   :  { %1802 = vrot.lane.b32.xlu1 %v4267_v9, %s4094_s28  ;;  %v1302_v37 = vpop.f32.mrb[44].mxu0 }
 0x53b   :  { %v3692_v39 = vpop.f32.mrb[45].mxu0  ;;  %v1323_v40 = vsel %vm277_vm2, %v1302_v37, -inf }
 0x53c   :  { %1324 = vmax.xlane.f32.xlu0 %v1323_v40  ;;  %v1305_v43 = vpop.f32.mrb[46].mxu0 }
 0x53d   :  { %v3693_v46 = vpop.f32.mrb[47].mxu0 }
 0x53e   :  { %1852 = vrot.lane.b32.xlu1 %v4275_v13, %s4094_s28 }
 0x540   :  { %1348 = vadd.xlane.f32.xlu0 %v1347_v47 }
 0x542   :  { %1902 = vrot.lane.b32.xlu1 %v4283_v17, %s4094_s28 }
 0x546   :  { %2004 = vrot.lane.b32.xlu1 %v4248_v53, %s4095_s29 }
 0x54a   :  { %2002 = vrot.lane.b32.xlu1 %v4298_v22, %s4094_s28 }
 0x556   :  { %1430 = vrot.lane.b32.xlu0 %v4313_v27, %s4093_s25 }
 0x58a   :  { %v1346_v48 = vpop.xlane.xlu1 %1345 }
 0x58b   :  { %4007 = vrcp.f32 %v1346_v48  ;;  %v246_v48 = vld [vmem:[%s4848_s6 + $0x4] sm:$0xf] }
 0x595   :  { %v4008_v51 = vpop.eup %4007 }
 0x596   :  { %v1368_v54 = vmul.f32 %v4008_v51, %v4000_v10 }
 0x598   :  { %v1374_v57 = vpack.c.bf16 %v1368_v54, %v1368_v54  ;;  %v1687_v54 = vsel %vm650_vm3, %v246_v48, 0 }
 0x59a   :  { %v1352_v49 = vpop.xlane.xlu1 %1351 }
 0x59b   :  { %4009 = vrcp.f32 %v1352_v49 }
 0x5a2   :  { %v1358_v52 = vpop.xlane.xlu1 %1357 }
 0x5a5   :  { %v4010_v59 = vpop.eup %4009 }
 0x5a6   :  { %v1382_v55 = vpop.permute.xlu1 %1381  ;;  %v1370_v1 = vmul.f32 %v4010_v59, %v4002_v21 }
 0x5a7   :  { %v1387_v56 = vsel %vm650_vm3, %v1382_v55, 0 }
 0x5a8   :  { %3695 = vmatpush3.bf16.msra.mxu1 %v1387_v56  ;;  %v1376_v2 = vpack.c.bf16 %v1370_v1, %v1370_v1 }
 0x5a9   :  { %3706 = vmatprep.subr.bf16.mxu1 %v4089_v0 }
 0x5aa   :  { %v1480_v61 = vpop.permute.xlu1 %1479 }
 0x5ab   :  { %v1485_v62 = vsel %vm650_vm3, %v1480_v61, 0  ;;  %3697 = vmatmul.mubr.msk.bf16.vlgmr.msra.gmra.mrb[60].mxu1 %vm277_vm2, %v1374_v57 }
 0x5ac   :  { %3707 = vmatpush3.bf16.msra.mxu1 %v1485_v62  ;;  %3708 = vmatprep.mubr.msk.bf16.mxu1 %vm4090_vm0, %v4089_v0 }
 0x5ad   :  { %3718 = vmatprep.subr.bf16.mxu1 %v4089_v0 }
 0x5ae   :  { %v1529_v23 = vpop.permute.xlu1 %1528 }
 0x5af   :  { %v1534_v28 = vsel %vm650_vm3, %v1529_v23, 0 }
 0x5b2   :  { %v1627_v39 = vpop.permute.xlu1 %1626 }
 0x5b3   :  { %3709 = vmatmul.mubr.msk.bf16.vlgmr.msra.gmra.mrb[64].mxu1 %vm277_vm2, %v1376_v2  ;;  %v1632_v46 = vsel %vm650_vm3, %v1627_v39, 0 }
 0x5b4   :  { %3720 = vmatprep.mubr.msk.bf16.mxu1 %vm4090_vm0, %v4089_v0 }
 0x5b6   :  { %v1753_v55 = vpop.permute.xlu1 %1752 }
 0x5ba   :  { %v1803_v62 = vpop.permute.xlu1 %1802 }
 0x5c1   :  { %v1319_v3 = vpop.xlane.xlu0 %1318 }
 0x5c2   :  { %v1329_v4 = vsub.f32 %v1200_v31, %v1319_v3 }
 0x5c4   :  { %v1338_v6 = vmul.f32 1.442695, %v1329_v4 }
 0x5c6   :  { %4011 = vpow2.f32 %v1338_v6  ;;  %v1853_v6 = vpop.permute.xlu1 %1852 }
 0x5c9   :  { %v1325_v8 = vpop.xlane.xlu0 %1324 }
 0x5ca   :  { %v1331_v58 = vsub.f32 %v1302_v37, %v1325_v8 }
 0x5cc   :  { %v1342_v10 = vmul.f32 1.442695, %v1331_v58 }
 0x5cd   :  { %v1349_v11 = vpop.xlane.xlu0 %1348 }
 0x5ce   :  { %4013 = vpow2.f32 %v1342_v10 }
 0x5cf   :  { %4015 = vrcp.f32 %v1349_v11 }
 0x5d0   :  { %v4012_v60 = vpop.eup %4011  ;;  %4017 = vrcp.f32 %v1358_v52 }
 0x5d1   :  { %v1431_v12 = vpop.permute.xlu0 %1430  ;;  %v1353_v30 = vsel %vm277_vm2, %v4012_v60, 0.0 }
 0x5d2   :  { %v1436_v15 = vsel %vm650_vm3, %v1431_v12, 0  ;;  %1354 = vadd.xlane.f32.xlu0 %v1353_v30  ;;  %v1903_v12 = vpop.permute.xlu1 %1902 }
 0x5d3   :  { %3701 = vmatpush3.bf16.msra.mxu0 %v1436_v15 }
 0x5d4   :  { %3712 = vmatprep.subr.bf16.mxu0 %v4089_v0 }
 0x5d6   :  { %v2005_v15 = vpop.permute.xlu1 %2004 }
 0x5d8   :  { %v4014_v16 = vpop.eup %4013 }
 0x5d9   :  { %v4016_v18 = vpop.eup %4015  ;;  %v1359_v19 = vsel %vm277_vm2, %v4014_v16, 0.0 }
 0x5da   :  { %v1369_v21 = vmul.f32 %v4016_v18, %v4006_v41  ;;  %1360 = vadd.xlane.f32.xlu0 %v1359_v19  ;;  %v4018_v31 = vpop.eup %4017  ;;  %v2003_v18 = vpop.permute.xlu1 %2002 }
 0x5db   :  { %v1372_v36 = vmul.f32 %v4018_v31, %v4463_v32 }
 0x5dc   :  { %v1375_v25 = vpack.c.bf16 %v1369_v21, %v1369_v21 }
 0x5dd   :  { %v1378_v43 = vpack.c.bf16 %v1372_v36, %v1372_v36 }
 0x5de   :  { %3703 = vmatmul.mubr.msk.bf16.vlgmr.msra.gmra.mrb[48].mxu0 %vm277_vm2, %v1375_v25 }
 0x5df   :  { %3713 = vmatpush3.bf16.msra.mxu0 %v1534_v28  ;;  %3714 = vmatprep.mubr.msk.bf16.mxu0 %vm4090_vm0, %v4089_v0 }
 0x5e0   :  { %3724 = vmatprep.subr.bf16.mxu0 %v4089_v0 }
 0x5f0   :  { %1577 = vrot.lane.b32.xlu0 %v4380_v14, %s4093_s25 }
 0x5f4   :  { %1754 = vrot.lane.b32.xlu0 %v4234_v38, %s4095_s29 }
 0x5f8   :  { %1804 = vrot.lane.b32.xlu0 %v4242_v45, %s4095_s29 }
 0x5fc   :  { %1854 = vrot.lane.b32.xlu0 %v4236_v42, %s4095_s29 }
 0x600   :  { %1904 = vrot.lane.b32.xlu0 %v4239_v44, %s4095_s29 }
 0x604   :  { %1954 = vrot.lane.b32.xlu0 %v4246_v50, %s4095_s29 }
 0x608   :  { %1952 = vrot.lane.b32.xlu0 %v4291_v20, %s4094_s28 }
 0x65f   :  { %v1355_v29 = vpop.xlane.xlu0 %1354 }
 0x660   :  { %4019 = vrcp.f32 %v1355_v29 }
 0x667   :  { %v1361_v33 = vpop.xlane.xlu0 %1360 }
 0x668   :  { %4021 = vrcp.f32 %v1361_v33 }
 0x66a   :  { %v4020_v35 = vpop.eup %4019 }
 0x66b   :  { %v1371_v34 = vmul.f32 %v4020_v35, %v4012_v60  ;;  %v1578_v37 = vpop.permute.xlu0 %1577 }
 0x66c   :  { %v1583_v40 = vsel %vm650_vm3, %v1578_v37, 0 }
 0x66d   :  { %3719 = vmatpush3.bf16.msra.mxu1 %v1583_v40  ;;  %v1377_v41 = vpack.c.bf16 %v1371_v34, %v1371_v34 }
 0x66e   :  { %3744 = vmatprep.subr.bf16.mxu1 %v4089_v0 }
 0x66f   :  { %3715 = vmatmul.mubr.msk.bf16.vlgmr.msra.gmra.mrb[52].mxu0 %vm277_vm2, %v1377_v41  ;;  %v1755_v47 = vpop.permute.xlu0 %1754 }
 0x670   :  { %3725 = vmatpush3.bf16.msra.mxu0 %v1632_v46  ;;  %3721 = vmatmul.mubr.msk.bf16.vlgmr.msra.gmra.mrb[68].mxu1 %vm277_vm2, %v1378_v43  ;;  %v1760_v51 = vsel %vm277_vm2, %v1755_v47, 0 }
 0x671   :  { %3726 = vmatprep.mubr.msk.bf16.mxu0 %vm4090_vm0, %v4089_v0  ;;  %3746 = vmatprep.mubr.msk.bf16.mxu1 %vm4090_vm0, %v4089_v0 }
 0x672   :  { %v4022_v32 = vpop.eup %4021  ;;  %3730 = vmatprep.subr.bf16.mxu0 %v4089_v0 }
 0x673   :  { %v1373_v49 = vmul.f32 %v4022_v32, %v4014_v16  ;;  %v1805_v56 = vpop.permute.xlu0 %1804  ;;  %v2010_v16 = vsel %vm277_vm2, %v2005_v15, 0 }
 0x674   :  { %v1810_v57 = vsel %vm277_vm2, %v1805_v56, 0 }
 0x675   :  { %v1379_v52 = vpack.c.bf16 %v1373_v49, %v1373_v49 }
 0x676   :  { %3745 = vmatpush3.bf16.xpose.msra.mxu1 %v1760_v51 }
 0x677   :  { %3727 = vmatmul.mubr.msk.bf16.vlgmr.msra.gmra.mrb[56].mxu0 %vm277_vm2, %v1379_v52  ;;  %3750 = vmatprep.subr.bf16.mxu1 %v4089_v0  ;;  %v1855_v3 = vpop.permute.xlu0 %1854 }
 0x678   :  { %3731 = vmatpush3.bf16.msra.mxu0 %v1687_v54  ;;  %3732 = vmatprep.mubr.msk.bf16.mxu0 %vm4090_vm0, %v4089_v0  ;;  %v1860_v4 = vsel %vm277_vm2, %v1855_v3, 0 }
 0x679   :  { %3768 = vmatprep.subr.bf16.mxu0 %v4089_v0 }
 0x67b   :  { %v1905_v60 = vpop.permute.xlu0 %1904 }
 0x67c   :  { %v1910_v30 = vsel %vm277_vm2, %v1905_v60, 0 }
 0x67d   :  { %3747 = vmatmul.mubr.msk.bf16.vlgmr.msra.gmra.mrb[72].mxu1 %vm277_vm2, %v1753_v55 }
 0x67e   :  { %v1423_v59 = vpop.f32.mrb[60].mxu1  ;;  %3751 = vmatpush3.bf16.xpose.msra.mxu1 %v1810_v57  ;;  %3752 = vmatprep.mubr.msk.bf16.mxu1 %vm4090_vm0, %v4089_v0 }
 0x67f   :  { %v3698_v61 = vpop.f32.mrb[61].mxu1  ;;  %3756 = vmatprep.subr.bf16.mxu1 %v4089_v0  ;;  %v1955_v19 = vpop.permute.xlu0 %1954 }
 0x680   :  { %v1426_v1 = vpop.f32.mrb[62].mxu1  ;;  %v1960_v29 = vsel %vm277_vm2, %v1955_v19, 0 }
 0x681   :  { %v3699_v2 = vpop.f32.mrb[63].mxu1 }
 0x683   :  { %v1953_v57 = vpop.permute.xlu0 %1952 }
 0x685   :  { %3753 = vmatmul.mubr.msk.bf16.vlgmr.msra.gmra.mrb[76].mxu1 %vm277_vm2, %v1803_v62 }
 0x686   :  { %v1521_v8 = vpop.f32.mrb[64].mxu1  ;;  %3757 = vmatpush3.bf16.xpose.msra.mxu1 %v1860_v4  ;;  %3758 = vmatprep.mubr.msk.bf16.mxu1 %vm4090_vm0, %v4089_v0 }
 0x687   :  { %v3710_v58 = vpop.f32.mrb[65].mxu1  ;;  %3762 = vmatprep.subr.bf16.mxu1 %v4089_v0 }
 0x688   :  { %v1524_v10 = vpop.f32.mrb[66].mxu1 }
 0x689   :  { %v3711_v11 = vpop.f32.mrb[67].mxu1 }
 0x68d   :  { %3759 = vmatmul.mubr.msk.bf16.vlgmr.msra.gmra.mrb[80].mxu1 %vm277_vm2, %v1853_v6 }
 0x68e   :  { %3763 = vmatpush3.bf16.xpose.msra.mxu1 %v1910_v30  ;;  %3764 = vmatprep.mubr.msk.bf16.mxu1 %vm4090_vm0, %v4089_v0 }
 0x68f   :  { %3774 = vmatprep.subr.bf16.mxu1 %v4089_v0 }
 0x695   :  { %3765 = vmatmul.mubr.msk.bf16.vlgmr.msra.gmra.mrb[84].mxu1 %vm277_vm2, %v1903_v12 }
 0x696   :  { %3775 = vmatpush3.bf16.xpose.msra.mxu1 %v2010_v16  ;;  %3776 = vmatprep.mubr.msk.bf16.mxu1 %vm4090_vm0, %v4089_v0 }
 0x697   :  { %3786 = vmatprep.subr.bf16.mxu1 %v4089_v0 }
 0x69d   :  { %3777 = vmatmul.mubr.msk.bf16.vlgmr.msra.gmra.mrb[88].mxu1 %vm277_vm2, %v2003_v18 }
 0x69e   :  { %3788 = vmatprep.mubr.msk.bf16.mxu1 %vm4090_vm0, %v4089_v0 }
 0x6b1   :  { %v1472_v21 = vpop.f32.mrb[48].mxu0 }
 0x6b2   :  { %v1674_v23 = vpack.c.bf16 %v1472_v21, %v1423_v59  ;;  %v3704_v25 = vpop.f32.mrb[49].mxu0 }
 0x6b3   :  { %v1475_v28 = vpop.f32.mrb[50].mxu0 }
 0x6b4   :  { %v3705_v31 = vpop.f32.mrb[51].mxu0  ;;  %3733 = vmatmul.mubr.msk.bf16.vlgmr.msra.gmra.mrb[28].mxu0 %vm277_vm2, %v1674_v23 }
 0x6b5   :  { %3769 = vmatpush3.bf16.xpose.msra.mxu0 %v1960_v29  ;;  %3736 = vmatprep.mubr.msk.bf16.mxu0 %vm4090_vm0, %v4089_v0 }
 0x6b6   :  { %3780 = vmatprep.subr.bf16.mxu0 %v4089_v0 }
 0x742   :  { %v1570_v33 = vpop.f32.mrb[52].mxu0 }
 0x743   :  { %v1675_v35 = vpack.c.bf16 %v1570_v33, %v1521_v8  ;;  %v3716_v36 = vpop.f32.mrb[53].mxu0  ;;  %v1619_v34 = vpop.f32.mrb[68].mxu1 }
 0x744   :  { %v1573_v37 = vpop.f32.mrb[54].mxu0  ;;  %v3722_v39 = vpop.f32.mrb[69].mxu1 }
 0x745   :  { %v3717_v40 = vpop.f32.mrb[55].mxu0  ;;  %v1622_v41 = vpop.f32.mrb[70].mxu1  ;;  %3737 = vmatmul.mubr.msk.bf16.gmra.mrb[32].mxu0 %vm277_vm2, %v1675_v35 }
 0x746   :  { %v3723_v43 = vpop.f32.mrb[71].mxu1  ;;  %3740 = vmatprep.mubr.msk.bf16.mxu0 %vm4090_vm0, %v4089_v0 }
 0x74a   :  { %v1668_v46 = vpop.f32.mrb[56].mxu0 }
 0x74b   :  { %v1676_v32 = vpack.c.bf16 %v1668_v46, %v1619_v34  ;;  %v3728_v47 = vpop.f32.mrb[57].mxu0 }
 0x74c   :  { %v1671_v48 = vpop.f32.mrb[58].mxu0 }
 0x74d   :  { %v3729_v49 = vpop.f32.mrb[59].mxu0  ;;  %3741 = vmatmul.mubr.msk.bf16.gmra.mrb[36].mxu0 %vm277_vm2, %v1676_v32 }
 0x74e   :  { %3770 = vmatprep.mubr.msk.bf16.mxu0 %vm4090_vm0, %v4089_v0 }
 0x750   :  { %v1796_v51 = vpop.f32.mrb[72].mxu1 }
 0x751   :  { %v3748_v52 = vpop.f32.mrb[73].mxu1  ;;  %v2052_v54 = vsel %vm277_vm2, %v1796_v51, -inf }
 0x752   :  { %2053 = vmax.xlane.f32.xlu0 %v2052_v54  ;;  %v1799_v55 = vpop.f32.mrb[74].mxu1 }
 0x753   :  { %v3749_v56 = vpop.f32.mrb[75].mxu1 }
 0x755   :  { %3771 = vmatmul.mubr.msk.bf16.vlgmr.msra.gmra.mrb[60].mxu0 %vm277_vm2, %v1953_v57 }
 0x756   :  { %3782 = vmatprep.mubr.msk.bf16.mxu0 %vm4090_vm0, %v4089_v0 }
 0x758   :  { %v1846_v59 = vpop.f32.mrb[76].mxu1 }
 0x759   :  { %v3754_v61 = vpop.f32.mrb[77].mxu1  ;;  %v2055_v62 = vsel %vm277_vm2, %v1846_v59, -inf }
 0x75a   :  { %2056 = vmax.xlane.f32.xlu1 %v2055_v62  ;;  %v1849_v1 = vpop.f32.mrb[78].mxu1 }
 0x75b   :  { %v3755_v2 = vpop.f32.mrb[79].mxu1 }
 0x760   :  { %v1896_v3 = vpop.f32.mrb[80].mxu1 }
 0x761   :  { %v3760_v4 = vpop.f32.mrb[81].mxu1  ;;  %v2058_v6 = vsel %vm277_vm2, %v1896_v3, -inf }
 0x762   :  { %2059 = vmax.xlane.f32.xlu0 %v2058_v6  ;;  %v1899_v8 = vpop.f32.mrb[82].mxu1 }
 0x763   :  { %v3761_v58 = vpop.f32.mrb[83].mxu1 }
 0x768   :  { %v1946_v10 = vpop.f32.mrb[84].mxu1 }
 0x769   :  { %v3766_v11 = vpop.f32.mrb[85].mxu1  ;;  %v2061_v60 = vsel %vm277_vm2, %v1946_v10, -inf }
 0x76a   :  { %2062 = vmax.xlane.f32.xlu0 %v2061_v60  ;;  %v1949_v12 = vpop.f32.mrb[86].mxu1 }
 0x76b   :  { %v3767_v30 = vpop.f32.mrb[87].mxu1 }
 0x770   :  { %v2046_v15 = vpop.f32.mrb[88].mxu1 }
 0x771   :  { %v3778_v16 = vpop.f32.mrb[89].mxu1  ;;  %v2067_v18 = vsel %vm277_vm2, %v2046_v15, -inf }
 0x772   :  { %2068 = vmax.xlane.f32.xlu0 %v2067_v18  ;;  %v2049_v19 = vpop.f32.mrb[90].mxu1 }
 0x773   :  { %v3779_v21 = vpop.f32.mrb[91].mxu1 }
 0x7df   :  { %v2054_v29 = vpop.xlane.xlu0 %2053 }
 0x7e0   :  { %v2070_v48 = vsub.f32 %v1796_v51, %v2054_v29 }
 0x7e2   :  { %v2076_v49 = vmul.f32 1.442695, %v2070_v48 }
 0x7e7   :  { %v2057_v23 = vpop.xlane.xlu1 %2056 }
 0x7e8   :  { %v2071_v25 = vsub.f32 %v1846_v59, %v2057_v23 }
 0x7ea   :  { %v2078_v28 = vmul.f32 1.442695, %v2071_v25 }
 0x7ec   :  { %4023 = vpow2.f32 %v2078_v28 }
 0x7ef   :  { %v2060_v31 = vpop.xlane.xlu0 %2059 }
 0x7f0   :  { %v2072_v52 = vsub.f32 %v1896_v3, %v2060_v31 }
 0x7f2   :  { %v2080_v54 = vmul.f32 1.442695, %v2072_v52 }
 0x7f6   :  { %v4024_v33 = vpop.eup %4023 }
 0x7f7   :  { %v2063_v35 = vpop.xlane.xlu0 %2062  ;;  %v2091_v36 = vsel %vm277_vm2, %v4024_v33, 0.0 }
 0x7f8   :  { %v2073_v34 = vsub.f32 %v1946_v10, %v2063_v35  ;;  %2092 = vadd.xlane.f32.xlu0 %v2091_v36 }
 0x7fa   :  { %v2082_v37 = vmul.f32 1.442695, %v2073_v34 }
 0x7fc   :  { %4025 = vpow2.f32 %v2082_v37 }
 0x7ff   :  { %v2069_v39 = vpop.xlane.xlu0 %2068 }
 0x800   :  { %v2075_v40 = vsub.f32 %v2046_v15, %v2069_v39 }
 0x802   :  { %v2086_v41 = vmul.f32 1.442695, %v2075_v40 }
 0x804   :  { %4027 = vpow2.f32 %v2086_v41 }
 0x805   :  { %4029 = vpow2.f32 %v2076_v49 }
 0x806   :  { %v4589_v43 = vpop.eup %4025  ;;  %4031 = vpow2.f32 %v2080_v54 }
 0x807   :  { %v2097_v46 = vsel %vm277_vm2, %v4589_v43, 0.0 }
 0x808   :  { %2098 = vadd.xlane.f32.xlu0 %v2097_v46 }
 0x80e   :  { %v4593_v32 = vpop.eup %4027 }
 0x80f   :  { %v2103_v47 = vsel %vm277_vm2, %v4593_v32, 0.0  ;;  %v4030_v59 = vpop.eup %4029 }
 0x810   :  { %2104 = vadd.xlane.f32.xlu0 %v2103_v47  ;;  %v2088_v51 = vsel %vm277_vm2, %v4030_v59, 0.0  ;;  %v4032_v1 = vpop.eup %4031 }
 0x811   :  { %v2094_v2 = vsel %vm277_vm2, %v4032_v1, 0.0 }
 0x826   :  { %2172 = vrot.lane.b32.xlu0 %v4313_v27, %s4094_s28 }
 0x828   :  { %v1996_v55 = vpop.f32.mrb[60].mxu0 }
 0x829   :  { %v3772_v56 = vpop.f32.mrb[61].mxu0  ;;  %v2064_v57 = vsel %vm277_vm2, %v1996_v55, -inf }
 0x82a   :  { %2316 = vrot.lane.b32.xlu0 %v4380_v14, %s4094_s28  ;;  %2065 = vmax.xlane.f32.xlu1 %v2064_v57  ;;  %v1999_v61 = vpop.f32.mrb[62].mxu0 }
 0x82b   :  { %v3773_v62 = vpop.f32.mrb[63].mxu0 }
 0x82e   :  { %2492 = vrot.lane.b32.xlu0 %v4234_v38, %s4096_s12  ;;  %2089 = vadd.xlane.f32.xlu1 %v2088_v51 }
 0x832   :  { %2542 = vrot.lane.b32.xlu0 %v4242_v45, %s4096_s12  ;;  %2095 = vadd.xlane.f32.xlu1 %v2094_v2 }
 0x836   :  { %2592 = vrot.lane.b32.xlu0 %v4236_v42, %s4096_s12 }
 0x83a   :  { %2590 = vrot.lane.b32.xlu0 %v4275_v13, %s4097_s13 }
 0x83e   :  { %2692 = vrot.lane.b32.xlu0 %v4246_v50, %s4096_s12 }
 0x842   :  { %2690 = vrot.lane.b32.xlu0 %v4291_v20, %s4097_s13 }
 0x843   :  { %2124 = vrot.lane.b32.xlu1 %v4311_v26, %s4094_s28 }
 0x847   :  { %2220 = vrot.lane.b32.xlu1 %v4366_v63, %s4094_s28 }
 0x84b   :  { %2268 = vrot.lane.b32.xlu1 %v4370_v7, %s4094_s28 }
 0x885   :  { %v2093_v38 = vpop.xlane.xlu0 %2092 }
 0x886   :  { %4033 = vrcp.f32 %v2093_v38 }
 0x890   :  { %v4034_v45 = vpop.eup %4033 }
 0x891   :  { %v2113_v3 = vmul.f32 %v4034_v45, %v4024_v33 }
 0x893   :  { %v2119_v20 = vpack.c.bf16 %v2113_v3, %v2113_v3 }
 0x895   :  { %v2099_v42 = vpop.xlane.xlu0 %2098 }
 0x896   :  { %4035 = vrcp.f32 %v2099_v42 }
 0x89d   :  { %v2105_v13 = vpop.xlane.xlu0 %2104 }
 0x8a0   :  { %v4036_v30 = vpop.eup %4035 }
 0x8a1   :  { %v2173_v4 = vpop.permute.xlu0 %2172  ;;  %v2115_v23 = vmul.f32 %v4036_v30, %v4589_v43 }
 0x8a2   :  { %v2178_v50 = vsel %vm650_vm3, %v2173_v4, 0 }
 0x8a3   :  { %3787 = vmatpush3.bf16.msra.mxu1 %v2178_v50  ;;  %v2121_v36 = vpack.c.bf16 %v2115_v23, %v2115_v23 }
 0x8a4   :  { %3798 = vmatprep.subr.bf16.mxu1 %v4089_v0 }
 0x8a5   :  { %v2317_v34 = vpop.permute.xlu0 %2316 }
 0x8a6   :  { %3789 = vmatmul.mubr.msk.bf16.vlgmr.msra.gmra.mrb[92].mxu1 %vm277_vm2, %v2119_v20  ;;  %v2322_v39 = vsel %vm650_vm3, %v2317_v34, 0 }
 0x8a7   :  { %3800 = vmatprep.mubr.msk.bf16.mxu1 %vm4090_vm0, %v4089_v0 }
 0x8b7   :  { %v2066_v6 = vpop.xlane.xlu1 %2065 }
 0x8b8   :  { %v2074_v8 = vsub.f32 %v1996_v55, %v2066_v6 }
 0x8ba   :  { %v2084_v58 = vmul.f32 1.442695, %v2074_v8 }
 0x8bb   :  { %v2090_v10 = vpop.xlane.xlu1 %2089 }
 0x8bc   :  { %4037 = vpow2.f32 %v2084_v58 }
 0x8bd   :  { %4039 = vrcp.f32 %v2090_v10 }
 0x8bf   :  { %v2096_v11 = vpop.xlane.xlu1 %2095 }
 0x8c0   :  { %4041 = vrcp.f32 %v2096_v11 }
 0x8c1   :  { %4043 = vrcp.f32 %v2105_v13 }
 0x8c3   :  { %v2125_v60 = vpop.permute.xlu1 %2124 }
 0x8c4   :  { %v2130_v12 = vsel %vm650_vm3, %v2125_v60, 0 }
 0x8c5   :  { %3781 = vmatpush3.bf16.msra.mxu0 %v2130_v12 }
 0x8c6   :  { %v4038_v15 = vpop.eup %4037  ;;  %3792 = vmatprep.subr.bf16.mxu0 %v4089_v0 }
 0x8c7   :  { %v4040_v16 = vpop.eup %4039  ;;  %v2221_v18 = vpop.permute.xlu1 %2220  ;;  %v2100_v19 = vsel %vm277_vm2, %v4038_v15, 0.0 }
 0x8c8   :  { %v2112_v21 = vmul.f32 %v4040_v16, %v4030_v59  ;;  %2101 = vadd.xlane.f32.xlu1 %v2100_v19  ;;  %v2226_v31 = vsel %vm650_vm3, %v2221_v18, 0 }
 0x8ca   :  { %v2118_v25 = vpack.c.bf16 %v2112_v21, %v2112_v21  ;;  %v4042_v28 = vpop.eup %4041 }
 0x8cb   :  { %v2269_v29 = vpop.permute.xlu1 %2268  ;;  %v2114_v35 = vmul.f32 %v4042_v28, %v4032_v1  ;;  %v4044_v40 = vpop.eup %4043 }
 0x8cc   :  { %3783 = vmatmul.mubr.msk.bf16.vlgmr.msra.gmra.mrb[64].mxu0 %vm277_vm2, %v2118_v25  ;;  %v2274_v33 = vsel %vm650_vm3, %v2269_v29, 0 }
 0x8cd   :  { %3793 = vmatpush3.bf16.msra.mxu0 %v2226_v31  ;;  %3799 = vmatpush3.bf16.msra.mxu1 %v2274_v33  ;;  %v2120_v37 = vpack.c.bf16 %v2114_v35, %v2114_v35 }
 0x8ce   :  { %3794 = vmatprep.mubr.msk.bf16.mxu0 %vm4090_vm0, %v4089_v0  ;;  %3804 = vmatprep.subr.bf16.mxu0 %v4089_v0 }
 0x8cf   :  { %3810 = vmatprep.subr.bf16.mxu1 %v4089_v0 }
 0x8d0   :  { %3801 = vmatmul.mubr.msk.bf16.vlgmr.msra.gmra.mrb[96].mxu1 %vm277_vm2, %v2121_v36 }
 0x8d1   :  { %3812 = vmatprep.mubr.msk.bf16.mxu1 %vm4090_vm0, %v4089_v0 }
 0x8d4   :  { %3795 = vmatmul.mubr.msk.bf16.vlgmr.msra.gmra.mrb[68].mxu0 %vm277_vm2, %v2120_v37 }
 0x8d5   :  { %3805 = vmatpush3.bf16.msra.mxu0 %v2322_v39  ;;  %3806 = vmatprep.mubr.msk.bf16.mxu0 %vm4090_vm0, %v4089_v0 }
 0x8d6   :  { %3816 = vmatprep.subr.bf16.mxu0 %v4089_v0 }
 0x8d9   :  { %2364 = vrot.lane.b32.xlu1 %v4390_v24, %s4094_s28 }
 0x8dd   :  { %2490 = vrot.lane.b32.xlu1 %v4259_v5, %s4097_s13  ;;  %v2117_v5 = vmul.f32 %v4044_v40, %v4593_v32 }
 0x8e1   :  { %2540 = vrot.lane.b32.xlu1 %v4267_v9, %s4097_s13 }
 0x8e5   :  { %2642 = vrot.lane.b32.xlu1 %v4239_v44, %s4096_s12  ;;  %v2123_v44 = vpack.c.bf16 %v2117_v5, %v2117_v5 }
 0x8e9   :  { %2640 = vrot.lane.b32.xlu1 %v4283_v17, %s4097_s13  ;;  %v2493_v17 = vpop.permute.xlu0 %2492 }
 0x8ea   :  { %v2498_v32 = vsel %vm277_vm2, %v2493_v17, 0 }
 0x8ed   :  { %2742 = vrot.lane.b32.xlu1 %v4248_v53, %s4096_s12  ;;  %v2543_v49 = vpop.permute.xlu0 %2542 }
 0x8ee   :  { %v2548_v54 = vsel %vm277_vm2, %v2543_v49, 0 }
 0x8f1   :  { %2740 = vrot.lane.b32.xlu1 %v4298_v22, %s4097_s13  ;;  %v247_v22 = vld [vmem:[%s4848_s6 + $0x8] sm:$0xf]  ;;  %v2593_v55 = vpop.permute.xlu0 %2592 }
 0x8f2   :  { %v2425_v48 = vsel %vm650_vm3, %v247_v22, 0  ;;  %v2598_v59 = vsel %vm277_vm2, %v2593_v55, 0 }
 0x8f5   :  { %v2591_v56 = vpop.permute.xlu0 %2590 }
 0x8f9   :  { %v2693_v61 = vpop.permute.xlu0 %2692 }
 0x8fa   :  { %v2698_v1 = vsel %vm277_vm2, %v2693_v61, 0 }
 0x8fd   :  { %v2691_v42 = vpop.permute.xlu0 %2690 }
 0x955   :  { %v2102_v41 = vpop.xlane.xlu1 %2101 }
 0x956   :  { %4045 = vrcp.f32 %v2102_v41 }
 0x959   :  { %v2365_v43 = vpop.permute.xlu1 %2364 }
 0x95a   :  { %v2370_v9 = vsel %vm650_vm3, %v2365_v43, 0 }
 0x95b   :  { %3811 = vmatpush3.bf16.msra.mxu1 %v2370_v9 }
 0x95c   :  { %3830 = vmatprep.subr.bf16.mxu1 %v4089_v0 }
 0x95d   :  { %v2491_v52 = vpop.permute.xlu1 %2490 }
 0x95e   :  { %3813 = vmatmul.mubr.msk.bf16.vlgmr.msra.gmra.mrb[100].mxu1 %vm277_vm2, %v2123_v44 }
 0x95f   :  { %3832 = vmatprep.mubr.msk.bf16.mxu1 %vm4090_vm0, %v4089_v0 }
 0x960   :  { %v4046_v53 = vpop.eup %4045 }
 0x961   :  { %v2116_v46 = vmul.f32 %v4046_v53, %v4038_v15  ;;  %v2541_v57 = vpop.permute.xlu1 %2540 }
 0x963   :  { %v2122_v47 = vpack.c.bf16 %v2116_v46, %v2116_v46 }
 0x964   :  { %3831 = vmatpush3.bf16.xpose.msra.mxu1 %v2498_v32 }
 0x965   :  { %3807 = vmatmul.mubr.msk.bf16.vlgmr.msra.gmra.mrb[72].mxu0 %vm277_vm2, %v2122_v47  ;;  %3836 = vmatprep.subr.bf16.mxu1 %v4089_v0  ;;  %v2643_v45 = vpop.permute.xlu1 %2642 }
 0x966   :  { %3817 = vmatpush3.bf16.msra.mxu0 %v2425_v48  ;;  %3818 = vmatprep.mubr.msk.bf16.mxu0 %vm4090_vm0, %v4089_v0  ;;  %v2648_v20 = vsel %vm277_vm2, %v2643_v45, 0 }
 0x967   :  { %3848 = vmatprep.subr.bf16.mxu0 %v4089_v0 }
 0x969   :  { %v2641_v31 = vpop.permute.xlu1 %2640 }
 0x96b   :  { %3833 = vmatmul.mubr.msk.bf16.vlgmr.msra.gmra.mrb[104].mxu1 %vm277_vm2, %v2491_v52 }
 0x96c   :  { %3837 = vmatpush3.bf16.xpose.msra.mxu1 %v2548_v54  ;;  %3838 = vmatprep.mubr.msk.bf16.mxu1 %vm4090_vm0, %v4089_v0 }
 0x96d   :  { %3842 = vmatprep.subr.bf16.mxu1 %v4089_v0  ;;  %v2743_v39 = vpop.permute.xlu1 %2742 }
 0x96e   :  { %v2748_v5 = vsel %vm277_vm2, %v2743_v39, 0 }
 0x971   :  { %v2741_v22 = vpop.permute.xlu1 %2740 }
 0x973   :  { %3839 = vmatmul.mubr.msk.bf16.vlgmr.msra.gmra.mrb[108].mxu1 %vm277_vm2, %v2541_v57 }
 0x974   :  { %3843 = vmatpush3.bf16.xpose.msra.mxu1 %v2598_v59  ;;  %3844 = vmatprep.mubr.msk.bf16.mxu1 %vm4090_vm0, %v4089_v0 }
 0x975   :  { %3854 = vmatprep.subr.bf16.mxu1 %v4089_v0 }
 0x979   :  { %v2214_v62 = vpop.f32.mrb[92].mxu1 }
 0x97a   :  { %v3790_v51 = vpop.f32.mrb[93].mxu1 }
 0x97b   :  { %v2217_v2 = vpop.f32.mrb[94].mxu1  ;;  %3845 = vmatmul.mubr.msk.bf16.vlgmr.msra.gmra.mrb[112].mxu1 %vm277_vm2, %v2591_v56 }
 0x97c   :  { %v3791_v38 = vpop.f32.mrb[95].mxu1  ;;  %3855 = vmatpush3.bf16.xpose.msra.mxu1 %v2698_v1  ;;  %3856 = vmatprep.mubr.msk.bf16.mxu1 %vm4090_vm0, %v4089_v0 }
 0x97d   :  { %3866 = vmatprep.subr.bf16.mxu1 %v4089_v0 }
 0x983   :  { %3857 = vmatmul.mubr.msk.bf16.vlgmr.msra.gmra.mrb[116].mxu1 %vm277_vm2, %v2691_v42 }
 0x984   :  { %3868 = vmatprep.mubr.msk.bf16.mxu1 %vm4090_vm0, %v4089_v0 }
 0x99f   :  { %v2166_v13 = vpop.f32.mrb[64].mxu0 }
 0x9a0   :  { %v2412_v3 = vpack.c.bf16 %v2214_v62, %v2166_v13  ;;  %v3784_v4 = vpop.f32.mrb[65].mxu0 }
 0x9a1   :  { %v2169_v50 = vpop.f32.mrb[66].mxu0 }
 0x9a2   :  { %v3785_v6 = vpop.f32.mrb[67].mxu0  ;;  %3819 = vmatmul.mubr.msk.bf16.vlgmr.msra.gmra.mrb[28].mxu0 %vm277_vm2, %v2412_v3 }
 0x9a3   :  { %3849 = vmatpush3.bf16.xpose.msra.mxu0 %v2648_v20  ;;  %v2310_v8 = vpop.f32.mrb[96].mxu1  ;;  %3822 = vmatprep.mubr.msk.bf16.mxu0 %vm4090_vm0, %v4089_v0 }
 0x9a4   :  { %v3802_v58 = vpop.f32.mrb[97].mxu1  ;;  %3860 = vmatprep.subr.bf16.mxu0 %v4089_v0 }
 0x9a5   :  { %v2313_v10 = vpop.f32.mrb[98].mxu1 }
 0x9a6   :  { %v3803_v11 = vpop.f32.mrb[99].mxu1 }
 0x9a7   :  { %v2262_v60 = vpop.f32.mrb[68].mxu0 }
 0x9a8   :  { %v2413_v12 = vpack.c.bf16 %v2310_v8, %v2262_v60  ;;  %v3796_v30 = vpop.f32.mrb[69].mxu0 }
 0x9a9   :  { %v2265_v15 = vpop.f32.mrb[70].mxu0 }
 0x9aa   :  { %v3797_v16 = vpop.f32.mrb[71].mxu0  ;;  %3823 = vmatmul.mubr.msk.bf16.gmra.mrb[32].mxu0 %vm277_vm2, %v2413_v12 }
 0x9ab   :  { %3826 = vmatprep.mubr.msk.bf16.mxu0 %vm4090_vm0, %v4089_v0 }
 0xa31   :  { %v2406_v18 = vpop.f32.mrb[100].mxu1 }
 0xa32   :  { %v3814_v19 = vpop.f32.mrb[101].mxu1 }
 0xa33   :  { %v2409_v21 = vpop.f32.mrb[102].mxu1 }
 0xa34   :  { %v3815_v23 = vpop.f32.mrb[103].mxu1 }
 0xa38   :  { %v2358_v25 = vpop.f32.mrb[72].mxu0 }
 0xa39   :  { %v2414_v28 = vpack.c.bf16 %v2406_v18, %v2358_v25  ;;  %v3808_v29 = vpop.f32.mrb[73].mxu0 }
 0xa3a   :  { %v2361_v33 = vpop.f32.mrb[74].mxu0 }
 0xa3b   :  { %v3809_v35 = vpop.f32.mrb[75].mxu0  ;;  %3827 = vmatmul.mubr.msk.bf16.gmra.mrb[36].mxu0 %vm277_vm2, %v2414_v28 }
 0xa3c   :  { %3850 = vmatprep.mubr.msk.bf16.mxu0 %vm4090_vm0, %v4089_v0 }
 0xa3e   :  { %v2534_v36 = vpop.f32.mrb[104].mxu1 }
 0xa3f   :  { %v3834_v34 = vpop.f32.mrb[105].mxu1  ;;  %v2790_v37 = vsel %vm277_vm2, %v2534_v36, -inf }
 0xa40   :  { %2791 = vmax.xlane.f32.xlu0 %v2790_v37  ;;  %v2537_v40 = vpop.f32.mrb[106].mxu1 }
 0xa41   :  { %v3835_v41 = vpop.f32.mrb[107].mxu1 }
 0xa43   :  { %3851 = vmatmul.mubr.msk.bf16.vlgmr.msra.gmra.mrb[76].mxu0 %vm277_vm2, %v2641_v31 }
 0xa44   :  { %3861 = vmatpush3.bf16.xpose.msra.mxu0 %v2748_v5  ;;  %3862 = vmatprep.mubr.msk.bf16.mxu0 %vm4090_vm0, %v4089_v0 }
 0xa45   :  { %3872 = vmatprep.subr.bf16.mxu0 %v4089_v0 }
 0xa46   :  { %v2584_v43 = vpop.f32.mrb[108].mxu1 }
 0xa47   :  { %v3840_v9 = vpop.f32.mrb[109].mxu1  ;;  %v2793_v44 = vsel %vm277_vm2, %v2584_v43, -inf }
 0xa48   :  { %2794 = vmax.xlane.f32.xlu1 %v2793_v44  ;;  %v2587_v53 = vpop.f32.mrb[110].mxu1 }
 0xa49   :  { %v3841_v17 = vpop.f32.mrb[111].mxu1 }
 0xa4b   :  { %3863 = vmatmul.mubr.msk.bf16.vlgmr.msra.gmra.mrb[80].mxu0 %vm277_vm2, %v2741_v22 }
 0xa4c   :  { %3874 = vmatprep.mubr.msk.bf16.mxu0 %vm4090_vm0, %v4089_v0 }
 0xa4e   :  { %v2634_v46 = vpop.f32.mrb[112].mxu1 }
 0xa4f   :  { %v3846_v32 = vpop.f32.mrb[113].mxu1  ;;  %v2796_v47 = vsel %vm277_vm2, %v2634_v46, -inf }
 0xa50   :  { %2797 = vmax.xlane.f32.xlu0 %v2796_v47  ;;  %v2637_v48 = vpop.f32.mrb[114].mxu1 }
 0xa51   :  { %v3847_v49 = vpop.f32.mrb[115].mxu1 }
 0xa56   :  { %v2734_v52 = vpop.f32.mrb[116].mxu1 }
 0xa57   :  { %v3858_v54 = vpop.f32.mrb[117].mxu1  ;;  %v2802_v55 = vsel %vm277_vm2, %v2734_v52, -inf }
 0xa58   :  { %2803 = vmax.xlane.f32.xlu1 %v2802_v55  ;;  %v2737_v56 = vpop.f32.mrb[118].mxu1 }
 0xa59   :  { %v3859_v57 = vpop.f32.mrb[119].mxu1 }
 0xacd   :  { %v2792_v59 = vpop.xlane.xlu0 %2791 }
 0xace   :  { %v2808_v61 = vsub.f32 %v2534_v36, %v2792_v59 }
 0xad0   :  { %v2814_v62 = vmul.f32 1.442695, %v2808_v61 }
 0xad2   :  { %4047 = vpow2.f32 %v2814_v62 }
 0xad5   :  { %v2795_v45 = vpop.xlane.xlu1 %2794 }
 0xad6   :  { %v2809_v58 = vsub.f32 %v2584_v43, %v2795_v45 }
 0xad8   :  { %v2816_v10 = vmul.f32 1.442695, %v2809_v58 }
 0xadc   :  { %v4048_v51 = vpop.eup %4047 }
 0xadd   :  { %v2798_v1 = vpop.xlane.xlu0 %2797  ;;  %v2826_v2 = vsel %vm277_vm2, %v4048_v51, 0.0 }
 0xade   :  { %v2810_v38 = vsub.f32 %v2634_v46, %v2798_v1  ;;  %2827 = vadd.xlane.f32.xlu1 %v2826_v2 }
 0xae0   :  { %v2818_v42 = vmul.f32 1.442695, %v2810_v38 }
 0xae2   :  { %4049 = vpow2.f32 %v2818_v42 }
 0xae5   :  { %v2804_v13 = vpop.xlane.xlu1 %2803 }
 0xae6   :  { %v2812_v3 = vsub.f32 %v2734_v52, %v2804_v13 }
 0xae8   :  { %v2822_v4 = vmul.f32 1.442695, %v2812_v3 }
 0xaea   :  { %4051 = vpow2.f32 %v2822_v4  ;;  %v248_v4 = vld [vmem:[%s4848_s6 + $0xc] sm:$0xf] }
 0xaeb   :  { %4053 = vpow2.f32 %v2816_v10 }
 0xaec   :  { %v4050_v50 = vpop.eup %4049 }
 0xaed   :  { %v2832_v20 = vsel %vm277_vm2, %v4050_v50, 0.0 }
 0xaee   :  { %2833 = vadd.xlane.f32.xlu1 %v2832_v20 }
 0xaf4   :  { %v4719_v6 = vpop.eup %4051 }
 0xaf5   :  { %v2838_v8 = vsel %vm277_vm2, %v4719_v6, 0.0  ;;  %v4054_v18 = vpop.eup %4053 }
 0xaf6   :  { %2839 = vadd.xlane.f32.xlu1 %v2838_v8  ;;  %v2829_v21 = vsel %vm277_vm2, %v4054_v18, 0.0 }
 0xb07   :  { %2862 = vrot.lane.b32.xlu1 %v4311_v26, %s4097_s13 }
 0xb0b   :  { %2958 = vrot.lane.b32.xlu1 %v4366_v63, %s4097_s13 }
 0xb0f   :  { %3006 = vrot.lane.b32.xlu1 %v4370_v7, %s4097_s13 }
 0xb13   :  { %3102 = vrot.lane.b32.xlu1 %v4390_v24, %s4097_s13 }
 0xb16   :  { %v2684_v11 = vpop.f32.mrb[76].mxu0 }
 0xb17   :  { %v3852_v60 = vpop.f32.mrb[77].mxu0  ;;  %v2799_v12 = vsel %vm277_vm2, %v2684_v11, -inf }
 0xb18   :  { %2800 = vmax.xlane.f32.xlu0 %v2799_v12  ;;  %v2687_v30 = vpop.f32.mrb[78].mxu0 }
 0xb19   :  { %v3853_v15 = vpop.f32.mrb[79].mxu0 }
 0xb1e   :  { %v2784_v26 = vpop.f32.mrb[80].mxu0 }
 0xb1f   :  { %v3864_v16 = vpop.f32.mrb[81].mxu0  ;;  %v2805_v63 = vsel %vm277_vm2, %v2784_v26, -inf }
 0xb20   :  { %2806 = vmax.xlane.f32.xlu0 %v2805_v63  ;;  %v2787_v19 = vpop.f32.mrb[82].mxu0 }
 0xb21   :  { %v3865_v7 = vpop.f32.mrb[83].mxu0 }
 0xb24   :  { %2830 = vadd.xlane.f32.xlu0 %v2829_v21 }
 0xb3a   :  { %2910 = vrot.lane.b32.xlu0 %v4313_v27, %s4097_s13 }
 0xb6b   :  { %v2828_v24 = vpop.xlane.xlu1 %2827 }
 0xb6c   :  { %4055 = vrcp.f32 %v2828_v24 }
 0xb76   :  { %v4056_v25 = vpop.eup %4055 }
 0xb77   :  { %v2850_v29 = vmul.f32 %v4056_v25, %v4048_v51 }
 0xb79   :  { %v2856_v35 = vpack.c.bf16 %v2850_v29, %v2850_v29 }
 0xb7b   :  { %v2834_v23 = vpop.xlane.xlu1 %2833 }
 0xb7c   :  { %4057 = vrcp.f32 %v2834_v23 }
 0xb83   :  { %v2840_v28 = vpop.xlane.xlu1 %2839 }
 0xb86   :  { %v4058_v36 = vpop.eup %4057 }
 0xb87   :  { %v2863_v31 = vpop.permute.xlu1 %2862  ;;  %v2852_v27 = vmul.f32 %v4058_v36, %v4050_v50 }
 0xb88   :  { %v2868_v33 = vsel %vm650_vm3, %v2863_v31, 0 }
 0xb89   :  { %3867 = vmatpush3.bf16.msra.mxu1 %v2868_v33  ;;  %v2858_v39 = vpack.c.bf16 %v2852_v27, %v2852_v27 }
 0xb8a   :  { %3878 = vmatprep.subr.bf16.mxu1 %v4089_v0 }
 0xb8b   :  { %v2959_v34 = vpop.permute.xlu1 %2958 }
 0xb8c   :  { %v2964_v37 = vsel %vm650_vm3, %v2959_v34, 0  ;;  %3869 = vmatmul.mubr.msk.bf16.vlgmr.msra.gmra.mrb[120].mxu1 %vm277_vm2, %v2856_v35 }
 0xb8d   :  { %3879 = vmatpush3.bf16.msra.mxu1 %v2964_v37  ;;  %3880 = vmatprep.mubr.msk.bf16.mxu1 %vm4090_vm0, %v4089_v0 }
 0xb8e   :  { %3890 = vmatprep.subr.bf16.mxu1 %v4089_v0 }
 0xb8f   :  { %v3007_v54 = vpop.permute.xlu1 %3006 }
 0xb90   :  { %v3012_v56 = vsel %vm650_vm3, %v3007_v54, 0 }
 0xb93   :  { %v3103_v38 = vpop.permute.xlu1 %3102 }
 0xb94   :  { %3881 = vmatmul.mubr.msk.bf16.vlgmr.msra.gmra.mrb[124].mxu1 %vm277_vm2, %v2858_v39  ;;  %v3108_v3 = vsel %vm650_vm3, %v3103_v38, 0  ;;  %v3355_v39 = vld [vmem:[%s4849_s7] ss:$0 sm:$0xff] }
 0xb95   :  { %3892 = vmatprep.mubr.msk.bf16.mxu1 %vm4090_vm0, %v4089_v0 }
 0xba5   :  { %v2801_v40 = vpop.xlane.xlu0 %2800 }
 0xba6   :  { %v2811_v41 = vsub.f32 %v2684_v11, %v2801_v40  ;;  %v4083_v40 = vld [vmem:[%s4843_s0] sm:$0xff] }
 0xba8   :  { %v2820_v5 = vmul.f32 1.442695, %v2811_v41  ;;  %v256_v41 = vadd.f32 %v4083_v40, %v3355_v39 }
 0xbaa   :  { %4059 = vpow2.f32 %v2820_v5 }
 0xbad   :  { %v2807_v43 = vpop.xlane.xlu0 %2806 }
 0xbae   :  { %v2813_v9 = vsub.f32 %v2784_v26, %v2807_v43 }
 0xbb0   :  { %v2824_v44 = vmul.f32 1.442695, %v2813_v9 }
 0xbb1   :  { %v2831_v53 = vpop.xlane.xlu0 %2830 }
 0xbb2   :  { %4061 = vpow2.f32 %v2824_v44 }
 0xbb3   :  { %4063 = vrcp.f32 %v2831_v53 }
 0xbb4   :  { %v4060_v17 = vpop.eup %4059  ;;  %4065 = vrcp.f32 %v2840_v28 }
 0xbb5   :  { %v2911_v22 = vpop.permute.xlu0 %2910  ;;  %v2835_v46 = vsel %vm277_vm2, %v4060_v17, 0.0 }
 0xbb6   :  { %v2916_v32 = vsel %vm650_vm3, %v2911_v22, 0  ;;  %2836 = vadd.xlane.f32.xlu0 %v2835_v46 }
 0xbb7   :  { %3873 = vmatpush3.bf16.msra.mxu0 %v2916_v32 }
 0xbb8   :  { %3884 = vmatprep.subr.bf16.mxu0 %v4089_v0 }
 0xbbc   :  { %v4062_v47 = vpop.eup %4061 }
 0xbbd   :  { %v4064_v48 = vpop.eup %4063  ;;  %v2841_v49 = vsel %vm277_vm2, %v4062_v47, 0.0 }
 0xbbe   :  { %v2851_v52 = vmul.f32 %v4064_v48, %v4054_v18  ;;  %2842 = vadd.xlane.f32.xlu0 %v2841_v49  ;;  %v4066_v59 = vpop.eup %4065  ;;  %v4086_v49 = vld [vmem:[%s4843_s0 + $0x18] sm:$0xff] }
 0xbbf   :  { %v2854_v51 = vmul.f32 %v4066_v59, %v4719_v6  ;;  %v3163_v6 = vsel %vm650_vm3, %v248_v4, 0 }
 0xbc0   :  { %v2857_v55 = vpack.c.bf16 %v2851_v52, %v2851_v52  ;;  %v259_v52 = vadd.f32 %v4086_v49, %v3355_v39 }
 0xbc1   :  { %v2860_v13 = vpack.c.bf16 %v2854_v51, %v2854_v51 }
 0xbc2   :  { %3875 = vmatmul.mubr.msk.bf16.vlgmr.msra.gmra.mrb[84].mxu0 %vm277_vm2, %v2857_v55 }
 0xbc3   :  { %3885 = vmatpush3.bf16.msra.mxu0 %v3012_v56  ;;  %3886 = vmatprep.mubr.msk.bf16.mxu0 %vm4090_vm0, %v4089_v0 }
 0xbc4   :  { %3896 = vmatprep.subr.bf16.mxu0 %v4089_v0 }
 0xbd4   :  { %3054 = vrot.lane.b32.xlu0 %v4380_v14, %s4097_s13 }
 0xc43   :  { %v2837_v57 = vpop.xlane.xlu0 %2836 }
 0xc44   :  { %4067 = vrcp.f32 %v2837_v57 }
 0xc4b   :  { %v2843_v61 = vpop.xlane.xlu0 %2842 }
 0xc4c   :  { %4069 = vrcp.f32 %v2843_v61 }
 0xc4e   :  { %v4068_v62 = vpop.eup %4067 }
 0xc4f   :  { %v2853_v1 = vmul.f32 %v4068_v62, %v4060_v17  ;;  %v3055_v2 = vpop.permute.xlu0 %3054 }
 0xc50   :  { %v3060_v42 = vsel %vm650_vm3, %v3055_v2, 0 }
 0xc51   :  { %3891 = vmatpush3.bf16.msra.mxu1 %v3060_v42  ;;  %v2859_v45 = vpack.c.bf16 %v2853_v1, %v2853_v1  ;;  %v4087_v42 = vld [vmem:[%s4843_s0 + $0x20] sm:$0xff] }
 0xc53   :  { %3887 = vmatmul.mubr.msk.bf16.vlgmr.msra.gmra.mrb[88].mxu0 %vm277_vm2, %v2859_v45  ;;  %v260_v45 = vadd.f32 %v4087_v42, %v3355_v39 }
 0xc54   :  { %3897 = vmatpush3.bf16.msra.mxu0 %v3108_v3  ;;  %3893 = vmatmul.mubr.msk.bf16.vlgmr.msra.gmra.mrb[128].mxu1 %vm277_vm2, %v2860_v13 }
 0xc55   :  { %3898 = vmatprep.mubr.msk.bf16.mxu0 %vm4090_vm0, %v4089_v0  ;;  %3902 = vmatprep.subr.bf16.mxu0 %v4089_v0 }
 0xc56   :  { %v4070_v14 = vpop.eup %4069 }
 0xc57   :  { %v2855_v50 = vmul.f32 %v4070_v14, %v4062_v47  ;;  %v4085_v47 = vld [vmem:[%s4843_s0 + $0x10] sm:$0xff]  ;;  %v4088_v14 = vld [vmem:[%s4843_s0 + $0x28] sm:$0xff] }
 0xc58   :  { %v258_v48 = vadd.f32 %v4085_v47, %v3355_v39  ;;  %v261_v4 = vadd.f32 %v4088_v14, %v3355_v39  ;;  %v3417_v47 = vld [vmem:[%s4851_s9] ss:$0 sm:$0xff] }
 0xc59   :  { %v2861_v20 = vpack.c.bf16 %v2855_v50, %v2855_v50 }
 0xc5b   :  { %3899 = vmatmul.mubr.msk.bf16.vlgmr.msra.gmra.mrb[92].mxu0 %vm277_vm2, %v2861_v20 }
 0xc5c   :  { %3903 = vmatpush3.bf16.msra.mxu0 %v3163_v6  ;;  %3904 = vmatprep.mubr.msk.bf16.mxu0 %vm4090_vm0, %v4089_v0 }
 0xc5f   :  { %v2904_v8 = vpop.f32.mrb[120].mxu1 }
 0xc60   :  { %v3870_v58 = vpop.f32.mrb[121].mxu1 }
 0xc61   :  { %v2907_v10 = vpop.f32.mrb[122].mxu1 }
 0xc62   :  { %v3871_v11 = vpop.f32.mrb[123].mxu1 }
 0xc67   :  { %v3000_v60 = vpop.f32.mrb[124].mxu1 }
 0xc68   :  { %v3882_v12 = vpop.f32.mrb[125].mxu1 }
 0xc69   :  { %v3003_v30 = vpop.f32.mrb[126].mxu1 }
 0xc6a   :  { %v3883_v15 = vpop.f32.mrb[127].mxu1 }
 0xc95   :  { %v2952_v26 = vpop.f32.mrb[84].mxu0 }
 0xc96   :  { %v3150_v16 = vpack.c.bf16 %v2952_v26, %v2904_v8  ;;  %v3876_v63 = vpop.f32.mrb[85].mxu0 }
 0xc97   :  { %v2955_v18 = vpop.f32.mrb[86].mxu0 }
 0xc98   :  { %v3877_v19 = vpop.f32.mrb[87].mxu0  ;;  %3905 = vmatmul.mubr.msk.bf16.vlgmr.msra.gmra.mrb[28].mxu0 %vm277_vm2, %v3150_v16 }
 0xc99   :  { %3908 = vmatprep.mubr.msk.bf16.mxu0 %vm4090_vm0, %v4089_v0 }
 0xd26   :  { %v3048_v7 = vpop.f32.mrb[88].mxu0 }
 0xd27   :  { %v3151_v21 = vpack.c.bf16 %v3048_v7, %v3000_v60  ;;  %v3888_v24 = vpop.f32.mrb[89].mxu0  ;;  %v3096_v23 = vpop.f32.mrb[128].mxu1 }
 0xd28   :  { %v3051_v25 = vpop.f32.mrb[90].mxu0  ;;  %v3894_v28 = vpop.f32.mrb[129].mxu1 }
 0xd29   :  { %v3889_v29 = vpop.f32.mrb[91].mxu0  ;;  %v3099_v31 = vpop.f32.mrb[130].mxu1  ;;  %3909 = vmatmul.mubr.msk.bf16.gmra.mrb[32].mxu0 %vm277_vm2, %v3151_v21 }
 0xd2a   :  { %v3895_v33 = vpop.f32.mrb[131].mxu1  ;;  %3912 = vmatprep.mubr.msk.bf16.mxu0 %vm4090_vm0, %v4089_v0  ;;  %v4084_v0 = vld [vmem:[%s4843_s0 + $0x8] sm:$0xff] }
 0xd2b   :  { %v257_v5 = vadd.f32 %v4084_v0, %v3355_v39 }
 0xd2e   :  { %v3144_v35 = vpop.f32.mrb[92].mxu0 }
 0xd2f   :  { %v3152_v36 = vpack.c.bf16 %v3144_v35, %v3096_v23  ;;  %v3900_v34 = vpop.f32.mrb[93].mxu0 }
 0xd30   :  { %v3147_v37 = vpop.f32.mrb[94].mxu0 }
 0xd31   :  { %v3901_v27 = vpop.f32.mrb[95].mxu0  ;;  %3913 = vmatmul.mubr.msk.bf16.gmra.mrb[36].mxu0 %vm277_vm2, %v3152_v36 }
 0xd6b   :  { %v3199_v43 = vpop.f32.mrb[28].mxu0 }
 0xd6c   :  { %v3920_v9 = vadd.f32 %v3199_v43, %v256_v41  ;;  %v3906_v44 = vpop.f32.mrb[29].mxu0 }
 0xd6d   :  { %v3202_v53 = vpop.f32.mrb[30].mxu0 }
 0xd6e   :  { %v3921_v17 = vadd.f32 %v3202_v53, %v257_v5  ;;  %v3907_v22 = vpop.f32.mrb[31].mxu0  ;;  %v3230_v46 = vsel %vm80_vm1, %v3920_v9, 0.0 }
 0xd6f   :  { %3231 = vadd.xlane.f32.xlu0 %v3230_v46  ;;  %v3416_v22 = vld [vmem:[%s4850_s8] ss:$0 sm:$0xff] }
 0xd70   :  { %v3233_v32 = vsel %vm80_vm1, %v3921_v17, 0.0 }
 0xd71   :  { %3234 = vadd.xlane.f32.xlu1 %v3233_v32 }
 0xdfc   :  { %v3232_v54 = vpop.xlane.xlu0 %3231  ;;  %v3207_v55 = vpop.f32.mrb[32].mxu0 }
 0xdfd   :  { %v3922_v56 = vadd.f32 %v3207_v55, %v258_v48  ;;  %v3910_v57 = vpop.f32.mrb[33].mxu0  ;;  %v3249_v62 = vmul.f32 0.03125, %v3232_v54 }
 0xdfe   :  { %v3235_v59 = vpop.xlane.xlu1 %3234  ;;  %v3210_v61 = vpop.f32.mrb[34].mxu0 }
 0xdff   :  { %v3923_v51 = vadd.f32 %v3210_v61, %v259_v52  ;;  %v3911_v1 = vpop.f32.mrb[35].mxu0  ;;  %v3236_v2 = vsel %vm80_vm1, %v3922_v56, 0.0  ;;  %v3250_v38 = vmul.f32 0.03125, %v3235_v59  ;;  %v3255_v13 = vsub.f32 %v3920_v9, %v3249_v62 }
 0xe00   :  { %3237 = vadd.xlane.f32.xlu0 %v3236_v2 }
 0xe01   :  { %v3239_v3 = vsel %vm80_vm1, %v3923_v51, 0.0  ;;  %v3256_v20 = vsub.f32 %v3921_v17, %v3250_v38  ;;  %v3261_v12 = vmul.f32 %v3255_v13, %v3255_v13 }
 0xe03   :  { %v3262_v15 = vmul.f32 %v3256_v20, %v3256_v20  ;;  %v3267_v26 = vsel %vm80_vm1, %v3261_v12, 0.0 }
 0xe04   :  { %3240 = vadd.xlane.f32.xlu0 %v3239_v3  ;;  %v3215_v50 = vpop.f32.mrb[36].mxu0 }
 0xe05   :  { %v3924_v6 = vadd.f32 %v3215_v50, %v260_v45  ;;  %v3914_v8 = vpop.f32.mrb[37].mxu0  ;;  %v3270_v16 = vsel %vm80_vm1, %v3262_v15, 0.0 }
 0xe06   :  { %v3218_v58 = vpop.f32.mrb[38].mxu0 }
 0xe07   :  { %v3925_v10 = vadd.f32 %v3218_v58, %v261_v4  ;;  %v3915_v11 = vpop.f32.mrb[39].mxu0  ;;  %v3242_v60 = vsel %vm80_vm1, %v3924_v6, 0.0 }
 0xe08   :  { %3243 = vadd.xlane.f32.xlu1 %v3242_v60 }
 0xe09   :  { %v3245_v30 = vsel %vm80_vm1, %v3925_v10, 0.0 }
 0xe0a   :  { %3246 = vadd.xlane.f32.xlu0 %v3245_v30 }
 0xe0c   :  { %3268 = vadd.xlane.f32.xlu1 %v3267_v26 }
 0xe0e   :  { %3271 = vadd.xlane.f32.xlu0 %v3270_v16 }
 0xe8d   :  { %v3238_v63 = vpop.xlane.xlu0 %3237 }
 0xe8e   :  { %v3251_v18 = vmul.f32 0.03125, %v3238_v63 }
 0xe90   :  { %v3257_v19 = vsub.f32 %v3922_v56, %v3251_v18 }
 0xe91   :  { %v3241_v7 = vpop.xlane.xlu0 %3240 }
 0xe92   :  { %v3252_v21 = vmul.f32 0.03125, %v3241_v7  ;;  %v3263_v24 = vmul.f32 %v3257_v19, %v3257_v19 }
 0xe94   :  { %v3258_v23 = vsub.f32 %v3923_v51, %v3252_v21  ;;  %v3273_v25 = vsel %vm80_vm1, %v3263_v24, 0.0 }
 0xe95   :  { %3274 = vadd.xlane.f32.xlu1 %v3273_v25  ;;  %v3244_v28 = vpop.xlane.xlu1 %3243 }
 0xe96   :  { %v3253_v29 = vmul.f32 0.03125, %v3244_v28  ;;  %v3264_v31 = vmul.f32 %v3258_v23, %v3258_v23 }
 0xe97   :  { %v3247_v33 = vpop.xlane.xlu0 %3246 }
 0xe98   :  { %v3259_v35 = vsub.f32 %v3924_v6, %v3253_v29  ;;  %v3254_v36 = vmul.f32 0.03125, %v3247_v33  ;;  %v3276_v34 = vsel %vm80_vm1, %v3264_v31, 0.0 }
 0xe99   :  { %v3269_v37 = vpop.xlane.xlu1 %3268  ;;  %3277 = vadd.xlane.f32.xlu0 %v3276_v34 }
 0xe9a   :  { %v3260_v27 = vsub.f32 %v3925_v10, %v3254_v36  ;;  %v3285_v39 = vmul.f32 0.03125, %v3269_v37  ;;  %v3265_v40 = vmul.f32 %v3259_v35, %v3259_v35 }
 0xe9b   :  { %v3272_v41 = vpop.xlane.xlu0 %3271 }
 0xe9c   :  { %v3291_v0 = vadd.f32 1e-05, %v3285_v39  ;;  %v3286_v5 = vmul.f32 0.03125, %v3272_v41  ;;  %v3279_v43 = vsel %vm80_vm1, %v3265_v40, 0.0  ;;  %v3266_v9 = vmul.f32 %v3260_v27, %v3260_v27 }
 0xe9d   :  { %3280 = vadd.xlane.f32.xlu1 %v3279_v43 }
 0xe9e   :  { %4071 = vrsqrt.f32 %v3291_v0  ;;  %v3292_v44 = vadd.f32 1e-05, %v3286_v5  ;;  %v3282_v53 = vsel %vm80_vm1, %v3266_v9, 0.0 }
 0xe9f   :  { %3283 = vadd.xlane.f32.xlu0 %v3282_v53 }
 0xea0   :  { %4073 = vrsqrt.f32 %v3292_v44 }
 0xea8   :  { %v4072_v17 = vpop.eup %4071 }
 0xea9   :  { %v3303_v46 = vmul.f32 %v4072_v17, %v3255_v13 }
 0xeaa   :  { %v4074_v32 = vpop.eup %4073 }
 0xeab   :  { %v3315_v48 = vmul.f32 %v3416_v22, %v3303_v46  ;;  %v3304_v49 = vmul.f32 %v4074_v32, %v3256_v20 }
 0xead   :  { %v3327_v52 = vadd.f32 %v3417_v47, %v3315_v48  ;;  %v3316_v54 = vmul.f32 %v3416_v22, %v3304_v49 }
 0xeaf   :  { %3333 = vst.msk [vmem:[%s4852_s10] sm:$0xff] %vm80_vm1, %v3327_v52  ;;  %v3328_v55 = vadd.f32 %v3417_v47, %v3316_v54 }
 0xeb1   :  { %3334 = vst.msk [vmem:[%s4852_s10 + $0x8] sm:$0xff] %vm80_vm1, %v3328_v55 }
 0xf22   :  { %v3275_v56 = vpop.xlane.xlu1 %3274 }
 0xf23   :  { %v3287_v57 = vmul.f32 0.03125, %v3275_v56 }
 0xf25   :  { %v3293_v59 = vadd.f32 1e-05, %v3287_v57 }
 0xf26   :  { %v3278_v61 = vpop.xlane.xlu0 %3277 }
 0xf27   :  { %4075 = vrsqrt.f32 %v3293_v59  ;;  %v3288_v62 = vmul.f32 0.03125, %v3278_v61 }
 0xf29   :  { %v3294_v51 = vadd.f32 1e-05, %v3288_v62 }
 0xf2a   :  { %v3281_v1 = vpop.xlane.xlu1 %3280 }
 0xf2b   :  { %4077 = vrsqrt.f32 %v3294_v51  ;;  %v3289_v2 = vmul.f32 0.03125, %v3281_v1 }
 0xf2c   :  { %v3284_v38 = vpop.xlane.xlu0 %3283 }
 0xf2d   :  { %v3295_v42 = vadd.f32 1e-05, %v3289_v2  ;;  %v3290_v45 = vmul.f32 0.03125, %v3284_v38 }
 0xf2f   :  { %4079 = vrsqrt.f32 %v3295_v42  ;;  %v3296_v13 = vadd.f32 1e-05, %v3290_v45 }
 0xf31   :  { %v4076_v3 = vpop.eup %4075  ;;  %4081 = vrsqrt.f32 %v3296_v13 }
 0xf32   :  { %v3305_v14 = vmul.f32 %v4076_v3, %v3257_v19 }
 0xf34   :  { %v3317_v4 = vmul.f32 %v3416_v22, %v3305_v14 }
 0xf35   :  { %v4078_v50 = vpop.eup %4077 }
 0xf36   :  { %v3329_v20 = vadd.f32 %v3417_v47, %v3317_v4  ;;  %v3306_v6 = vmul.f32 %v4078_v50, %v3258_v23 }
 0xf38   :  { %3335 = vst.msk [vmem:[%s4852_s10 + $0x10] sm:$0xff] %vm80_vm1, %v3329_v20  ;;  %v3318_v8 = vmul.f32 %v3416_v22, %v3306_v6 }
 0xf39   :  { %v4080_v58 = vpop.eup %4079 }
 0xf3a   :  { %v3330_v10 = vadd.f32 %v3417_v47, %v3318_v8  ;;  %v3307_v11 = vmul.f32 %v4080_v58, %v3259_v35 }
 0xf3b   :  { %v4082_v60 = vpop.eup %4081 }
 0xf3c   :  { %3336 = vst.msk [vmem:[%s4852_s10 + $0x18] sm:$0xff] %vm80_vm1, %v3330_v10  ;;  %v3319_v12 = vmul.f32 %v3416_v22, %v3307_v11  ;;  %v3308_v30 = vmul.f32 %v4082_v60, %v3260_v27 }
 0xf3e   :  { %v3331_v15 = vadd.f32 %v3417_v47, %v3319_v12  ;;  %v3320_v26 = vmul.f32 %v3416_v22, %v3308_v30 }
 0xf40   :  { %3337 = vst.msk [vmem:[%s4852_s10 + $0x20] sm:$0xff] %vm80_vm1, %v3331_v15  ;;  %v3332_v16 = vadd.f32 %v3417_v47, %v3320_v26 }
 0xf42   :  { %3338 = vst.msk [vmem:[%s4852_s10 + $0x28] sm:$0xff] %vm80_vm1, %v3332_v16 }

// kernel: deformable_control_layer_forward.8
= control target key start
LH: loop header
LB: loop body
LE: loop exit
PB: predicated region body
PF: predicated region fallthrough
CT: control target
= control target key end

     0   :  { %s3110_s12 = smov 0   ;;  %s3112_s13 = smov 0   ;;  %s4723_s0 = inlined_call_operand.vmem [shape: f32[2,80,32], index: 0, kind: input, shape index: {}]   ;;  %s4724_s1 = inlined_call_operand.vmem [shape: s32[2,24,64], index: 1, kind: input, shape index: {}]   ;;  %s4725_s2 = inlined_call_operand.vmem [shape: f32[2,24,64], index: 2, kind: input, shape index: {}]   ;;  %s4726_s3 = inlined_call_operand.vmem [shape: f32[2,24,32], index: 3, kind: output, shape index: {}]  }
   0x1   :  { %s3114_s14 = smov 0  }
   0x2 LB: > { %s25_s15 = sadd.s32 1, %s3014_s13  ;;  %p2661_p0 = scmp.ge.s32.totalorder %s3018_s14, 1  ;;  %s3018_s14 = sphi %s3114_s14, %s13_s14   ;;  %s3014_s13 = sphi %s3112_s13, %s4921_s13   ;;  %s3010_s12 = sphi %s3110_s12, %s4920_s12  }
   0x3   : > { %p27_p1 = scmp.ge.s32.totalorder %s25_s15, 2  ;;  %p185_p2 = scmp.lt.s32.totalorder %s3018_s14, 3 }
   0x5   : > { %s4923_s15 = smov (%p27_p1, %s25_s15), 0  ;;  %p186_p3 = pnand %p2661_p0, %p185_p2 }
   0x7   : > { %189 = sbr.rel (%p186_p3) target bundleno = 2185 (0x889), region = 32 }
   0xe   : > { %p231_p4 = scmp.lt.s32.totalorder %s3010_s12, 1  ;;  %v3020_v0 = vmov 0   ;;  %v3021_v7 = vmov 1   ;;  %v3022_v8 = vmov 2   ;;  %v3023_v9 = vmov 3   ;;  %s3052_s27 = smov 120  }
   0xf   : > { %2857 = vset.pattern.permute.xlu1 %v3020_v0  ;;  %2856 = vset.pattern.permute.xlu0 %v3020_v0  ;;  %v3024_v10 = vmov 4   ;;  %v3025_v11 = vmov 5   ;;  %v3026_v12 = vmov 6   ;;  %v3027_v13 = vmov 7   ;;  %s3054_s4 = smov 8   ;;  %s3070_s5 = smov 112  }
  0x10   : > { %s4925_s12 = smov (!%p231_p4, %s3010_s12), 1  ;;  %v3028_v14 = vmov 8   ;;  %v3029_v15 = vmov 9   ;;  %v3030_v16 = vmov 10   ;;  %v3031_v17 = vmov 11   ;;  %s3072_s6 = smov 16  }
  0x11   : > { %s3131_s16 = smul.u32 24, %s4925_s12  ;;  %v3032_v21 = vmov 12   ;;  %v3033_v25 = vmov 13   ;;  %v3034_v32 = vmov 14   ;;  %v3035_v36 = vmov 15   ;;  %s3088_s7 = smov 104  }
  0x12   : > { %v3036_v42 = vmov 16   ;;  %v3037_v47 = vmov 17   ;;  %v4730_v53 = vmov 18   ;;  %v4729_v58 = vmov 19   ;;  %s2760_s23 = smul.u32 80, %s4925_s12  ;;  %s3089_s8 = smov 24  }
  0x13   : > { %s3137_s19 = scalar_lea.vmem %s4724_s1, %s3131_s16  ;;  %s3143_s22 = scalar_lea.vmem %s4725_s2, %s3131_s16 }
  0x14   : > { %v3146_v1 = vld [vmem:[%s3137_s19 + $0x10] sm:$0xff]  ;;  %v3149_v2 = vld [vmem:[%s3137_s19] sm:$0xff]  ;;  %v3157_v4 = vld [vmem:[%s3137_s19 + $0x8] sm:$0xff]  ;;  %s3341_s26 = scalar_lea.vmem %s4723_s0, %s2760_s23  ;;  %s3998_s30 = scalar_lea.vmem %s4726_s3, %s3131_s16 }
  0x15   : > { %292 = vperm.xlu1 %2857, %v3146_v1   ;;  %286 = vperm.xlu0 %2856, %v3149_v2   ;;  %v3154_v3 = vld [vmem:[%s3143_s22] sm:$0xff]  ;;  %v3162_v5 = vld [vmem:[%s3143_s22 + $0x10] sm:$0xff]  ;;  %v3165_v6 = vld [vmem:[%s3143_s22 + $0x8] sm:$0xff] }
  0x16   : > { %v267_v61 = vld [vmem:[%s3341_s26] sm:$0xff]  ;;  %v268_v62 = vld [vmem:[%s3341_s26 + $0x8] sm:$0xff] }
  0x17   : > { %v3347_v63 = vpack.c.bf16 %v268_v62, %v267_v61  ;;  %v275_v62 = vld [vmem:[%s3341_s26 + $0x40] sm:$0xff] }
  0x19   : > { %299 = vperm.xlu1 %2857, %v3154_v3   ;;  %289 = vperm.xlu0 %2856, %v3157_v4   ;;  %4761 = vst [vmem:[#allocation2_spill] sm:$0xff] %v3347_v63 }
  0x1a   : > { %2704 = vmatprep.subr.bf16.mxu0 %v3347_v63 }
  0x1b   : > { %2705 = vmatpush3.bf16.msra.mxu0 %v3347_v63 }
  0x1d   : > { %309 = vperm.xlu1 %2857, %v3162_v5   ;;  %304 = vperm.xlu0 %2856, %v3165_v6  }
  0x21   : > { %2859 = vset.pattern.permute.xlu1 %v3021_v7  ;;  %2858 = vset.pattern.permute.xlu0 %v3021_v7  ;;  %v269_v7 = vld [vmem:[%s3341_s26 + $0x10] sm:$0xff] }
  0x22   : > { %322 = vperm.xlu1 %2859, %v3157_v4   ;;  %319 = vperm.xlu0 %2858, %v3149_v2  }
  0x26   : > { %325 = vperm.xlu1 %2859, %v3146_v1   ;;  %331 = vperm.xlu0 %2858, %v3154_v3  }
  0x2a   : > { %335 = vperm.xlu1 %2859, %v3165_v6   ;;  %339 = vperm.xlu0 %2858, %v3162_v5  }
  0x2e   : > { %2860 = vset.pattern.permute.xlu1 %v3022_v8  ;;  %2861 = vset.pattern.permute.xlu0 %v3022_v8  ;;  %v270_v8 = vld [vmem:[%s3341_s26 + $0x18] sm:$0xff] }
  0x2f   : > { %349 = vperm.xlu1 %2860, %v3149_v2   ;;  %352 = vperm.xlu0 %2861, %v3157_v4  }
  0x33   : > { %355 = vperm.xlu1 %2860, %v3146_v1   ;;  %365 = vperm.xlu0 %2861, %v3165_v6  }
  0x37   : > { %361 = vperm.xlu1 %2860, %v3154_v3   ;;  %2862 = vset.pattern.permute.xlu0 %v3023_v9 }
  0x38   : > { %379 = vperm.xlu0 %2862, %v3149_v2  }
  0x3b   : > { %369 = vperm.xlu1 %2860, %v3162_v5  }
  0x3c   : > { %391 = vperm.xlu0 %2862, %v3154_v3  }
  0x3f   : > { %2863 = vset.pattern.permute.xlu1 %v3023_v9 }
  0x40   : > { %382 = vperm.xlu1 %2863, %v3157_v4   ;;  %399 = vperm.xlu0 %2862, %v3162_v5  }
  0x44   : > { %385 = vperm.xlu1 %2863, %v3146_v1   ;;  %2865 = vset.pattern.permute.xlu0 %v3024_v10 }
  0x45   : > { %412 = vperm.xlu0 %2865, %v3157_v4  }
  0x48   : > { %395 = vperm.xlu1 %2863, %v3165_v6  }
  0x49   : > { %425 = vperm.xlu0 %2865, %v3165_v6  }
  0x4c   : > { %2864 = vset.pattern.permute.xlu1 %v3024_v10  ;;  %v3359_v10 = vpack.c.bf16 %v270_v8, %v269_v7  ;;  %v276_v7 = vld [vmem:[%s3341_s26 + $0x48] sm:$0xff] }
  0x4d   : > { %409 = vperm.xlu1 %2864, %v3149_v2   ;;  %2866 = vset.pattern.permute.xlu0 %v3025_v11  ;;  %v3394_v8 = vpack.c.bf16 %v276_v7, %v275_v62 }
  0x4e   : > { %439 = vperm.xlu0 %2866, %v3149_v2   ;;  %4762 = vst [vmem:[#allocation3_spill] sm:$0xff] %v3359_v10  ;;  %2706 = vmatprep.subr.bf16.mxu0 %v3359_v10 }
  0x4f   : > { %2707 = vmatpush3.bf16.msra.mxu0 %v3359_v10  ;;  %4765 = vst [vmem:[#allocation6_spill] sm:$0xff] %v3394_v8  ;;  %v4773_v10 = vmov 18  }
  0x51   : > { %415 = vperm.xlu1 %2864, %v3146_v1  }
  0x52   : > { %451 = vperm.xlu0 %2866, %v3154_v3  }
  0x55   : > { %421 = vperm.xlu1 %2864, %v3154_v3  }
  0x56   : > { %459 = vperm.xlu0 %2866, %v3162_v5  }
  0x59   : > { %429 = vperm.xlu1 %2864, %v3162_v5  }
  0x5a   : > { %2869 = vset.pattern.permute.xlu0 %v3026_v12 }
  0x5b   : > { %472 = vperm.xlu0 %2869, %v3157_v4  }
  0x5d   : > { %2867 = vset.pattern.permute.xlu1 %v3025_v11 }
  0x5e   : > { %442 = vperm.xlu1 %2867, %v3157_v4  }
  0x5f   : > { %485 = vperm.xlu0 %2869, %v3165_v6  }
  0x62   : > { %445 = vperm.xlu1 %2867, %v3146_v1  }
  0x63   : > { %2870 = vset.pattern.permute.xlu0 %v3027_v13 }
  0x64   : > { %499 = vperm.xlu0 %2870, %v3149_v2  }
  0x66   : > { %455 = vperm.xlu1 %2867, %v3165_v6  }
  0x68   : > { %511 = vperm.xlu0 %2870, %v3154_v3  }
  0x6a   : > { %2868 = vset.pattern.permute.xlu1 %v3026_v12  ;;  %v271_v12 = vld [vmem:[%s3341_s26 + $0x20] sm:$0xff] }
  0x6b   : > { %469 = vperm.xlu1 %2868, %v3149_v2  }
  0x6c   : > { %519 = vperm.xlu0 %2870, %v3162_v5  }
  0x6f   : > { %475 = vperm.xlu1 %2868, %v3146_v1  }
  0x70   : > { %2873 = vset.pattern.permute.xlu0 %v3028_v14 }
  0x71   : > { %532 = vperm.xlu0 %2873, %v3157_v4  }
  0x73   : > { %481 = vperm.xlu1 %2868, %v3154_v3  }
  0x75   : > { %545 = vperm.xlu0 %2873, %v3165_v6  }
  0x77   : > { %489 = vperm.xlu1 %2868, %v3162_v5  }
  0x79   : > { %2874 = vset.pattern.permute.xlu0 %v3029_v15 }
  0x7a   : > { %559 = vperm.xlu0 %2874, %v3149_v2  }
  0x7b   : > { %2871 = vset.pattern.permute.xlu1 %v3027_v13  ;;  %v272_v13 = vld [vmem:[%s3341_s26 + $0x28] sm:$0xff] }
  0x7c   : > { %502 = vperm.xlu1 %2871, %v3157_v4  }
  0x7e   : > { %571 = vperm.xlu0 %2874, %v3154_v3  }
  0x80   : > { %505 = vperm.xlu1 %2871, %v3146_v1  }
  0x82   : > { %579 = vperm.xlu0 %2874, %v3162_v5  }
  0x84   : > { %515 = vperm.xlu1 %2871, %v3165_v6  }
  0x86   : > { %2877 = vset.pattern.permute.xlu0 %v3030_v16 }
  0x87   : > { %592 = vperm.xlu0 %2877, %v3157_v4  }
  0x88   : > { %2872 = vset.pattern.permute.xlu1 %v3028_v14 }
  0x89   : > { %529 = vperm.xlu1 %2872, %v3149_v2  }
  0x8b   : > { %605 = vperm.xlu0 %2877, %v3165_v6  }
  0x8d   : > { %535 = vperm.xlu1 %2872, %v3146_v1  }
  0x8f   : > { %2878 = vset.pattern.permute.xlu0 %v3031_v17 }
  0x90   : > { %619 = vperm.xlu0 %2878, %v3149_v2  }
  0x91   : > { %541 = vperm.xlu1 %2872, %v3154_v3  }
  0x94   : > { %v3222_v18 = vpop.permute.xlu1 %292  ;;  %631 = vperm.xlu0 %2878, %v3154_v3   ;;  %v3234_v22 = vpop.permute.xlu0 %286 }
  0x95   : > { %549 = vperm.xlu1 %2872, %v3162_v5  }
  0x98   : > { %v3226_v19 = vpop.permute.xlu1 %299  ;;  %639 = vperm.xlu0 %2878, %v3162_v5   ;;  %v3242_v26 = vpop.permute.xlu0 %289 }
  0x99   : > { %2875 = vset.pattern.permute.xlu1 %v3029_v15  ;;  %v4728_v15 = vmov 20  }
  0x9a   : > { %562 = vperm.xlu1 %2875, %v3157_v4  }
  0x9c   : > { %v3230_v20 = vpop.permute.xlu1 %309  ;;  %2881 = vset.pattern.permute.xlu0 %v3032_v21  ;;  %v3250_v28 = vpop.permute.xlu0 %304 }
  0x9d   : > { %652 = vperm.xlu0 %2881, %v3157_v4  }
  0x9e   : > { %565 = vperm.xlu1 %2875, %v3146_v1  }
  0xa1   : > { %v3236_v23 = vpop.permute.xlu1 %322  ;;  %665 = vperm.xlu0 %2881, %v3165_v6   ;;  %v3256_v30 = vpop.permute.xlu0 %319 }
  0xa2   : > { %575 = vperm.xlu1 %2875, %v3165_v6  }
  0xa5   : > { %v3240_v24 = vpop.permute.xlu1 %325  ;;  %2882 = vset.pattern.permute.xlu0 %v3033_v25  ;;  %v3265_v34 = vpop.permute.xlu0 %331 }
  0xa6   : > { %2876 = vset.pattern.permute.xlu1 %v3030_v16  ;;  %679 = vperm.xlu0 %2882, %v3149_v2   ;;  %v3372_v16 = vpack.c.bf16 %v272_v13, %v271_v12  ;;  %v4727_v12 = vmov 21  }
  0xa7   : > { %589 = vperm.xlu1 %2876, %v3149_v2  }
  0xa8   : > { %4763 = vst [vmem:[#allocation4_spill] sm:$0xff] %v3372_v16  ;;  %2708 = vmatprep.subr.bf16.mxu0 %v3372_v16 }
  0xa9   : > { %v3246_v27 = vpop.permute.xlu1 %335  ;;  %v3273_v37 = vpop.permute.xlu0 %339  ;;  %2709 = vmatpush3.bf16.msra.mxu0 %v3372_v16 }
  0xaa   : > { %691 = vperm.xlu0 %2882, %v3154_v3  }
  0xab   : > { %595 = vperm.xlu1 %2876, %v3146_v1  }
  0xae   : > { %v3252_v29 = vpop.permute.xlu1 %349  ;;  %699 = vperm.xlu0 %2882, %v3162_v5   ;;  %v3281_v40 = vpop.permute.xlu0 %352 }
  0xaf   : > { %601 = vperm.xlu1 %2876, %v3154_v3  }
  0xb2   : > { %v3258_v31 = vpop.permute.xlu1 %355  ;;  %2885 = vset.pattern.permute.xlu0 %v3034_v32  ;;  %v3290_v43 = vpop.permute.xlu0 %365 }
  0xb3   : > { %609 = vperm.xlu1 %2876, %v3162_v5   ;;  %712 = vperm.xlu0 %2885, %v3157_v4  }
  0xb6   : > { %v3262_v33 = vpop.permute.xlu1 %361 }
  0xb7   : > { %2879 = vset.pattern.permute.xlu1 %v3031_v17  ;;  %725 = vperm.xlu0 %2885, %v3165_v6   ;;  %v3296_v45 = vpop.permute.xlu0 %379 }
  0xb8   : > { %622 = vperm.xlu1 %2879, %v3157_v4  }
  0xba   : > { %v3268_v35 = vpop.permute.xlu1 %369 }
  0xbb   : > { %2886 = vset.pattern.permute.xlu0 %v3035_v36  ;;  %v3305_v49 = vpop.permute.xlu0 %391 }
  0xbc   : > { %625 = vperm.xlu1 %2879, %v3146_v1   ;;  %739 = vperm.xlu0 %2886, %v3149_v2  }
  0xbf   : > { %v3275_v38 = vpop.permute.xlu1 %382  ;;  %v3311_v51 = vpop.permute.xlu0 %399 }
  0xc0   : > { %635 = vperm.xlu1 %2879, %v3165_v6   ;;  %751 = vperm.xlu0 %2886, %v3154_v3  }
  0xc3   : > { %v3279_v39 = vpop.permute.xlu1 %385 }
  0xc4   : > { %2880 = vset.pattern.permute.xlu1 %v3032_v21  ;;  %759 = vperm.xlu0 %2886, %v3162_v5   ;;  %v3320_v54 = vpop.permute.xlu0 %412  ;;  %v273_v21 = vld [vmem:[%s3341_s26 + $0x30] sm:$0xff] }
  0xc5   : > { %649 = vperm.xlu1 %2880, %v3149_v2  }
  0xc7   : > { %v3285_v41 = vpop.permute.xlu1 %395 }
  0xc8   : > { %2889 = vset.pattern.permute.xlu0 %v3036_v42  ;;  %v3328_v57 = vpop.permute.xlu0 %425 }
  0xc9   : > { %655 = vperm.xlu1 %2880, %v3146_v1   ;;  %838 = vperm.xlu0 %2889, %v3157_v4  }
  0xcc   : > { %v3292_v44 = vpop.permute.xlu1 %409 }
  0xcd   : > { %661 = vperm.xlu1 %2880, %v3154_v3   ;;  %851 = vperm.xlu0 %2889, %v3165_v6   ;;  %v3334_v59 = vpop.permute.xlu0 %439 }
  0xd0   : > { %v3298_v46 = vpop.permute.xlu1 %415 }
  0xd1   : > { %669 = vperm.xlu1 %2880, %v3162_v5   ;;  %2890 = vset.pattern.permute.xlu0 %v3037_v47  ;;  %v3356_v9 = vpop.permute.xlu0 %451 }
  0xd2   : > { %865 = vperm.xlu0 %2890, %v3149_v2  }
  0xd4   : > { %v3303_v48 = vpop.permute.xlu1 %421 }
  0xd5   : > { %2883 = vset.pattern.permute.xlu1 %v3033_v25  ;;  %v3368_v14 = vpop.permute.xlu0 %459  ;;  %v274_v25 = vld [vmem:[%s3341_s26 + $0x38] sm:$0xff] }
  0xd6   : > { %682 = vperm.xlu1 %2883, %v3157_v4   ;;  %877 = vperm.xlu0 %2890, %v3154_v3  }
  0xd8   : > { %v3309_v50 = vpop.permute.xlu1 %429 }
  0xda   : > { %685 = vperm.xlu1 %2883, %v3146_v1   ;;  %885 = vperm.xlu0 %2890, %v3162_v5  }
  0xdd   : > { %v3315_v52 = vpop.permute.xlu1 %442 }
  0xde   : > { %695 = vperm.xlu1 %2883, %v3165_v6   ;;  %2893 = vset.pattern.permute.xlu0 %v4730_v53 }
  0xdf   : > { %898 = vperm.xlu0 %2893, %v3157_v4  }
  0xe1   : > { %v3322_v55 = vpop.permute.xlu1 %445 }
  0xe2   : > { %2884 = vset.pattern.permute.xlu1 %v3034_v32  ;;  %v3382_v32 = vpack.c.bf16 %v274_v25, %v273_v21 }
  0xe3   : > { %709 = vperm.xlu1 %2884, %v3149_v2   ;;  %911 = vperm.xlu0 %2893, %v3165_v6  }
  0xe4   : > { %4764 = vst [vmem:[#allocation5_spill] sm:$0xff] %v3382_v32  ;;  %2710 = vmatprep.subr.bf16.mxu0 %v3382_v32 }
  0xe5   : > { %v3326_v56 = vpop.permute.xlu1 %455  ;;  %2711 = vmatpush3.bf16.msra.mxu0 %v3382_v32 }
  0xe6   : > { %2712 = vmatprep.subr.bf16.mxu0 %v3394_v8 }
  0xe7   : > { %715 = vperm.xlu1 %2884, %v3146_v1   ;;  %2894 = vset.pattern.permute.xlu0 %v4729_v58 }
  0xe8   : > { %925 = vperm.xlu0 %2894, %v3149_v2  }
  0xe9   : > { %2713 = vmatpush3.bf16.msra.mxu0 %v3394_v8  ;;  %v4740_v8 = vmov 23  }
  0xea   : > { %v3336_v60 = vpop.permute.xlu1 %469 }
  0xeb   : > { %721 = vperm.xlu1 %2884, %v3154_v3  }
  0xec   : > { %937 = vperm.xlu0 %2894, %v3154_v3  }
  0xee   : > { %v3349_v0 = vpop.permute.xlu1 %475 }
  0xef   : > { %729 = vperm.xlu1 %2884, %v3162_v5  }
  0xf0   : > { %945 = vperm.xlu0 %2894, %v3162_v5  }
  0xf2   : > { %v3361_v11 = vpop.permute.xlu1 %481 }
  0xf3   : > { %2887 = vset.pattern.permute.xlu1 %v3035_v36  ;;  %v3385_v36 = vpop.permute.xlu0 %472 }
  0xf4   : > { %742 = vperm.xlu1 %2887, %v3157_v4   ;;  %2897 = vset.pattern.permute.xlu0 %v4728_v15  ;;  %v4733_v15 = vmov 22  }
  0xf5   : > { %958 = vperm.xlu0 %2897, %v3157_v4  }
  0xf6   : > { %v3375_v17 = vpop.permute.xlu1 %489 }
  0xf7   : > { %v3402_v21 = vpop.permute.xlu0 %485 }
  0xf8   : > { %745 = vperm.xlu1 %2887, %v3146_v1  }
  0xf9   : > { %971 = vperm.xlu0 %2897, %v3165_v6  }
  0xfb   : > { %v3388_v61 = vpop.permute.xlu1 %502  ;;  %v3409_v62 = vpop.permute.xlu0 %499 }
  0xfc   : > { %755 = vperm.xlu1 %2887, %v3165_v6  }
  0xfd   : > { %2898 = vset.pattern.permute.xlu0 %v4727_v12 }
  0xfe   : > { %985 = vperm.xlu0 %2898, %v3149_v2  }
  0xff   : > { %v3399_v13 = vpop.permute.xlu1 %505  ;;  %v3416_v12 = vpop.permute.xlu0 %511 }
 0x100   : > { %4766 = vst [vmem:[#allocation7_spill] sm:$0xff] %v3399_v13  ;;  %2888 = vset.pattern.permute.xlu1 %v3036_v42 }
 0x101   : > { %835 = vperm.xlu1 %2888, %v3149_v2  }
 0x102   : > { %997 = vperm.xlu0 %2898, %v3154_v3  }
 0x103   : > { %v3407_v25 = vpop.permute.xlu1 %515  ;;  %v3423_v58 = vpop.permute.xlu0 %519 }
 0x104   : > { %4768 = vst [vmem:[#allocation9_spill] sm:$0xff] %v3423_v58 }
 0x105   : > { %841 = vperm.xlu1 %2888, %v3146_v1  }
 0x106   : > { %1005 = vperm.xlu0 %2898, %v3162_v5  }
 0x108   : > { %v3413_v7 = vpop.permute.xlu1 %529 }
 0x109   : > { %847 = vperm.xlu1 %2888, %v3154_v3  }
 0x10a   : > { %2901 = vset.pattern.permute.xlu0 %v4733_v15  ;;  %v3431_v15 = vpop.permute.xlu0 %532 }
 0x10b   : > { %1018 = vperm.xlu0 %2901, %v3157_v4  }
 0x10c   : > { %v3420_v42 = vpop.permute.xlu1 %535 }
 0x10d   : > { %4767 = vst [vmem:[#allocation8_spill] sm:$0xff] %v3420_v42  ;;  %855 = vperm.xlu1 %2888, %v3162_v5  }
 0x10e   : > { %v3440_v32 = vpop.permute.xlu0 %545 }
 0x10f   : > { %1031 = vperm.xlu0 %2901, %v3165_v6   ;;  %4771 = vst [vmem:[#allocation12_spill] sm:$0xff] %v3440_v32 }
 0x110   : > { %v3426_v53 = vpop.permute.xlu1 %541 }
 0x111   : > { %2891 = vset.pattern.permute.xlu1 %v3037_v47 }
 0x112   : > { %868 = vperm.xlu1 %2891, %v3157_v4  }
 0x113   : > { %2902 = vset.pattern.permute.xlu0 %v4740_v8  ;;  %v3446_v8 = vpop.permute.xlu0 %559 }
 0x114   : > { %v3433_v16 = vpop.permute.xlu1 %549  ;;  %1045 = vperm.xlu0 %2902, %v3149_v2  }
 0x115   : > { %4769 = vst [vmem:[#allocation10_spill] sm:$0xff] %v3433_v16  ;;  %v4743_v16 = vmov 24  }
 0x116   : > { %871 = vperm.xlu1 %2891, %v3146_v1  }
 0x117   : > { %v3455_v58 = vpop.permute.xlu0 %571 }
 0x118   : > { %1057 = vperm.xlu0 %2902, %v3154_v3   ;;  %4775 = vst [vmem:[#allocation15_spill] sm:$0xff] %v3455_v58 }
 0x119   : > { %v3438_v63 = vpop.permute.xlu1 %562 }
 0x11a   : > { %4770 = vst [vmem:[#allocation11_spill] sm:$0xff] %v3438_v63  ;;  %881 = vperm.xlu1 %2891, %v3165_v6   ;;  %v4744_v63 = vmov 25  }
 0x11c   : > { %1065 = vperm.xlu0 %2902, %v3162_v5  }
 0x11d   : > { %v3444_v47 = vpop.permute.xlu1 %565 }
 0x11e   : > { %4772 = vst [vmem:[#allocation13_spill] sm:$0xff] %v3444_v47  ;;  %2892 = vset.pattern.permute.xlu1 %v4773_v10  ;;  %v3461_v10 = vpop.permute.xlu0 %579 }
 0x11f   : > { %895 = vperm.xlu1 %2892, %v3149_v2   ;;  %4777 = vst [vmem:[#allocation17_spill] sm:$0xff] %v3461_v10 }
 0x120   : > { %2905 = vset.pattern.permute.xlu0 %v4743_v16 }
 0x121   : > { %v3451_v42 = vpop.permute.xlu1 %575  ;;  %1078 = vperm.xlu0 %2905, %v3157_v4  }
 0x122   : > { %4774 = vst [vmem:[#allocation14_spill] sm:$0xff] %v3451_v42  ;;  %v3468_v42 = vpop.permute.xlu0 %592 }
 0x123   : > { %901 = vperm.xlu1 %2892, %v3146_v1   ;;  %4779 = vst [vmem:[#allocation19_spill] sm:$0xff] %v3468_v42 }
 0x125   : > { %1091 = vperm.xlu0 %2905, %v3165_v6  }
 0x126   : > { %v3458_v47 = vpop.permute.xlu1 %589 }
 0x127   : > { %4776 = vst [vmem:[#allocation16_spill] sm:$0xff] %v3458_v47  ;;  %907 = vperm.xlu1 %2892, %v3154_v3   ;;  %v4781_v47 = vmov 19  }
 0x129   : > { %2906 = vset.pattern.permute.xlu0 %v4744_v63  ;;  %v3478_v63 = vpop.permute.xlu0 %605 }
 0x12a   : > { %v3464_v16 = vpop.permute.xlu1 %595  ;;  %1105 = vperm.xlu0 %2906, %v3149_v2   ;;  %4783 = vst [vmem:[#allocation22_spill] sm:$0xff] %v3478_v63 }
 0x12b   : > { %4778 = vst [vmem:[#allocation18_spill] sm:$0xff] %v3464_v16  ;;  %915 = vperm.xlu1 %2892, %v3162_v5   ;;  %v4745_v16 = vmov 26  }
 0x12e   : > { %v3470_v58 = vpop.permute.xlu1 %601  ;;  %1117 = vperm.xlu0 %2906, %v3154_v3  }
 0x12f   : > { %4780 = vst [vmem:[#allocation20_spill] sm:$0xff] %v3470_v58  ;;  %2895 = vset.pattern.permute.xlu1 %v4781_v47  ;;  %v3485_v58 = vpop.permute.xlu0 %619 }
 0x130   : > { %928 = vperm.xlu1 %2895, %v3157_v4   ;;  %4785 = vst [vmem:[#allocation24_spill] sm:$0xff] %v3485_v58  ;;  %v4748_v58 = vmov 28  }
 0x132   : > { %v3475_v10 = vpop.permute.xlu1 %609  ;;  %1125 = vperm.xlu0 %2906, %v3162_v5  }
 0x133   : > { %4782 = vst [vmem:[#allocation21_spill] sm:$0xff] %v3475_v10  ;;  %v4787_v10 = vmov 20   ;;  %v3493_v63 = vpop.permute.xlu0 %631 }
 0x134   : > { %931 = vperm.xlu1 %2895, %v3146_v1   ;;  %4788 = vst [vmem:[#allocation26_spill] sm:$0xff] %v3493_v63 }
 0x136   : > { %2909 = vset.pattern.permute.xlu0 %v4745_v16  ;;  %v4746_v16 = vmov 27  }
 0x137   : > { %v3482_v42 = vpop.permute.xlu1 %622  ;;  %1138 = vperm.xlu0 %2909, %v3157_v4  }
 0x138   : > { %4784 = vst [vmem:[#allocation23_spill] sm:$0xff] %v3482_v42  ;;  %941 = vperm.xlu1 %2895, %v3165_v6   ;;  %v3500_v42 = vpop.permute.xlu0 %639 }
 0x139   : > { %4790 = vst [vmem:[#allocation28_spill] sm:$0xff] %v3500_v42 }
 0x13b   : > { %v3488_v47 = vpop.permute.xlu1 %625  ;;  %1151 = vperm.xlu0 %2909, %v3165_v6  }
 0x13c   : > { %4786 = vst [vmem:[#allocation25_spill] sm:$0xff] %v3488_v47  ;;  %2896 = vset.pattern.permute.xlu1 %v4787_v10  ;;  %v3506_v10 = vpop.permute.xlu0 %652 }
 0x13d   : > { %955 = vperm.xlu1 %2896, %v3149_v2  }
 0x13f   : > { %v3495_v32 = vpop.permute.xlu1 %635  ;;  %2910 = vset.pattern.permute.xlu0 %v4746_v16 }
 0x140   : > { %4789 = vst [vmem:[#allocation27_spill] sm:$0xff] %v3495_v32  ;;  %1165 = vperm.xlu0 %2910, %v3149_v2   ;;  %v283_v32 = vlaneseq  ;;  %v3519_v13 = vpop.permute.xlu0 %665 }
 0x141   : > { %961 = vperm.xlu1 %2896, %v3146_v1  }
 0x142   : > { %v3515_v42 = vand.u32 127, %v283_v32 }
 0x144   : > { %v3502_v47 = vpop.permute.xlu1 %649  ;;  %1177 = vperm.xlu0 %2910, %v3154_v3   ;;  %vm295_vm0 = vcmp.eq.s32.totalorder %v3242_v26, %v3515_v42  ;;  %vm327_vm1 = vcmp.eq.s32.totalorder %v3256_v30, %v3515_v42  ;;  %vm294_vm2 = vcmp.eq.s32.totalorder %v3234_v22, %v3515_v42  ;;  %vm328_vm3 = vcmp.eq.s32.totalorder %v3236_v23, %v3515_v42  ;;  %v3538_v30 = vpop.permute.xlu0 %679 }
 0x145   : > { %4791 = vst [vmem:[#allocation29_spill] sm:$0xff] %v3502_v47  ;;  %967 = vperm.xlu1 %2896, %v3154_v3   ;;  %v4793_v47 = vmov 21   ;;  %vm358_vm4 = vcmp.eq.s32.totalorder %v3281_v40, %v3515_v42  ;;  %v313_v32 = vsel %vm295_vm0, %v3250_v28, 0.0  ;;  %v342_v26 = vsel %vm327_vm1, %v3265_v34, 0.0 }
 0x146   : > { %vm357_vm5 = vcmp.eq.s32.totalorder %v3252_v29, %v3515_v42  ;;  %vm387_vm6 = vcmp.eq.s32.totalorder %v3296_v45, %v3515_v42  ;;  %v312_v22 = vsel %vm294_vm2, %v3226_v19, 0.0  ;;  %v373_v23 = vsel %vm358_vm4, %v3290_v43, 0.0 }
 0x147   : > { %v372_v28 = vsel %vm357_vm5, %v3262_v33, 0.0  ;;  %v345_v40 = vadd.f32 %v342_v26, %v312_v22  ;;  %vm388_vm7 = vcmp.eq.s32.totalorder %v3275_v38, %v3515_v42  ;;  %v402_v29 = vsel %vm387_vm6, %v3305_v49, 0.0 }
 0x148   : > { %v3508_v63 = vpop.permute.xlu1 %655  ;;  %1185 = vperm.xlu0 %2910, %v3162_v5   ;;  %v403_v45 = vsel %vm388_vm7, %v3285_v41, 0.0  ;;  %vm418_vm8 = vcmp.eq.s32.totalorder %v3320_v54, %v3515_v42  ;;  %vm417_vm9 = vcmp.eq.s32.totalorder %v3292_v44, %v3515_v42  ;;  %v3562_v43 = vpop.permute.xlu0 %691  ;;  %vm447_vm10 = vcmp.eq.s32.totalorder %v3334_v59, %v3515_v42 }
 0x149   : > { %4792 = vst [vmem:[#allocation30_spill] sm:$0xff] %v3508_v63  ;;  %975 = vperm.xlu1 %2896, %v3162_v5   ;;  %v375_v33 = vadd.f32 %v372_v28, %v345_v40  ;;  %v432_v38 = vsel %vm417_vm9, %v3303_v48, 0.0  ;;  %vm296_vm11 = vcmp.eq.s32.totalorder %v3222_v18, %v3515_v42  ;;  %vm329_vm12 = vcmp.eq.s32.totalorder %v3240_v24, %v3515_v42  ;;  %v4796_v40 = vld [vmem:[#allocation12_spill] sm:$0xff] }
 0x14a   : > { %v433_v54 = vsel %vm418_vm8, %v3328_v57, 0.0  ;;  %v4794_v44 = vmov 22   ;;  %v344_v48 = vsel %vm329_vm12, %v3273_v37, 0.0  ;;  %vm389_vm13 = vcmp.eq.s32.totalorder %v3279_v39, %v3515_v42 }
 0x14b   : > { %vm448_vm14 = vcmp.eq.s32.totalorder %v3315_v52, %v3515_v42  ;;  %v314_v18 = vsel %vm296_vm11, %v3230_v20, 0.0  ;;  %vm359_vm15 = vcmp.eq.s32.totalorder %v3258_v31, %v3515_v42  ;;  %v462_v24 = vsel %vm447_vm10, %v3356_v9, 0.0 }
 0x14c   : > { %v3512_v16 = vpop.permute.xlu1 %661  ;;  %2913 = vset.pattern.permute.xlu0 %v4748_v58  ;;  %v3049_v58 = vmov 29   ;;  %v463_v57 = vsel %vm448_vm14, %v3326_v56, 0.0  ;;  %v3586_v26 = vpop.permute.xlu0 %699  ;;  %v374_v37 = vsel %vm359_vm15, %v3268_v35, 0.0  ;;  %vm478_vm0 = vcmp.eq.s32.totalorder %v3385_v36, %v3515_v42 }
 0x14d   : > { %2899 = vset.pattern.permute.xlu1 %v4793_v47  ;;  %1198 = vperm.xlu0 %2913, %v3157_v4   ;;  %v343_v47 = vsel %vm328_vm3, %v3246_v27, 0.0  ;;  %vm477_vm1 = vcmp.eq.s32.totalorder %v3336_v60, %v3515_v42  ;;  %v347_v20 = vadd.f32 %v344_v48, %v314_v18  ;;  %v404_v31 = vsel %vm389_vm13, %v3311_v51, 0.0  ;;  %v4802_v48 = vld [vmem:[#allocation16_spill] sm:$0xff]  ;;  %v4804_v18 = vld [vmem:[#allocation13_spill] sm:$0xff] }
 0x14e   : > { %988 = vperm.xlu1 %2899, %v3157_v4   ;;  %v346_v34 = vadd.f32 %v343_v47, %v313_v32  ;;  %v405_v32 = vadd.f32 %v402_v29, %v375_v33  ;;  %v492_v9 = vsel %vm477_vm1, %v3361_v11, 0.0  ;;  %vm507_vm2 = vcmp.eq.s32.totalorder %v3409_v62, %v3515_v42 }
 0x14f   : > { %v377_v35 = vadd.f32 %v374_v37, %v347_v20  ;;  %vm419_vm3 = vcmp.eq.s32.totalorder %v3298_v46, %v3515_v42  ;;  %vm449_vm4 = vcmp.eq.s32.totalorder %v3322_v55, %v3515_v42  ;;  %v493_v51 = vsel %vm478_vm0, %v3402_v21, 0.0 }
 0x150   : > { %v3526_v63 = vpop.permute.xlu1 %669  ;;  %v376_v19 = vadd.f32 %v373_v23, %v346_v34  ;;  %v435_v59 = vadd.f32 %v432_v38, %v405_v32  ;;  %v434_v60 = vsel %vm419_vm3, %v3309_v50, 0.0  ;;  %vm508_vm5 = vcmp.eq.s32.totalorder %v3388_v61, %v3515_v42  ;;  %v3611_v23 = vpop.permute.xlu0 %712  ;;  %v4800_v32 = vld [vmem:[#allocation9_spill] sm:$0xff] }
 0x151   : > { %1211 = vperm.xlu0 %2913, %v3165_v6   ;;  %v407_v36 = vadd.f32 %v404_v31, %v377_v35  ;;  %v522_v62 = vsel %vm507_vm2, %v3416_v12, 0.0  ;;  %v523_v22 = vsel %vm508_vm5, %v3407_v25, 0.0  ;;  %v3050_v46 = vmov 30   ;;  %v4807_v31 = vld [vmem:[#allocation10_spill] sm:$0xff] }
 0x152   : > { %991 = vperm.xlu1 %2899, %v3146_v1   ;;  %v406_v49 = vadd.f32 %v403_v45, %v376_v19  ;;  %v465_v56 = vadd.f32 %v462_v24, %v435_v59  ;;  %v464_v55 = vsel %vm449_vm4, %v3368_v14, 0.0  ;;  %vm538_vm6 = vcmp.eq.s32.totalorder %v3431_v15, %v3515_v42  ;;  %v4803_v59 = vld [vmem:[#allocation8_spill] sm:$0xff] }
 0x153   : > { %vm537_vm7 = vcmp.eq.s32.totalorder %v3413_v7, %v3515_v42  ;;  %v437_v50 = vadd.f32 %v434_v60, %v407_v36  ;;  %vm479_vm8 = vcmp.eq.s32.totalorder %v3349_v0, %v3515_v42  ;;  %vm567_vm9 = vcmp.eq.s32.totalorder %v3446_v8, %v3515_v42  ;;  %v4795_v7 = vld [vmem:[#allocation7_spill] sm:$0xff]  ;;  %v4799_v8 = vld [vmem:[#allocation14_spill] sm:$0xff]  ;;  %v4805_v24 = vld [vmem:[#allocation24_spill] sm:$0xff] }
 0x154   : > { %v436_v39 = vadd.f32 %v433_v54, %v406_v49  ;;  %v495_v11 = vadd.f32 %v492_v9, %v465_v56  ;;  %v552_v61 = vsel %vm537_vm7, %v3426_v53, 0.0  ;;  %v494_v14 = vsel %vm479_vm8, %v3375_v17, 0.0  ;;  %v4797_v0 = vld [vmem:[#allocation11_spill] sm:$0xff]  ;;  %v3640_v38 = vpop.permute.xlu0 %725  ;;  %v4809_v60 = vld [vmem:[#allocation22_spill] sm:$0xff] }
 0x155   : > { %v3550_v27 = vpop.permute.xlu1 %682  ;;  %2914 = vset.pattern.permute.xlu0 %v3049_v58  ;;  %v467_v15 = vadd.f32 %v464_v55, %v437_v50  ;;  %vm509_vm10 = vcmp.eq.s32.totalorder %v4795_v7, %v3515_v42  ;;  %v553_v34 = vsel %vm538_vm6, %v4796_v40, 0.0  ;;  %vm568_vm11 = vcmp.eq.s32.totalorder %v4797_v0, %v3515_v42  ;;  %v4798_v17 = vld [vmem:[#allocation15_spill] sm:$0xff]  ;;  %v4816_v40 = vld [vmem:[#allocation21_spill] sm:$0xff] }
 0x156   : > { %1001 = vperm.xlu1 %2899, %v3165_v6   ;;  %1225 = vperm.xlu0 %2914, %v3149_v2   ;;  %v466_v47 = vadd.f32 %v463_v57, %v436_v39  ;;  %v525_v12 = vadd.f32 %v522_v62, %v495_v11  ;;  %v582_v19 = vsel %vm567_vm9, %v4798_v17, 0.0  ;;  %v583_v33 = vsel %vm568_vm11, %v4799_v8, 0.0  ;;  %v4806_v57 = vld [vmem:[#allocation20_spill] sm:$0xff]  ;;  %v4810_v62 = vld [vmem:[#allocation17_spill] sm:$0xff] }
 0x157   : > { %v497_v53 = vadd.f32 %v494_v14, %v467_v15  ;;  %v524_v49 = vsel %vm509_vm10, %v4800_v32, 0.0  ;;  %vm597_vm13 = vcmp.eq.s32.totalorder %v4802_v48, %v3515_v42  ;;  %vm539_vm14 = vcmp.eq.s32.totalorder %v4803_v59, %v3515_v42  ;;  %v4813_v14 = vld [vmem:[#allocation18_spill] sm:$0xff] }
 0x158   : > { %v496_v21 = vadd.f32 %v493_v51, %v466_v47  ;;  %v555_v45 = vadd.f32 %v552_v61, %v525_v12  ;;  %vm569_vm15 = vcmp.eq.s32.totalorder %v4804_v18, %v3515_v42  ;;  %vm627_vm0 = vcmp.eq.s32.totalorder %v4805_v24, %v3515_v42  ;;  %v740_v36 = vpop.permute.xlu0 %739  ;;  %v4812_v61 = vld [vmem:[#allocation23_spill] sm:$0xff] }
 0x159   : > { %v3566_v41 = vpop.permute.xlu1 %685  ;;  %v612_v37 = vsel %vm597_vm13, %v4806_v57, 0.0  ;;  %v554_v9 = vsel %vm539_vm14, %v4807_v31, 0.0  ;;  %v4808_v47 = vmov 23   ;;  %v3051_v35 = vmov 31   ;;  %v3707_v57 = vld [vmem:[%s3137_s19] sm:$0xff] }
 0x15a   : > { %2900 = vset.pattern.permute.xlu1 %v4794_v44  ;;  %1237 = vperm.xlu0 %2914, %v3154_v3   ;;  %v526_v25 = vadd.f32 %v523_v22, %v496_v21  ;;  %v4801_v44 = vld [vmem:[#allocation19_spill] sm:$0xff]  ;;  %v585_v20 = vadd.f32 %v582_v19, %v555_v45  ;;  %v527_v51 = vadd.f32 %v524_v49, %v497_v53  ;;  %v584_v22 = vsel %vm569_vm15, %v4810_v62, 0.0  ;;  %v4811_v21 = vld [vmem:[#allocation26_spill] sm:$0xff]  ;;  %v4817_v45 = vld [vmem:[#allocation29_spill] sm:$0xff] }
 0x15b   : > { %1015 = vperm.xlu1 %2900, %v3149_v2   ;;  %vm598_vm12 = vcmp.eq.s32.totalorder %v4801_v44, %v3515_v42  ;;  %v642_v50 = vsel %vm627_vm0, %v4811_v21, 0.0  ;;  %vm628_vm1 = vcmp.eq.s32.totalorder %v4812_v61, %v3515_v42  ;;  %vm599_vm2 = vcmp.eq.s32.totalorder %v4813_v14, %v3515_v42  ;;  %v4818_v19 = vld [vmem:[#allocation28_spill] sm:$0xff]  ;;  %v4819_v49 = vld [vmem:[#allocation30_spill] sm:$0xff]  ;;  %4821 = vst [vmem:[#allocation7_spill] sm:$0xff] %v3707_v57 }
 0x15c   : > { %v556_v54 = vadd.f32 %v553_v34, %v526_v25  ;;  %v613_v11 = vsel %vm598_vm12, %v4809_v60, 0.0  ;;  %v615_v55 = vadd.f32 %v612_v37, %v585_v20  ;;  %v557_v12 = vadd.f32 %v554_v9, %v527_v51  ;;  %v4814_v25 = vld [vmem:[#allocation25_spill] sm:$0xff]  ;;  %v4823_v51 = vld [vmem:[#allocation3_spill] sm:$0xff]  ;;  %v3720_v62 = vld [vmem:[%s3143_s22] sm:$0xff] }
 0x15d   : > { %v3593_v52 = vpop.permute.xlu1 %695  ;;  %vm629_vm3 = vcmp.eq.s32.totalorder %v4814_v25, %v3515_v42  ;;  %v614_v34 = vsel %vm599_vm2, %v4816_v40, 0.0  ;;  %vm658_vm4 = vcmp.eq.s32.totalorder %v3506_v10, %v3515_v42  ;;  %vm657_vm5 = vcmp.eq.s32.totalorder %v4817_v45, %v3515_v42  ;;  %4824 = vst [vmem:[#allocation11_spill] sm:$0xff] %v3720_v62  ;;  %v3730_v21 = vld [vmem:[%s3143_s22 + $0x10] sm:$0xff] }
 0x15e   : > { %1245 = vperm.xlu0 %2914, %v3162_v5   ;;  %v586_v56 = vadd.f32 %v583_v33, %v556_v54  ;;  %v587_v0 = vadd.f32 %v584_v22, %v557_v12  ;;  %v672_v53 = vsel %vm657_vm5, %v3512_v16, 0.0  ;;  %v645_v17 = vadd.f32 %v642_v50, %v615_v55  ;;  %v752_v16 = vpop.permute.xlu0 %751  ;;  %v4825_v22 = vld [vmem:[#allocation5_spill] sm:$0xff]  ;;  %4826 = vst [vmem:[#allocation15_spill] sm:$0xff] %v3730_v21  ;;  %v3737_v12 = vld [vmem:[%s3137_s19 + $0x8] sm:$0xff] }
 0x15f   : > { %1021 = vperm.xlu1 %2900, %v3146_v1   ;;  %v644_v8 = vsel %vm629_vm3, %v4818_v19, 0.0  ;;  %vm687_vm6 = vcmp.eq.s32.totalorder %v3538_v30, %v3515_v42  ;;  %v673_v10 = vsel %vm658_vm4, %v3519_v13, 0.0  ;;  %vm659_vm7 = vcmp.eq.s32.totalorder %v4819_v49, %v3515_v42  ;;  %4828 = vst [vmem:[#allocation14_spill] sm:$0xff] %v3737_v12 }
 0x160   : > { %v616_v7 = vadd.f32 %v613_v11, %v586_v56  ;;  %v617_v32 = vadd.f32 %v614_v34, %v587_v0  ;;  %vm689_vm8 = vcmp.eq.s32.totalorder %v3566_v41, %v3515_v42  ;;  %vm688_vm9 = vcmp.eq.s32.totalorder %v3550_v27, %v3515_v42 }
 0x161   : > { %v702_v30 = vsel %vm687_vm6, %v3562_v43, 0.0  ;;  %v703_v48 = vsel %vm688_vm9, %v3593_v52, 0.0  ;;  %v704_v41 = vsel %vm689_vm8, %v3586_v26, 0.0  ;;  %vm718_vm10 = vcmp.eq.s32.totalorder %v3611_v23, %v3515_v42 }
 0x162   : > { %v3613_v28 = vpop.permute.xlu1 %709  ;;  %2917 = vset.pattern.permute.xlu0 %v3050_v46  ;;  %v647_v44 = vadd.f32 %v644_v8, %v617_v32  ;;  %v760_v43 = vpop.permute.xlu0 %759  ;;  %vm747_vm13 = vcmp.eq.s32.totalorder %v740_v36, %v3515_v42  ;;  %v733_v18 = vsel %vm718_vm10, %v3640_v38, 0.0  ;;  %v4820_v23 = vmov 24  }
 0x163   : > { %1027 = vperm.xlu1 %2900, %v3154_v3   ;;  %1258 = vperm.xlu0 %2917, %v3157_v4   ;;  %vm717_vm11 = vcmp.eq.s32.totalorder %v3613_v28, %v3515_v42  ;;  %vm775_vm0 = vcmask 654336   ;;  %v4827_v61 = vmov 25   ;;  %v4832_v49 = vmov 28  }
 0x166   : > { %v3632_v29 = vpop.permute.xlu1 %715  ;;  %v3758_v34 = vpop.permute.xlu0 %838 }
 0x167   : > { %1035 = vperm.xlu1 %2900, %v3162_v5   ;;  %1271 = vperm.xlu0 %2917, %v3165_v6   ;;  %vm719_vm12 = vcmp.eq.s32.totalorder %v3632_v29, %v3515_v42  ;;  %v762_v29 = vsel %vm747_vm13, %v752_v16, 0.0 }
 0x16a   : > { %v722_v39 = vpop.permute.xlu1 %721  ;;  %v3764_v0 = vpop.permute.xlu0 %851 }
 0x16b   : > { %2903 = vset.pattern.permute.xlu1 %v4808_v47  ;;  %2918 = vset.pattern.permute.xlu0 %v3051_v35  ;;  %v732_v27 = vsel %vm717_vm11, %v722_v39, 0.0  ;;  %v3712_v47 = vld [vmem:[%s3137_s19 + $0x10] sm:$0xff] }
 0x16c   : > { %1048 = vperm.xlu1 %2903, %v3157_v4   ;;  %1285 = vperm.xlu0 %2918, %v3149_v2   ;;  %v4815_v4 = vld [vmem:[#allocation27_spill] sm:$0xff]  ;;  %4822 = vst [vmem:[#allocation12_spill] sm:$0xff] %v3712_v47 }
 0x16d   : > { %v643_v2 = vsel %vm628_vm1, %v4815_v4, 0.0  ;;  %v3746_v4 = vld [vmem:[%s3143_s22 + $0x8] sm:$0xff]  ;;  %vm844_vm1 = vcmp.eq.s32.totalorder %v3758_v34, %v3515_v42 }
 0x16e   : > { %v730_v15 = vpop.permute.xlu1 %729  ;;  %v646_v33 = vadd.f32 %v643_v2, %v616_v7  ;;  %4829 = vst [vmem:[#allocation9_spill] sm:$0xff] %v3746_v4  ;;  %v3772_v8 = vpop.permute.xlu0 %865 }
 0x16f   : > { %vm873_vm2 = vcmp.eq.s32.totalorder %v3772_v8, %v3515_v42 }
 0x170   : > { %1051 = vperm.xlu1 %2903, %v3146_v1   ;;  %1297 = vperm.xlu0 %2918, %v3154_v3   ;;  %v675_v1 = vadd.f32 %v672_v53, %v645_v17  ;;  %v674_v3 = vsel %vm659_vm7, %v3526_v63, 0.0  ;;  %v676_v13 = vadd.f32 %v673_v10, %v646_v33  ;;  %v4831_v17 = vmov 27  }
 0x171   : > { %v677_v63 = vadd.f32 %v674_v3, %v647_v44 }
 0x172   : > { %v705_v52 = vadd.f32 %v702_v30, %v675_v1  ;;  %v3778_v32 = vpop.permute.xlu0 %877 }
 0x173   : > { %v743_v54 = vpop.permute.xlu1 %742  ;;  %v707_v26 = vadd.f32 %v704_v41, %v677_v63 }
 0x174   : > { %1061 = vperm.xlu1 %2903, %v3165_v6   ;;  %1305 = vperm.xlu0 %2918, %v3162_v5   ;;  %v706_v6 = vadd.f32 %v703_v48, %v676_v13  ;;  %v734_v5 = vsel %vm719_vm12, %v730_v15, 0.0  ;;  %v735_v28 = vadd.f32 %v732_v27, %v705_v52  ;;  %vm748_vm15 = vcmp.eq.s32.totalorder %v743_v54, %v3515_v42 }
 0x175   : > { %v737_v37 = vadd.f32 %v734_v5, %v707_v26  ;;  %v4830_v15 = vmov 26  }
 0x176   : > { %v736_v39 = vadd.f32 %v733_v18, %v706_v6  ;;  %v765_v9 = vadd.f32 %v762_v29, %v735_v28  ;;  %v3783_v16 = vpop.permute.xlu0 %885 }
 0x177   : > { %v746_v59 = vpop.permute.xlu1 %745 }
 0x178   : > { %vm749_vm14 = vcmp.eq.s32.totalorder %v746_v59, %v3515_v42  ;;  %2904 = vset.pattern.permute.xlu1 %v4820_v23  ;;  %1323 = vrot.lane.b32.xlu0 %v4823_v51, %s3052_s27 }
 0x179   : > { %v764_v24 = vsel %vm749_vm14, %v760_v43, 0.0  ;;  %1075 = vperm.xlu1 %2904, %v3707_v57  }
 0x17a   : > { %v767_v31 = vadd.f32 %v764_v24, %v737_v37  ;;  %v3789_v3 = vpop.permute.xlu0 %898 }
 0x17b   : > { %v756_v20 = vpop.permute.xlu1 %755  ;;  %vm904_vm5 = vcmp.eq.s32.totalorder %v3789_v3, %v3515_v42 }
 0x17c   : > { %v763_v38 = vsel %vm748_vm15, %v756_v20, 0.0  ;;  %v769_v11 = vpack.c.bf16 %v767_v31, %v767_v31  ;;  %1327 = vrot.lane.b32.xlu0 %v4825_v22, %s3052_s27  ;;  %v4841_v31 = vld [vmem:[#allocation4_spill] sm:$0xff] }
 0x17d   : > { %v766_v56 = vadd.f32 %v763_v38, %v736_v39  ;;  %1081 = vperm.xlu1 %2904, %v3712_v47  }
 0x17e   : > { %v3796_v30 = vpop.permute.xlu0 %911 }
 0x17f   : > { %v768_v60 = vpack.c.bf16 %v766_v56, %v765_v9  ;;  %v4842_v56 = vld [vmem:[#allocation6_spill] sm:$0xff] }
 0x180   : > { %v3717_v36 = vpop.permute.xlu1 %835 }
 0x181   : > { %1087 = vperm.xlu1 %2904, %v3720_v62   ;;  %2714 = vmatprep.mubr.msk.bf16.mxu0 %vm775_vm0, %v768_v60  ;;  %vm843_vm3 = vcmp.eq.s32.totalorder %v3717_v36, %v3515_v42 }
 0x182   : > { %2715 = vmatmul.mubr.msk.bf16.vlgmr.msra.gmra.mrb[0].mxu0 %vm775_vm0, %v769_v11  ;;  %v3801_v13 = vpop.permute.xlu0 %925 }
 0x183   : > { %vm933_vm7 = vcmp.eq.s32.totalorder %v3801_v13, %v3515_v42 }
 0x184   : > { %v3727_v55 = vpop.permute.xlu1 %841 }
 0x185   : > { %1095 = vperm.xlu1 %2904, %v3730_v21  }
 0x186   : > { %v3808_v63 = vpop.permute.xlu0 %937 }
 0x187   : > { %v948_v3 = vsel %vm933_vm7, %v3808_v63, 0.0 }
 0x188   : > { %v3733_v50 = vpop.permute.xlu1 %847 }
 0x189   : > { %2907 = vset.pattern.permute.xlu1 %v4827_v61 }
 0x18a   : > { %1108 = vperm.xlu1 %2907, %v3737_v12   ;;  %v3813_v43 = vpop.permute.xlu0 %945 }
 0x18c   : > { %v3740_v14 = vpop.permute.xlu1 %855 }
 0x18e   : > { %1111 = vperm.xlu1 %2907, %v3712_v47  }
 0x191   : > { %v3743_v25 = vpop.permute.xlu1 %868 }
 0x192   : > { %1121 = vperm.xlu1 %2907, %v3746_v4   ;;  %vm874_vm4 = vcmp.eq.s32.totalorder %v3743_v25, %v3515_v42 }
 0x195   : > { %v3749_v2 = vpop.permute.xlu1 %871 }
 0x196   : > { %2908 = vset.pattern.permute.xlu1 %v4830_v15 }
 0x197   : > { %1135 = vperm.xlu1 %2908, %v3707_v57  }
 0x199   : > { %v3753_v7 = vpop.permute.xlu1 %881 }
 0x19b   : > { %1141 = vperm.xlu1 %2908, %v3712_v47  }
 0x19e   : > { %v3756_v40 = vpop.permute.xlu1 %895 }
 0x19f   : > { %1147 = vperm.xlu1 %2908, %v3720_v62   ;;  %vm903_vm6 = vcmp.eq.s32.totalorder %v3756_v40, %v3515_v42 }
 0x1a2   : > { %v3761_v45 = vpop.permute.xlu1 %901 }
 0x1a3   : > { %1155 = vperm.xlu1 %2908, %v3730_v21  }
 0x1a6   : > { %v3766_v53 = vpop.permute.xlu1 %907 }
 0x1a7   : > { %2911 = vset.pattern.permute.xlu1 %v4831_v17  ;;  %v918_v36 = vsel %vm903_vm6, %v3766_v53, 0.0 }
 0x1a8   : > { %1168 = vperm.xlu1 %2911, %v3737_v12  }
 0x1aa   : > { %v3770_v19 = vpop.permute.xlu1 %915 }
 0x1ac   : > { %1171 = vperm.xlu1 %2911, %v3712_v47  }
 0x1af   : > { %v3775_v33 = vpop.permute.xlu1 %928 }
 0x1b0   : > { %1181 = vperm.xlu1 %2911, %v3746_v4   ;;  %vm934_vm8 = vcmp.eq.s32.totalorder %v3775_v33, %v3515_v42 }
 0x1b3   : > { %v3780_v10 = vpop.permute.xlu1 %931 }
 0x1b4   : > { %2912 = vset.pattern.permute.xlu1 %v4832_v49 }
 0x1b5   : > { %1195 = vperm.xlu1 %2912, %v3707_v57  }
 0x1b7   : > { %v3786_v1 = vpop.permute.xlu1 %941 }
 0x1b8   : > { %v949_v40 = vsel %vm934_vm8, %v3786_v1, 0.0 }
 0x1b9   : > { %1201 = vperm.xlu1 %2912, %v3712_v47  }
 0x1bc   : > { %v3791_v54 = vpop.permute.xlu1 %955 }
 0x1bd   : > { %1207 = vperm.xlu1 %2912, %v3720_v62   ;;  %vm963_vm10 = vcmp.eq.s32.totalorder %v3791_v54, %v3515_v42 }
 0x1c0   : > { %v3794_v44 = vpop.permute.xlu1 %961 }
 0x1c1   : > { %4833 = vst [vmem:[#allocation19_spill] sm:$0xff] %v3794_v44  ;;  %1215 = vperm.xlu1 %2912, %v3730_v21   ;;  %v889_v44 = vsel %vm874_vm4, %v3753_v7, 0.0  ;;  %vm830_vm4 = vcmask 64512  }
 0x1c4   : > { %v3799_v48 = vpop.permute.xlu1 %967 }
 0x1c5   : > { %2915 = vset.pattern.permute.xlu1 %v3049_v58  ;;  %v3819_v58 = vpop.permute.xlu0 %958 }
 0x1c6   : > { %1228 = vperm.xlu1 %2915, %v3737_v12   ;;  %vm964_vm9 = vcmp.eq.s32.totalorder %v3819_v58, %v3515_v42 }
 0x1c8   : > { %v3805_v41 = vpop.permute.xlu1 %975 }
 0x1c9   : > { %4834 = vst [vmem:[#allocation16_spill] sm:$0xff] %v3805_v41  ;;  %v3826_v59 = vpop.permute.xlu0 %971 }
 0x1ca   : > { %1231 = vperm.xlu1 %2915, %v3712_v47   ;;  %v979_v1 = vsel %vm964_vm9, %v3826_v59, 0.0  ;;  %vm875_vm9 = vcmp.eq.s32.totalorder %v3749_v2, %v3515_v42 }
 0x1cd   : > { %v3810_v27 = vpop.permute.xlu1 %988  ;;  %v3831_v18 = vpop.permute.xlu0 %985 }
 0x1ce   : > { %1241 = vperm.xlu1 %2915, %v3746_v4   ;;  %vm993_vm11 = vcmp.eq.s32.totalorder %v3831_v18, %v3515_v42  ;;  %vm994_vm12 = vcmp.eq.s32.totalorder %v3810_v27, %v3515_v42 }
 0x1d1   : > { %v3815_v52 = vpop.permute.xlu1 %991  ;;  %v3838_v23 = vpop.permute.xlu0 %997 }
 0x1d2   : > { %4835 = vst [vmem:[#allocation8_spill] sm:$0xff] %v3815_v52  ;;  %2916 = vset.pattern.permute.xlu1 %v3050_v46  ;;  %v888_v52 = vsel %vm873_vm2, %v3778_v32, 0.0  ;;  %v1008_v63 = vsel %vm993_vm11, %v3838_v23, 0.0 }
 0x1d3   : > { %1255 = vperm.xlu1 %2916, %v3707_v57  }
 0x1d5   : > { %v3821_v6 = vpop.permute.xlu1 %1001  ;;  %v3843_v24 = vpop.permute.xlu0 %1005 }
 0x1d6   : > { %4838 = vst [vmem:[#allocation20_spill] sm:$0xff] %v3843_v24  ;;  %v1009_v54 = vsel %vm994_vm12, %v3821_v6, 0.0  ;;  %vm845_vm12 = vcmp.eq.s32.totalorder %v3727_v55, %v3515_v42 }
 0x1d7   : > { %1261 = vperm.xlu1 %2916, %v3712_v47  }
 0x1d9   : > { %v3848_v37 = vpop.permute.xlu0 %1018 }
 0x1da   : > { %v3824_v5 = vpop.permute.xlu1 %1015  ;;  %vm1024_vm13 = vcmp.eq.s32.totalorder %v3848_v37, %v3515_v42 }
 0x1db   : > { %1267 = vperm.xlu1 %2916, %v3720_v62   ;;  %vm1023_vm14 = vcmp.eq.s32.totalorder %v3824_v5, %v3515_v42 }
 0x1dd   : > { %v3858_v38 = vpop.permute.xlu0 %1031 }
 0x1de   : > { %v3829_v26 = vpop.permute.xlu1 %1021  ;;  %v1039_v6 = vsel %vm1024_vm13, %v3858_v38, 0.0  ;;  %vm905_vm13 = vcmp.eq.s32.totalorder %v3761_v45, %v3515_v42 }
 0x1df   : > { %4836 = vst [vmem:[#allocation13_spill] sm:$0xff] %v3829_v26  ;;  %1275 = vperm.xlu1 %2916, %v3730_v21   ;;  %v920_v55 = vsel %vm905_vm13, %v3770_v19, 0.0 }
 0x1e1   : > { %v3864_v60 = vpop.permute.xlu0 %1045 }
 0x1e2   : > { %v3834_v46 = vpop.permute.xlu1 %1027  ;;  %vm1053_vm15 = vcmp.eq.s32.totalorder %v3864_v60, %v3515_v42 }
 0x1e3   : > { %2919 = vset.pattern.permute.xlu1 %v3051_v35  ;;  %v4840_v35 = vld [vmem:[#allocation2_spill] sm:$0xff]  ;;  %v1038_v59 = vsel %vm1023_vm14, %v3834_v46, 0.0 }
 0x1e4   : > { %1288 = vperm.xlu1 %2919, %v3737_v12  }
 0x1e5   : > { %v3868_v61 = vpop.permute.xlu0 %1057 }
 0x1e6   : > { %v3840_v28 = vpop.permute.xlu1 %1035  ;;  %v1068_v5 = vsel %vm1053_vm15, %v3868_v61, 0.0 }
 0x1e7   : > { %4837 = vst [vmem:[#allocation24_spill] sm:$0xff] %v3840_v28 }
 0x1e8   : > { %1291 = vperm.xlu1 %2919, %v3712_v47  }
 0x1e9   : > { %v3872_v17 = vpop.permute.xlu0 %1065 }
 0x1ea   : > { %4844 = vst [vmem:[#allocation17_spill] sm:$0xff] %v3872_v17 }
 0x1eb   : > { %v3845_v29 = vpop.permute.xlu1 %1048 }
 0x1ec   : > { %1301 = vperm.xlu1 %2919, %v3746_v4  }
 0x1ef   : > { %v3850_v39 = vpop.permute.xlu1 %1051 }
 0x1f0   : > { %4839 = vst [vmem:[#allocation10_spill] sm:$0xff] %v3850_v39  ;;  %1321 = vrot.lane.b32.xlu1 %v4840_v35, %s3052_s27 }
 0x1f3   : > { %v3854_v20 = vpop.permute.xlu1 %1061 }
 0x1f4   : > { %1325 = vrot.lane.b32.xlu1 %v4841_v31, %s3052_s27  ;;  %v3876_v31 = vpop.permute.xlu0 %1078 }
 0x1f5   : > { %vm1084_vm2 = vcmp.eq.s32.totalorder %v3876_v31, %v3515_v42 }
 0x1f8   : > { %v3860_v9 = vpop.permute.xlu1 %1075  ;;  %1329 = vrot.lane.b32.xlu1 %v4842_v56, %s3052_s27  ;;  %v3882_v51 = vpop.permute.xlu0 %1091 }
 0x1f9   : > { %v1099_v31 = vsel %vm1084_vm2, %v3882_v51, 0.0 }
 0x1fc   : > { %v3866_v11 = vpop.permute.xlu1 %1081  ;;  %v3886_v21 = vpop.permute.xlu0 %1105 }
 0x1fd   : > { %4843 = vst [vmem:[#allocation22_spill] sm:$0xff] %v3866_v11 }
 0x200   : > { %v3870_v15 = vpop.permute.xlu1 %1087  ;;  %v3890_v4 = vpop.permute.xlu0 %1117 }
 0x204   : > { %v3874_v49 = vpop.permute.xlu1 %1095  ;;  %v3894_v12 = vpop.permute.xlu0 %1125 }
 0x205   : > { %4845 = vst [vmem:[#allocation26_spill] sm:$0xff] %v3874_v49  ;;  %4848 = vst [vmem:[#allocation25_spill] sm:$0xff] %v3894_v12 }
 0x208   : > { %v3900_v11 = vpop.permute.xlu0 %1138 }
 0x209   : > { %v3878_v35 = vpop.permute.xlu1 %1108  ;;  %vm1144_vm7 = vcmp.eq.s32.totalorder %v3900_v11, %v3515_v42 }
 0x20a   : > { %vm1114_vm6 = vcmp.eq.s32.totalorder %v3878_v35, %v3515_v42 }
 0x20c   : > { %v3904_v17 = vpop.permute.xlu0 %1151 }
 0x20d   : > { %v3880_v22 = vpop.permute.xlu1 %1111 }
 0x20e   : > { %4846 = vst [vmem:[#allocation23_spill] sm:$0xff] %v3880_v22 }
 0x210   : > { %v3908_v39 = vpop.permute.xlu0 %1165 }
 0x211   : > { %v3884_v56 = vpop.permute.xlu1 %1121 }
 0x214   : > { %v3912_v24 = vpop.permute.xlu0 %1177 }
 0x216   : > { %v3888_v62 = vpop.permute.xlu1 %1135 }
 0x217   : > { %vm1143_vm8 = vcmp.eq.s32.totalorder %v3888_v62, %v3515_v42 }
 0x218   : > { %v3916_v12 = vpop.permute.xlu0 %1185 }
 0x219   : > { %4851 = vst [vmem:[#allocation29_spill] sm:$0xff] %v3916_v12  ;;  %v859_v12 = vsel %vm844_vm1, %v3764_v0, 0.0  ;;  %v919_v0 = vsel %vm904_vm5, %v3796_v30, 0.0  ;;  %vm1054_vm1 = vcmp.eq.s32.totalorder %v3845_v29, %v3515_v42  ;;  %vm1113_vm5 = vcmp.eq.s32.totalorder %v3886_v21, %v3515_v42 }
 0x21a   : > { %v3892_v47 = vpop.permute.xlu1 %1141  ;;  %v892_v25 = vadd.f32 %v889_v44, %v859_v12  ;;  %v978_v44 = vsel %vm963_vm10, %v3799_v48, 0.0  ;;  %v1128_v21 = vsel %vm1113_vm5, %v3890_v4, 0.0  ;;  %vm1173_vm10 = vcmp.eq.s32.totalorder %v3908_v39, %v3515_v42 }
 0x21b   : > { %4847 = vst [vmem:[#allocation18_spill] sm:$0xff] %v3892_v47  ;;  %v1188_v11 = vsel %vm1173_vm10, %v3912_v24, 0.0 }
 0x21c   : > { %v922_v53 = vadd.f32 %v919_v0, %v892_v25 }
 0x21e   : > { %v3896_v57 = vpop.permute.xlu1 %1147  ;;  %v952_v13 = vadd.f32 %v949_v40, %v922_v53 }
 0x21f   : > { %v1158_v35 = vsel %vm1143_vm8, %v3896_v57, 0.0  ;;  %v890_v57 = vsel %vm875_vm9, %v3783_v16, 0.0 }
 0x222   : > { %v3898_v49 = vpop.permute.xlu1 %1155 }
 0x223   : > { %4849 = vst [vmem:[#allocation27_spill] sm:$0xff] %v3898_v49 }
 0x227   : > { %v3902_v22 = vpop.permute.xlu1 %1168 }
 0x228   : > { %vm1174_vm11 = vcmp.eq.s32.totalorder %v3902_v22, %v3515_v42  ;;  %v860_v22 = vsel %vm845_vm12, %v3740_v14, 0.0 }
 0x22b   : > { %v3906_v28 = vpop.permute.xlu1 %1171 }
 0x22c   : > { %4850 = vst [vmem:[#allocation21_spill] sm:$0xff] %v3906_v28  ;;  %v3926_v28 = vpop.permute.xlu0 %1198 }
 0x22d   : > { %vm1204_vm14 = vcmp.eq.s32.totalorder %v3926_v28, %v3515_v42 }
 0x22f   : > { %v3910_v26 = vpop.permute.xlu1 %1181 }
 0x230   : > { %v1189_v2 = vsel %vm1174_vm11, %v3910_v26, 0.0  ;;  %v893_v26 = vadd.f32 %v890_v57, %v860_v22  ;;  %v4867_v22 = vld [vmem:[#allocation27_spill] sm:$0xff] }
 0x234   : > { %v3914_v47 = vpop.permute.xlu1 %1195 }
 0x235   : > { %vm1203_vm15 = vcmp.eq.s32.totalorder %v3914_v47, %v3515_v42 }
 0x238   : > { %v3918_v41 = vpop.permute.xlu1 %1201 }
 0x239   : > { %4852 = vst [vmem:[#allocation28_spill] sm:$0xff] %v3918_v41  ;;  %v858_v41 = vsel %vm843_vm3, %v3733_v50, 0.0  ;;  %v3945_v50 = vpop.permute.xlu0 %1211  ;;  %vm1083_vm3 = vcmp.eq.s32.totalorder %v3860_v9, %v3515_v42 }
 0x23a   : > { %v891_v8 = vadd.f32 %v888_v52, %v858_v41  ;;  %v982_v52 = vadd.f32 %v979_v1, %v952_v13  ;;  %v1098_v29 = vsel %vm1083_vm3, %v3870_v15, 0.0  ;;  %v1219_v28 = vsel %vm1204_vm14, %v3945_v50, 0.0 }
 0x23b   : > { %v923_v13 = vadd.f32 %v920_v55, %v893_v26  ;;  %v4868_v26 = vld [vmem:[#allocation29_spill] sm:$0xff] }
 0x23c   : > { %v3920_v49 = vpop.permute.xlu1 %1207  ;;  %v921_v7 = vadd.f32 %v918_v36, %v891_v8  ;;  %v1012_v27 = vadd.f32 %v1009_v54, %v982_v52  ;;  %v1069_v36 = vsel %vm1054_vm1, %v3854_v20, 0.0  ;;  %vm935_vm1 = vcmp.eq.s32.totalorder %v3780_v10, %v3515_v42  ;;  %v4853_v10 = vld [vmem:[#allocation19_spill] sm:$0xff]  ;;  %v4856_v54 = vld [vmem:[#allocation20_spill] sm:$0xff] }
 0x23d   : > { %v3958_v12 = vpop.permute.xlu0 %1225  ;;  %v1218_v16 = vsel %vm1203_vm15, %v3920_v49, 0.0  ;;  %v950_v47 = vsel %vm935_vm1, %v3813_v43, 0.0  ;;  %v4854_v49 = vld [vmem:[#allocation8_spill] sm:$0xff] }
 0x23e   : > { %v951_v30 = vadd.f32 %v948_v3, %v921_v7  ;;  %v1042_v46 = vadd.f32 %v1039_v6, %v1012_v27  ;;  %v1129_v7 = vsel %vm1114_vm6, %v3884_v56, 0.0  ;;  %v1159_v56 = vsel %vm1144_vm7, %v3904_v17, 0.0  ;;  %v4857_v6 = vld [vmem:[#allocation13_spill] sm:$0xff] }
 0x23f   : > { %vm1233_vm2 = vcmp.eq.s32.totalorder %v3958_v12, %v3515_v42  ;;  %vm995_vm5 = vcmp.eq.s32.totalorder %v4854_v49, %v3515_v42  ;;  %v953_v43 = vadd.f32 %v950_v47, %v923_v13  ;;  %vm1025_vm9 = vcmp.eq.s32.totalorder %v4857_v6, %v3515_v42 }
 0x240   : > { %v3936_v34 = vpop.permute.xlu1 %1215  ;;  %v981_v41 = vadd.f32 %v978_v44, %v951_v30  ;;  %v1072_v38 = vadd.f32 %v1069_v36, %v1042_v46  ;;  %v1010_v52 = vsel %vm995_vm5, %v4856_v54, 0.0  ;;  %v4859_v36 = vld [vmem:[#allocation24_spill] sm:$0xff]  ;;  %v4871_v54 = vld [vmem:[#allocation14_spill] sm:$0xff]  ;;  %v3057_v6 = vmov 35  }
 0x241   : > { %v3974_v48 = vpop.permute.xlu0 %1237  ;;  %vm1402_vm5 = vcmask 130112  }
 0x242   : > { %v1011_v18 = vadd.f32 %v1008_v63, %v981_v41  ;;  %v1102_v51 = vadd.f32 %v1099_v31, %v1072_v38  ;;  %v1248_v1 = vsel %vm1233_vm2, %v3974_v48, 0.0  ;;  %v4855_v41 = vld [vmem:[#allocation16_spill] sm:$0xff]  ;;  %v4860_v38 = vld [vmem:[#allocation17_spill] sm:$0xff] }
 0x244   : > { %v1041_v23 = vadd.f32 %v1038_v59, %v1011_v18  ;;  %v1132_v4 = vadd.f32 %v1129_v7, %v1102_v51 }
 0x245   : > { %v3950_v32 = vpop.permute.xlu1 %1228  ;;  %v3984_v37 = vpop.permute.xlu0 %1245 }
 0x246   : > { %v1071_v20 = vadd.f32 %v1068_v5, %v1041_v23  ;;  %v1162_v39 = vadd.f32 %v1159_v56, %v1132_v4  ;;  %vm1234_vm3 = vcmp.eq.s32.totalorder %v3950_v32, %v3515_v42  ;;  %v4858_v23 = vld [vmem:[#allocation10_spill] sm:$0xff]  ;;  %v4864_v4 = vld [vmem:[#allocation25_spill] sm:$0xff] }
 0x247   : > { %vm1055_vm10 = vcmp.eq.s32.totalorder %v4858_v23, %v3515_v42  ;;  %v3058_v23 = vmov 36  }
 0x248   : > { %v1101_v25 = vadd.f32 %v1098_v29, %v1071_v20  ;;  %v1192_v17 = vadd.f32 %v1189_v2, %v1162_v39  ;;  %v4865_v2 = vld [vmem:[#allocation18_spill] sm:$0xff]  ;;  %v4866_v39 = vld [vmem:[#allocation21_spill] sm:$0xff] }
 0x249   : > { %v3963_v33 = vpop.permute.xlu1 %1231  ;;  %v4010_v0 = vpop.permute.xlu0 %1258  ;;  %vm1145_vm14 = vcmp.eq.s32.totalorder %v4865_v2, %v3515_v42  ;;  %vm1175_vm15 = vcmp.eq.s32.totalorder %v4866_v39, %v3515_v42 }
 0x24a   : > { %v1131_v53 = vadd.f32 %v1128_v21, %v1101_v25  ;;  %v1222_v63 = vadd.f32 %v1219_v28, %v1192_v17  ;;  %vm1264_vm6 = vcmp.eq.s32.totalorder %v4010_v0, %v3515_v42  ;;  %v4862_v21 = vld [vmem:[#allocation23_spill] sm:$0xff]  ;;  %v1160_v55 = vsel %vm1145_vm14, %v4867_v22, 0.0  ;;  %v4869_v28 = vld [vmem:[#allocation28_spill] sm:$0xff] }
 0x24b   : > { %vm1115_vm13 = vcmp.eq.s32.totalorder %v4862_v21, %v3515_v42  ;;  %vm1205_vm1 = vcmp.eq.s32.totalorder %v4869_v28, %v3515_v42  ;;  %vm1235_vm2 = vcmp.eq.s32.totalorder %v3963_v33, %v3515_v42 }
 0x24c   : > { %v1161_v44 = vadd.f32 %v1158_v35, %v1131_v53  ;;  %v1130_v56 = vsel %vm1115_vm13, %v4864_v4, 0.0  ;;  %v1220_v13 = vsel %vm1205_vm1, %v3936_v34, 0.0 }
 0x24d   : > { %v3976_v58 = vpop.permute.xlu1 %1241  ;;  %v1272_v62 = vpop.permute.xlu0 %1271 }
 0x24e   : > { %v1191_v24 = vadd.f32 %v1188_v11, %v1161_v44  ;;  %v1249_v12 = vsel %vm1234_vm3, %v3976_v58, 0.0  ;;  %v1279_v5 = vsel %vm1264_vm6, %v1272_v62, 0.0 }
 0x24f   : > { %v1252_v18 = vadd.f32 %v1249_v12, %v1222_v63 }
 0x250   : > { %v1221_v14 = vadd.f32 %v1218_v16, %v1191_v24  ;;  %v1190_v24 = vsel %vm1175_vm15, %v4868_v26, 0.0 }
 0x251   : > { %v1286_v45 = vpop.permute.xlu0 %1285  ;;  %v1282_v31 = vadd.f32 %v1279_v5, %v1252_v18  ;;  %v4874_v18 = vld [vmem:[#allocation11_spill] sm:$0xff]  ;;  %v3059_v5 = vmov 37  }
 0x252   : > { %v3988_v8 = vpop.permute.xlu1 %1255  ;;  %v1251_v59 = vadd.f32 %v1248_v1, %v1221_v14  ;;  %vm1293_vm8 = vcmp.eq.s32.totalorder %v1286_v45, %v3515_v42  ;;  %v1250_v14 = vsel %vm1235_vm2, %v3984_v37, 0.0 }
 0x253   : > { %vm1263_vm7 = vcmp.eq.s32.totalorder %v3988_v8, %v3515_v42  ;;  %v1040_v8 = vsel %vm1025_vm9, %v4859_v36, 0.0  ;;  %v3060_v36 = vmov 38  }
 0x255   : > { %v2716_v60 = vpop.f32.mrb[0].mxu0  ;;  %v1298_v48 = vpop.permute.xlu0 %1297 }
 0x256   : > { %833 = vst.msk [vmem:[%s3998_s30 + $0x10] sm:$0xff] %vm830_vm4, %v2716_v60  ;;  %v4006_v9 = vpop.permute.xlu1 %1261  ;;  %v816_v61 = vpop.f32.mrb[1].mxu0  ;;  %v1308_v20 = vsel %vm1293_vm8, %v1298_v48, 0.0  ;;  %v1070_v60 = vsel %vm1055_vm10, %v4860_v38, 0.0  ;;  %v3055_v48 = vmov 33  }
 0x257   : > { %831 = vst.msk [vmem:[%s3998_s30] sm:$0xff] %vm830_vm4, %v816_v61  ;;  %v2717_v15 = vpop.f32.mrb[2].mxu0  ;;  %vm1265_vm3 = vcmp.eq.s32.totalorder %v4006_v9, %v3515_v42 }
 0x258   : > { %v819_v3 = vpop.f32.mrb[3].mxu0  ;;  %v4861_v15 = vld [vmem:[#allocation22_spill] sm:$0xff] }
 0x259   : > { %832 = vst.msk [vmem:[%s3998_s30 + $0x8] sm:$0xff] %vm830_vm4, %v819_v3  ;;  %vm965_vm4 = vcmp.eq.s32.totalorder %v4853_v10, %v3515_v42  ;;  %v1306_v61 = vpop.permute.xlu0 %1305  ;;  %vm1085_vm12 = vcmp.eq.s32.totalorder %v4861_v15, %v3515_v42  ;;  %v4863_v3 = vld [vmem:[#allocation26_spill] sm:$0xff]  ;;  %v3066_v15 = vmov 44  }
 0x25a   : > { %v1268_v40 = vpop.permute.xlu1 %1267  ;;  %v980_v50 = vsel %vm965_vm4, %v4855_v41, 0.0  ;;  %v1100_v51 = vsel %vm1085_vm12, %v4863_v3, 0.0  ;;  %v3067_v3 = vmov 45  }
 0x25b   : > { %v1278_v32 = vsel %vm1263_vm7, %v1268_v40, 0.0  ;;  %v983_v58 = vadd.f32 %v980_v50, %v953_v43  ;;  %v3053_v50 = vmov 32  }
 0x25c   : > { %v1281_v46 = vadd.f32 %v1278_v32, %v1251_v59  ;;  %2920 = vset.pattern.permute.xlu1 %v3053_v50  ;;  %2921 = vset.pattern.permute.xlu0 %v3053_v50  ;;  %v4870_v32 = vld [vmem:[#allocation7_spill] sm:$0xff]  ;;  %v4873_v59 = vld [vmem:[#allocation9_spill] sm:$0xff] }
 0x25d   : > { %v1013_v29 = vadd.f32 %v1010_v52, %v983_v58  ;;  %v1324_v57 = vpop.permute.xlu0 %1323  ;;  %v4872_v52 = vld [vmem:[#allocation12_spill] sm:$0xff]  ;;  %v3056_v58 = vmov 34  }
 0x25e   : > { %v4035_v30 = vpop.permute.xlu1 %1275  ;;  %v1311_v35 = vadd.f32 %v1308_v20, %v1281_v46  ;;  %v3062_v46 = vmov 40  }
 0x25f   : > { %v1043_v0 = vadd.f32 %v1040_v8, %v1013_v29  ;;  %v1280_v49 = vsel %vm1265_vm3, %v4035_v30, 0.0  ;;  %v3061_v8 = vmov 39   ;;  %v3063_v29 = vmov 41  }
 0x261   : > { %v1073_v53 = vadd.f32 %v1070_v60, %v1043_v0  ;;  %v3064_v60 = vmov 42  }
 0x263   : > { %v1289_v19 = vpop.permute.xlu1 %1288  ;;  %v1103_v11 = vadd.f32 %v1100_v51, %v1073_v53  ;;  %v3068_v53 = vmov 46  }
 0x264   : > { %vm1294_vm11 = vcmp.eq.s32.totalorder %v1289_v19, %v3515_v42  ;;  %v1328_v19 = vpop.permute.xlu0 %1327 }
 0x265   : > { %v1133_v16 = vadd.f32 %v1130_v56, %v1103_v11 }
 0x267   : > { %v1292_v27 = vpop.permute.xlu1 %1291  ;;  %v1163_v45 = vadd.f32 %v1160_v55, %v1133_v16  ;;  %v4876_v16 = vld [vmem:[#allocation3_spill] sm:$0xff] }
 0x268   : > { %vm1295_vm4 = vcmp.eq.s32.totalorder %v1292_v27, %v3515_v42  ;;  %v4875_v27 = vld [vmem:[#allocation15_spill] sm:$0xff] }
 0x269   : > { %v1193_v47 = vadd.f32 %v1190_v24, %v1163_v45  ;;  %v1310_v33 = vsel %vm1295_vm4, %v1306_v61, 0.0  ;;  %v3065_v61 = vmov 43  }
 0x26b   : > { %v1302_v25 = vpop.permute.xlu1 %1301  ;;  %v1223_v10 = vadd.f32 %v1220_v13, %v1193_v47 }
 0x26c   : > { %v1309_v7 = vsel %vm1294_vm11, %v1302_v25, 0.0 }
 0x26d   : > { %v1312_v40 = vadd.f32 %v1309_v7, %v1282_v31  ;;  %v1253_v1 = vadd.f32 %v1250_v14, %v1223_v10 }
 0x26f   : > { %v1322_v44 = vpop.permute.xlu1 %1321  ;;  %v1314_v62 = vpack.c.bf16 %v1312_v40, %v1311_v35  ;;  %v1283_v34 = vadd.f32 %v1280_v49, %v1253_v1 }
 0x270   : > { %2718 = vmatprep.subr.bf16.mxu1 %v1322_v44 }
 0x271   : > { %2719 = vmatpush3.bf16.msra.mxu1 %v1322_v44  ;;  %2728 = vmatprep.mubr.msk.bf16.mxu1 %vm775_vm0, %v1314_v62  ;;  %v1313_v41 = vadd.f32 %v1310_v33, %v1283_v34 }
 0x272   : > { %2720 = vmatprep.subr.bf16.mxu1 %v1324_v57 }
 0x273   : > { %v1326_v17 = vpop.permute.xlu1 %1325  ;;  %v1315_v37 = vpack.c.bf16 %v1313_v41, %v1313_v41 }
 0x275   : > { %2721 = vmatpush3.bf16.msra.mxu1 %v1324_v57  ;;  %v3069_v57 = vmov 47  }
 0x276   : > { %2722 = vmatprep.subr.bf16.mxu1 %v1326_v17 }
 0x277   : > { %v1330_v12 = vpop.permute.xlu1 %1329 }
 0x279   : > { %2723 = vmatpush3.bf16.msra.mxu1 %v1326_v17  ;;  %v4877_v17 = vld [vmem:[#allocation5_spill] sm:$0xff] }
 0x27a   : > { %2724 = vmatprep.subr.bf16.mxu1 %v1328_v19 }
 0x27d   : > { %2725 = vmatpush3.bf16.msra.mxu1 %v1328_v19 }
 0x27e   : > { %2726 = vmatprep.subr.bf16.mxu1 %v1330_v12 }
 0x281   : > { %2727 = vmatpush3.bf16.msra.mxu1 %v1330_v12 }
 0x284   : > { %2729 = vmatmul.mubr.msk.bf16.vlgmr.msra.gmra.mrb[0].mxu1 %vm775_vm0, %v1315_v37 }
 0x357   : > { %v2730_v9 = vpop.f32.mrb[0].mxu1 }
 0x358   : > { %v1376_v63 = vpop.f32.mrb[1].mxu1 }
 0x359   : > { %1393 = vrot.lane.b32.xlu0 %v1376_v63, %s3054_s4  ;;  %v2731_v30 = vpop.f32.mrb[2].mxu1 }
 0x35a   : > { %v1379_v43 = vpop.f32.mrb[3].mxu1 }
 0x35b   : > { %1395 = vrot.lane.b32.xlu1 %v1379_v43, %s3054_s4 }
 0x35d   : > { %1397 = vrot.lane.b32.xlu0 %v2730_v9, %s3054_s4 }
 0x35f   : > { %1407 = vperm.xlu1 %2920, %v4870_v32  }
 0x361   : > { %1410 = vperm.xlu0 %2921, %v4871_v54  }
 0x363   : > { %1413 = vperm.xlu1 %2920, %v4872_v52  }
 0x365   : > { %1423 = vperm.xlu0 %2921, %v4873_v59  }
 0x367   : > { %1419 = vperm.xlu1 %2920, %v4874_v18  }
 0x369   : > { %2922 = vset.pattern.permute.xlu0 %v3055_v48 }
 0x36a   : > { %1437 = vperm.xlu0 %2922, %v4870_v32  }
 0x36b   : > { %1427 = vperm.xlu1 %2920, %v4875_v27  }
 0x36e   : > { %1449 = vperm.xlu0 %2922, %v4874_v18  }
 0x36f   : > { %2923 = vset.pattern.permute.xlu1 %v3055_v48 }
 0x370   : > { %1440 = vperm.xlu1 %2923, %v4871_v54  }
 0x372   : > { %1457 = vperm.xlu0 %2922, %v4875_v27  }
 0x374   : > { %1443 = vperm.xlu1 %2923, %v4872_v52  }
 0x376   : > { %2925 = vset.pattern.permute.xlu0 %v3056_v58 }
 0x377   : > { %1470 = vperm.xlu0 %2925, %v4871_v54  }
 0x378   : > { %1453 = vperm.xlu1 %2923, %v4873_v59  }
 0x37b   : > { %1483 = vperm.xlu0 %2925, %v4873_v59  }
 0x37c   : > { %2924 = vset.pattern.permute.xlu1 %v3056_v58 }
 0x37d   : > { %1467 = vperm.xlu1 %2924, %v4870_v32  }
 0x37f   : > { %2926 = vset.pattern.permute.xlu0 %v3057_v6 }
 0x380   : > { %1497 = vperm.xlu0 %2926, %v4870_v32  }
 0x381   : > { %1473 = vperm.xlu1 %2924, %v4872_v52  }
 0x384   : > { %1509 = vperm.xlu0 %2926, %v4874_v18  }
 0x385   : > { %1479 = vperm.xlu1 %2924, %v4874_v18  }
 0x388   : > { %1517 = vperm.xlu0 %2926, %v4875_v27  }
 0x389   : > { %1487 = vperm.xlu1 %2924, %v4875_v27  }
 0x38c   : > { %2929 = vset.pattern.permute.xlu0 %v3058_v23 }
 0x38d   : > { %2927 = vset.pattern.permute.xlu1 %v3057_v6  ;;  %1530 = vperm.xlu0 %2929, %v4871_v54  }
 0x38e   : > { %1500 = vperm.xlu1 %2927, %v4871_v54  }
 0x391   : > { %1543 = vperm.xlu0 %2929, %v4873_v59  }
 0x392   : > { %1503 = vperm.xlu1 %2927, %v4872_v52  }
 0x395   : > { %2930 = vset.pattern.permute.xlu0 %v3059_v5 }
 0x396   : > { %1513 = vperm.xlu1 %2927, %v4873_v59   ;;  %1557 = vperm.xlu0 %2930, %v4870_v32  }
 0x39a   : > { %2928 = vset.pattern.permute.xlu1 %v3058_v23  ;;  %1569 = vperm.xlu0 %2930, %v4874_v18   ;;  %v4885_v23 = vld [vmem:[#allocation2_spill] sm:$0xff] }
 0x39b   : > { %1527 = vperm.xlu1 %2928, %v4870_v32  }
 0x39e   : > { %1577 = vperm.xlu0 %2930, %v4875_v27  }
 0x39f   : > { %1533 = vperm.xlu1 %2928, %v4872_v52  }
 0x3a2   : > { %2933 = vset.pattern.permute.xlu0 %v3060_v36 }
 0x3a3   : > { %1539 = vperm.xlu1 %2928, %v4874_v18   ;;  %1590 = vperm.xlu0 %2933, %v4871_v54  }
 0x3a7   : > { %1547 = vperm.xlu1 %2928, %v4875_v27   ;;  %1603 = vperm.xlu0 %2933, %v4873_v59  }
 0x3ab   : > { %2931 = vset.pattern.permute.xlu1 %v3059_v5  ;;  %2934 = vset.pattern.permute.xlu0 %v3061_v8  ;;  %v4886_v5 = vld [vmem:[#allocation4_spill] sm:$0xff] }
 0x3ac   : > { %1560 = vperm.xlu1 %2931, %v4871_v54   ;;  %1617 = vperm.xlu0 %2934, %v4870_v32  }
 0x3b0   : > { %1563 = vperm.xlu1 %2931, %v4872_v52   ;;  %1629 = vperm.xlu0 %2934, %v4874_v18  }
 0x3b4   : > { %1573 = vperm.xlu1 %2931, %v4873_v59   ;;  %1637 = vperm.xlu0 %2934, %v4875_v27  }
 0x3b8   : > { %2932 = vset.pattern.permute.xlu1 %v3060_v36  ;;  %2937 = vset.pattern.permute.xlu0 %v3062_v46 }
 0x3b9   : > { %1587 = vperm.xlu1 %2932, %v4870_v32   ;;  %1650 = vperm.xlu0 %2937, %v4871_v54  }
 0x3bd   : > { %1593 = vperm.xlu1 %2932, %v4872_v52   ;;  %1663 = vperm.xlu0 %2937, %v4873_v59  }
 0x3c1   : > { %1599 = vperm.xlu1 %2932, %v4874_v18   ;;  %2938 = vset.pattern.permute.xlu0 %v3063_v29 }
 0x3c2   : > { %1677 = vperm.xlu0 %2938, %v4870_v32  }
 0x3c5   : > { %1607 = vperm.xlu1 %2932, %v4875_v27  }
 0x3c6   : > { %1689 = vperm.xlu0 %2938, %v4874_v18  }
 0x3c9   : > { %2935 = vset.pattern.permute.xlu1 %v3061_v8  ;;  %v4887_v8 = vld [vmem:[#allocation6_spill] sm:$0xff] }
 0x3ca   : > { %1620 = vperm.xlu1 %2935, %v4871_v54   ;;  %1697 = vperm.xlu0 %2938, %v4875_v27  }
 0x3cb   : > { %v1394_v20 = vpop.permute.xlu0 %1393 }
 0x3cc   : > { %1403 = vst.msk [vmem:[%s3998_s30] sm:$0xff] %vm1402_vm5, %v1394_v20 }
 0x3cd   : > { %v1396_v38 = vpop.permute.xlu1 %1395 }
 0x3ce   : > { %1404 = vst.msk [vmem:[%s3998_s30 + $0x8] sm:$0xff] %vm1402_vm5, %v1396_v38  ;;  %1623 = vperm.xlu1 %2935, %v4872_v52   ;;  %2941 = vset.pattern.permute.xlu0 %v3064_v60 }
 0x3cf   : > { %v1398_v31 = vpop.permute.xlu0 %1397  ;;  %1710 = vperm.xlu0 %2941, %v4871_v54  }
 0x3d0   : > { %1405 = vst.msk [vmem:[%s3998_s30 + $0x10] sm:$0xff] %vm1402_vm5, %v1398_v31 }
 0x3d2   : > { %1633 = vperm.xlu1 %2935, %v4873_v59  }
 0x3d3   : > { %1723 = vperm.xlu0 %2941, %v4873_v59  }
 0x3d6   : > { %2936 = vset.pattern.permute.xlu1 %v3062_v46 }
 0x3d7   : > { %1647 = vperm.xlu1 %2936, %v4870_v32   ;;  %2942 = vset.pattern.permute.xlu0 %v3065_v61 }
 0x3d8   : > { %1737 = vperm.xlu0 %2942, %v4870_v32  }
 0x3db   : > { %1653 = vperm.xlu1 %2936, %v4872_v52  }
 0x3dc   : > { %1749 = vperm.xlu0 %2942, %v4874_v18  }
 0x3de   : > { %v4160_v25 = vpop.permute.xlu1 %1407 }
 0x3df   : > { %1659 = vperm.xlu1 %2936, %v4874_v18   ;;  %vm1415_vm9 = vcmp.eq.s32.totalorder %v4160_v25, %v3515_v42 }
 0x3e0   : > { %1757 = vperm.xlu0 %2942, %v4875_v27   ;;  %v4187_v4 = vpop.permute.xlu0 %1410 }
 0x3e1   : > { %vm1416_vm6 = vcmp.eq.s32.totalorder %v4187_v4, %v3515_v42 }
 0x3e2   : > { %v4164_v0 = vpop.permute.xlu1 %1413 }
 0x3e3   : > { %1667 = vperm.xlu1 %2936, %v4875_v27  }
 0x3e4   : > { %2945 = vset.pattern.permute.xlu0 %v3066_v15  ;;  %v4196_v62 = vpop.permute.xlu0 %1423 }
 0x3e5   : > { %1770 = vperm.xlu0 %2945, %v4871_v54  }
 0x3e6   : > { %v4168_v21 = vpop.permute.xlu1 %1419 }
 0x3e7   : > { %2939 = vset.pattern.permute.xlu1 %v3063_v29  ;;  %v1430_v4 = vsel %vm1415_vm9, %v4168_v21, 0.0 }
 0x3e8   : > { %1680 = vperm.xlu1 %2939, %v4871_v54  }
 0x3e9   : > { %1783 = vperm.xlu0 %2945, %v4873_v59   ;;  %v4203_v2 = vpop.permute.xlu0 %1437 }
 0x3ea   : > { %v4172_v7 = vpop.permute.xlu1 %1427  ;;  %vm1445_vm7 = vcmp.eq.s32.totalorder %v4203_v2, %v3515_v42 }
 0x3ec   : > { %1683 = vperm.xlu1 %2939, %v4872_v52  }
 0x3ed   : > { %2946 = vset.pattern.permute.xlu0 %v3067_v3  ;;  %v4210_v22 = vpop.permute.xlu0 %1449 }
 0x3ee   : > { %1797 = vperm.xlu0 %2946, %v4870_v32  }
 0x3ef   : > { %v4176_v51 = vpop.permute.xlu1 %1440 }
 0x3f0   : > { %1693 = vperm.xlu1 %2939, %v4873_v59   ;;  %vm1446_vm8 = vcmp.eq.s32.totalorder %v4176_v51, %v3515_v42 }
 0x3f1   : > { %v4219_v24 = vpop.permute.xlu0 %1457 }
 0x3f2   : > { %1809 = vperm.xlu0 %2946, %v4874_v18  }
 0x3f3   : > { %v4180_v35 = vpop.permute.xlu1 %1443 }
 0x3f4   : > { %2940 = vset.pattern.permute.xlu1 %v3064_v60 }
 0x3f5   : > { %1707 = vperm.xlu1 %2940, %v4870_v32  }
 0x3f6   : > { %1817 = vperm.xlu0 %2946, %v4875_v27   ;;  %v4227_v28 = vpop.permute.xlu0 %1470 }
 0x3f7   : > { %v4184_v40 = vpop.permute.xlu1 %1453  ;;  %vm1476_vm10 = vcmp.eq.s32.totalorder %v4227_v28, %v3515_v42 }
 0x3f9   : > { %1713 = vperm.xlu1 %2940, %v4872_v52  }
 0x3fa   : > { %2949 = vset.pattern.permute.xlu0 %v3068_v53  ;;  %v4234_v14 = vpop.permute.xlu0 %1483 }
 0x3fb   : > { %1830 = vperm.xlu0 %2949, %v4871_v54  }
 0x3fc   : > { %v4190_v56 = vpop.permute.xlu1 %1467 }
 0x3fd   : > { %1719 = vperm.xlu1 %2940, %v4874_v18   ;;  %vm1475_vm11 = vcmp.eq.s32.totalorder %v4190_v56, %v3515_v42 }
 0x3ff   : > { %1843 = vperm.xlu0 %2949, %v4873_v59   ;;  %v4239_v10 = vpop.permute.xlu0 %1497 }
 0x400   : > { %v4194_v44 = vpop.permute.xlu1 %1473  ;;  %vm1505_vm12 = vcmp.eq.s32.totalorder %v4239_v10, %v3515_v42 }
 0x401   : > { %1727 = vperm.xlu1 %2940, %v4875_v27  }
 0x403   : > { %2950 = vset.pattern.permute.xlu0 %v3069_v57  ;;  %v4245_v1 = vpop.permute.xlu0 %1509 }
 0x404   : > { %v4199_v11 = vpop.permute.xlu1 %1479  ;;  %1857 = vperm.xlu0 %2950, %v4870_v32   ;;  %v1520_v56 = vsel %vm1505_vm12, %v4245_v1, 0.0 }
 0x405   : > { %2943 = vset.pattern.permute.xlu1 %v3065_v61  ;;  %v1490_v51 = vsel %vm1475_vm11, %v4199_v11, 0.0 }
 0x406   : > { %1740 = vperm.xlu1 %2943, %v4871_v54  }
 0x407   : > { %v4250_v12 = vpop.permute.xlu0 %1517 }
 0x408   : > { %v4205_v39 = vpop.permute.xlu1 %1487  ;;  %1869 = vperm.xlu0 %2950, %v4874_v18  }
 0x40a   : > { %1743 = vperm.xlu1 %2943, %v4872_v52  }
 0x40c   : > { %1877 = vperm.xlu0 %2950, %v4875_v27   ;;  %v4255_v41 = vpop.permute.xlu0 %1530 }
 0x40d   : > { %v4212_v55 = vpop.permute.xlu1 %1500  ;;  %vm1536_vm14 = vcmp.eq.s32.totalorder %v4255_v41, %v3515_v42 }
 0x40e   : > { %1753 = vperm.xlu1 %2943, %v4873_v59   ;;  %vm1506_vm13 = vcmp.eq.s32.totalorder %v4212_v55, %v3515_v42 }
 0x410   : > { %1890 = vrot.lane.b32.xlu0 %v4876_v16, %s3070_s5  ;;  %v4262_v9 = vpop.permute.xlu0 %1543 }
 0x411   : > { %v4217_v26 = vpop.permute.xlu1 %1503 }
 0x412   : > { %2944 = vset.pattern.permute.xlu1 %v3066_v15 }
 0x413   : > { %1767 = vperm.xlu1 %2944, %v4870_v32  }
 0x414   : > { %1894 = vrot.lane.b32.xlu0 %v4877_v17, %s3070_s5 }
 0x415   : > { %v4224_v45 = vpop.permute.xlu1 %1513  ;;  %v4267_v30 = vpop.permute.xlu0 %1557 }
 0x416   : > { %v1521_v21 = vsel %vm1506_vm13, %v4224_v45, 0.0  ;;  %vm1565_vm1 = vcmp.eq.s32.totalorder %v4267_v30, %v3515_v42  ;;  %v1551_v45 = vsel %vm1536_vm14, %v4262_v9, 0.0  ;;  %vm1447_vm13 = vcmp.eq.s32.totalorder %v4180_v35, %v3515_v42 }
 0x417   : > { %1773 = vperm.xlu1 %2944, %v4872_v52  }
 0x41a   : > { %v4229_v13 = vpop.permute.xlu1 %1527 }
 0x41b   : > { %1779 = vperm.xlu1 %2944, %v4874_v18   ;;  %vm1535_vm15 = vcmp.eq.s32.totalorder %v4229_v13, %v3515_v42 }
 0x41e   : > { %v4232_v47 = vpop.permute.xlu1 %1533 }
 0x41f   : > { %4878 = vst [vmem:[#allocation30_spill] sm:$0xff] %v4232_v47  ;;  %1787 = vperm.xlu1 %2944, %v4875_v27   ;;  %v1460_v47 = vsel %vm1445_vm7, %v4210_v22, 0.0  ;;  %v1491_v22 = vsel %vm1476_vm10, %v4234_v14, 0.0 }
 0x422   : > { %v4237_v19 = vpop.permute.xlu1 %1539 }
 0x423   : > { %2947 = vset.pattern.permute.xlu1 %v3067_v3  ;;  %v1550_v14 = vsel %vm1535_vm15, %v4237_v19, 0.0 }
 0x424   : > { %1800 = vperm.xlu1 %2947, %v4871_v54  }
 0x426   : > { %v4242_v49 = vpop.permute.xlu1 %1547 }
 0x427   : > { %4879 = vst [vmem:[#allocation19_spill] sm:$0xff] %v4242_v49 }
 0x428   : > { %1803 = vperm.xlu1 %2947, %v4872_v52  }
 0x42b   : > { %v4247_v33 = vpop.permute.xlu1 %1560 }
 0x42c   : > { %1813 = vperm.xlu1 %2947, %v4873_v59   ;;  %vm1566_vm2 = vcmp.eq.s32.totalorder %v4247_v33, %v3515_v42 }
 0x42f   : > { %v4252_v34 = vpop.permute.xlu1 %1563 }
 0x430   : > { %4880 = vst [vmem:[#allocation8_spill] sm:$0xff] %v4252_v34  ;;  %2948 = vset.pattern.permute.xlu1 %v3068_v53  ;;  %v1431_v34 = vsel %vm1416_vm6, %v4196_v62, 0.0  ;;  %v1463_v62 = vadd.f32 %v1460_v47, %v1430_v4 }
 0x431   : > { %1827 = vperm.xlu1 %2948, %v4870_v32   ;;  %v4273_v32 = vpop.permute.xlu0 %1569 }
 0x432   : > { %v1493_v25 = vadd.f32 %v1490_v51, %v1463_v62  ;;  %v1580_v41 = vsel %vm1565_vm1, %v4273_v32, 0.0  ;;  %vm1417_vm1 = vcmp.eq.s32.totalorder %v4164_v0, %v3515_v42 }
 0x433   : > { %v4257_v37 = vpop.permute.xlu1 %1573  ;;  %v1432_v0 = vsel %vm1417_vm1, %v4172_v7, 0.0 }
 0x434   : > { %v1523_v10 = vadd.f32 %v1520_v56, %v1493_v25  ;;  %v1581_v13 = vsel %vm1566_vm2, %v4257_v37, 0.0  ;;  %vm1477_vm2 = vcmp.eq.s32.totalorder %v4194_v44, %v3515_v42 }
 0x435   : > { %1833 = vperm.xlu1 %2948, %v4872_v52   ;;  %v4278_v58 = vpop.permute.xlu0 %1577 }
 0x436   : > { %4883 = vst [vmem:[#allocation13_spill] sm:$0xff] %v4278_v58  ;;  %v1553_v1 = vadd.f32 %v1550_v14, %v1523_v10  ;;  %v4900_v14 = vld [vmem:[#allocation19_spill] sm:$0xff] }
 0x438   : > { %v4260_v50 = vpop.permute.xlu1 %1587  ;;  %v1583_v4 = vadd.f32 %v1580_v41, %v1553_v1 }
 0x439   : > { %1839 = vperm.xlu1 %2948, %v4874_v18   ;;  %v4283_v6 = vpop.permute.xlu0 %1590  ;;  %vm1595_vm4 = vcmp.eq.s32.totalorder %v4260_v50, %v3515_v42 }
 0x43a   : > { %vm1596_vm3 = vcmp.eq.s32.totalorder %v4283_v6, %v3515_v42 }
 0x43c   : > { %v4265_v63 = vpop.permute.xlu1 %1593 }
 0x43d   : > { %4881 = vst [vmem:[#allocation16_spill] sm:$0xff] %v4265_v63  ;;  %1847 = vperm.xlu1 %2948, %v4875_v27   ;;  %v4293_v36 = vpop.permute.xlu0 %1603 }
 0x43e   : > { %v1611_v33 = vsel %vm1596_vm3, %v4293_v36, 0.0 }
 0x440   : > { %v4270_v43 = vpop.permute.xlu1 %1599 }
 0x441   : > { %2951 = vset.pattern.permute.xlu1 %v3069_v57  ;;  %v1610_v9 = vsel %vm1595_vm4, %v4270_v43, 0.0 }
 0x442   : > { %1860 = vperm.xlu1 %2951, %v4871_v54   ;;  %v1613_v37 = vadd.f32 %v1610_v9, %v1583_v4 }
 0x444   : > { %v4275_v48 = vpop.permute.xlu1 %1607 }
 0x445   : > { %4882 = vst [vmem:[#allocation20_spill] sm:$0xff] %v4275_v48 }
 0x446   : > { %1863 = vperm.xlu1 %2951, %v4872_v52  }
 0x449   : > { %v4280_v18 = vpop.permute.xlu1 %1620 }
 0x44a   : > { %1873 = vperm.xlu1 %2951, %v4873_v59   ;;  %v4299_v59 = vpop.permute.xlu0 %1617  ;;  %vm1626_vm6 = vcmp.eq.s32.totalorder %v4280_v18, %v3515_v42 }
 0x44b   : > { %vm1625_vm5 = vcmp.eq.s32.totalorder %v4299_v59, %v3515_v42 }
 0x44d   : > { %v4285_v27 = vpop.permute.xlu1 %1623 }
 0x44e   : > { %4884 = vst [vmem:[#allocation10_spill] sm:$0xff] %v4285_v27  ;;  %1888 = vrot.lane.b32.xlu1 %v4885_v23, %s3070_s5  ;;  %v4303_v29 = vpop.permute.xlu0 %1629 }
 0x44f   : > { %v1640_v50 = vsel %vm1625_vm5, %v4303_v29, 0.0  ;;  %vm1507_vm5 = vcmp.eq.s32.totalorder %v4217_v26, %v3515_v42  ;;  %v4898_v26 = vld [vmem:[#allocation30_spill] sm:$0xff] }
 0x450   : > { %v1643_v36 = vadd.f32 %v1640_v50, %v1613_v37 }
 0x451   : > { %v4289_v54 = vpop.permute.xlu1 %1633 }
 0x452   : > { %1892 = vrot.lane.b32.xlu1 %v4886_v5, %s3070_s5  ;;  %v4307_v38 = vpop.permute.xlu0 %1637  ;;  %v1641_v6 = vsel %vm1626_vm6, %v4289_v54, 0.0 }
 0x453   : > { %4889 = vst [vmem:[#allocation17_spill] sm:$0xff] %v4307_v38 }
 0x455   : > { %v4903_v9 = vld [vmem:[#allocation10_spill] sm:$0xff] }
 0x456   : > { %v4295_v52 = vpop.permute.xlu1 %1647  ;;  %1896 = vrot.lane.b32.xlu1 %v4887_v8, %s3070_s5  ;;  %v4311_v31 = vpop.permute.xlu0 %1650 }
 0x457   : > { %vm1656_vm7 = vcmp.eq.s32.totalorder %v4311_v31, %v3515_v42 }
 0x45a   : > { %v4301_v46 = vpop.permute.xlu1 %1653  ;;  %v4317_v3 = vpop.permute.xlu0 %1663 }
 0x45b   : > { %4888 = vst [vmem:[#allocation24_spill] sm:$0xff] %v4301_v46  ;;  %v1671_v18 = vsel %vm1656_vm7, %v4317_v3, 0.0 }
 0x45e   : > { %v4305_v20 = vpop.permute.xlu1 %1659  ;;  %v4321_v57 = vpop.permute.xlu0 %1677 }
 0x45f   : > { %vm1685_vm9 = vcmp.eq.s32.totalorder %v4321_v57, %v3515_v42 }
 0x462   : > { %v4309_v60 = vpop.permute.xlu1 %1667  ;;  %v4325_v5 = vpop.permute.xlu0 %1689 }
 0x463   : > { %4890 = vst [vmem:[#allocation22_spill] sm:$0xff] %v4309_v60  ;;  %v1700_v31 = vsel %vm1685_vm9, %v4325_v5, 0.0 }
 0x466   : > { %v4329_v23 = vpop.permute.xlu0 %1697 }
 0x467   : > { %v4313_v61 = vpop.permute.xlu1 %1680  ;;  %4893 = vst [vmem:[#allocation25_spill] sm:$0xff] %v4329_v23 }
 0x468   : > { %vm1686_vm10 = vcmp.eq.s32.totalorder %v4313_v61, %v3515_v42 }
 0x46a   : > { %v4335_v46 = vpop.permute.xlu0 %1710 }
 0x46b   : > { %v4315_v15 = vpop.permute.xlu1 %1683  ;;  %vm1716_vm11 = vcmp.eq.s32.totalorder %v4335_v46, %v3515_v42 }
 0x46c   : > { %4891 = vst [vmem:[#allocation23_spill] sm:$0xff] %v4315_v15 }
 0x46e   : > { %v4339_v38 = vpop.permute.xlu0 %1723 }
 0x46f   : > { %v4319_v53 = vpop.permute.xlu1 %1693  ;;  %v1731_v5 = vsel %vm1716_vm11, %v4339_v38, 0.0 }
 0x472   : > { %v4343_v27 = vpop.permute.xlu0 %1737 }
 0x473   : > { %vm1745_vm14 = vcmp.eq.s32.totalorder %v4343_v27, %v3515_v42 }
 0x474   : > { %v4323_v8 = vpop.permute.xlu1 %1707 }
 0x475   : > { %vm1715_vm12 = vcmp.eq.s32.totalorder %v4323_v8, %v3515_v42 }
 0x476   : > { %v4347_v58 = vpop.permute.xlu0 %1749 }
 0x477   : > { %v1760_v8 = vsel %vm1745_vm14, %v4347_v58, 0.0  ;;  %vm1627_vm14 = vcmp.eq.s32.totalorder %v4903_v9, %v3515_v42  ;;  %v3076_v9 = vmov 52  }
 0x478   : > { %v4327_v16 = vpop.permute.xlu1 %1713 }
 0x479   : > { %4892 = vst [vmem:[#allocation26_spill] sm:$0xff] %v4327_v16 }
 0x47a   : > { %v4351_v23 = vpop.permute.xlu0 %1757 }
 0x47b   : > { %4896 = vst [vmem:[#allocation27_spill] sm:$0xff] %v4351_v23  ;;  %v1461_v23 = vsel %vm1446_vm8, %v4184_v40, 0.0  ;;  %vm1655_vm8 = vcmp.eq.s32.totalorder %v4295_v52, %v3515_v42  ;;  %v1701_v52 = vsel %vm1686_vm10, %v4319_v53, 0.0 }
 0x47c   : > { %v4331_v17 = vpop.permute.xlu1 %1719  ;;  %v1464_v2 = vadd.f32 %v1461_v23, %v1431_v34  ;;  %v1670_v43 = vsel %vm1655_vm8, %v4305_v20, 0.0  ;;  %vm1537_vm8 = vcmp.eq.s32.totalorder %v4898_v26, %v3515_v42 }
 0x47d   : > { %v1673_v54 = vadd.f32 %v1670_v43, %v1643_v36  ;;  %v1730_v20 = vsel %vm1715_vm12, %v4331_v17, 0.0  ;;  %v1462_v17 = vsel %vm1447_vm13, %v4219_v24, 0.0  ;;  %v1492_v24 = vsel %vm1477_vm2, %v4205_v39, 0.0 }
 0x47e   : > { %v1494_v11 = vadd.f32 %v1491_v22, %v1464_v2  ;;  %v1465_v58 = vadd.f32 %v1462_v17, %v1432_v0 }
 0x47f   : > { %v1703_v57 = vadd.f32 %v1700_v31, %v1673_v54  ;;  %v4906_v54 = vld [vmem:[#allocation24_spill] sm:$0xff] }
 0x480   : > { %v4333_v60 = vpop.permute.xlu1 %1727  ;;  %v1524_v34 = vadd.f32 %v1521_v21, %v1494_v11  ;;  %v1495_v21 = vadd.f32 %v1492_v24, %v1465_v58  ;;  %vm1657_vm1 = vcmp.eq.s32.totalorder %v4906_v54, %v3515_v42 }
 0x481   : > { %4894 = vst [vmem:[#allocation18_spill] sm:$0xff] %v4333_v60  ;;  %v1733_v53 = vadd.f32 %v1730_v20, %v1703_v57 }
 0x482   : > { %v1554_v23 = vadd.f32 %v1551_v45, %v1524_v34  ;;  %v4901_v34 = vld [vmem:[#allocation13_spill] sm:$0xff]  ;;  %v4913_v58 = vld [vmem:[#allocation27_spill] sm:$0xff] }
 0x483   : > { %v1763_v38 = vadd.f32 %v1760_v8, %v1733_v53 }
 0x484   : > { %v1584_v51 = vadd.f32 %v1581_v13, %v1554_v23 }
 0x485   : > { %v4337_v15 = vpop.permute.xlu1 %1740 }
 0x486   : > { %v1614_v2 = vadd.f32 %v1611_v33, %v1584_v51  ;;  %vm1746_vm15 = vcmp.eq.s32.totalorder %v4337_v15, %v3515_v42  ;;  %v4904_v51 = vld [vmem:[#allocation20_spill] sm:$0xff] }
 0x488   : > { %v1644_v59 = vadd.f32 %v1641_v6, %v1614_v2  ;;  %v4912_v0 = vld [vmem:[#allocation18_spill] sm:$0xff] }
 0x489   : > { %v4341_v48 = vpop.permute.xlu1 %1743 }
 0x48a   : > { %4895 = vst [vmem:[#allocation21_spill] sm:$0xff] %v4341_v48  ;;  %v4361_v48 = vpop.permute.xlu0 %1770  ;;  %v1674_v25 = vadd.f32 %v1671_v18, %v1644_v59 }
 0x48b   : > { %vm1776_vm3 = vcmp.eq.s32.totalorder %v4361_v48, %v3515_v42 }
 0x48c   : > { %v1704_v61 = vadd.f32 %v1701_v52, %v1674_v25  ;;  %v4908_v52 = vld [vmem:[#allocation22_spill] sm:$0xff] }
 0x48d   : > { %v4345_v63 = vpop.permute.xlu1 %1753  ;;  %v1672_v25 = vsel %vm1657_vm1, %v4908_v52, 0.0 }
 0x48e   : > { %v4380_v40 = vpop.permute.xlu0 %1783  ;;  %v1761_v35 = vsel %vm1746_vm15, %v4345_v63, 0.0  ;;  %v1734_v27 = vadd.f32 %v1731_v5, %v1704_v61  ;;  %v4909_v61 = vld [vmem:[#allocation25_spill] sm:$0xff] }
 0x48f   : > { %v1791_v48 = vsel %vm1776_vm3, %v4380_v40, 0.0  ;;  %v1552_v40 = vsel %vm1537_vm8, %v4900_v14, 0.0 }
 0x490   : > { %v1764_v15 = vadd.f32 %v1761_v35, %v1734_v27  ;;  %v4910_v35 = vld [vmem:[#allocation26_spill] sm:$0xff] }
 0x491   : > { %vm1717_vm3 = vcmp.eq.s32.totalorder %v4910_v35, %v3515_v42  ;;  %v4911_v27 = vld [vmem:[#allocation21_spill] sm:$0xff] }
 0x492   : > { %v4349_v16 = vpop.permute.xlu1 %1767  ;;  %v4393_v47 = vpop.permute.xlu0 %1797  ;;  %v1794_v10 = vadd.f32 %v1791_v48, %v1764_v15  ;;  %v1732_v24 = vsel %vm1717_vm3, %v4912_v0, 0.0 }
 0x493   : > { %vm1775_vm4 = vcmp.eq.s32.totalorder %v4349_v16, %v3515_v42  ;;  %vm1805_vm6 = vcmp.eq.s32.totalorder %v4393_v47, %v3515_v42  ;;  %v1522_v16 = vsel %vm1507_vm5, %v4250_v12, 0.0 }
 0x494   : > { %v1525_v12 = vadd.f32 %v1522_v16, %v1495_v21 }
 0x496   : > { %v4353_v49 = vpop.permute.xlu1 %1773  ;;  %v4409_v19 = vpop.permute.xlu0 %1809 }
 0x497   : > { %4897 = vst [vmem:[#allocation29_spill] sm:$0xff] %v4353_v49  ;;  %v1820_v11 = vsel %vm1805_vm6, %v4409_v19, 0.0  ;;  %v1555_v19 = vadd.f32 %v1552_v40, %v1525_v12 }
 0x49a   : > { %v4355_v60 = vpop.permute.xlu1 %1779  ;;  %v4419_v32 = vpop.permute.xlu0 %1817 }
 0x49b   : > { %v1790_v63 = vsel %vm1775_vm4, %v4355_v60, 0.0  ;;  %v4899_v60 = vld [vmem:[#allocation8_spill] sm:$0xff]  ;;  %vm1747_vm4 = vcmp.eq.s32.totalorder %v4911_v27, %v3515_v42 }
 0x49c   : > { %v1793_v7 = vadd.f32 %v1790_v63, %v1763_v38  ;;  %vm1567_vm9 = vcmp.eq.s32.totalorder %v4899_v60, %v3515_v42  ;;  %v1762_v38 = vsel %vm1747_vm4, %v4913_v58, 0.0 }
 0x49d   : > { %v1582_v45 = vsel %vm1567_vm9, %v4901_v34, 0.0  ;;  %v4520_v34 = vld [vmem:[%s3137_s19 + $0x8] sm:$0xff]  ;;  %vm1969_vm9 = vcmask 195712  }
 0x49e   : > { %v4368_v49 = vpop.permute.xlu1 %1787  ;;  %v1831_v22 = vpop.permute.xlu0 %1830  ;;  %v1823_v1 = vadd.f32 %v1820_v11, %v1793_v7  ;;  %v1585_v50 = vadd.f32 %v1582_v45, %v1555_v19  ;;  %v4914_v48 = vld [vmem:[#allocation29_spill] sm:$0xff]  ;;  %v4524_v45 = vld [vmem:[%s3137_s19 + $0x10] sm:$0xff]  ;;  %v3074_v19 = vmov 50  }
 0x49f   : > { %vm1836_vm10 = vcmp.eq.s32.totalorder %v1831_v22, %v3515_v42  ;;  %v4907_v22 = vld [vmem:[#allocation23_spill] sm:$0xff]  ;;  %vm1777_vm5 = vcmp.eq.s32.totalorder %v4914_v48, %v3515_v42 }
 0x4a0   : > { %vm1687_vm2 = vcmp.eq.s32.totalorder %v4907_v22, %v3515_v42  ;;  %v1792_v21 = vsel %vm1777_vm5, %v4368_v49, 0.0 }
 0x4a1   : > { %v1702_v5 = vsel %vm1687_vm2, %v4909_v61, 0.0 }
 0x4a2   : > { %v1844_v46 = vpop.permute.xlu0 %1843 }
 0x4a3   : > { %v4385_v28 = vpop.permute.xlu1 %1800  ;;  %v1851_v4 = vsel %vm1836_vm10, %v1844_v46, 0.0 }
 0x4a4   : > { %vm1806_vm7 = vcmp.eq.s32.totalorder %v4385_v28, %v3515_v42 }
 0x4a6   : > { %v1858_v44 = vpop.permute.xlu0 %1857 }
 0x4a7   : > { %v4398_v55 = vpop.permute.xlu1 %1803  ;;  %vm1865_vm12 = vcmp.eq.s32.totalorder %v1858_v44, %v3515_v42 }
 0x4a8   : > { %vm1807_vm6 = vcmp.eq.s32.totalorder %v4398_v55, %v3515_v42 }
 0x4a9   : > { %v1822_v7 = vsel %vm1807_vm6, %v4419_v32, 0.0 }
 0x4aa   : > { %v1870_v13 = vpop.permute.xlu0 %1869 }
 0x4ab   : > { %v4411_v30 = vpop.permute.xlu1 %1813  ;;  %v1880_v6 = vsel %vm1865_vm12, %v1870_v13, 0.0  ;;  %v3073_v13 = vmov 49  }
 0x4ac   : > { %v1821_v47 = vsel %vm1806_vm7, %v4411_v30, 0.0  ;;  %v4902_v30 = vld [vmem:[#allocation16_spill] sm:$0xff] }
 0x4ad   : > { %v1824_v41 = vadd.f32 %v1821_v47, %v1794_v10  ;;  %vm1597_vm13 = vcmp.eq.s32.totalorder %v4902_v30, %v3515_v42  ;;  %v3075_v30 = vmov 51  }
 0x4ae   : > { %v1612_v33 = vsel %vm1597_vm13, %v4904_v51, 0.0  ;;  %v1878_v36 = vpop.permute.xlu0 %1877  ;;  %v3078_v51 = vmov 54  }
 0x4af   : > { %v1854_v43 = vadd.f32 %v1851_v4, %v1824_v41  ;;  %v1615_v18 = vadd.f32 %v1612_v33, %v1585_v50  ;;  %v4532_v41 = vld [vmem:[%s3143_s22] sm:$0xff]  ;;  %v3077_v4 = vmov 53   ;;  %v3079_v33 = vmov 55  }
 0x4b0   : > { %v1828_v62 = vpop.permute.xlu1 %1827  ;;  %v3081_v50 = vmov 57  }
 0x4b1   : > { %vm1835_vm11 = vcmp.eq.s32.totalorder %v1828_v62, %v3515_v42  ;;  %v4905_v62 = vld [vmem:[#allocation17_spill] sm:$0xff] }
 0x4b2   : > { %v1642_v2 = vsel %vm1627_vm14, %v4905_v62, 0.0  ;;  %v1891_v17 = vpop.permute.xlu0 %1890 }
 0x4b3   : > { %v1645_v57 = vadd.f32 %v1642_v2, %v1615_v18  ;;  %v3082_v2 = vmov 58  }
 0x4b4   : > { %v4431_v29 = vpop.permute.xlu1 %1833 }
 0x4b5   : > { %v1675_v8 = vadd.f32 %v1672_v25, %v1645_v57  ;;  %vm1837_vm7 = vcmp.eq.s32.totalorder %v4431_v29, %v3515_v42  ;;  %v3071_v29 = vmov 48  }
 0x4b6   : > { %2952 = vset.pattern.permute.xlu1 %v3071_v29  ;;  %2953 = vset.pattern.permute.xlu0 %v3071_v29 }
 0x4b7   : > { %v1705_v63 = vadd.f32 %v1702_v5, %v1675_v8 }
 0x4b8   : > { %v1840_v3 = vpop.permute.xlu1 %1839 }
 0x4b9   : > { %v1850_v28 = vsel %vm1835_vm11, %v1840_v3, 0.0  ;;  %v1735_v44 = vadd.f32 %v1732_v24, %v1705_v63  ;;  %v3086_v63 = vmov 62  }
 0x4ba   : > { %v1853_v37 = vadd.f32 %v1850_v28, %v1823_v1  ;;  %v4516_v28 = vld [vmem:[%s3137_s19] sm:$0xff]  ;;  %v4528_v1 = vld [vmem:[%s3143_s22 + $0x8] sm:$0xff] }
 0x4bb   : > { %v1765_v16 = vadd.f32 %v1762_v38, %v1735_v44 }
 0x4bc   : > { %v4454_v56 = vpop.permute.xlu1 %1847  ;;  %v1883_v20 = vadd.f32 %v1880_v6, %v1853_v37  ;;  %v3080_v37 = vmov 56  }
 0x4bd   : > { %v1795_v26 = vadd.f32 %v1792_v21, %v1765_v16  ;;  %v1852_v60 = vsel %vm1837_vm7, %v4454_v56, 0.0 }
 0x4bf   : > { %v1825_v11 = vadd.f32 %v1822_v7, %v1795_v26 }
 0x4c1   : > { %v1861_v39 = vpop.permute.xlu1 %1860  ;;  %v1855_v49 = vadd.f32 %v1852_v60, %v1825_v11 }
 0x4c2   : > { %vm1866_vm15 = vcmp.eq.s32.totalorder %v1861_v39, %v3515_v42  ;;  %v1895_v39 = vpop.permute.xlu0 %1894 }
 0x4c5   : > { %v1864_v23 = vpop.permute.xlu1 %1863 }
 0x4c6   : > { %vm1867_vm8 = vcmp.eq.s32.totalorder %v1864_v23, %v3515_v42  ;;  %v4537_v23 = vld [vmem:[%s3143_s22 + $0x10] sm:$0xff] }
 0x4c7   : > { %v1882_v55 = vsel %vm1867_vm8, %v1878_v36, 0.0  ;;  %v3083_v36 = vmov 59  }
 0x4c8   : > { %v1885_v14 = vadd.f32 %v1882_v55, %v1855_v49 }
 0x4c9   : > { %v1874_v59 = vpop.permute.xlu1 %1873 }
 0x4ca   : > { %v1881_v31 = vsel %vm1866_vm15, %v1874_v59, 0.0  ;;  %v1887_v32 = vpack.c.bf16 %v1885_v14, %v1885_v14 }
 0x4cb   : > { %v1884_v3 = vadd.f32 %v1881_v31, %v1854_v43  ;;  %v3084_v31 = vmov 60  }
 0x4cd   : > { %v1886_v53 = vpack.c.bf16 %v1884_v3, %v1883_v20  ;;  %v1889_v46 = vpop.permute.xlu1 %1888 }
 0x4ce   : > { %2732 = vmatprep.subr.bf16.mxu0 %v1889_v46 }
 0x4cf   : > { %2733 = vmatpush3.bf16.msra.mxu0 %v1889_v46  ;;  %2742 = vmatprep.mubr.msk.bf16.mxu0 %vm775_vm0, %v1886_v53  ;;  %v3085_v46 = vmov 61  }
 0x4d0   : > { %2734 = vmatprep.subr.bf16.mxu0 %v1891_v17 }
 0x4d1   : > { %v1893_v15 = vpop.permute.xlu1 %1892 }
 0x4d3   : > { %2735 = vmatpush3.bf16.msra.mxu0 %v1891_v17 }
 0x4d4   : > { %2736 = vmatprep.subr.bf16.mxu0 %v1893_v15 }
 0x4d5   : > { %v1897_v47 = vpop.permute.xlu1 %1896 }
 0x4d7   : > { %2737 = vmatpush3.bf16.msra.mxu0 %v1893_v15 }
 0x4d8   : > { %2738 = vmatprep.subr.bf16.mxu0 %v1895_v39 }
 0x4db   : > { %2739 = vmatpush3.bf16.msra.mxu0 %v1895_v39 }
 0x4dc   : > { %2740 = vmatprep.subr.bf16.mxu0 %v1897_v47 }
 0x4df   : > { %2741 = vmatpush3.bf16.msra.mxu0 %v1897_v47  ;;  %v3087_v47 = vmov 63  }
 0x4e2   : > { %2743 = vmatmul.mubr.msk.bf16.vlgmr.msra.gmra.mrb[4].mxu0 %vm775_vm0, %v1887_v32 }
 0x5b5   : > { %v2744_v56 = vpop.f32.mrb[4].mxu0 }
 0x5b6   : > { %v1943_v40 = vpop.f32.mrb[5].mxu0 }
 0x5b7   : > { %1960 = vrot.lane.b32.xlu0 %v1943_v40, %s3072_s6  ;;  %v2745_v10 = vpop.f32.mrb[6].mxu0 }
 0x5b8   : > { %v1946_v12 = vpop.f32.mrb[7].mxu0 }
 0x5b9   : > { %1962 = vrot.lane.b32.xlu1 %v1946_v12, %s3072_s6 }
 0x5bb   : > { %1964 = vrot.lane.b32.xlu0 %v2744_v56, %s3072_s6 }
 0x5bd   : > { %1974 = vperm.xlu1 %2952, %v4516_v28  }
 0x5bf   : > { %1977 = vperm.xlu0 %2953, %v4520_v34  }
 0x5c1   : > { %1980 = vperm.xlu1 %2952, %v4524_v45  }
 0x5c3   : > { %1990 = vperm.xlu0 %2953, %v4528_v1  }
 0x5c5   : > { %1986 = vperm.xlu1 %2952, %v4532_v41  }
 0x5c7   : > { %2954 = vset.pattern.permute.xlu0 %v3073_v13 }
 0x5c8   : > { %2004 = vperm.xlu0 %2954, %v4516_v28  }
 0x5c9   : > { %1994 = vperm.xlu1 %2952, %v4537_v23  }
 0x5cc   : > { %2016 = vperm.xlu0 %2954, %v4532_v41  }
 0x5cd   : > { %2955 = vset.pattern.permute.xlu1 %v3073_v13 }
 0x5ce   : > { %2007 = vperm.xlu1 %2955, %v4520_v34  }
 0x5d0   : > { %2024 = vperm.xlu0 %2954, %v4537_v23  }
 0x5d2   : > { %2010 = vperm.xlu1 %2955, %v4524_v45  }
 0x5d4   : > { %2957 = vset.pattern.permute.xlu0 %v3074_v19 }
 0x5d5   : > { %2037 = vperm.xlu0 %2957, %v4520_v34  }
 0x5d6   : > { %2020 = vperm.xlu1 %2955, %v4528_v1  }
 0x5d9   : > { %2050 = vperm.xlu0 %2957, %v4528_v1  }
 0x5da   : > { %2956 = vset.pattern.permute.xlu1 %v3074_v19 }
 0x5db   : > { %2034 = vperm.xlu1 %2956, %v4516_v28  }
 0x5dd   : > { %2958 = vset.pattern.permute.xlu0 %v3075_v30 }
 0x5de   : > { %2064 = vperm.xlu0 %2958, %v4516_v28  }
 0x5df   : > { %2040 = vperm.xlu1 %2956, %v4524_v45  }
 0x5e2   : > { %2076 = vperm.xlu0 %2958, %v4532_v41  }
 0x5e3   : > { %2046 = vperm.xlu1 %2956, %v4532_v41  }
 0x5e6   : > { %2084 = vperm.xlu0 %2958, %v4537_v23  }
 0x5e7   : > { %2054 = vperm.xlu1 %2956, %v4537_v23  }
 0x5ea   : > { %2961 = vset.pattern.permute.xlu0 %v3076_v9 }
 0x5eb   : > { %2959 = vset.pattern.permute.xlu1 %v3075_v30  ;;  %2097 = vperm.xlu0 %2961, %v4520_v34  }
 0x5ec   : > { %2067 = vperm.xlu1 %2959, %v4520_v34  }
 0x5ef   : > { %2110 = vperm.xlu0 %2961, %v4528_v1  }
 0x5f0   : > { %2070 = vperm.xlu1 %2959, %v4524_v45  }
 0x5f3   : > { %2962 = vset.pattern.permute.xlu0 %v3077_v4 }
 0x5f4   : > { %2080 = vperm.xlu1 %2959, %v4528_v1   ;;  %2124 = vperm.xlu0 %2962, %v4516_v28  }
 0x5f8   : > { %2960 = vset.pattern.permute.xlu1 %v3076_v9  ;;  %2136 = vperm.xlu0 %2962, %v4532_v41  }
 0x5f9   : > { %2094 = vperm.xlu1 %2960, %v4516_v28  }
 0x5fc   : > { %2144 = vperm.xlu0 %2962, %v4537_v23  }
 0x5fd   : > { %2100 = vperm.xlu1 %2960, %v4524_v45  }
 0x600   : > { %2965 = vset.pattern.permute.xlu0 %v3078_v51 }
 0x601   : > { %2106 = vperm.xlu1 %2960, %v4532_v41   ;;  %2157 = vperm.xlu0 %2965, %v4520_v34  }
 0x605   : > { %2114 = vperm.xlu1 %2960, %v4537_v23   ;;  %2170 = vperm.xlu0 %2965, %v4528_v1  }
 0x609   : > { %2963 = vset.pattern.permute.xlu1 %v3077_v4  ;;  %2966 = vset.pattern.permute.xlu0 %v3079_v33 }
 0x60a   : > { %2127 = vperm.xlu1 %2963, %v4520_v34   ;;  %2184 = vperm.xlu0 %2966, %v4516_v28  }
 0x60e   : > { %2130 = vperm.xlu1 %2963, %v4524_v45   ;;  %2196 = vperm.xlu0 %2966, %v4532_v41  }
 0x612   : > { %2140 = vperm.xlu1 %2963, %v4528_v1   ;;  %2204 = vperm.xlu0 %2966, %v4537_v23  }
 0x616   : > { %2964 = vset.pattern.permute.xlu1 %v3078_v51  ;;  %2969 = vset.pattern.permute.xlu0 %v3080_v37 }
 0x617   : > { %2154 = vperm.xlu1 %2964, %v4516_v28   ;;  %2217 = vperm.xlu0 %2969, %v4520_v34  }
 0x61b   : > { %2160 = vperm.xlu1 %2964, %v4524_v45   ;;  %2230 = vperm.xlu0 %2969, %v4528_v1  }
 0x61f   : > { %2166 = vperm.xlu1 %2964, %v4532_v41   ;;  %2970 = vset.pattern.permute.xlu0 %v3081_v50 }
 0x620   : > { %2244 = vperm.xlu0 %2970, %v4516_v28  }
 0x623   : > { %2174 = vperm.xlu1 %2964, %v4537_v23  }
 0x624   : > { %2256 = vperm.xlu0 %2970, %v4532_v41  }
 0x627   : > { %2967 = vset.pattern.permute.xlu1 %v3079_v33  ;;  %v4915_v33 = vld [vmem:[#allocation5_spill] sm:$0xff] }
 0x628   : > { %2187 = vperm.xlu1 %2967, %v4520_v34   ;;  %2264 = vperm.xlu0 %2970, %v4537_v23  }
 0x629   : > { %v1961_v6 = vpop.permute.xlu0 %1960 }
 0x62a   : > { %1970 = vst.msk [vmem:[%s3998_s30] sm:$0xff] %vm1969_vm9, %v1961_v6 }
 0x62b   : > { %v1963_v62 = vpop.permute.xlu1 %1962 }
 0x62c   : > { %1971 = vst.msk [vmem:[%s3998_s30 + $0x8] sm:$0xff] %vm1969_vm9, %v1963_v62  ;;  %2190 = vperm.xlu1 %2967, %v4524_v45   ;;  %2973 = vset.pattern.permute.xlu0 %v3082_v2 }
 0x62d   : > { %v1965_v43 = vpop.permute.xlu0 %1964  ;;  %2277 = vperm.xlu0 %2973, %v4520_v34  }
 0x62e   : > { %1972 = vst.msk [vmem:[%s3998_s30 + $0x10] sm:$0xff] %vm1969_vm9, %v1965_v43 }
 0x630   : > { %2200 = vperm.xlu1 %2967, %v4528_v1  }
 0x631   : > { %2290 = vperm.xlu0 %2973, %v4528_v1  }
 0x634   : > { %2968 = vset.pattern.permute.xlu1 %v3080_v37 }
 0x635   : > { %2214 = vperm.xlu1 %2968, %v4516_v28   ;;  %2974 = vset.pattern.permute.xlu0 %v3083_v36 }
 0x636   : > { %2304 = vperm.xlu0 %2974, %v4516_v28  }
 0x639   : > { %2220 = vperm.xlu1 %2968, %v4524_v45  }
 0x63a   : > { %2316 = vperm.xlu0 %2974, %v4532_v41  }
 0x63c   : > { %v1975_v59 = vpop.permute.xlu1 %1974 }
 0x63d   : > { %2226 = vperm.xlu1 %2968, %v4532_v41   ;;  %vm1982_vm15 = vcmp.eq.s32.totalorder %v1975_v59, %v3515_v42 }
 0x63e   : > { %v1978_v18 = vpop.permute.xlu0 %1977  ;;  %2324 = vperm.xlu0 %2974, %v4537_v23  }
 0x63f   : > { %vm1983_vm10 = vcmp.eq.s32.totalorder %v1978_v18, %v3515_v42 }
 0x640   : > { %v4599_v54 = vpop.permute.xlu1 %1980 }
 0x641   : > { %2234 = vperm.xlu1 %2968, %v4537_v23   ;;  %vm1984_vm3 = vcmp.eq.s32.totalorder %v4599_v54, %v3515_v42 }
 0x642   : > { %v1991_v22 = vpop.permute.xlu0 %1990  ;;  %2977 = vset.pattern.permute.xlu0 %v3084_v31 }
 0x643   : > { %v1998_v52 = vsel %vm1983_vm10, %v1991_v22, 0.0  ;;  %2337 = vperm.xlu0 %2977, %v4520_v34  }
 0x644   : > { %v1987_v25 = vpop.permute.xlu1 %1986 }
 0x645   : > { %2971 = vset.pattern.permute.xlu1 %v3081_v50  ;;  %v1997_v21 = vsel %vm1982_vm15, %v1987_v25, 0.0 }
 0x646   : > { %2247 = vperm.xlu1 %2971, %v4520_v34  }
 0x647   : > { %v2005_v20 = vpop.permute.xlu0 %2004  ;;  %2346 = vperm.xlu0 %2977, %v4532_v41  }
 0x648   : > { %v4606_v3 = vpop.permute.xlu1 %1994  ;;  %vm2012_vm11 = vcmp.eq.s32.totalorder %v2005_v20, %v3515_v42 }
 0x649   : > { %v1999_v40 = vsel %vm1984_vm3, %v4606_v3, 0.0 }
 0x64a   : > { %2250 = vperm.xlu1 %2971, %v4524_v45  }
 0x64b   : > { %v2017_v57 = vpop.permute.xlu0 %2016  ;;  %2354 = vperm.xlu0 %2977, %v4537_v23  }
 0x64c   : > { %v2027_v61 = vsel %vm2012_vm11, %v2017_v57, 0.0 }
 0x64d   : > { %v2008_v5 = vpop.permute.xlu1 %2007  ;;  %v2030_v7 = vadd.f32 %v2027_v61, %v1997_v21  ;;  %v4917_v21 = vld [vmem:[#allocation3_spill] sm:$0xff] }
 0x64e   : > { %2260 = vperm.xlu1 %2971, %v4528_v1   ;;  %vm2013_vm12 = vcmp.eq.s32.totalorder %v2008_v5, %v3515_v42 }
 0x64f   : > { %v2025_v53 = vpop.permute.xlu0 %2024  ;;  %2979 = vset.pattern.permute.xlu0 %v3085_v46 }
 0x650   : > { %2367 = vperm.xlu0 %2979, %v4520_v34  }
 0x651   : > { %v2011_v17 = vpop.permute.xlu1 %2010 }
 0x652   : > { %2972 = vset.pattern.permute.xlu1 %v3082_v2  ;;  %vm2014_vm2 = vcmp.eq.s32.totalorder %v2011_v17, %v3515_v42  ;;  %v4916_v2 = vld [vmem:[#allocation2_spill] sm:$0xff] }
 0x653   : > { %2274 = vperm.xlu1 %2972, %v4516_v28   ;;  %v2029_v29 = vsel %vm2014_vm2, %v2025_v53, 0.0 }
 0x654   : > { %v2038_v8 = vpop.permute.xlu0 %2037  ;;  %2380 = vperm.xlu0 %2979, %v4528_v1   ;;  %v2032_v12 = vadd.f32 %v2029_v29, %v1999_v40 }
 0x655   : > { %v2021_v35 = vpop.permute.xlu1 %2020  ;;  %vm2043_vm13 = vcmp.eq.s32.totalorder %v2038_v8, %v3515_v42 }
 0x656   : > { %v2028_v27 = vsel %vm2013_vm12, %v2021_v35, 0.0 }
 0x657   : > { %v2031_v0 = vadd.f32 %v2028_v27, %v1998_v52  ;;  %2280 = vperm.xlu1 %2972, %v4524_v45  }
 0x658   : > { %v2051_v24 = vpop.permute.xlu0 %2050  ;;  %2980 = vset.pattern.permute.xlu0 %v3086_v63 }
 0x659   : > { %v2058_v58 = vsel %vm2043_vm13, %v2051_v24, 0.0  ;;  %2394 = vperm.xlu0 %2980, %v4516_v28  }
 0x65a   : > { %v2061_v38 = vadd.f32 %v2058_v58, %v2031_v0  ;;  %v2035_v15 = vpop.permute.xlu1 %2034 }
 0x65b   : > { %2286 = vperm.xlu1 %2972, %v4532_v41   ;;  %vm2042_vm1 = vcmp.eq.s32.totalorder %v2035_v15, %v3515_v42 }
 0x65d   : > { %v2065_v44 = vpop.permute.xlu0 %2064  ;;  %2400 = vperm.xlu0 %2980, %v4524_v45  }
 0x65e   : > { %v2041_v48 = vpop.permute.xlu1 %2040  ;;  %vm2072_vm14 = vcmp.eq.s32.totalorder %v2065_v44, %v3515_v42 }
 0x65f   : > { %2294 = vperm.xlu1 %2972, %v4537_v23   ;;  %vm2044_vm4 = vcmp.eq.s32.totalorder %v2041_v48, %v3515_v42 }
 0x661   : > { %v2077_v16 = vpop.permute.xlu0 %2076  ;;  %2410 = vperm.xlu0 %2980, %v4528_v1  }
 0x662   : > { %v2047_v39 = vpop.permute.xlu1 %2046  ;;  %v2087_v26 = vsel %vm2072_vm14, %v2077_v16, 0.0 }
 0x663   : > { %v2057_v60 = vsel %vm2042_vm1, %v2047_v39, 0.0  ;;  %2975 = vset.pattern.permute.xlu1 %v3083_v36 }
 0x664   : > { %v2060_v11 = vadd.f32 %v2057_v60, %v2030_v7  ;;  %2307 = vperm.xlu1 %2975, %v4520_v34  }
 0x665   : > { %v2085_v55 = vpop.permute.xlu0 %2084  ;;  %2982 = vset.pattern.permute.xlu0 %v3087_v47 }
 0x666   : > { %v2090_v49 = vadd.f32 %v2087_v26, %v2060_v11  ;;  %v2055_v14 = vpop.permute.xlu1 %2054  ;;  %2424 = vperm.xlu0 %2982, %v4516_v28  }
 0x667   : > { %v2059_v10 = vsel %vm2044_vm4, %v2055_v14, 0.0 }
 0x668   : > { %2310 = vperm.xlu1 %2975, %v4524_v45   ;;  %v2062_v9 = vadd.f32 %v2059_v10, %v2032_v12  ;;  %v4919_v10 = vld [vmem:[#allocation6_spill] sm:$0xff] }
 0x66a   : > { %v2098_v32 = vpop.permute.xlu0 %2097  ;;  %2436 = vperm.xlu0 %2982, %v4532_v41  }
 0x66b   : > { %v2068_v56 = vpop.permute.xlu1 %2067  ;;  %vm2103_vm5 = vcmp.eq.s32.totalorder %v2098_v32, %v3515_v42 }
 0x66c   : > { %2320 = vperm.xlu1 %2975, %v4528_v1   ;;  %vm2073_vm7 = vcmp.eq.s32.totalorder %v2068_v56, %v3515_v42 }
 0x66e   : > { %v2111_v13 = vpop.permute.xlu0 %2110  ;;  %2444 = vperm.xlu0 %2982, %v4537_v23  }
 0x66f   : > { %v2071_v19 = vpop.permute.xlu1 %2070  ;;  %v2118_v30 = vsel %vm2103_vm5, %v2111_v13, 0.0 }
 0x670   : > { %vm2074_vm6 = vcmp.eq.s32.totalorder %v2071_v19, %v3515_v42  ;;  %2976 = vset.pattern.permute.xlu1 %v3084_v31 }
 0x671   : > { %v2089_v4 = vsel %vm2074_vm6, %v2085_v55, 0.0  ;;  %2334 = vperm.xlu1 %2976, %v4516_v28  }
 0x672   : > { %v2092_v51 = vadd.f32 %v2089_v4, %v2062_v9  ;;  %2461 = vrot.lane.b32.xlu0 %v4915_v33, %s3088_s7 }
 0x673   : > { %v2081_v37 = vpop.permute.xlu1 %2080  ;;  %v2125_v50 = vpop.permute.xlu0 %2124 }
 0x674   : > { %v2088_v6 = vsel %vm2073_vm7, %v2081_v37, 0.0  ;;  %vm2132_vm8 = vcmp.eq.s32.totalorder %v2125_v50, %v3515_v42 }
 0x675   : > { %v2091_v62 = vadd.f32 %v2088_v6, %v2061_v38  ;;  %2455 = vrot.lane.b32.xlu1 %v4916_v2, %s3088_s7 }
 0x677   : > { %v2121_v43 = vadd.f32 %v2118_v30, %v2091_v62  ;;  %v2137_v36 = vpop.permute.xlu0 %2136 }
 0x678   : > { %v2095_v59 = vpop.permute.xlu1 %2094  ;;  %v2147_v18 = vsel %vm2132_vm8, %v2137_v36, 0.0 }
 0x679   : > { %2340 = vperm.xlu1 %2976, %v4524_v45   ;;  %vm2102_vm9 = vcmp.eq.s32.totalorder %v2095_v59, %v3515_v42 }
 0x67b   : > { %v2145_v54 = vpop.permute.xlu0 %2144 }
 0x67c   : > { %v2101_v22 = vpop.permute.xlu1 %2100 }
 0x67d   : > { %2350 = vperm.xlu1 %2976, %v4528_v1   ;;  %vm2104_vm11 = vcmp.eq.s32.totalorder %v2101_v22, %v3515_v42 }
 0x680   : > { %v2107_v31 = vpop.permute.xlu1 %2106  ;;  %v2158_v52 = vpop.permute.xlu0 %2157 }
 0x681   : > { %v2117_v25 = vsel %vm2102_vm9, %v2107_v31, 0.0  ;;  %2978 = vset.pattern.permute.xlu1 %v3085_v46  ;;  %vm2163_vm10 = vcmp.eq.s32.totalorder %v2158_v52, %v3515_v42 }
 0x682   : > { %v2120_v20 = vadd.f32 %v2117_v25, %v2090_v49  ;;  %2364 = vperm.xlu1 %2978, %v4516_v28  }
 0x684   : > { %v2150_v3 = vadd.f32 %v2147_v18, %v2120_v20  ;;  %v2115_v57 = vpop.permute.xlu1 %2114  ;;  %v2171_v61 = vpop.permute.xlu0 %2170 }
 0x685   : > { %v2119_v5 = vsel %vm2104_vm11, %v2115_v57, 0.0  ;;  %v2178_v53 = vsel %vm2163_vm10, %v2171_v61, 0.0 }
 0x686   : > { %v2122_v17 = vadd.f32 %v2119_v5, %v2092_v51  ;;  %2370 = vperm.xlu1 %2978, %v4524_v45  }
 0x689   : > { %v2128_v8 = vpop.permute.xlu1 %2127  ;;  %v2185_v35 = vpop.permute.xlu0 %2184 }
 0x68a   : > { %2376 = vperm.xlu1 %2978, %v4532_v41   ;;  %vm2192_vm12 = vcmp.eq.s32.totalorder %v2185_v35, %v3515_v42  ;;  %vm2133_vm14 = vcmp.eq.s32.totalorder %v2128_v8, %v3515_v42 }
 0x68d   : > { %v2131_v46 = vpop.permute.xlu1 %2130  ;;  %v2197_v28 = vpop.permute.xlu0 %2196 }
 0x68e   : > { %vm2134_vm13 = vcmp.eq.s32.totalorder %v2131_v46, %v3515_v42  ;;  %2384 = vperm.xlu1 %2978, %v4537_v23   ;;  %v2207_v27 = vsel %vm2192_vm12, %v2197_v28, 0.0 }
 0x68f   : > { %v2149_v0 = vsel %vm2134_vm13, %v2145_v54, 0.0 }
 0x690   : > { %v2152_v24 = vadd.f32 %v2149_v0, %v2122_v17 }
 0x691   : > { %v2141_v58 = vpop.permute.xlu1 %2140  ;;  %v2205_v14 = vpop.permute.xlu0 %2204 }
 0x692   : > { %v2148_v38 = vsel %vm2133_vm14, %v2141_v58, 0.0  ;;  %2981 = vset.pattern.permute.xlu1 %v3086_v63 }
 0x693   : > { %v2151_v15 = vadd.f32 %v2148_v38, %v2121_v43  ;;  %2397 = vperm.xlu1 %2981, %v4520_v34  }
 0x695   : > { %v2181_v44 = vadd.f32 %v2178_v53, %v2151_v15 }
 0x696   : > { %v2155_v48 = vpop.permute.xlu1 %2154 }
 0x697   : > { %2457 = vrot.lane.b32.xlu1 %v4917_v21, %s3088_s7  ;;  %vm2162_vm15 = vcmp.eq.s32.totalorder %v2155_v48, %v3515_v42 }
 0x69a   : > { %v2161_v16 = vpop.permute.xlu1 %2160 }
 0x69b   : > { %2406 = vperm.xlu1 %2981, %v4532_v41   ;;  %vm2164_vm1 = vcmp.eq.s32.totalorder %v2161_v16, %v3515_v42 }
 0x69e   : > { %v2167_v7 = vpop.permute.xlu1 %2166 }
 0x69f   : > { %v2177_v39 = vsel %vm2162_vm15, %v2167_v7, 0.0  ;;  %2414 = vperm.xlu1 %2981, %v4537_v23  }
 0x6a0   : > { %v2180_v26 = vadd.f32 %v2177_v39, %v2150_v3 }
 0x6a2   : > { %v2210_v63 = vadd.f32 %v2207_v27, %v2180_v26  ;;  %v2175_v60 = vpop.permute.xlu1 %2174 }
 0x6a3   : > { %v2179_v11 = vsel %vm2164_vm1, %v2175_v60, 0.0  ;;  %2983 = vset.pattern.permute.xlu1 %v3087_v47  ;;  %v4918_v47 = vld [vmem:[#allocation4_spill] sm:$0xff] }
 0x6a4   : > { %v2182_v55 = vadd.f32 %v2179_v11, %v2152_v24  ;;  %2427 = vperm.xlu1 %2983, %v4520_v34  }
 0x6a7   : > { %v2188_v49 = vpop.permute.xlu1 %2187 }
 0x6a8   : > { %2430 = vperm.xlu1 %2983, %v4524_v45   ;;  %vm2193_vm3 = vcmp.eq.s32.totalorder %v2188_v49, %v3515_v42  ;;  %v2218_v45 = vpop.permute.xlu0 %2217 }
 0x6a9   : > { %vm2223_vm6 = vcmp.eq.s32.totalorder %v2218_v45, %v3515_v42 }
 0x6ab   : > { %v2191_v41 = vpop.permute.xlu1 %2190 }
 0x6ac   : > { %vm2194_vm2 = vcmp.eq.s32.totalorder %v2191_v41, %v3515_v42  ;;  %2440 = vperm.xlu1 %2983, %v4528_v1   ;;  %v2231_v13 = vpop.permute.xlu0 %2230 }
 0x6ad   : > { %v2209_v23 = vsel %vm2194_vm2, %v2205_v14, 0.0  ;;  %v2238_v62 = vsel %vm2223_vm6, %v2231_v13, 0.0 }
 0x6ae   : > { %v2212_v32 = vadd.f32 %v2209_v23, %v2182_v55 }
 0x6af   : > { %v2201_v29 = vpop.permute.xlu1 %2200 }
 0x6b0   : > { %v2208_v56 = vsel %vm2193_vm3, %v2201_v29, 0.0  ;;  %2459 = vrot.lane.b32.xlu1 %v4918_v47, %s3088_s7  ;;  %v2245_v9 = vpop.permute.xlu0 %2244 }
 0x6b1   : > { %v2211_v40 = vadd.f32 %v2208_v56, %v2181_v44  ;;  %vm2252_vm9 = vcmp.eq.s32.totalorder %v2245_v9, %v3515_v42 }
 0x6b3   : > { %v2241_v59 = vadd.f32 %v2238_v62, %v2211_v40 }
 0x6b4   : > { %v2215_v34 = vpop.permute.xlu1 %2214  ;;  %2463 = vrot.lane.b32.xlu1 %v4919_v10, %s3088_s7  ;;  %v2257_v50 = vpop.permute.xlu0 %2256 }
 0x6b5   : > { %vm2222_vm4 = vcmp.eq.s32.totalorder %v2215_v34, %v3515_v42  ;;  %v2267_v20 = vsel %vm2252_vm9, %v2257_v50, 0.0 }
 0x6b8   : > { %v2221_v12 = vpop.permute.xlu1 %2220  ;;  %v2265_v2 = vpop.permute.xlu0 %2264 }
 0x6b9   : > { %vm2224_vm5 = vcmp.eq.s32.totalorder %v2221_v12, %v3515_v42 }
 0x6bc   : > { %v2227_v1 = vpop.permute.xlu1 %2226  ;;  %v2278_v31 = vpop.permute.xlu0 %2277 }
 0x6bd   : > { %v2237_v19 = vsel %vm2222_vm4, %v2227_v1, 0.0  ;;  %vm2283_vm13 = vcmp.eq.s32.totalorder %v2278_v31, %v3515_v42 }
 0x6be   : > { %v2240_v30 = vadd.f32 %v2237_v19, %v2210_v63 }
 0x6c0   : > { %v2235_v4 = vpop.permute.xlu1 %2234  ;;  %v2291_v3 = vpop.permute.xlu0 %2290  ;;  %v2270_v57 = vadd.f32 %v2267_v20, %v2240_v30 }
 0x6c1   : > { %v2239_v51 = vsel %vm2224_vm5, %v2235_v4, 0.0  ;;  %v2298_v40 = vsel %vm2283_vm13, %v2291_v3, 0.0  ;;  %vm2536_vm13 = vcmask 261312  }
 0x6c2   : > { %v2242_v33 = vadd.f32 %v2239_v51, %v2212_v32 }
 0x6c4   : > { %v2305_v53 = vpop.permute.xlu0 %2304 }
 0x6c5   : > { %v2248_v37 = vpop.permute.xlu1 %2247  ;;  %vm2312_vm14 = vcmp.eq.s32.totalorder %v2305_v53, %v3515_v42 }
 0x6c6   : > { %vm2253_vm8 = vcmp.eq.s32.totalorder %v2248_v37, %v3515_v42 }
 0x6c8   : > { %v2317_v28 = vpop.permute.xlu0 %2316 }
 0x6c9   : > { %v2251_v6 = vpop.permute.xlu1 %2250  ;;  %v2327_v10 = vsel %vm2312_vm14, %v2317_v28, 0.0 }
 0x6ca   : > { %vm2254_vm7 = vcmp.eq.s32.totalorder %v2251_v6, %v3515_v42 }
 0x6cb   : > { %v2269_v43 = vsel %vm2254_vm7, %v2265_v2, 0.0 }
 0x6cc   : > { %v2272_v36 = vadd.f32 %v2269_v43, %v2242_v33  ;;  %v2325_v0 = vpop.permute.xlu0 %2324 }
 0x6cd   : > { %v2261_v18 = vpop.permute.xlu1 %2260 }
 0x6ce   : > { %v2268_v54 = vsel %vm2253_vm8, %v2261_v18, 0.0 }
 0x6cf   : > { %v2271_v22 = vadd.f32 %v2268_v54, %v2241_v59 }
 0x6d0   : > { %v2338_v48 = vpop.permute.xlu0 %2337 }
 0x6d1   : > { %vm2343_vm1 = vcmp.eq.s32.totalorder %v2338_v48, %v3515_v42  ;;  %v2301_v12 = vadd.f32 %v2298_v40, %v2271_v22 }
 0x6d2   : > { %v2275_v52 = vpop.permute.xlu1 %2274 }
 0x6d3   : > { %vm2282_vm10 = vcmp.eq.s32.totalorder %v2275_v52, %v3515_v42 }
 0x6d4   : > { %v2347_v7 = vpop.permute.xlu0 %2346 }
 0x6d6   : > { %v2281_v25 = vpop.permute.xlu1 %2280 }
 0x6d7   : > { %vm2284_vm11 = vcmp.eq.s32.totalorder %v2281_v25, %v3515_v42 }
 0x6d8   : > { %v2355_v26 = vpop.permute.xlu0 %2354 }
 0x6da   : > { %v2287_v61 = vpop.permute.xlu1 %2286 }
 0x6db   : > { %v2297_v5 = vsel %vm2282_vm10, %v2287_v61, 0.0 }
 0x6dc   : > { %v2300_v17 = vadd.f32 %v2297_v5, %v2270_v57  ;;  %v2368_v60 = vpop.permute.xlu0 %2367 }
 0x6dd   : > { %vm2373_vm3 = vcmp.eq.s32.totalorder %v2368_v60, %v3515_v42 }
 0x6de   : > { %v2295_v8 = vpop.permute.xlu1 %2294  ;;  %v2330_v30 = vadd.f32 %v2327_v10, %v2300_v17 }
 0x6df   : > { %v2299_v35 = vsel %vm2284_vm11, %v2295_v8, 0.0 }
 0x6e0   : > { %v2302_v46 = vadd.f32 %v2299_v35, %v2272_v36  ;;  %v2381_v49 = vpop.permute.xlu0 %2380 }
 0x6e1   : > { %v2388_v50 = vsel %vm2373_vm3, %v2381_v49, 0.0 }
 0x6e3   : > { %v2308_v27 = vpop.permute.xlu1 %2307 }
 0x6e4   : > { %v2395_v14 = vpop.permute.xlu0 %2394  ;;  %vm2313_vm15 = vcmp.eq.s32.totalorder %v2308_v27, %v3515_v42 }
 0x6e5   : > { %vm2402_vm5 = vcmp.eq.s32.totalorder %v2395_v14, %v3515_v42 }
 0x6e7   : > { %v2311_v24 = vpop.permute.xlu1 %2310 }
 0x6e8   : > { %vm2314_vm12 = vcmp.eq.s32.totalorder %v2311_v24, %v3515_v42  ;;  %v2401_v32 = vpop.permute.xlu0 %2400 }
 0x6e9   : > { %v2329_v58 = vsel %vm2314_vm12, %v2325_v0, 0.0  ;;  %vm2404_vm11 = vcmp.eq.s32.totalorder %v2401_v32, %v3515_v42 }
 0x6ea   : > { %v4691_v38 = vadd.f32 %v2329_v58, %v2302_v46 }
 0x6eb   : > { %v2321_v15 = vpop.permute.xlu1 %2320 }
 0x6ec   : > { %v2411_v47 = vpop.permute.xlu0 %2410  ;;  %v2328_v45 = vsel %vm2313_vm15, %v2321_v15, 0.0 }
 0x6ed   : > { %v2331_v9 = vadd.f32 %v2328_v45, %v2301_v12 }
 0x6f0   : > { %v2335_v44 = vpop.permute.xlu1 %2334  ;;  %v2425_v13 = vpop.permute.xlu0 %2424 }
 0x6f1   : > { %vm2342_vm2 = vcmp.eq.s32.totalorder %v2335_v44, %v3515_v42  ;;  %vm2432_vm7 = vcmp.eq.s32.totalorder %v2425_v13, %v3515_v42 }
 0x6f2   : > { %v2357_v1 = vsel %vm2342_vm2, %v2347_v7, 0.0 }
 0x6f3   : > { %v2360_v33 = vadd.f32 %v2357_v1, %v2330_v30 }
 0x6f4   : > { %v2456_v21 = vpop.permute.xlu1 %2455  ;;  %v2437_v2 = vpop.permute.xlu0 %2436 }
 0x6f5   : > { %2746 = vmatprep.subr.bf16.mxu1 %v2456_v21  ;;  %v2447_v54 = vsel %vm2432_vm7, %v2437_v2, 0.0 }
 0x6f6   : > { %2747 = vmatpush3.bf16.msra.mxu1 %v2456_v21 }
 0x6f8   : > { %v2341_v16 = vpop.permute.xlu1 %2340  ;;  %v2445_v31 = vpop.permute.xlu0 %2444 }
 0x6f9   : > { %vm2344_vm8 = vcmp.eq.s32.totalorder %v2341_v16, %v3515_v42 }
 0x6fa   : > { %v2359_v20 = vsel %vm2344_vm8, %v2355_v26, 0.0 }
 0x6fb   : > { %v2362_v8 = vadd.f32 %v2359_v20, %v4691_v38 }
 0x6fc   : > { %v2351_v39 = vpop.permute.xlu1 %2350  ;;  %v2462_v17 = vpop.permute.xlu0 %2461 }
 0x6fd   : > { %v2358_v19 = vsel %vm2343_vm1, %v2351_v39, 0.0 }
 0x6fe   : > { %v2361_v37 = vadd.f32 %v2358_v19, %v2331_v9 }
 0x700   : > { %v2391_v59 = vadd.f32 %v2388_v50, %v2361_v37 }
 0x701   : > { %v2365_v63 = vpop.permute.xlu1 %2364 }
 0x702   : > { %vm2372_vm4 = vcmp.eq.s32.totalorder %v2365_v63, %v3515_v42 }
 0x705   : > { %v2371_v11 = vpop.permute.xlu1 %2370 }
 0x706   : > { %vm2374_vm10 = vcmp.eq.s32.totalorder %v2371_v11, %v3515_v42 }
 0x709   : > { %v2377_v55 = vpop.permute.xlu1 %2376 }
 0x70a   : > { %v2387_v51 = vsel %vm2372_vm4, %v2377_v55, 0.0 }
 0x70b   : > { %v2390_v62 = vadd.f32 %v2387_v51, %v2360_v33 }
 0x70d   : > { %v2385_v41 = vpop.permute.xlu1 %2384 }
 0x70e   : > { %v2389_v61 = vsel %vm2374_vm10, %v2385_v41, 0.0 }
 0x70f   : > { %v2392_v46 = vadd.f32 %v2389_v61, %v2362_v8 }
 0x712   : > { %v2398_v23 = vpop.permute.xlu1 %2397 }
 0x713   : > { %vm2403_vm6 = vcmp.eq.s32.totalorder %v2398_v23, %v3515_v42 }
 0x714   : > { %v2418_v36 = vsel %vm2403_vm6, %v2411_v47, 0.0 }
 0x715   : > { %v2421_v22 = vadd.f32 %v2418_v36, %v2391_v59 }
 0x716   : > { %v2458_v29 = vpop.permute.xlu1 %2457 }
 0x717   : > { %2748 = vmatprep.subr.bf16.mxu1 %v2458_v29 }
 0x718   : > { %2749 = vmatpush3.bf16.msra.mxu1 %v2458_v29 }
 0x71a   : > { %v2407_v56 = vpop.permute.xlu1 %2406 }
 0x71b   : > { %v2417_v6 = vsel %vm2402_vm5, %v2407_v56, 0.0 }
 0x71c   : > { %v2420_v18 = vadd.f32 %v2417_v6, %v2390_v62 }
 0x71e   : > { %v2415_v34 = vpop.permute.xlu1 %2414  ;;  %v2450_v3 = vadd.f32 %v2447_v54, %v2420_v18 }
 0x71f   : > { %v2419_v35 = vsel %vm2404_vm11, %v2415_v34, 0.0 }
 0x720   : > { %v2422_v0 = vadd.f32 %v2419_v35, %v2392_v46 }
 0x723   : > { %v2428_v4 = vpop.permute.xlu1 %2427 }
 0x724   : > { %vm2433_vm9 = vcmp.eq.s32.totalorder %v2428_v4, %v3515_v42 }
 0x727   : > { %v2431_v43 = vpop.permute.xlu1 %2430 }
 0x728   : > { %vm2434_vm12 = vcmp.eq.s32.totalorder %v2431_v43, %v3515_v42 }
 0x729   : > { %v2449_v28 = vsel %vm2434_vm12, %v2445_v31, 0.0 }
 0x72a   : > { %v2452_v24 = vadd.f32 %v2449_v28, %v2422_v0 }
 0x72b   : > { %v2441_v52 = vpop.permute.xlu1 %2440 }
 0x72c   : > { %v2448_v25 = vsel %vm2433_vm9, %v2441_v52, 0.0  ;;  %v2454_v58 = vpack.c.bf16 %v2452_v24, %v2452_v24 }
 0x72d   : > { %v2451_v57 = vadd.f32 %v2448_v25, %v2421_v22 }
 0x72f   : > { %v2453_v5 = vpack.c.bf16 %v2451_v57, %v2450_v3  ;;  %v2460_v53 = vpop.permute.xlu1 %2459 }
 0x730   : > { %2750 = vmatprep.subr.bf16.mxu1 %v2460_v53 }
 0x731   : > { %2751 = vmatpush3.bf16.msra.mxu1 %v2460_v53  ;;  %2756 = vmatprep.mubr.msk.bf16.mxu1 %vm775_vm0, %v2453_v5 }
 0x732   : > { %2752 = vmatprep.subr.bf16.mxu1 %v2462_v17 }
 0x733   : > { %v2464_v27 = vpop.permute.xlu1 %2463 }
 0x735   : > { %2753 = vmatpush3.bf16.msra.mxu1 %v2462_v17 }
 0x736   : > { %2754 = vmatprep.subr.bf16.mxu1 %v2464_v27 }
 0x739   : > { %2755 = vmatpush3.bf16.msra.mxu1 %v2464_v27 }
 0x73c   : > { %2757 = vmatmul.mubr.msk.bf16.vlgmr.msra.gmra.mrb[4].mxu1 %vm775_vm0, %v2454_v58 }
 0x80f   : > { %v2758_v42 = vpop.f32.mrb[4].mxu1 }
 0x810   : > { %v2510_v38 = vpop.f32.mrb[5].mxu1 }
 0x811   : > { %2527 = vrot.lane.b32.xlu0 %v2510_v38, %s3089_s8  ;;  %v2759_v15 = vpop.f32.mrb[6].mxu1 }
 0x812   : > { %v2513_v44 = vpop.f32.mrb[7].mxu1 }
 0x813   : > { %2529 = vrot.lane.b32.xlu1 %v2513_v44, %s3089_s8 }
 0x815   : > { %2531 = vrot.lane.b32.xlu0 %v2758_v42, %s3089_s8 }
 0x883   : > { %v2528_v48 = vpop.permute.xlu0 %2527 }
 0x884   : > { %2537 = vst.msk [vmem:[%s3998_s30] sm:$0xff] %vm2536_vm13, %v2528_v48 }
 0x885   : > { %v2530_v21 = vpop.permute.xlu1 %2529 }
 0x886   : > { %2538 = vst.msk [vmem:[%s3998_s30 + $0x8] sm:$0xff] %vm2536_vm13, %v2530_v21 }
 0x887   : > { %v2532_v16 = vpop.permute.xlu0 %2531 }
 0x888   : > { %2539 = vst.msk [vmem:[%s3998_s30 + $0x10] sm:$0xff] %vm2536_vm13, %v2532_v16 }
 0x889 PF: > { %s13_s14 = sadd.s32 1, %s3018_s14   ;;  %s4920_s12 = smov %s3014_s13 }
 0x88a   : > { %p10_p5 = scmp.ge.s32.totalorder %s13_s14, 4   ;;  %s4921_s13 = smov %s4923_s15 }
 0x88c   :  { %12 = sbr.rel (!%p10_p5) target bundleno = 2 (0x2), region = 68 }

</bundles_post_ra>
